<compile_context>
chip_gen: v6e
topology: v6e:2x2x1
jax: 0.10.0
libtpu: 0.0.40
codegen_flags: <defaults>
</compile_context>

<pallas_src>
import math

import jax
import jax.numpy as jnp
import numpy as np
from jax.experimental import pallas as pl
from jax.experimental.pallas import tpu as pltpu

# ----------------------------- hyperparameters ------------------------------
B, L, D = 2, 8, 32            # batch, seq_len, d_model (configs.dimension)
N_LAYERS = 2                  # configs.vlayers
H = 4                         # configs.vheads
DH = D // H                   # per-head dim
R = B * L                     # rows after folding batch into the sublane axis
FILTERS = (1, 3, 5)           # HAR_CNN filter sizes
NBRANCH = len(FILTERS)
MAXPAD = (max(FILTERS) - 1) // 2
NSHIFT = 2 * MAXPAD + 1       # time shifts -2..+2
EPS = 1e-6                    # custom LayerNorm eps
BN_EPS = 1e-5                 # BatchNorm1d eps

HI = jax.lax.Precision.HIGHEST   # true-f32 MXU contractions (kernel + reference)


# --------------------------------- kernel -----------------------------------
def har_kernel(x_ref, wqkv_ref, wo_ref, wconv_ref, vec_ref, out_ref):
    scale = 1.0 / math.sqrt(DH)

    def layer_norm(h, a, b):
        # PyTorch custom LayerNorm: unbiased std, divide by (std + eps).
        mean = jnp.mean(h, axis=-1, keepdims=True)
        var = jnp.sum((h - mean) ** 2, axis=-1, keepdims=True) * (1.0 / (D - 1))
        return a * (h - mean) / (jnp.sqrt(var) + EPS) + b

    vec_all = vec_ref[...]                     # [N_LAYERS, 8, 3D] packed vectors
    xb = x_ref[...]                            # [R, D] folded activations
    zpad = jnp.zeros((MAXPAD, D), jnp.float32)

    for l in range(N_LAYERS):
        v = vec_all[l]                         # [8, 3D]
        b_qkv = v[0:1, :]                      # [1, 3D]  (bq | bk | bv)
        cscale = v[1:2, :]                     # [1, 3D]  folded BN scale
        cshift = v[2:3, :]                     # [1, 3D]  folded conv bias + BN shift
        ln1_a = v[3:4, 0:D]
        ln1_b = v[3:4, D:2 * D]
        b_o = v[3:4, 2 * D:3 * D]
        ln2_a = v[4:5, 0:D]
        ln2_b = v[4:5, D:2 * D]

        # -------- sublayer 0: pre-norm full multi-head attention + residual --------
        xn = layer_norm(xb, ln1_a, ln1_b)                                  # [R, D]
        qkv = jnp.dot(xn, wqkv_ref[l], preferred_element_type=jnp.float32,
                      precision=HI) + b_qkv                                # [R, 3D]

        batch_heads = []
        for bi in range(B):                    # score/softmax/PV is per (batch, head)
            r0 = bi * L
            heads = []
            for h in range(H):
                c = h * DH
                qh = qkv[r0:r0 + L, c:c + DH]                               # [L, DH]
                kh = qkv[r0:r0 + L, D + c:D + c + DH]
                vh = qkv[r0:r0 + L, 2 * D + c:2 * D + c + DH]
                s = jnp.einsum('ld,md->lm', qh, kh,
                               preferred_element_type=jnp.float32,
                               precision=HI) * scale                       # [L, L]
                s = s - jnp.max(s, axis=-1, keepdims=True)
                e = jnp.exp(s)
                p = e / jnp.sum(e, axis=-1, keepdims=True)                  # exact
                heads.append(jnp.dot(p, vh,
                                     preferred_element_type=jnp.float32,
                                     precision=HI))                         # [L, DH]
            batch_heads.append(jnp.concatenate(heads, axis=1))              # [L, D]
        attn = jnp.concatenate(batch_heads, axis=0)                         # [R, D]
        attn = jnp.dot(attn, wo_ref[l], preferred_element_type=jnp.float32,
                       precision=HI) + b_o                                  # fused out-proj
        xb = xb + attn

        # -------- sublayer 1: pre-norm HAR_CNN feed-forward + residual --------
        xn2 = layer_norm(xb, ln2_a, ln2_b)                                  # [R, D]
        zrows = []
        for bi in range(B):                    # zero-padded time shifts per batch
            xbl = xn2[bi * L:(bi + 1) * L, :]                               # [L, D]
            padded = jnp.concatenate([zpad, xbl, zpad], axis=0)             # [L+4, D]
            shifted = [padded[MAXPAD + s:MAXPAD + s + L, :]
                       for s in range(-MAXPAD, MAXPAD + 1)]
            zrows.append(jnp.concatenate(shifted, axis=1))                  # [L, 5D]
        z = jnp.concatenate(zrows, axis=0)                                  # [R, 5D]
        conv = jnp.dot(z, wconv_ref[l], preferred_element_type=jnp.float32,
                       precision=HI)                                        # [R, 3D]
        conv = jnp.maximum(conv * cscale + cshift, 0.0)                     # bias+BN+ReLU
        ff = (conv[:, 0:D] + conv[:, D:2 * D]
              + conv[:, 2 * D:3 * D]) * (1.0 / NBRANCH)                     # branch mean
        xb = xb + ff

    # final encoder LayerNorm
    lnf_a = vec_all[0, 5:6, 0:D]
    lnf_b = vec_all[0, 5:6, D:2 * D]
    out_ref[...] = layer_norm(xb, lnf_a, lnf_b)


# --------------------------------- wrapper ----------------------------------
@jax.jit
def har_transformer_forward(x, packed):
    """x: [B, L, D] float32; packed = (wqkv, wo, wconv, vec) slabs."""
    wqkv, wo, wconv, vec = packed
    xf = x.reshape(R, D)          # fold batch into rows (no positional encoding)
    out = pl.pallas_call(
        har_kernel,
        out_shape=jax.ShapeDtypeStruct((R, D), jnp.float32),
        in_specs=[pl.BlockSpec(memory_space=pltpu.MemorySpace.VMEM)] * 5,
        out_specs=pl.BlockSpec(memory_space=pltpu.MemorySpace.VMEM),
    )(xf, wqkv, wo, wconv, vec)
    return out.reshape(B, L, D)


# ----------------------- deterministic parameter init -----------------------
def init_params(key):
    keys = jax.random.split(key, 64)
    it = iter(keys)

    def nrm(shape, s=0.1):
        return jax.random.normal(next(it), shape, jnp.float32) * s

    layers = []
    for _ in range(N_LAYERS):
        layers.append(dict(
            ln1_a=jnp.ones((D,), jnp.float32), ln1_b=jnp.zeros((D,), jnp.float32),
            wq=nrm((D, D)), bq=nrm((D,), 0.02),
            wk=nrm((D, D)), bk=nrm((D,), 0.02),
            wv=nrm((D, D)), bv=nrm((D,), 0.02),
            wo=nrm((D, D)), bo=nrm((D,), 0.02),
            ln2_a=jnp.ones((D,), jnp.float32), ln2_b=jnp.zeros((D,), jnp.float32),
            wc=[nrm((D, D, k)) for k in FILTERS],   # conv weight [out, in, k]
            bc=[nrm((D,), 0.02) for _ in FILTERS],
            bn_gamma=jnp.ones((D,), jnp.float32) + nrm((D,), 0.05),
            bn_beta=nrm((D,), 0.05),
            bn_rm=nrm((D,), 0.05),
            bn_rv=jnp.ones((D,), jnp.float32) + jnp.abs(nrm((D,), 0.05)),
        ))
    return dict(layers=layers,
                lnf_a=jnp.ones((D,), jnp.float32),
                lnf_b=jnp.zeros((D,), jnp.float32))


# --------------------- host-side packing into 4 weight slabs ----------------
def pack_params(params):
    wqkv = np.zeros((N_LAYERS, D, 3 * D), np.float32)
    wo = np.zeros((N_LAYERS, D, D), np.float32)
    wconv = np.zeros((N_LAYERS, NSHIFT * D, NBRANCH * D), np.float32)
    vec = np.zeros((N_LAYERS, 8, 3 * D), np.float32)

    for l, p in enumerate(params["layers"]):
        wqkv[l] = np.concatenate([np.asarray(p["wq"]), np.asarray(p["wk"]),
                                  np.asarray(p["wv"])], axis=1)
        wo[l] = np.asarray(p["wo"])

        g = np.asarray(p["bn_gamma"]) / np.sqrt(np.asarray(p["bn_rv"]) + BN_EPS)
        beta = np.asarray(p["bn_beta"])
        rm = np.asarray(p["bn_rm"])
        for j, k in enumerate(FILTERS):
            pad = (k - 1) // 2
            w = np.asarray(p["wc"][j])                     # [out, in, k]
            for s in range(-MAXPAD, MAXPAD + 1):
                dt = s + pad
                if 0 <= dt < k:
                    wconv[l, (s + MAXPAD) * D:(s + MAXPAD + 1) * D,
                          j * D:(j + 1) * D] = w[:, :, dt].T
            vec[l, 1, j * D:(j + 1) * D] = g
            vec[l, 2, j * D:(j + 1) * D] = (np.asarray(p["bc"][j]) - rm) * g + beta

        vec[l, 0, :] = np.concatenate([np.asarray(p["bq"]), np.asarray(p["bk"]),
                                       np.asarray(p["bv"])])
        vec[l, 3, 0:D] = np.asarray(p["ln1_a"])
        vec[l, 3, D:2 * D] = np.asarray(p["ln1_b"])
        vec[l, 3, 2 * D:3 * D] = np.asarray(p["bo"])
        vec[l, 4, 0:D] = np.asarray(p["ln2_a"])
        vec[l, 4, D:2 * D] = np.asarray(p["ln2_b"])

    vec[0, 5, 0:D] = np.asarray(params["lnf_a"])
    vec[0, 5, D:2 * D] = np.asarray(params["lnf_b"])
    return (jnp.asarray(wqkv), jnp.asarray(wo),
            jnp.asarray(wconv), jnp.asarray(vec))


# ----------------------------- pure-JAX reference ----------------------------
def _ref_layernorm(h, a, b):
    mean = jnp.mean(h, axis=-1, keepdims=True)
    var = jnp.sum((h - mean) ** 2, axis=-1, keepdims=True) / (D - 1)
    return a * (h - mean) / (jnp.sqrt(var) + EPS) + b


def _ref_conv1d_same(x_bdl, w, bias):
    # x: [B, D, L], w: [out, in, k] (PyTorch cross-correlation), bias: [out]
    k = w.shape[-1]
    pad = (k - 1) // 2
    xp = jnp.pad(x_bdl, ((0, 0), (0, 0), (pad, pad)))
    y = jnp.zeros_like(x_bdl)
    for dt in range(k):
        y = y + jnp.einsum('bil,oi->bol', xp[:, :, dt:dt + L], w[:, :, dt],
                           precision=HI)
    return y + bias[None, :, None]


def reference_forward(x, params):
    xb = x
    for p in params["layers"]:
        # attention sublayer
        xn = _ref_layernorm(xb, p["ln1_a"], p["ln1_b"])
        q = (jnp.einsum('bld,de->ble', xn, p["wq"], precision=HI)
             + p["bq"]).reshape(B, L, H, DH)
        k = (jnp.einsum('bld,de->ble', xn, p["wk"], precision=HI)
             + p["bk"]).reshape(B, L, H, DH)
        v = (jnp.einsum('bld,de->ble', xn, p["wv"], precision=HI)
             + p["bv"]).reshape(B, L, H, DH)
        s = jnp.einsum('blhd,bmhd->bhlm', q, k, precision=HI) / math.sqrt(DH)
        a = jax.nn.softmax(s, axis=-1)
        o = jnp.einsum('bhlm,bmhd->blhd', a, v, precision=HI).reshape(B, L, D)
        xb = xb + jnp.einsum('bld,de->ble', o, p["wo"], precision=HI) + p["bo"]

        # HAR_CNN feed-forward sublayer (eval: dropout = identity, BN running stats)
        xn2 = _ref_layernorm(xb, p["ln2_a"], p["ln2_b"])
        xt = jnp.transpose(xn2, (0, 2, 1))                   # [B, D, L]
        g = p["bn_gamma"] / jnp.sqrt(p["bn_rv"] + BN_EPS)
        acc = jnp.zeros_like(xt)
        for j in range(NBRANCH):
            y = _ref_conv1d_same(xt, p["wc"][j], p["bc"][j])
            y = (y - p["bn_rm"][None, :, None]) * g[None, :, None] \
                + p["bn_beta"][None, :, None]
            acc = acc + jnp.maximum(y, 0.0)
        xb = xb + jnp.transpose(acc / float(NBRANCH), (0, 2, 1))
    return _ref_layernorm(xb, params["lnf_a"], params["lnf_b"])


# ----------------------------------- main ------------------------------------
if __name__ == "__main__":
    key = jax.random.PRNGKey(0)
    kx, kp = jax.random.split(key)
    x = jax.random.normal(kx, (B, L, D), jnp.float32)
    params = init_params(kp)
    packed = pack_params(params)

    out = har_transformer_forward(x, packed)
    out = jax.block_until_ready(out)
    assert out.shape == (B, L, D)

    ref = reference_forward(x, params)
    np.testing.assert_allclose(np.asarray(out), np.asarray(ref),
                               rtol=2e-3, atol=2e-3)
    print("KERNEL_OK")
</pallas_src>

<mosaic_0001>
module attributes {stable_mosaic.version = 11 : i64} {
  func.func @har_kernel(%arg0: memref<16x32xf32, #tpu.memory_space<vmem>>, %arg1: memref<2x32x96xf32, #tpu.memory_space<vmem>>, %arg2: memref<2x32x32xf32, #tpu.memory_space<vmem>>, %arg3: memref<2x160x96xf32, #tpu.memory_space<vmem>>, %arg4: memref<2x8x96xf32, #tpu.memory_space<vmem>>, %arg5: memref<16x32xf32, #tpu.memory_space<vmem>>) attributes {dimension_semantics = [], scalar_prefetch = 0 : i64, scratch_operands = 0 : i64, tpu.core_type = #tpu.core_type<tc>} {
    %c0 = arith.constant 0 : index
    %c0_0 = arith.constant 0 : index
    %c0_1 = arith.constant 0 : index
    %0 = vector.load %arg4[%c0, %c0_0, %c0_1] : memref<2x8x96xf32, #tpu.memory_space<vmem>>, vector<2x8x96xf32>
    %c0_2 = arith.constant 0 : index
    %c0_3 = arith.constant 0 : index
    %1 = vector.load %arg0[%c0_2, %c0_3] : memref<16x32xf32, #tpu.memory_space<vmem>>, vector<16x32xf32>
    %cst = arith.constant 0.000000e+00 : f32
    %2 = vector.broadcast %cst : f32 to vector<2x32xf32>
    %3 = vector.extract_strided_slice %0 {offsets = [0, 0, 0], sizes = [1, 8, 96], strides = [1, 1, 1]} : vector<2x8x96xf32> to vector<1x8x96xf32>
    %4 = vector.shape_cast %3 : vector<1x8x96xf32> to vector<8x96xf32>
    %5 = vector.extract_strided_slice %4 {offsets = [0, 0], sizes = [1, 96], strides = [1, 1]} : vector<8x96xf32> to vector<1x96xf32>
    %6 = vector.extract_strided_slice %4 {offsets = [1, 0], sizes = [1, 96], strides = [1, 1]} : vector<8x96xf32> to vector<1x96xf32>
    %7 = vector.extract_strided_slice %4 {offsets = [2, 0], sizes = [1, 96], strides = [1, 1]} : vector<8x96xf32> to vector<1x96xf32>
    %8 = vector.extract_strided_slice %4 {offsets = [3, 0], sizes = [1, 32], strides = [1, 1]} : vector<8x96xf32> to vector<1x32xf32>
    %9 = vector.extract_strided_slice %4 {offsets = [3, 32], sizes = [1, 32], strides = [1, 1]} : vector<8x96xf32> to vector<1x32xf32>
    %10 = vector.extract_strided_slice %4 {offsets = [3, 64], sizes = [1, 32], strides = [1, 1]} : vector<8x96xf32> to vector<1x32xf32>
    %11 = vector.extract_strided_slice %4 {offsets = [4, 0], sizes = [1, 32], strides = [1, 1]} : vector<8x96xf32> to vector<1x32xf32>
    %12 = vector.extract_strided_slice %4 {offsets = [4, 32], sizes = [1, 32], strides = [1, 1]} : vector<8x96xf32> to vector<1x32xf32>
    %cst_4 = arith.constant dense<0.000000e+00> : vector<16xf32>
    %13 = vector.multi_reduction <add>, %1, %cst_4 [1] : vector<16x32xf32> to vector<16xf32>
    %14 = vector.shape_cast %13 : vector<16xf32> to vector<16x1xf32>
    %cst_5 = arith.constant 3.200000e+01 : f32
    %15 = vector.broadcast %cst_5 : f32 to vector<16x1xf32>
    %16 = arith.divf %14, %15 : vector<16x1xf32>
    %17 = vector.broadcast %16 : vector<16x1xf32> to vector<16x32xf32>
    %18 = arith.subf %1, %17 : vector<16x32xf32>
    %19 = arith.mulf %18, %18 : vector<16x32xf32>
    %cst_6 = arith.constant dense<0.000000e+00> : vector<16xf32>
    %20 = vector.multi_reduction <add>, %19, %cst_6 [1] : vector<16x32xf32> to vector<16xf32>
    %21 = vector.shape_cast %20 : vector<16xf32> to vector<16x1xf32>
    %cst_7 = arith.constant 0.0322580636 : f32
    %22 = vector.broadcast %cst_7 : f32 to vector<16x1xf32>
    %23 = arith.mulf %21, %22 : vector<16x1xf32>
    %24 = vector.broadcast %16 : vector<16x1xf32> to vector<16x32xf32>
    %25 = arith.subf %1, %24 : vector<16x32xf32>
    %26 = vector.broadcast %8 : vector<1x32xf32> to vector<16x32xf32>
    %27 = arith.mulf %26, %25 : vector<16x32xf32>
    %28 = math.sqrt %23 : vector<16x1xf32>
    %cst_8 = arith.constant 9.99999997E-7 : f32
    %29 = vector.broadcast %cst_8 : f32 to vector<16x1xf32>
    %30 = arith.addf %28, %29 : vector<16x1xf32>
    %31 = vector.broadcast %30 : vector<16x1xf32> to vector<16x32xf32>
    %32 = arith.divf %27, %31 : vector<16x32xf32>
    %33 = vector.broadcast %9 : vector<1x32xf32> to vector<16x32xf32>
    %34 = arith.addf %32, %33 : vector<16x32xf32>
    %c0_9 = arith.constant 0 : index
    %c0_10 = arith.constant 0 : index
    %c0_11 = arith.constant 0 : index
    %35 = vector.load %arg1[%c0_9, %c0_10, %c0_11] : memref<2x32x96xf32, #tpu.memory_space<vmem>>, vector<1x32x96xf32>
    %36 = vector.shape_cast %35 : vector<1x32x96xf32> to vector<32x96xf32>
    %cst_12 = arith.constant dense<0.000000e+00> : vector<16x96xf32>
    %37 = tpu.matmul %34, %36, %cst_12 {dimension_numbers = #tpu.dot_dimension_numbers<[1], [0], [0], [1], [0, 0, 1, 1], [], []>, precision = #tpu.contract_precision<fp32>} : vector<16x32xf32>, vector<32x96xf32>, vector<16x96xf32> -> vector<16x96xf32>
    %38 = vector.broadcast %5 : vector<1x96xf32> to vector<16x96xf32>
    %39 = arith.addf %37, %38 : vector<16x96xf32>
    %40 = vector.extract_strided_slice %39 {offsets = [0, 0], sizes = [8, 8], strides = [1, 1]} : vector<16x96xf32> to vector<8x8xf32>
    %41 = vector.extract_strided_slice %39 {offsets = [0, 32], sizes = [8, 8], strides = [1, 1]} : vector<16x96xf32> to vector<8x8xf32>
    %42 = vector.extract_strided_slice %39 {offsets = [0, 64], sizes = [8, 8], strides = [1, 1]} : vector<16x96xf32> to vector<8x8xf32>
    "tpu.trace_start"() <{level = 10 : i32, message = "ld,md->lm"}> : () -> ()
    %cst_13 = arith.constant dense<0.000000e+00> : vector<8x8xf32>
    %43 = tpu.matmul %40, %41, %cst_13 {dimension_numbers = #tpu.dot_dimension_numbers<[1], [1], [0], [0], [0, 0, 1, 0], [], []>, precision = #tpu.contract_precision<fp32>} : vector<8x8xf32>, vector<8x8xf32>, vector<8x8xf32> -> vector<8x8xf32>
    "tpu.trace_stop"() : () -> ()
    %cst_14 = arith.constant 0.353553385 : f32
    %44 = vector.broadcast %cst_14 : f32 to vector<8x8xf32>
    %45 = arith.mulf %43, %44 : vector<8x8xf32>
    %cst_15 = arith.constant dense<0xFF800000> : vector<8xf32>
    %46 = vector.multi_reduction <maximumf>, %45, %cst_15 [1] : vector<8x8xf32> to vector<8xf32>
    %47 = vector.shape_cast %46 : vector<8xf32> to vector<8x1xf32>
    %48 = vector.broadcast %47 : vector<8x1xf32> to vector<8x8xf32>
    %49 = arith.subf %45, %48 : vector<8x8xf32>
    %50 = math.exp %49 : vector<8x8xf32>
    %cst_16 = arith.constant dense<0.000000e+00> : vector<8xf32>
    %51 = vector.multi_reduction <add>, %50, %cst_16 [1] : vector<8x8xf32> to vector<8xf32>
    %52 = vector.shape_cast %51 : vector<8xf32> to vector<8x1xf32>
    %53 = vector.broadcast %52 : vector<8x1xf32> to vector<8x8xf32>
    %54 = arith.divf %50, %53 : vector<8x8xf32>
    %cst_17 = arith.constant dense<0.000000e+00> : vector<8x8xf32>
    %55 = tpu.matmul %54, %42, %cst_17 {dimension_numbers = #tpu.dot_dimension_numbers<[1], [0], [0], [1], [0, 0, 1, 1], [], []>, precision = #tpu.contract_precision<fp32>} : vector<8x8xf32>, vector<8x8xf32>, vector<8x8xf32> -> vector<8x8xf32>
    %56 = vector.extract_strided_slice %39 {offsets = [0, 8], sizes = [8, 8], strides = [1, 1]} : vector<16x96xf32> to vector<8x8xf32>
    %57 = vector.extract_strided_slice %39 {offsets = [0, 40], sizes = [8, 8], strides = [1, 1]} : vector<16x96xf32> to vector<8x8xf32>
    %58 = vector.extract_strided_slice %39 {offsets = [0, 72], sizes = [8, 8], strides = [1, 1]} : vector<16x96xf32> to vector<8x8xf32>
    "tpu.trace_start"() <{level = 10 : i32, message = "ld,md->lm"}> : () -> ()
    %cst_18 = arith.constant dense<0.000000e+00> : vector<8x8xf32>
    %59 = tpu.matmul %56, %57, %cst_18 {dimension_numbers = #tpu.dot_dimension_numbers<[1], [1], [0], [0], [0, 0, 1, 0], [], []>, precision = #tpu.contract_precision<fp32>} : vector<8x8xf32>, vector<8x8xf32>, vector<8x8xf32> -> vector<8x8xf32>
    "tpu.trace_stop"() : () -> ()
    %cst_19 = arith.constant 0.353553385 : f32
    %60 = vector.broadcast %cst_19 : f32 to vector<8x8xf32>
    %61 = arith.mulf %59, %60 : vector<8x8xf32>
    %cst_20 = arith.constant dense<0xFF800000> : vector<8xf32>
    %62 = vector.multi_reduction <maximumf>, %61, %cst_20 [1] : vector<8x8xf32> to vector<8xf32>
    %63 = vector.shape_cast %62 : vector<8xf32> to vector<8x1xf32>
    %64 = vector.broadcast %63 : vector<8x1xf32> to vector<8x8xf32>
    %65 = arith.subf %61, %64 : vector<8x8xf32>
    %66 = math.exp %65 : vector<8x8xf32>
    %cst_21 = arith.constant dense<0.000000e+00> : vector<8xf32>
    %67 = vector.multi_reduction <add>, %66, %cst_21 [1] : vector<8x8xf32> to vector<8xf32>
    %68 = vector.shape_cast %67 : vector<8xf32> to vector<8x1xf32>
    %69 = vector.broadcast %68 : vector<8x1xf32> to vector<8x8xf32>
    %70 = arith.divf %66, %69 : vector<8x8xf32>
    %cst_22 = arith.constant dense<0.000000e+00> : vector<8x8xf32>
    %71 = tpu.matmul %70, %58, %cst_22 {dimension_numbers = #tpu.dot_dimension_numbers<[1], [0], [0], [1], [0, 0, 1, 1], [], []>, precision = #tpu.contract_precision<fp32>} : vector<8x8xf32>, vector<8x8xf32>, vector<8x8xf32> -> vector<8x8xf32>
    %72 = vector.extract_strided_slice %39 {offsets = [0, 16], sizes = [8, 8], strides = [1, 1]} : vector<16x96xf32> to vector<8x8xf32>
    %73 = vector.extract_strided_slice %39 {offsets = [0, 48], sizes = [8, 8], strides = [1, 1]} : vector<16x96xf32> to vector<8x8xf32>
    %74 = vector.extract_strided_slice %39 {offsets = [0, 80], sizes = [8, 8], strides = [1, 1]} : vector<16x96xf32> to vector<8x8xf32>
    "tpu.trace_start"() <{level = 10 : i32, message = "ld,md->lm"}> : () -> ()
    %cst_23 = arith.constant dense<0.000000e+00> : vector<8x8xf32>
    %75 = tpu.matmul %72, %73, %cst_23 {dimension_numbers = #tpu.dot_dimension_numbers<[1], [1], [0], [0], [0, 0, 1, 0], [], []>, precision = #tpu.contract_precision<fp32>} : vector<8x8xf32>, vector<8x8xf32>, vector<8x8xf32> -> vector<8x8xf32>
    "tpu.trace_stop"() : () -> ()
    %cst_24 = arith.constant 0.353553385 : f32
    %76 = vector.broadcast %cst_24 : f32 to vector<8x8xf32>
    %77 = arith.mulf %75, %76 : vector<8x8xf32>
    %cst_25 = arith.constant dense<0xFF800000> : vector<8xf32>
    %78 = vector.multi_reduction <maximumf>, %77, %cst_25 [1] : vector<8x8xf32> to vector<8xf32>
    %79 = vector.shape_cast %78 : vector<8xf32> to vector<8x1xf32>
    %80 = vector.broadcast %79 : vector<8x1xf32> to vector<8x8xf32>
    %81 = arith.subf %77, %80 : vector<8x8xf32>
    %82 = math.exp %81 : vector<8x8xf32>
    %cst_26 = arith.constant dense<0.000000e+00> : vector<8xf32>
    %83 = vector.multi_reduction <add>, %82, %cst_26 [1] : vector<8x8xf32> to vector<8xf32>
    %84 = vector.shape_cast %83 : vector<8xf32> to vector<8x1xf32>
    %85 = vector.broadcast %84 : vector<8x1xf32> to vector<8x8xf32>
    %86 = arith.divf %82, %85 : vector<8x8xf32>
    %cst_27 = arith.constant dense<0.000000e+00> : vector<8x8xf32>
    %87 = tpu.matmul %86, %74, %cst_27 {dimension_numbers = #tpu.dot_dimension_numbers<[1], [0], [0], [1], [0, 0, 1, 1], [], []>, precision = #tpu.contract_precision<fp32>} : vector<8x8xf32>, vector<8x8xf32>, vector<8x8xf32> -> vector<8x8xf32>
    %88 = vector.extract_strided_slice %39 {offsets = [0, 24], sizes = [8, 8], strides = [1, 1]} : vector<16x96xf32> to vector<8x8xf32>
    %89 = vector.extract_strided_slice %39 {offsets = [0, 56], sizes = [8, 8], strides = [1, 1]} : vector<16x96xf32> to vector<8x8xf32>
    %90 = vector.extract_strided_slice %39 {offsets = [0, 88], sizes = [8, 8], strides = [1, 1]} : vector<16x96xf32> to vector<8x8xf32>
    "tpu.trace_start"() <{level = 10 : i32, message = "ld,md->lm"}> : () -> ()
    %cst_28 = arith.constant dense<0.000000e+00> : vector<8x8xf32>
    %91 = tpu.matmul %88, %89, %cst_28 {dimension_numbers = #tpu.dot_dimension_numbers<[1], [1], [0], [0], [0, 0, 1, 0], [], []>, precision = #tpu.contract_precision<fp32>} : vector<8x8xf32>, vector<8x8xf32>, vector<8x8xf32> -> vector<8x8xf32>
    "tpu.trace_stop"() : () -> ()
    %cst_29 = arith.constant 0.353553385 : f32
    %92 = vector.broadcast %cst_29 : f32 to vector<8x8xf32>
    %93 = arith.mulf %91, %92 : vector<8x8xf32>
    %cst_30 = arith.constant dense<0xFF800000> : vector<8xf32>
    %94 = vector.multi_reduction <maximumf>, %93, %cst_30 [1] : vector<8x8xf32> to vector<8xf32>
    %95 = vector.shape_cast %94 : vector<8xf32> to vector<8x1xf32>
    %96 = vector.broadcast %95 : vector<8x1xf32> to vector<8x8xf32>
    %97 = arith.subf %93, %96 : vector<8x8xf32>
    %98 = math.exp %97 : vector<8x8xf32>
    %cst_31 = arith.constant dense<0.000000e+00> : vector<8xf32>
    %99 = vector.multi_reduction <add>, %98, %cst_31 [1] : vector<8x8xf32> to vector<8xf32>
    %100 = vector.shape_cast %99 : vector<8xf32> to vector<8x1xf32>
    %101 = vector.broadcast %100 : vector<8x1xf32> to vector<8x8xf32>
    %102 = arith.divf %98, %101 : vector<8x8xf32>
    %cst_32 = arith.constant dense<0.000000e+00> : vector<8x8xf32>
    %103 = tpu.matmul %102, %90, %cst_32 {dimension_numbers = #tpu.dot_dimension_numbers<[1], [0], [0], [1], [0, 0, 1, 1], [], []>, precision = #tpu.contract_precision<fp32>} : vector<8x8xf32>, vector<8x8xf32>, vector<8x8xf32> -> vector<8x8xf32>
    %104 = tpu.concatenate %55, %71, %87, %103 in 1 : vector<8x8xf32>, vector<8x8xf32>, vector<8x8xf32>, vector<8x8xf32> -> vector<8x32xf32>
    %105 = vector.extract_strided_slice %39 {offsets = [8, 0], sizes = [8, 8], strides = [1, 1]} : vector<16x96xf32> to vector<8x8xf32>
    %106 = vector.extract_strided_slice %39 {offsets = [8, 32], sizes = [8, 8], strides = [1, 1]} : vector<16x96xf32> to vector<8x8xf32>
    %107 = vector.extract_strided_slice %39 {offsets = [8, 64], sizes = [8, 8], strides = [1, 1]} : vector<16x96xf32> to vector<8x8xf32>
    "tpu.trace_start"() <{level = 10 : i32, message = "ld,md->lm"}> : () -> ()
    %cst_33 = arith.constant dense<0.000000e+00> : vector<8x8xf32>
    %108 = tpu.matmul %105, %106, %cst_33 {dimension_numbers = #tpu.dot_dimension_numbers<[1], [1], [0], [0], [0, 0, 1, 0], [], []>, precision = #tpu.contract_precision<fp32>} : vector<8x8xf32>, vector<8x8xf32>, vector<8x8xf32> -> vector<8x8xf32>
    "tpu.trace_stop"() : () -> ()
    %cst_34 = arith.constant 0.353553385 : f32
    %109 = vector.broadcast %cst_34 : f32 to vector<8x8xf32>
    %110 = arith.mulf %108, %109 : vector<8x8xf32>
    %cst_35 = arith.constant dense<0xFF800000> : vector<8xf32>
    %111 = vector.multi_reduction <maximumf>, %110, %cst_35 [1] : vector<8x8xf32> to vector<8xf32>
    %112 = vector.shape_cast %111 : vector<8xf32> to vector<8x1xf32>
    %113 = vector.broadcast %112 : vector<8x1xf32> to vector<8x8xf32>
    %114 = arith.subf %110, %113 : vector<8x8xf32>
    %115 = math.exp %114 : vector<8x8xf32>
    %cst_36 = arith.constant dense<0.000000e+00> : vector<8xf32>
    %116 = vector.multi_reduction <add>, %115, %cst_36 [1] : vector<8x8xf32> to vector<8xf32>
    %117 = vector.shape_cast %116 : vector<8xf32> to vector<8x1xf32>
    %118 = vector.broadcast %117 : vector<8x1xf32> to vector<8x8xf32>
    %119 = arith.divf %115, %118 : vector<8x8xf32>
    %cst_37 = arith.constant dense<0.000000e+00> : vector<8x8xf32>
    %120 = tpu.matmul %119, %107, %cst_37 {dimension_numbers = #tpu.dot_dimension_numbers<[1], [0], [0], [1], [0, 0, 1, 1], [], []>, precision = #tpu.contract_precision<fp32>} : vector<8x8xf32>, vector<8x8xf32>, vector<8x8xf32> -> vector<8x8xf32>
    %121 = vector.extract_strided_slice %39 {offsets = [8, 8], sizes = [8, 8], strides = [1, 1]} : vector<16x96xf32> to vector<8x8xf32>
    %122 = vector.extract_strided_slice %39 {offsets = [8, 40], sizes = [8, 8], strides = [1, 1]} : vector<16x96xf32> to vector<8x8xf32>
    %123 = vector.extract_strided_slice %39 {offsets = [8, 72], sizes = [8, 8], strides = [1, 1]} : vector<16x96xf32> to vector<8x8xf32>
    "tpu.trace_start"() <{level = 10 : i32, message = "ld,md->lm"}> : () -> ()
    %cst_38 = arith.constant dense<0.000000e+00> : vector<8x8xf32>
    %124 = tpu.matmul %121, %122, %cst_38 {dimension_numbers = #tpu.dot_dimension_numbers<[1], [1], [0], [0], [0, 0, 1, 0], [], []>, precision = #tpu.contract_precision<fp32>} : vector<8x8xf32>, vector<8x8xf32>, vector<8x8xf32> -> vector<8x8xf32>
    "tpu.trace_stop"() : () -> ()
    %cst_39 = arith.constant 0.353553385 : f32
    %125 = vector.broadcast %cst_39 : f32 to vector<8x8xf32>
    %126 = arith.mulf %124, %125 : vector<8x8xf32>
    %cst_40 = arith.constant dense<0xFF800000> : vector<8xf32>
    %127 = vector.multi_reduction <maximumf>, %126, %cst_40 [1] : vector<8x8xf32> to vector<8xf32>
    %128 = vector.shape_cast %127 : vector<8xf32> to vector<8x1xf32>
    %129 = vector.broadcast %128 : vector<8x1xf32> to vector<8x8xf32>
    %130 = arith.subf %126, %129 : vector<8x8xf32>
    %131 = math.exp %130 : vector<8x8xf32>
    %cst_41 = arith.constant dense<0.000000e+00> : vector<8xf32>
    %132 = vector.multi_reduction <add>, %131, %cst_41 [1] : vector<8x8xf32> to vector<8xf32>
    %133 = vector.shape_cast %132 : vector<8xf32> to vector<8x1xf32>
    %134 = vector.broadcast %133 : vector<8x1xf32> to vector<8x8xf32>
    %135 = arith.divf %131, %134 : vector<8x8xf32>
    %cst_42 = arith.constant dense<0.000000e+00> : vector<8x8xf32>
    %136 = tpu.matmul %135, %123, %cst_42 {dimension_numbers = #tpu.dot_dimension_numbers<[1], [0], [0], [1], [0, 0, 1, 1], [], []>, precision = #tpu.contract_precision<fp32>} : vector<8x8xf32>, vector<8x8xf32>, vector<8x8xf32> -> vector<8x8xf32>
    %137 = vector.extract_strided_slice %39 {offsets = [8, 16], sizes = [8, 8], strides = [1, 1]} : vector<16x96xf32> to vector<8x8xf32>
    %138 = vector.extract_strided_slice %39 {offsets = [8, 48], sizes = [8, 8], strides = [1, 1]} : vector<16x96xf32> to vector<8x8xf32>
    %139 = vector.extract_strided_slice %39 {offsets = [8, 80], sizes = [8, 8], strides = [1, 1]} : vector<16x96xf32> to vector<8x8xf32>
    "tpu.trace_start"() <{level = 10 : i32, message = "ld,md->lm"}> : () -> ()
    %cst_43 = arith.constant dense<0.000000e+00> : vector<8x8xf32>
    %140 = tpu.matmul %137, %138, %cst_43 {dimension_numbers = #tpu.dot_dimension_numbers<[1], [1], [0], [0], [0, 0, 1, 0], [], []>, precision = #tpu.contract_precision<fp32>} : vector<8x8xf32>, vector<8x8xf32>, vector<8x8xf32> -> vector<8x8xf32>
    "tpu.trace_stop"() : () -> ()
    %cst_44 = arith.constant 0.353553385 : f32
    %141 = vector.broadcast %cst_44 : f32 to vector<8x8xf32>
    %142 = arith.mulf %140, %141 : vector<8x8xf32>
    %cst_45 = arith.constant dense<0xFF800000> : vector<8xf32>
    %143 = vector.multi_reduction <maximumf>, %142, %cst_45 [1] : vector<8x8xf32> to vector<8xf32>
    %144 = vector.shape_cast %143 : vector<8xf32> to vector<8x1xf32>
    %145 = vector.broadcast %144 : vector<8x1xf32> to vector<8x8xf32>
    %146 = arith.subf %142, %145 : vector<8x8xf32>
    %147 = math.exp %146 : vector<8x8xf32>
    %cst_46 = arith.constant dense<0.000000e+00> : vector<8xf32>
    %148 = vector.multi_reduction <add>, %147, %cst_46 [1] : vector<8x8xf32> to vector<8xf32>
    %149 = vector.shape_cast %148 : vector<8xf32> to vector<8x1xf32>
    %150 = vector.broadcast %149 : vector<8x1xf32> to vector<8x8xf32>
    %151 = arith.divf %147, %150 : vector<8x8xf32>
    %cst_47 = arith.constant dense<0.000000e+00> : vector<8x8xf32>
    %152 = tpu.matmul %151, %139, %cst_47 {dimension_numbers = #tpu.dot_dimension_numbers<[1], [0], [0], [1], [0, 0, 1, 1], [], []>, precision = #tpu.contract_precision<fp32>} : vector<8x8xf32>, vector<8x8xf32>, vector<8x8xf32> -> vector<8x8xf32>
    %153 = vector.extract_strided_slice %39 {offsets = [8, 24], sizes = [8, 8], strides = [1, 1]} : vector<16x96xf32> to vector<8x8xf32>
    %154 = vector.extract_strided_slice %39 {offsets = [8, 56], sizes = [8, 8], strides = [1, 1]} : vector<16x96xf32> to vector<8x8xf32>
    %155 = vector.extract_strided_slice %39 {offsets = [8, 88], sizes = [8, 8], strides = [1, 1]} : vector<16x96xf32> to vector<8x8xf32>
    "tpu.trace_start"() <{level = 10 : i32, message = "ld,md->lm"}> : () -> ()
    %cst_48 = arith.constant dense<0.000000e+00> : vector<8x8xf32>
    %156 = tpu.matmul %153, %154, %cst_48 {dimension_numbers = #tpu.dot_dimension_numbers<[1], [1], [0], [0], [0, 0, 1, 0], [], []>, precision = #tpu.contract_precision<fp32>} : vector<8x8xf32>, vector<8x8xf32>, vector<8x8xf32> -> vector<8x8xf32>
    "tpu.trace_stop"() : () -> ()
    %cst_49 = arith.constant 0.353553385 : f32
    %157 = vector.broadcast %cst_49 : f32 to vector<8x8xf32>
    %158 = arith.mulf %156, %157 : vector<8x8xf32>
    %cst_50 = arith.constant dense<0xFF800000> : vector<8xf32>
    %159 = vector.multi_reduction <maximumf>, %158, %cst_50 [1] : vector<8x8xf32> to vector<8xf32>
    %160 = vector.shape_cast %159 : vector<8xf32> to vector<8x1xf32>
    %161 = vector.broadcast %160 : vector<8x1xf32> to vector<8x8xf32>
    %162 = arith.subf %158, %161 : vector<8x8xf32>
    %163 = math.exp %162 : vector<8x8xf32>
    %cst_51 = arith.constant dense<0.000000e+00> : vector<8xf32>
    %164 = vector.multi_reduction <add>, %163, %cst_51 [1] : vector<8x8xf32> to vector<8xf32>
    %165 = vector.shape_cast %164 : vector<8xf32> to vector<8x1xf32>
    %166 = vector.broadcast %165 : vector<8x1xf32> to vector<8x8xf32>
    %167 = arith.divf %163, %166 : vector<8x8xf32>
    %cst_52 = arith.constant dense<0.000000e+00> : vector<8x8xf32>
    %168 = tpu.matmul %167, %155, %cst_52 {dimension_numbers = #tpu.dot_dimension_numbers<[1], [0], [0], [1], [0, 0, 1, 1], [], []>, precision = #tpu.contract_precision<fp32>} : vector<8x8xf32>, vector<8x8xf32>, vector<8x8xf32> -> vector<8x8xf32>
    %169 = tpu.concatenate %120, %136, %152, %168 in 1 : vector<8x8xf32>, vector<8x8xf32>, vector<8x8xf32>, vector<8x8xf32> -> vector<8x32xf32>
    %170 = tpu.concatenate %104, %169 in 0 : vector<8x32xf32>, vector<8x32xf32> -> vector<16x32xf32>
    %c0_53 = arith.constant 0 : index
    %c0_54 = arith.constant 0 : index
    %c0_55 = arith.constant 0 : index
    %171 = vector.load %arg2[%c0_53, %c0_54, %c0_55] : memref<2x32x32xf32, #tpu.memory_space<vmem>>, vector<1x32x32xf32>
    %172 = vector.shape_cast %171 : vector<1x32x32xf32> to vector<32x32xf32>
    %cst_56 = arith.constant dense<0.000000e+00> : vector<16x32xf32>
    %173 = tpu.matmul %170, %172, %cst_56 {dimension_numbers = #tpu.dot_dimension_numbers<[1], [0], [0], [1], [0, 0, 1, 1], [], []>, precision = #tpu.contract_precision<fp32>} : vector<16x32xf32>, vector<32x32xf32>, vector<16x32xf32> -> vector<16x32xf32>
    %174 = vector.broadcast %10 : vector<1x32xf32> to vector<16x32xf32>
    %175 = arith.addf %173, %174 : vector<16x32xf32>
    %176 = arith.addf %1, %175 : vector<16x32xf32>
    %cst_57 = arith.constant dense<0.000000e+00> : vector<16xf32>
    %177 = vector.multi_reduction <add>, %176, %cst_57 [1] : vector<16x32xf32> to vector<16xf32>
    %178 = vector.shape_cast %177 : vector<16xf32> to vector<16x1xf32>
    %cst_58 = arith.constant 3.200000e+01 : f32
    %179 = vector.broadcast %cst_58 : f32 to vector<16x1xf32>
    %180 = arith.divf %178, %179 : vector<16x1xf32>
    %181 = vector.broadcast %180 : vector<16x1xf32> to vector<16x32xf32>
    %182 = arith.subf %176, %181 : vector<16x32xf32>
    %183 = arith.mulf %182, %182 : vector<16x32xf32>
    %cst_59 = arith.constant dense<0.000000e+00> : vector<16xf32>
    %184 = vector.multi_reduction <add>, %183, %cst_59 [1] : vector<16x32xf32> to vector<16xf32>
    %185 = vector.shape_cast %184 : vector<16xf32> to vector<16x1xf32>
    %cst_60 = arith.constant 0.0322580636 : f32
    %186 = vector.broadcast %cst_60 : f32 to vector<16x1xf32>
    %187 = arith.mulf %185, %186 : vector<16x1xf32>
    %188 = vector.broadcast %180 : vector<16x1xf32> to vector<16x32xf32>
    %189 = arith.subf %176, %188 : vector<16x32xf32>
    %190 = vector.broadcast %11 : vector<1x32xf32> to vector<16x32xf32>
    %191 = arith.mulf %190, %189 : vector<16x32xf32>
    %192 = math.sqrt %187 : vector<16x1xf32>
    %cst_61 = arith.constant 9.99999997E-7 : f32
    %193 = vector.broadcast %cst_61 : f32 to vector<16x1xf32>
    %194 = arith.addf %192, %193 : vector<16x1xf32>
    %195 = vector.broadcast %194 : vector<16x1xf32> to vector<16x32xf32>
    %196 = arith.divf %191, %195 : vector<16x32xf32>
    %197 = vector.broadcast %12 : vector<1x32xf32> to vector<16x32xf32>
    %198 = arith.addf %196, %197 : vector<16x32xf32>
    %199 = vector.extract_strided_slice %198 {offsets = [0, 0], sizes = [8, 32], strides = [1, 1]} : vector<16x32xf32> to vector<8x32xf32>
    %200 = tpu.concatenate %2, %199, %2 in 0 : vector<2x32xf32>, vector<8x32xf32>, vector<2x32xf32> -> vector<12x32xf32>
    %201 = vector.extract_strided_slice %200 {offsets = [0, 0], sizes = [8, 32], strides = [1, 1]} : vector<12x32xf32> to vector<8x32xf32>
    %202 = vector.extract_strided_slice %200 {offsets = [1, 0], sizes = [8, 32], strides = [1, 1]} : vector<12x32xf32> to vector<8x32xf32>
    %203 = vector.extract_strided_slice %200 {offsets = [2, 0], sizes = [8, 32], strides = [1, 1]} : vector<12x32xf32> to vector<8x32xf32>
    %204 = vector.extract_strided_slice %200 {offsets = [3, 0], sizes = [8, 32], strides = [1, 1]} : vector<12x32xf32> to vector<8x32xf32>
    %205 = vector.extract_strided_slice %200 {offsets = [4, 0], sizes = [8, 32], strides = [1, 1]} : vector<12x32xf32> to vector<8x32xf32>
    %206 = tpu.concatenate %201, %202, %203, %204, %205 in 1 : vector<8x32xf32>, vector<8x32xf32>, vector<8x32xf32>, vector<8x32xf32>, vector<8x32xf32> -> vector<8x160xf32>
    %207 = vector.extract_strided_slice %198 {offsets = [8, 0], sizes = [8, 32], strides = [1, 1]} : vector<16x32xf32> to vector<8x32xf32>
    %208 = tpu.concatenate %2, %207, %2 in 0 : vector<2x32xf32>, vector<8x32xf32>, vector<2x32xf32> -> vector<12x32xf32>
    %209 = vector.extract_strided_slice %208 {offsets = [0, 0], sizes = [8, 32], strides = [1, 1]} : vector<12x32xf32> to vector<8x32xf32>
    %210 = vector.extract_strided_slice %208 {offsets = [1, 0], sizes = [8, 32], strides = [1, 1]} : vector<12x32xf32> to vector<8x32xf32>
    %211 = vector.extract_strided_slice %208 {offsets = [2, 0], sizes = [8, 32], strides = [1, 1]} : vector<12x32xf32> to vector<8x32xf32>
    %212 = vector.extract_strided_slice %208 {offsets = [3, 0], sizes = [8, 32], strides = [1, 1]} : vector<12x32xf32> to vector<8x32xf32>
    %213 = vector.extract_strided_slice %208 {offsets = [4, 0], sizes = [8, 32], strides = [1, 1]} : vector<12x32xf32> to vector<8x32xf32>
    %214 = tpu.concatenate %209, %210, %211, %212, %213 in 1 : vector<8x32xf32>, vector<8x32xf32>, vector<8x32xf32>, vector<8x32xf32>, vector<8x32xf32> -> vector<8x160xf32>
    %215 = tpu.concatenate %206, %214 in 0 : vector<8x160xf32>, vector<8x160xf32> -> vector<16x160xf32>
    %c0_62 = arith.constant 0 : index
    %c0_63 = arith.constant 0 : index
    %c0_64 = arith.constant 0 : index
    %216 = vector.load %arg3[%c0_62, %c0_63, %c0_64] : memref<2x160x96xf32, #tpu.memory_space<vmem>>, vector<1x160x96xf32>
    %217 = vector.shape_cast %216 : vector<1x160x96xf32> to vector<160x96xf32>
    %cst_65 = arith.constant dense<0.000000e+00> : vector<16x96xf32>
    %218 = tpu.matmul %215, %217, %cst_65 {dimension_numbers = #tpu.dot_dimension_numbers<[1], [0], [0], [1], [0, 0, 1, 1], [], []>, precision = #tpu.contract_precision<fp32>} : vector<16x160xf32>, vector<160x96xf32>, vector<16x96xf32> -> vector<16x96xf32>
    %219 = vector.broadcast %6 : vector<1x96xf32> to vector<16x96xf32>
    %220 = arith.mulf %218, %219 : vector<16x96xf32>
    %221 = vector.broadcast %7 : vector<1x96xf32> to vector<16x96xf32>
    %222 = arith.addf %220, %221 : vector<16x96xf32>
    %cst_66 = arith.constant 0.000000e+00 : f32
    %223 = vector.broadcast %cst_66 : f32 to vector<16x96xf32>
    %224 = arith.maximumf %222, %223 : vector<16x96xf32>
    %225 = vector.extract_strided_slice %224 {offsets = [0, 0], sizes = [16, 32], strides = [1, 1]} : vector<16x96xf32> to vector<16x32xf32>
    %226 = vector.extract_strided_slice %224 {offsets = [0, 32], sizes = [16, 32], strides = [1, 1]} : vector<16x96xf32> to vector<16x32xf32>
    %227 = arith.addf %225, %226 : vector<16x32xf32>
    %228 = vector.extract_strided_slice %224 {offsets = [0, 64], sizes = [16, 32], strides = [1, 1]} : vector<16x96xf32> to vector<16x32xf32>
    %229 = arith.addf %227, %228 : vector<16x32xf32>
    %cst_67 = arith.constant 0.333333343 : f32
    %230 = vector.broadcast %cst_67 : f32 to vector<16x32xf32>
    %231 = arith.mulf %229, %230 : vector<16x32xf32>
    %232 = arith.addf %176, %231 : vector<16x32xf32>
    %233 = vector.extract_strided_slice %0 {offsets = [1, 0, 0], sizes = [1, 8, 96], strides = [1, 1, 1]} : vector<2x8x96xf32> to vector<1x8x96xf32>
    %234 = vector.shape_cast %233 : vector<1x8x96xf32> to vector<8x96xf32>
    %235 = vector.extract_strided_slice %234 {offsets = [0, 0], sizes = [1, 96], strides = [1, 1]} : vector<8x96xf32> to vector<1x96xf32>
    %236 = vector.extract_strided_slice %234 {offsets = [1, 0], sizes = [1, 96], strides = [1, 1]} : vector<8x96xf32> to vector<1x96xf32>
    %237 = vector.extract_strided_slice %234 {offsets = [2, 0], sizes = [1, 96], strides = [1, 1]} : vector<8x96xf32> to vector<1x96xf32>
    %238 = vector.extract_strided_slice %234 {offsets = [3, 0], sizes = [1, 32], strides = [1, 1]} : vector<8x96xf32> to vector<1x32xf32>
    %239 = vector.extract_strided_slice %234 {offsets = [3, 32], sizes = [1, 32], strides = [1, 1]} : vector<8x96xf32> to vector<1x32xf32>
    %240 = vector.extract_strided_slice %234 {offsets = [3, 64], sizes = [1, 32], strides = [1, 1]} : vector<8x96xf32> to vector<1x32xf32>
    %241 = vector.extract_strided_slice %234 {offsets = [4, 0], sizes = [1, 32], strides = [1, 1]} : vector<8x96xf32> to vector<1x32xf32>
    %242 = vector.extract_strided_slice %234 {offsets = [4, 32], sizes = [1, 32], strides = [1, 1]} : vector<8x96xf32> to vector<1x32xf32>
    %cst_68 = arith.constant dense<0.000000e+00> : vector<16xf32>
    %243 = vector.multi_reduction <add>, %232, %cst_68 [1] : vector<16x32xf32> to vector<16xf32>
    %244 = vector.shape_cast %243 : vector<16xf32> to vector<16x1xf32>
    %cst_69 = arith.constant 3.200000e+01 : f32
    %245 = vector.broadcast %cst_69 : f32 to vector<16x1xf32>
    %246 = arith.divf %244, %245 : vector<16x1xf32>
    %247 = vector.broadcast %246 : vector<16x1xf32> to vector<16x32xf32>
    %248 = arith.subf %232, %247 : vector<16x32xf32>
    %249 = arith.mulf %248, %248 : vector<16x32xf32>
    %cst_70 = arith.constant dense<0.000000e+00> : vector<16xf32>
    %250 = vector.multi_reduction <add>, %249, %cst_70 [1] : vector<16x32xf32> to vector<16xf32>
    %251 = vector.shape_cast %250 : vector<16xf32> to vector<16x1xf32>
    %cst_71 = arith.constant 0.0322580636 : f32
    %252 = vector.broadcast %cst_71 : f32 to vector<16x1xf32>
    %253 = arith.mulf %251, %252 : vector<16x1xf32>
    %254 = vector.broadcast %246 : vector<16x1xf32> to vector<16x32xf32>
    %255 = arith.subf %232, %254 : vector<16x32xf32>
    %256 = vector.broadcast %238 : vector<1x32xf32> to vector<16x32xf32>
    %257 = arith.mulf %256, %255 : vector<16x32xf32>
    %258 = math.sqrt %253 : vector<16x1xf32>
    %cst_72 = arith.constant 9.99999997E-7 : f32
    %259 = vector.broadcast %cst_72 : f32 to vector<16x1xf32>
    %260 = arith.addf %258, %259 : vector<16x1xf32>
    %261 = vector.broadcast %260 : vector<16x1xf32> to vector<16x32xf32>
    %262 = arith.divf %257, %261 : vector<16x32xf32>
    %263 = vector.broadcast %239 : vector<1x32xf32> to vector<16x32xf32>
    %264 = arith.addf %262, %263 : vector<16x32xf32>
    %c1 = arith.constant 1 : index
    %c0_73 = arith.constant 0 : index
    %c0_74 = arith.constant 0 : index
    %265 = vector.load %arg1[%c1, %c0_73, %c0_74] : memref<2x32x96xf32, #tpu.memory_space<vmem>>, vector<1x32x96xf32>
    %266 = vector.shape_cast %265 : vector<1x32x96xf32> to vector<32x96xf32>
    %cst_75 = arith.constant dense<0.000000e+00> : vector<16x96xf32>
    %267 = tpu.matmul %264, %266, %cst_75 {dimension_numbers = #tpu.dot_dimension_numbers<[1], [0], [0], [1], [0, 0, 1, 1], [], []>, precision = #tpu.contract_precision<fp32>} : vector<16x32xf32>, vector<32x96xf32>, vector<16x96xf32> -> vector<16x96xf32>
    %268 = vector.broadcast %235 : vector<1x96xf32> to vector<16x96xf32>
    %269 = arith.addf %267, %268 : vector<16x96xf32>
    %270 = vector.extract_strided_slice %269 {offsets = [0, 0], sizes = [8, 8], strides = [1, 1]} : vector<16x96xf32> to vector<8x8xf32>
    %271 = vector.extract_strided_slice %269 {offsets = [0, 32], sizes = [8, 8], strides = [1, 1]} : vector<16x96xf32> to vector<8x8xf32>
    %272 = vector.extract_strided_slice %269 {offsets = [0, 64], sizes = [8, 8], strides = [1, 1]} : vector<16x96xf32> to vector<8x8xf32>
    "tpu.trace_start"() <{level = 10 : i32, message = "ld,md->lm"}> : () -> ()
    %cst_76 = arith.constant dense<0.000000e+00> : vector<8x8xf32>
    %273 = tpu.matmul %270, %271, %cst_76 {dimension_numbers = #tpu.dot_dimension_numbers<[1], [1], [0], [0], [0, 0, 1, 0], [], []>, precision = #tpu.contract_precision<fp32>} : vector<8x8xf32>, vector<8x8xf32>, vector<8x8xf32> -> vector<8x8xf32>
    "tpu.trace_stop"() : () -> ()
    %cst_77 = arith.constant 0.353553385 : f32
    %274 = vector.broadcast %cst_77 : f32 to vector<8x8xf32>
    %275 = arith.mulf %273, %274 : vector<8x8xf32>
    %cst_78 = arith.constant dense<0xFF800000> : vector<8xf32>
    %276 = vector.multi_reduction <maximumf>, %275, %cst_78 [1] : vector<8x8xf32> to vector<8xf32>
    %277 = vector.shape_cast %276 : vector<8xf32> to vector<8x1xf32>
    %278 = vector.broadcast %277 : vector<8x1xf32> to vector<8x8xf32>
    %279 = arith.subf %275, %278 : vector<8x8xf32>
    %280 = math.exp %279 : vector<8x8xf32>
    %cst_79 = arith.constant dense<0.000000e+00> : vector<8xf32>
    %281 = vector.multi_reduction <add>, %280, %cst_79 [1] : vector<8x8xf32> to vector<8xf32>
    %282 = vector.shape_cast %281 : vector<8xf32> to vector<8x1xf32>
    %283 = vector.broadcast %282 : vector<8x1xf32> to vector<8x8xf32>
    %284 = arith.divf %280, %283 : vector<8x8xf32>
    %cst_80 = arith.constant dense<0.000000e+00> : vector<8x8xf32>
    %285 = tpu.matmul %284, %272, %cst_80 {dimension_numbers = #tpu.dot_dimension_numbers<[1], [0], [0], [1], [0, 0, 1, 1], [], []>, precision = #tpu.contract_precision<fp32>} : vector<8x8xf32>, vector<8x8xf32>, vector<8x8xf32> -> vector<8x8xf32>
    %286 = vector.extract_strided_slice %269 {offsets = [0, 8], sizes = [8, 8], strides = [1, 1]} : vector<16x96xf32> to vector<8x8xf32>
    %287 = vector.extract_strided_slice %269 {offsets = [0, 40], sizes = [8, 8], strides = [1, 1]} : vector<16x96xf32> to vector<8x8xf32>
    %288 = vector.extract_strided_slice %269 {offsets = [0, 72], sizes = [8, 8], strides = [1, 1]} : vector<16x96xf32> to vector<8x8xf32>
    "tpu.trace_start"() <{level = 10 : i32, message = "ld,md->lm"}> : () -> ()
    %cst_81 = arith.constant dense<0.000000e+00> : vector<8x8xf32>
    %289 = tpu.matmul %286, %287, %cst_81 {dimension_numbers = #tpu.dot_dimension_numbers<[1], [1], [0], [0], [0, 0, 1, 0], [], []>, precision = #tpu.contract_precision<fp32>} : vector<8x8xf32>, vector<8x8xf32>, vector<8x8xf32> -> vector<8x8xf32>
    "tpu.trace_stop"() : () -> ()
    %cst_82 = arith.constant 0.353553385 : f32
    %290 = vector.broadcast %cst_82 : f32 to vector<8x8xf32>
    %291 = arith.mulf %289, %290 : vector<8x8xf32>
    %cst_83 = arith.constant dense<0xFF800000> : vector<8xf32>
    %292 = vector.multi_reduction <maximumf>, %291, %cst_83 [1] : vector<8x8xf32> to vector<8xf32>
    %293 = vector.shape_cast %292 : vector<8xf32> to vector<8x1xf32>
    %294 = vector.broadcast %293 : vector<8x1xf32> to vector<8x8xf32>
    %295 = arith.subf %291, %294 : vector<8x8xf32>
    %296 = math.exp %295 : vector<8x8xf32>
    %cst_84 = arith.constant dense<0.000000e+00> : vector<8xf32>
    %297 = vector.multi_reduction <add>, %296, %cst_84 [1] : vector<8x8xf32> to vector<8xf32>
    %298 = vector.shape_cast %297 : vector<8xf32> to vector<8x1xf32>
    %299 = vector.broadcast %298 : vector<8x1xf32> to vector<8x8xf32>
    %300 = arith.divf %296, %299 : vector<8x8xf32>
    %cst_85 = arith.constant dense<0.000000e+00> : vector<8x8xf32>
    %301 = tpu.matmul %300, %288, %cst_85 {dimension_numbers = #tpu.dot_dimension_numbers<[1], [0], [0], [1], [0, 0, 1, 1], [], []>, precision = #tpu.contract_precision<fp32>} : vector<8x8xf32>, vector<8x8xf32>, vector<8x8xf32> -> vector<8x8xf32>
    %302 = vector.extract_strided_slice %269 {offsets = [0, 16], sizes = [8, 8], strides = [1, 1]} : vector<16x96xf32> to vector<8x8xf32>
    %303 = vector.extract_strided_slice %269 {offsets = [0, 48], sizes = [8, 8], strides = [1, 1]} : vector<16x96xf32> to vector<8x8xf32>
    %304 = vector.extract_strided_slice %269 {offsets = [0, 80], sizes = [8, 8], strides = [1, 1]} : vector<16x96xf32> to vector<8x8xf32>
    "tpu.trace_start"() <{level = 10 : i32, message = "ld,md->lm"}> : () -> ()
    %cst_86 = arith.constant dense<0.000000e+00> : vector<8x8xf32>
    %305 = tpu.matmul %302, %303, %cst_86 {dimension_numbers = #tpu.dot_dimension_numbers<[1], [1], [0], [0], [0, 0, 1, 0], [], []>, precision = #tpu.contract_precision<fp32>} : vector<8x8xf32>, vector<8x8xf32>, vector<8x8xf32> -> vector<8x8xf32>
    "tpu.trace_stop"() : () -> ()
    %cst_87 = arith.constant 0.353553385 : f32
    %306 = vector.broadcast %cst_87 : f32 to vector<8x8xf32>
    %307 = arith.mulf %305, %306 : vector<8x8xf32>
    %cst_88 = arith.constant dense<0xFF800000> : vector<8xf32>
    %308 = vector.multi_reduction <maximumf>, %307, %cst_88 [1] : vector<8x8xf32> to vector<8xf32>
    %309 = vector.shape_cast %308 : vector<8xf32> to vector<8x1xf32>
    %310 = vector.broadcast %309 : vector<8x1xf32> to vector<8x8xf32>
    %311 = arith.subf %307, %310 : vector<8x8xf32>
    %312 = math.exp %311 : vector<8x8xf32>
    %cst_89 = arith.constant dense<0.000000e+00> : vector<8xf32>
    %313 = vector.multi_reduction <add>, %312, %cst_89 [1] : vector<8x8xf32> to vector<8xf32>
    %314 = vector.shape_cast %313 : vector<8xf32> to vector<8x1xf32>
    %315 = vector.broadcast %314 : vector<8x1xf32> to vector<8x8xf32>
    %316 = arith.divf %312, %315 : vector<8x8xf32>
    %cst_90 = arith.constant dense<0.000000e+00> : vector<8x8xf32>
    %317 = tpu.matmul %316, %304, %cst_90 {dimension_numbers = #tpu.dot_dimension_numbers<[1], [0], [0], [1], [0, 0, 1, 1], [], []>, precision = #tpu.contract_precision<fp32>} : vector<8x8xf32>, vector<8x8xf32>, vector<8x8xf32> -> vector<8x8xf32>
    %318 = vector.extract_strided_slice %269 {offsets = [0, 24], sizes = [8, 8], strides = [1, 1]} : vector<16x96xf32> to vector<8x8xf32>
    %319 = vector.extract_strided_slice %269 {offsets = [0, 56], sizes = [8, 8], strides = [1, 1]} : vector<16x96xf32> to vector<8x8xf32>
    %320 = vector.extract_strided_slice %269 {offsets = [0, 88], sizes = [8, 8], strides = [1, 1]} : vector<16x96xf32> to vector<8x8xf32>
    "tpu.trace_start"() <{level = 10 : i32, message = "ld,md->lm"}> : () -> ()
    %cst_91 = arith.constant dense<0.000000e+00> : vector<8x8xf32>
    %321 = tpu.matmul %318, %319, %cst_91 {dimension_numbers = #tpu.dot_dimension_numbers<[1], [1], [0], [0], [0, 0, 1, 0], [], []>, precision = #tpu.contract_precision<fp32>} : vector<8x8xf32>, vector<8x8xf32>, vector<8x8xf32> -> vector<8x8xf32>
    "tpu.trace_stop"() : () -> ()
    %cst_92 = arith.constant 0.353553385 : f32
    %322 = vector.broadcast %cst_92 : f32 to vector<8x8xf32>
    %323 = arith.mulf %321, %322 : vector<8x8xf32>
    %cst_93 = arith.constant dense<0xFF800000> : vector<8xf32>
    %324 = vector.multi_reduction <maximumf>, %323, %cst_93 [1] : vector<8x8xf32> to vector<8xf32>
    %325 = vector.shape_cast %324 : vector<8xf32> to vector<8x1xf32>
    %326 = vector.broadcast %325 : vector<8x1xf32> to vector<8x8xf32>
    %327 = arith.subf %323, %326 : vector<8x8xf32>
    %328 = math.exp %327 : vector<8x8xf32>
    %cst_94 = arith.constant dense<0.000000e+00> : vector<8xf32>
    %329 = vector.multi_reduction <add>, %328, %cst_94 [1] : vector<8x8xf32> to vector<8xf32>
    %330 = vector.shape_cast %329 : vector<8xf32> to vector<8x1xf32>
    %331 = vector.broadcast %330 : vector<8x1xf32> to vector<8x8xf32>
    %332 = arith.divf %328, %331 : vector<8x8xf32>
    %cst_95 = arith.constant dense<0.000000e+00> : vector<8x8xf32>
    %333 = tpu.matmul %332, %320, %cst_95 {dimension_numbers = #tpu.dot_dimension_numbers<[1], [0], [0], [1], [0, 0, 1, 1], [], []>, precision = #tpu.contract_precision<fp32>} : vector<8x8xf32>, vector<8x8xf32>, vector<8x8xf32> -> vector<8x8xf32>
    %334 = tpu.concatenate %285, %301, %317, %333 in 1 : vector<8x8xf32>, vector<8x8xf32>, vector<8x8xf32>, vector<8x8xf32> -> vector<8x32xf32>
    %335 = vector.extract_strided_slice %269 {offsets = [8, 0], sizes = [8, 8], strides = [1, 1]} : vector<16x96xf32> to vector<8x8xf32>
    %336 = vector.extract_strided_slice %269 {offsets = [8, 32], sizes = [8, 8], strides = [1, 1]} : vector<16x96xf32> to vector<8x8xf32>
    %337 = vector.extract_strided_slice %269 {offsets = [8, 64], sizes = [8, 8], strides = [1, 1]} : vector<16x96xf32> to vector<8x8xf32>
    "tpu.trace_start"() <{level = 10 : i32, message = "ld,md->lm"}> : () -> ()
    %cst_96 = arith.constant dense<0.000000e+00> : vector<8x8xf32>
    %338 = tpu.matmul %335, %336, %cst_96 {dimension_numbers = #tpu.dot_dimension_numbers<[1], [1], [0], [0], [0, 0, 1, 0], [], []>, precision = #tpu.contract_precision<fp32>} : vector<8x8xf32>, vector<8x8xf32>, vector<8x8xf32> -> vector<8x8xf32>
    "tpu.trace_stop"() : () -> ()
    %cst_97 = arith.constant 0.353553385 : f32
    %339 = vector.broadcast %cst_97 : f32 to vector<8x8xf32>
    %340 = arith.mulf %338, %339 : vector<8x8xf32>
    %cst_98 = arith.constant dense<0xFF800000> : vector<8xf32>
    %341 = vector.multi_reduction <maximumf>, %340, %cst_98 [1] : vector<8x8xf32> to vector<8xf32>
    %342 = vector.shape_cast %341 : vector<8xf32> to vector<8x1xf32>
    %343 = vector.broadcast %342 : vector<8x1xf32> to vector<8x8xf32>
    %344 = arith.subf %340, %343 : vector<8x8xf32>
    %345 = math.exp %344 : vector<8x8xf32>
    %cst_99 = arith.constant dense<0.000000e+00> : vector<8xf32>
    %346 = vector.multi_reduction <add>, %345, %cst_99 [1] : vector<8x8xf32> to vector<8xf32>
    %347 = vector.shape_cast %346 : vector<8xf32> to vector<8x1xf32>
    %348 = vector.broadcast %347 : vector<8x1xf32> to vector<8x8xf32>
    %349 = arith.divf %345, %348 : vector<8x8xf32>
    %cst_100 = arith.constant dense<0.000000e+00> : vector<8x8xf32>
    %350 = tpu.matmul %349, %337, %cst_100 {dimension_numbers = #tpu.dot_dimension_numbers<[1], [0], [0], [1], [0, 0, 1, 1], [], []>, precision = #tpu.contract_precision<fp32>} : vector<8x8xf32>, vector<8x8xf32>, vector<8x8xf32> -> vector<8x8xf32>
    %351 = vector.extract_strided_slice %269 {offsets = [8, 8], sizes = [8, 8], strides = [1, 1]} : vector<16x96xf32> to vector<8x8xf32>
    %352 = vector.extract_strided_slice %269 {offsets = [8, 40], sizes = [8, 8], strides = [1, 1]} : vector<16x96xf32> to vector<8x8xf32>
    %353 = vector.extract_strided_slice %269 {offsets = [8, 72], sizes = [8, 8], strides = [1, 1]} : vector<16x96xf32> to vector<8x8xf32>
    "tpu.trace_start"() <{level = 10 : i32, message = "ld,md->lm"}> : () -> ()
    %cst_101 = arith.constant dense<0.000000e+00> : vector<8x8xf32>
    %354 = tpu.matmul %351, %352, %cst_101 {dimension_numbers = #tpu.dot_dimension_numbers<[1], [1], [0], [0], [0, 0, 1, 0], [], []>, precision = #tpu.contract_precision<fp32>} : vector<8x8xf32>, vector<8x8xf32>, vector<8x8xf32> -> vector<8x8xf32>
    "tpu.trace_stop"() : () -> ()
    %cst_102 = arith.constant 0.353553385 : f32
    %355 = vector.broadcast %cst_102 : f32 to vector<8x8xf32>
    %356 = arith.mulf %354, %355 : vector<8x8xf32>
    %cst_103 = arith.constant dense<0xFF800000> : vector<8xf32>
    %357 = vector.multi_reduction <maximumf>, %356, %cst_103 [1] : vector<8x8xf32> to vector<8xf32>
    %358 = vector.shape_cast %357 : vector<8xf32> to vector<8x1xf32>
    %359 = vector.broadcast %358 : vector<8x1xf32> to vector<8x8xf32>
    %360 = arith.subf %356, %359 : vector<8x8xf32>
    %361 = math.exp %360 : vector<8x8xf32>
    %cst_104 = arith.constant dense<0.000000e+00> : vector<8xf32>
    %362 = vector.multi_reduction <add>, %361, %cst_104 [1] : vector<8x8xf32> to vector<8xf32>
    %363 = vector.shape_cast %362 : vector<8xf32> to vector<8x1xf32>
    %364 = vector.broadcast %363 : vector<8x1xf32> to vector<8x8xf32>
    %365 = arith.divf %361, %364 : vector<8x8xf32>
    %cst_105 = arith.constant dense<0.000000e+00> : vector<8x8xf32>
    %366 = tpu.matmul %365, %353, %cst_105 {dimension_numbers = #tpu.dot_dimension_numbers<[1], [0], [0], [1], [0, 0, 1, 1], [], []>, precision = #tpu.contract_precision<fp32>} : vector<8x8xf32>, vector<8x8xf32>, vector<8x8xf32> -> vector<8x8xf32>
    %367 = vector.extract_strided_slice %269 {offsets = [8, 16], sizes = [8, 8], strides = [1, 1]} : vector<16x96xf32> to vector<8x8xf32>
    %368 = vector.extract_strided_slice %269 {offsets = [8, 48], sizes = [8, 8], strides = [1, 1]} : vector<16x96xf32> to vector<8x8xf32>
    %369 = vector.extract_strided_slice %269 {offsets = [8, 80], sizes = [8, 8], strides = [1, 1]} : vector<16x96xf32> to vector<8x8xf32>
    "tpu.trace_start"() <{level = 10 : i32, message = "ld,md->lm"}> : () -> ()
    %cst_106 = arith.constant dense<0.000000e+00> : vector<8x8xf32>
    %370 = tpu.matmul %367, %368, %cst_106 {dimension_numbers = #tpu.dot_dimension_numbers<[1], [1], [0], [0], [0, 0, 1, 0], [], []>, precision = #tpu.contract_precision<fp32>} : vector<8x8xf32>, vector<8x8xf32>, vector<8x8xf32> -> vector<8x8xf32>
    "tpu.trace_stop"() : () -> ()
    %cst_107 = arith.constant 0.353553385 : f32
    %371 = vector.broadcast %cst_107 : f32 to vector<8x8xf32>
    %372 = arith.mulf %370, %371 : vector<8x8xf32>
    %cst_108 = arith.constant dense<0xFF800000> : vector<8xf32>
    %373 = vector.multi_reduction <maximumf>, %372, %cst_108 [1] : vector<8x8xf32> to vector<8xf32>
    %374 = vector.shape_cast %373 : vector<8xf32> to vector<8x1xf32>
    %375 = vector.broadcast %374 : vector<8x1xf32> to vector<8x8xf32>
    %376 = arith.subf %372, %375 : vector<8x8xf32>
    %377 = math.exp %376 : vector<8x8xf32>
    %cst_109 = arith.constant dense<0.000000e+00> : vector<8xf32>
    %378 = vector.multi_reduction <add>, %377, %cst_109 [1] : vector<8x8xf32> to vector<8xf32>
    %379 = vector.shape_cast %378 : vector<8xf32> to vector<8x1xf32>
    %380 = vector.broadcast %379 : vector<8x1xf32> to vector<8x8xf32>
    %381 = arith.divf %377, %380 : vector<8x8xf32>
    %cst_110 = arith.constant dense<0.000000e+00> : vector<8x8xf32>
    %382 = tpu.matmul %381, %369, %cst_110 {dimension_numbers = #tpu.dot_dimension_numbers<[1], [0], [0], [1], [0, 0, 1, 1], [], []>, precision = #tpu.contract_precision<fp32>} : vector<8x8xf32>, vector<8x8xf32>, vector<8x8xf32> -> vector<8x8xf32>
    %383 = vector.extract_strided_slice %269 {offsets = [8, 24], sizes = [8, 8], strides = [1, 1]} : vector<16x96xf32> to vector<8x8xf32>
    %384 = vector.extract_strided_slice %269 {offsets = [8, 56], sizes = [8, 8], strides = [1, 1]} : vector<16x96xf32> to vector<8x8xf32>
    %385 = vector.extract_strided_slice %269 {offsets = [8, 88], sizes = [8, 8], strides = [1, 1]} : vector<16x96xf32> to vector<8x8xf32>
    "tpu.trace_start"() <{level = 10 : i32, message = "ld,md->lm"}> : () -> ()
    %cst_111 = arith.constant dense<0.000000e+00> : vector<8x8xf32>
    %386 = tpu.matmul %383, %384, %cst_111 {dimension_numbers = #tpu.dot_dimension_numbers<[1], [1], [0], [0], [0, 0, 1, 0], [], []>, precision = #tpu.contract_precision<fp32>} : vector<8x8xf32>, vector<8x8xf32>, vector<8x8xf32> -> vector<8x8xf32>
    "tpu.trace_stop"() : () -> ()
    %cst_112 = arith.constant 0.353553385 : f32
    %387 = vector.broadcast %cst_112 : f32 to vector<8x8xf32>
    %388 = arith.mulf %386, %387 : vector<8x8xf32>
    %cst_113 = arith.constant dense<0xFF800000> : vector<8xf32>
    %389 = vector.multi_reduction <maximumf>, %388, %cst_113 [1] : vector<8x8xf32> to vector<8xf32>
    %390 = vector.shape_cast %389 : vector<8xf32> to vector<8x1xf32>
    %391 = vector.broadcast %390 : vector<8x1xf32> to vector<8x8xf32>
    %392 = arith.subf %388, %391 : vector<8x8xf32>
    %393 = math.exp %392 : vector<8x8xf32>
    %cst_114 = arith.constant dense<0.000000e+00> : vector<8xf32>
    %394 = vector.multi_reduction <add>, %393, %cst_114 [1] : vector<8x8xf32> to vector<8xf32>
    %395 = vector.shape_cast %394 : vector<8xf32> to vector<8x1xf32>
    %396 = vector.broadcast %395 : vector<8x1xf32> to vector<8x8xf32>
    %397 = arith.divf %393, %396 : vector<8x8xf32>
    %cst_115 = arith.constant dense<0.000000e+00> : vector<8x8xf32>
    %398 = tpu.matmul %397, %385, %cst_115 {dimension_numbers = #tpu.dot_dimension_numbers<[1], [0], [0], [1], [0, 0, 1, 1], [], []>, precision = #tpu.contract_precision<fp32>} : vector<8x8xf32>, vector<8x8xf32>, vector<8x8xf32> -> vector<8x8xf32>
    %399 = tpu.concatenate %350, %366, %382, %398 in 1 : vector<8x8xf32>, vector<8x8xf32>, vector<8x8xf32>, vector<8x8xf32> -> vector<8x32xf32>
    %400 = tpu.concatenate %334, %399 in 0 : vector<8x32xf32>, vector<8x32xf32> -> vector<16x32xf32>
    %c1_116 = arith.constant 1 : index
    %c0_117 = arith.constant 0 : index
    %c0_118 = arith.constant 0 : index
    %401 = vector.load %arg2[%c1_116, %c0_117, %c0_118] : memref<2x32x32xf32, #tpu.memory_space<vmem>>, vector<1x32x32xf32>
    %402 = vector.shape_cast %401 : vector<1x32x32xf32> to vector<32x32xf32>
    %cst_119 = arith.constant dense<0.000000e+00> : vector<16x32xf32>
    %403 = tpu.matmul %400, %402, %cst_119 {dimension_numbers = #tpu.dot_dimension_numbers<[1], [0], [0], [1], [0, 0, 1, 1], [], []>, precision = #tpu.contract_precision<fp32>} : vector<16x32xf32>, vector<32x32xf32>, vector<16x32xf32> -> vector<16x32xf32>
    %404 = vector.broadcast %240 : vector<1x32xf32> to vector<16x32xf32>
    %405 = arith.addf %403, %404 : vector<16x32xf32>
    %406 = arith.addf %232, %405 : vector<16x32xf32>
    %cst_120 = arith.constant dense<0.000000e+00> : vector<16xf32>
    %407 = vector.multi_reduction <add>, %406, %cst_120 [1] : vector<16x32xf32> to vector<16xf32>
    %408 = vector.shape_cast %407 : vector<16xf32> to vector<16x1xf32>
    %cst_121 = arith.constant 3.200000e+01 : f32
    %409 = vector.broadcast %cst_121 : f32 to vector<16x1xf32>
    %410 = arith.divf %408, %409 : vector<16x1xf32>
    %411 = vector.broadcast %410 : vector<16x1xf32> to vector<16x32xf32>
    %412 = arith.subf %406, %411 : vector<16x32xf32>
    %413 = arith.mulf %412, %412 : vector<16x32xf32>
    %cst_122 = arith.constant dense<0.000000e+00> : vector<16xf32>
    %414 = vector.multi_reduction <add>, %413, %cst_122 [1] : vector<16x32xf32> to vector<16xf32>
    %415 = vector.shape_cast %414 : vector<16xf32> to vector<16x1xf32>
    %cst_123 = arith.constant 0.0322580636 : f32
    %416 = vector.broadcast %cst_123 : f32 to vector<16x1xf32>
    %417 = arith.mulf %415, %416 : vector<16x1xf32>
    %418 = vector.broadcast %410 : vector<16x1xf32> to vector<16x32xf32>
    %419 = arith.subf %406, %418 : vector<16x32xf32>
    %420 = vector.broadcast %241 : vector<1x32xf32> to vector<16x32xf32>
    %421 = arith.mulf %420, %419 : vector<16x32xf32>
    %422 = math.sqrt %417 : vector<16x1xf32>
    %cst_124 = arith.constant 9.99999997E-7 : f32
    %423 = vector.broadcast %cst_124 : f32 to vector<16x1xf32>
    %424 = arith.addf %422, %423 : vector<16x1xf32>
    %425 = vector.broadcast %424 : vector<16x1xf32> to vector<16x32xf32>
    %426 = arith.divf %421, %425 : vector<16x32xf32>
    %427 = vector.broadcast %242 : vector<1x32xf32> to vector<16x32xf32>
    %428 = arith.addf %426, %427 : vector<16x32xf32>
    %429 = vector.extract_strided_slice %428 {offsets = [0, 0], sizes = [8, 32], strides = [1, 1]} : vector<16x32xf32> to vector<8x32xf32>
    %430 = tpu.concatenate %2, %429, %2 in 0 : vector<2x32xf32>, vector<8x32xf32>, vector<2x32xf32> -> vector<12x32xf32>
    %431 = vector.extract_strided_slice %430 {offsets = [0, 0], sizes = [8, 32], strides = [1, 1]} : vector<12x32xf32> to vector<8x32xf32>
    %432 = vector.extract_strided_slice %430 {offsets = [1, 0], sizes = [8, 32], strides = [1, 1]} : vector<12x32xf32> to vector<8x32xf32>
    %433 = vector.extract_strided_slice %430 {offsets = [2, 0], sizes = [8, 32], strides = [1, 1]} : vector<12x32xf32> to vector<8x32xf32>
    %434 = vector.extract_strided_slice %430 {offsets = [3, 0], sizes = [8, 32], strides = [1, 1]} : vector<12x32xf32> to vector<8x32xf32>
    %435 = vector.extract_strided_slice %430 {offsets = [4, 0], sizes = [8, 32], strides = [1, 1]} : vector<12x32xf32> to vector<8x32xf32>
    %436 = tpu.concatenate %431, %432, %433, %434, %435 in 1 : vector<8x32xf32>, vector<8x32xf32>, vector<8x32xf32>, vector<8x32xf32>, vector<8x32xf32> -> vector<8x160xf32>
    %437 = vector.extract_strided_slice %428 {offsets = [8, 0], sizes = [8, 32], strides = [1, 1]} : vector<16x32xf32> to vector<8x32xf32>
    %438 = tpu.concatenate %2, %437, %2 in 0 : vector<2x32xf32>, vector<8x32xf32>, vector<2x32xf32> -> vector<12x32xf32>
    %439 = vector.extract_strided_slice %438 {offsets = [0, 0], sizes = [8, 32], strides = [1, 1]} : vector<12x32xf32> to vector<8x32xf32>
    %440 = vector.extract_strided_slice %438 {offsets = [1, 0], sizes = [8, 32], strides = [1, 1]} : vector<12x32xf32> to vector<8x32xf32>
    %441 = vector.extract_strided_slice %438 {offsets = [2, 0], sizes = [8, 32], strides = [1, 1]} : vector<12x32xf32> to vector<8x32xf32>
    %442 = vector.extract_strided_slice %438 {offsets = [3, 0], sizes = [8, 32], strides = [1, 1]} : vector<12x32xf32> to vector<8x32xf32>
    %443 = vector.extract_strided_slice %438 {offsets = [4, 0], sizes = [8, 32], strides = [1, 1]} : vector<12x32xf32> to vector<8x32xf32>
    %444 = tpu.concatenate %439, %440, %441, %442, %443 in 1 : vector<8x32xf32>, vector<8x32xf32>, vector<8x32xf32>, vector<8x32xf32>, vector<8x32xf32> -> vector<8x160xf32>
    %445 = tpu.concatenate %436, %444 in 0 : vector<8x160xf32>, vector<8x160xf32> -> vector<16x160xf32>
    %c1_125 = arith.constant 1 : index
    %c0_126 = arith.constant 0 : index
    %c0_127 = arith.constant 0 : index
    %446 = vector.load %arg3[%c1_125, %c0_126, %c0_127] : memref<2x160x96xf32, #tpu.memory_space<vmem>>, vector<1x160x96xf32>
    %447 = vector.shape_cast %446 : vector<1x160x96xf32> to vector<160x96xf32>
    %cst_128 = arith.constant dense<0.000000e+00> : vector<16x96xf32>
    %448 = tpu.matmul %445, %447, %cst_128 {dimension_numbers = #tpu.dot_dimension_numbers<[1], [0], [0], [1], [0, 0, 1, 1], [], []>, precision = #tpu.contract_precision<fp32>} : vector<16x160xf32>, vector<160x96xf32>, vector<16x96xf32> -> vector<16x96xf32>
    %449 = vector.broadcast %236 : vector<1x96xf32> to vector<16x96xf32>
    %450 = arith.mulf %448, %449 : vector<16x96xf32>
    %451 = vector.broadcast %237 : vector<1x96xf32> to vector<16x96xf32>
    %452 = arith.addf %450, %451 : vector<16x96xf32>
    %cst_129 = arith.constant 0.000000e+00 : f32
    %453 = vector.broadcast %cst_129 : f32 to vector<16x96xf32>
    %454 = arith.maximumf %452, %453 : vector<16x96xf32>
    %455 = vector.extract_strided_slice %454 {offsets = [0, 0], sizes = [16, 32], strides = [1, 1]} : vector<16x96xf32> to vector<16x32xf32>
    %456 = vector.extract_strided_slice %454 {offsets = [0, 32], sizes = [16, 32], strides = [1, 1]} : vector<16x96xf32> to vector<16x32xf32>
    %457 = arith.addf %455, %456 : vector<16x32xf32>
    %458 = vector.extract_strided_slice %454 {offsets = [0, 64], sizes = [16, 32], strides = [1, 1]} : vector<16x96xf32> to vector<16x32xf32>
    %459 = arith.addf %457, %458 : vector<16x32xf32>
    %cst_130 = arith.constant 0.333333343 : f32
    %460 = vector.broadcast %cst_130 : f32 to vector<16x32xf32>
    %461 = arith.mulf %459, %460 : vector<16x32xf32>
    %462 = arith.addf %406, %461 : vector<16x32xf32>
    %463 = vector.extract_strided_slice %0 {offsets = [0, 5, 0], sizes = [1, 1, 32], strides = [1, 1, 1]} : vector<2x8x96xf32> to vector<1x1x32xf32>
    %464 = vector.shape_cast %463 : vector<1x1x32xf32> to vector<1x32xf32>
    %465 = vector.extract_strided_slice %0 {offsets = [0, 5, 32], sizes = [1, 1, 32], strides = [1, 1, 1]} : vector<2x8x96xf32> to vector<1x1x32xf32>
    %466 = vector.shape_cast %465 : vector<1x1x32xf32> to vector<1x32xf32>
    %cst_131 = arith.constant dense<0.000000e+00> : vector<16xf32>
    %467 = vector.multi_reduction <add>, %462, %cst_131 [1] : vector<16x32xf32> to vector<16xf32>
    %468 = vector.shape_cast %467 : vector<16xf32> to vector<16x1xf32>
    %cst_132 = arith.constant 3.200000e+01 : f32
    %469 = vector.broadcast %cst_132 : f32 to vector<16x1xf32>
    %470 = arith.divf %468, %469 : vector<16x1xf32>
    %471 = vector.broadcast %470 : vector<16x1xf32> to vector<16x32xf32>
    %472 = arith.subf %462, %471 : vector<16x32xf32>
    %473 = arith.mulf %472, %472 : vector<16x32xf32>
    %cst_133 = arith.constant dense<0.000000e+00> : vector<16xf32>
    %474 = vector.multi_reduction <add>, %473, %cst_133 [1] : vector<16x32xf32> to vector<16xf32>
    %475 = vector.shape_cast %474 : vector<16xf32> to vector<16x1xf32>
    %cst_134 = arith.constant 0.0322580636 : f32
    %476 = vector.broadcast %cst_134 : f32 to vector<16x1xf32>
    %477 = arith.mulf %475, %476 : vector<16x1xf32>
    %478 = vector.broadcast %470 : vector<16x1xf32> to vector<16x32xf32>
    %479 = arith.subf %462, %478 : vector<16x32xf32>
    %480 = vector.broadcast %464 : vector<1x32xf32> to vector<16x32xf32>
    %481 = arith.mulf %480, %479 : vector<16x32xf32>
    %482 = math.sqrt %477 : vector<16x1xf32>
    %cst_135 = arith.constant 9.99999997E-7 : f32
    %483 = vector.broadcast %cst_135 : f32 to vector<16x1xf32>
    %484 = arith.addf %482, %483 : vector<16x1xf32>
    %485 = vector.broadcast %484 : vector<16x1xf32> to vector<16x32xf32>
    %486 = arith.divf %481, %485 : vector<16x32xf32>
    %487 = vector.broadcast %466 : vector<1x32xf32> to vector<16x32xf32>
    %488 = arith.addf %486, %487 : vector<16x32xf32>
    %c0_136 = arith.constant 0 : index
    %c0_137 = arith.constant 0 : index
    %489 = vector.load %arg5[%c0_136, %c0_137] : memref<16x32xf32, #tpu.memory_space<vmem>>, vector<16x32xf32>
    tpu.vector_store %arg5[%c0_136, %c0_137], %488 {strides = array<i32>} : memref<16x32xf32, #tpu.memory_space<vmem>>, vector<16x32xf32>,
    return
  }
}

</mosaic_0001>

<bundles_post_ra>
// kernel: har_transformer_forward.1
= control target key start
LH: loop header
LB: loop body
LE: loop exit
PB: predicated region body
PF: predicated region fallthrough
CT: control target
= control target key end

     0   :  { %10 = vsyncpa [#allocation3], 0  ;;  %s23510_s0 = inlined_call_operand.hbm [shape: f32[16,32], index: 0, kind: input, shape index: {}]   ;;  %s23511_s1 = inlined_call_operand.hbm [shape: f32[2,32,96], index: 1, kind: input, shape index: {}]   ;;  %s23512_s2 = inlined_call_operand.hbm [shape: f32[2,32,32], index: 2, kind: input, shape index: {}]   ;;  %s23513_s3 = inlined_call_operand.hbm [shape: f32[2,160,96], index: 3, kind: input, shape index: {}]   ;;  %s23514_s4 = inlined_call_operand.hbm [shape: f32[2,8,96], index: 4, kind: input, shape index: {}]   ;;  %s23515_s5 = inlined_call_operand.hbm [shape: f32[16,32], index: 5, kind: output, shape index: {}]  }
   0x1   :  { %11 = vsyncpa [#allocation6], 0 }
   0x2   :  { %12 = vsyncpa [#allocation9], 0 }
   0x3   :  { %13 = vsyncpa [#allocation4], 0  ;;  %s21086_s18 = smov [#allocation5]   ;;  %s21087_s20 = smov [#allocation8]  }
   0x4   :  { %s31_s19 = sshll.u32 %s21086_s18, 4  ;;  %s55_s21 = sshll.u32 %s21087_s20, 4  ;;  %s32_s19 = int_to_ptr.vmem [resolvable:$true] %s31_s19  ;;  %s56_s21 = int_to_ptr.vmem [resolvable:$true] %s55_s21 }
   0x5   :  { %s20966_s22 = scalar_lea.vmem %s32_s19, 1024  ;;  %p20971_p1 = scmp.lt.s32.totalorder %s32_s19, %s32_s19 }
   0x6   :  { %p20967_p0 = scmp.ne.s32.totalorder %s32_s19, %s20966_s22  ;;  %p20972_p2 = scmp.lt.s32.totalorder %s20966_s22, %s20966_s22 }
   0x8   :  { %p20973_p3 = por %p20972_p2, %p20971_p1 }
   0xa   :  { %p20974_p4 = pnand %p20973_p3, %p20967_p0 }
   0xc   :  { %20977 = shalt.err (!%p20974_p4)
}
   0xd   :  { %s21088_s23 = smov 128   ;;  %s21089_s24 = smov 8  }
   0xe   :  { %37 = dma.hbm_to_vmem [thread:$0]  %s23511_s1, 1024, %s32_s19, [#allocation6], %s21088_s23, %s21088_s23, %s21089_s24  }
   0xf   :  { %s20986_s27 = scalar_lea.vmem %s56_s21, 5120  ;;  %p20991_p6 = scmp.lt.s32.totalorder %s56_s21, %s56_s21 }
  0x10   :  { %p20987_p5 = scmp.ne.s32.totalorder %s56_s21, %s20986_s27  ;;  %p20992_p7 = scmp.lt.s32.totalorder %s20986_s27, %s20986_s27 }
  0x12   :  { %p20993_p8 = por %p20992_p7, %p20991_p6 }
  0x14   :  { %p20994_p9 = pnand %p20993_p8, %p20987_p5 }
  0x16   :  { %20997 = shalt.err (!%p20994_p9)
}
  0x17   :  { %61 = dma.hbm_to_vmem [thread:$0]  %s23513_s3, 5120, %s56_s21, [#allocation9], %s21088_s23, %s21088_s23, %s21089_s24  }
  0x18   :  { %s21090_s30 = smov [#allocation2]   ;;  %s21091_s7 = smov [#allocation7]  }
  0x19   :  { %s19_s6 = sshll.u32 %s21090_s30, 4  ;;  %s43_s8 = sshll.u32 %s21091_s7, 4  ;;  %s20_s6 = int_to_ptr.vmem [resolvable:$true] %s19_s6  ;;  %s44_s8 = int_to_ptr.vmem [resolvable:$true] %s43_s8 }
  0x1a   :  { %s21006_s1 = scalar_lea.vmem %s20_s6, 256  ;;  %p21011_p11 = scmp.lt.s32.totalorder %s20_s6, %s20_s6 }
  0x1b   :  { %p21007_p10 = scmp.ne.s32.totalorder %s20_s6, %s21006_s1  ;;  %p21012_p12 = scmp.lt.s32.totalorder %s21006_s1, %s21006_s1 }
  0x1d   :  { %p21013_p13 = por %p21012_p12, %p21011_p11 }
  0x1f   :  { %p21014_p0 = pnand %p21013_p13, %p21007_p10 }
  0x21   :  { %21017 = shalt.err (!%p21014_p0)
}
  0x22   :  { %25 = dma.hbm_to_vmem [thread:$0]  %s23510_s0, 256, %s20_s6, [#allocation3], %s21088_s23, %s21088_s23, %s21089_s24  }
  0x23   :  { %s21026_s3 = scalar_lea.vmem %s44_s8, 1024  ;;  %p21031_p2 = scmp.lt.s32.totalorder %s44_s8, %s44_s8 }
  0x24   :  { %p21027_p1 = scmp.ne.s32.totalorder %s44_s8, %s21026_s3  ;;  %p21032_p3 = scmp.lt.s32.totalorder %s21026_s3, %s21026_s3 }
  0x26   :  { %p21033_p4 = por %p21032_p3, %p21031_p2 }
  0x28   :  { %p21034_p5 = pnand %p21033_p4, %p21027_p1 }
  0x2a   :  { %21037 = shalt.err (!%p21034_p5)
}
  0x2b   :  { %49 = dma.hbm_to_vmem [thread:$0]  %s23512_s2, 1024, %s44_s8, [#allocation6], %s21088_s23, %s21088_s23, %s21089_s24  }
  0x2c   :  { %s21092_s13 = smov [#allocation10]  }
  0x2d   :  { %s67_s14 = sshll.u32 %s21092_s13, 4  ;;  %s68_s14 = int_to_ptr.vmem [resolvable:$true] %s67_s14 }
  0x2e   :  { %s21046_s15 = scalar_lea.vmem %s68_s14, 256  ;;  %p21051_p7 = scmp.lt.s32.totalorder %s68_s14, %s68_s14 }
  0x2f   :  { %p21047_p6 = scmp.ne.s32.totalorder %s68_s14, %s21046_s15  ;;  %p21052_p8 = scmp.lt.s32.totalorder %s21046_s15, %s21046_s15 }
  0x31   :  { %p21053_p9 = por %p21052_p8, %p21051_p7 }
  0x33   :  { %p21054_p10 = pnand %p21053_p9, %p21047_p6 }
  0x35   :  { %21057 = shalt.err (!%p21054_p10)
}
  0x36   :  { %73 = dma.hbm_to_vmem [thread:$0]  %s23514_s4, 256, %s68_s14, [#allocation9], %s21088_s23, %s21088_s23, %s21089_s24  }
  0x37   :  { %21078 = dma.done.wait [#allocation3], 256  }
  0x38   :  { %21079 = vsyncadd [#allocation3], 4294967040 }
  0x39   :  { %21080 = dma.done.wait [#allocation6], 2048  }
  0x3a   :  { %21081 = vsyncadd [#allocation6], 4294965248 }
  0x3b   :  { %21082 = dma.done.wait [#allocation9], 5376  }
  0x3c   :  { %21083 = vsyncadd [#allocation9], 4294961920  ;;  %vm93_vm0 = vcmask 261120   ;;  %v91_v0 = vld [vmem:[#allocation2] sm:$0xff]  ;;  %v92_v1 = vld [vmem:[#allocation2 + $0x8] sm:$0xff]  ;;  %v115_v4 = vlaneseq  ;;  %s21093_s2 = smov 96  }
  0x3d   :  { %v94_v2 = vsel %vm93_vm0, %v91_v0, 0.0  ;;  %v97_v3 = vsel %vm93_vm0, %v92_v1, 0.0  ;;  %v21175_v7 = vld [vmem:[#allocation10] sm:$0xff]  ;;  %v150_v19 = vld [vmem:[#allocation5 + $0x18] sm:$0xff]  ;;  %v149_v21 = vld [vmem:[#allocation5 + $0x10] sm:$0xff]  ;;  %vm21095_vm5 = vmmov 0  }
  0x3e   :  { %95 = vadd.xlane.f32.xlu0 %v94_v2  ;;  %v21172_v5 = vshrl.u32 %v115_v4, 7  ;;  %v21194_v20 = vand.u32 4294901760, %v150_v19  ;;  %v21199_v23 = vand.u32 4294901760, %v149_v21  ;;  %v148_v24 = vld [vmem:[#allocation5 + $0x8] sm:$0xff]  ;;  %v147_v28 = vld [vmem:[#allocation5] sm:$0xff]  ;;  %vm692_vm6 = vcmask 64512  }
  0x3f   :  { %v21209_v27 = vand.u32 4294901760, %v148_v24  ;;  %v21221_v32 = vand.u32 4294901760, %v147_v28  ;;  %s21096_s4 = smov 88   ;;  %s21097_s17 = smov 120   ;;  %vm4374_vm7 = vcmask 130048   ;;  %vm4376_vm8 = vcmask 195584  }
  0x40   :  { %v23518_v6 = vsub.s32 3, %v21172_v5  ;;  %v21197_v22 = vsub.f32 %v150_v19, %v21194_v20  ;;  %19599 = vmatprep.subr.mxu0 %v21194_v20  ;;  %v21207_v26 = vsub.f32 %v149_v21, %v21199_v23  ;;  %s21098_s18 = smov 64   ;;  %s21099_s19 = smov 80   ;;  %vm8662_vm13 = vcmask 1041408  }
  0x41   :  { %19600 = vmatpush3.msra.mxu0 %v21194_v20  ;;  %v21219_v31 = vsub.f32 %v148_v24, %v21209_v27  ;;  %v21231_v36 = vsub.f32 %v147_v28, %v21221_v32  ;;  %s21100_s20 = smov 112   ;;  %s21101_s21 = smov 56   ;;  %vm8667_vm14 = vcmask 1046528   ;;  %vm8688_vm15 = vcmask 1043456  }
  0x42   :  { %98 = vadd.xlane.f32.xlu0 %v97_v3  ;;  %v21180_v8 = vrot.slane %v21175_v7, %v23518_v6  ;;  %v21204_v25 = vand.u32 4294901760, %v21197_v22  ;;  %19601 = vmatprep.subr.mxu0 %v21199_v23  ;;  %v21216_v30 = vand.u32 4294901760, %v21207_v26  ;;  %s21102_s22 = smov 48   ;;  %s21103_s25 = smov 104  }
  0x43   :  { %19602 = vmatpush3.msra.mxu0 %v21199_v23  ;;  %v21228_v35 = vand.u32 4294901760, %v21219_v31  ;;  %v21238_v39 = vand.u32 4294901760, %v21231_v36  ;;  %s21104_s26 = smov 72   ;;  %s21105_s27 = smov 40  }
  0x44   :  { %v278_v29 = vsub.f32 %v21197_v22, %v21204_v25  ;;  %19603 = vmatprep.subr.mxu0 %v21209_v27  ;;  %v285_v34 = vsub.f32 %v21207_v26, %v21216_v30  ;;  %s21106_s28 = smov 16   ;;  %s21107_s29 = smov 24  }
  0x45   :  { %19604 = vmatpush3.msra.mxu0 %v21209_v27  ;;  %v292_v38 = vsub.f32 %v21219_v31, %v21228_v35  ;;  %v299_v41 = vsub.f32 %v21231_v36, %v21238_v39  ;;  %s21108_s30 = smov 32   ;;  %s21109_s6 = smov [#allocation11]  }
  0x46   :  { %v279_v33 = vand.u32 4294901760, %v278_v29  ;;  %19605 = vmatprep.subr.mxu0 %v21221_v32  ;;  %v286_v37 = vand.u32 4294901760, %v285_v34  ;;  %s19057_s7 = sshll.u32 %s21109_s6, 4  ;;  %s19058_s7 = int_to_ptr.vmem [resolvable:$true] %s19057_s7 }
  0x47   :  { %19606 = vmatpush3.msra.mxu0 %v21221_v32  ;;  %v293_v40 = vand.u32 4294901760, %v292_v38  ;;  %v300_v42 = vand.u32 4294901760, %v299_v41  ;;  %s21058_s8 = scalar_lea.vmem %s19058_s7, 256  ;;  %p21063_p12 = scmp.lt.s32.totalorder %s19058_s7, %s19058_s7 }
  0x48   :  { %19610 = vmatprep.subr.mxu1 %v279_v33  ;;  %19621 = vmatprep.subr.mxu0 %v21197_v22  ;;  %p21059_p11 = scmp.ne.s32.totalorder %s19058_s7, %s21058_s8  ;;  %p21064_p13 = scmp.lt.s32.totalorder %s21058_s8, %s21058_s8 }
  0x49   :  { %19611 = vmatpush3.msra.mxu1 %v279_v33 }
  0x4a   :  { %19612 = vmatprep.subr.mxu1 %v286_v37  ;;  %p21065_p0 = por %p21064_p13, %p21063_p12 }
  0x4b   :  { %19613 = vmatpush3.msra.mxu1 %v286_v37 }
  0x4c   :  { %19614 = vmatprep.subr.mxu1 %v293_v40  ;;  %p21066_p1 = pnand %p21065_p0, %p21059_p11 }
  0x4d   :  { %19615 = vmatpush3.msra.mxu1 %v293_v40 }
  0x4e   :  { %19616 = vmatprep.subr.mxu1 %v300_v42 }
  0x4f   :  { %19617 = vmatpush3.msra.mxu1 %v300_v42 }
  0x50   :  { %19632 = vmatprep.subr.mxu1 %v21194_v20 }
  0x58   :  { %142 = vrot.lane.b32.xlu0 %v21180_v8, %s21093_s2 }
  0xc7   :  { %v96_v9 = vpop.xlane.xlu0 %95 }
  0xc8   :  { %v101_v10 = vmul.f32 0.03125, %v96_v9 }
  0xca   :  { %v21184_v11 = vsub.f32 %v91_v0, %v101_v10 }
  0xcb   :  { %v99_v12 = vpop.xlane.xlu0 %98 }
  0xcc   :  { %v102_v13 = vmul.f32 0.03125, %v99_v12  ;;  %v105_v14 = vmul.f32 %v21184_v11, %v21184_v11  ;;  %v119_v59 = vmul.f32 %v21180_v8, %v21184_v11 }
  0xce   :  { %v21188_v15 = vsub.f32 %v92_v1, %v102_v13  ;;  %v107_v16 = vsel %vm93_vm0, %v105_v14, 0.0 }
  0xcf   :  { %108 = vadd.xlane.f32.xlu1 %v107_v16  ;;  %v143_v61 = vpop.permute.xlu0 %142 }
  0xd0   :  { %v106_v17 = vmul.f32 %v21188_v15, %v21188_v15  ;;  %v120_v63 = vmul.f32 %v21180_v8, %v21188_v15 }
  0xd2   :  { %v110_v18 = vsel %vm93_vm0, %v106_v17, 0.0 }
  0xd3   :  { %111 = vadd.xlane.f32.xlu1 %v110_v18 }
 0x158   :  { %v109_v43 = vpop.xlane.xlu1 %108 }
 0x159   :  { %v113_v44 = vmul.f32 0.032258064, %v109_v43 }
 0x15b   :  { %20847 = vrsqrt.f32 %v113_v44  ;;  %vm123_vm1 = vcmp.eq.f32.partialorder %v113_v44, inf  ;;  %v126_v49 = vand.u32 2147483648, %v113_v44  ;;  %vm125_vm2 = vcmp.eq.f32.partialorder %v113_v44, 0.0 }
 0x15c   :  { %v112_v45 = vpop.xlane.xlu1 %111 }
 0x15d   :  { %v114_v46 = vmul.f32 0.032258064, %v112_v45 }
 0x15f   :  { %20849 = vrsqrt.f32 %v114_v46  ;;  %vm130_vm3 = vcmp.eq.f32.partialorder %v114_v46, inf  ;;  %v133_v55 = vand.u32 2147483648, %v114_v46  ;;  %vm132_vm4 = vcmp.eq.f32.partialorder %v114_v46, 0.0 }
 0x168   :  { %v20848_v47 = vpop.eup %20847 }
 0x169   :  { %v122_v48 = vmul.f32 %v20848_v47, %v113_v44 }
 0x16b   :  { %v124_v50 = vsel %vm123_vm1, %v113_v44, %v122_v48  ;;  %vm8674_vm1 = vcmask 1045504  }
 0x16c   :  { %v20850_v51 = vpop.eup %20849  ;;  %v127_v52 = vsel %vm125_vm2, %v126_v49, %v124_v50  ;;  %vm8681_vm2 = vcmask 1044480  }
 0x16d   :  { %v129_v53 = vmul.f32 %v20850_v51, %v114_v46  ;;  %v135_v54 = vadd.f32 1e-06, %v127_v52 }
 0x16f   :  { %v131_v56 = vsel %vm130_vm3, %v114_v46, %v129_v53  ;;  %20851 = vrcp.f32 %v135_v54  ;;  %vm8693_vm3 = vcmask 523264  }
 0x170   :  { %v134_v57 = vsel %vm132_vm4, %v133_v55, %v131_v56  ;;  %vm8695_vm4 = vcmask 785408  }
 0x171   :  { %v136_v58 = vadd.f32 1e-06, %v134_v57 }
 0x173   :  { %20853 = vrcp.f32 %v136_v58 }
 0x17c   :  { %v20852_v60 = vpop.eup %20851 }
 0x17d   :  { %v138_v62 = vmul.f32 %v20852_v60, %v119_v59 }
 0x17f   :  { %v145_v0 = vadd.f32 %v143_v61, %v138_v62 }
 0x180   :  { %v20854_v1 = vpop.eup %20853 }
 0x181   :  { %v140_v2 = vmul.f32 %v20854_v1, %v120_v63  ;;  %v156_v3 = vsel %vm93_vm0, %v145_v0, 0 }
 0x182   :  { %v230_v4 = vand.u32 4294901760, %v156_v3 }
 0x183   :  { %v146_v9 = vadd.f32 %v143_v61, %v140_v2 }
 0x184   :  { %v231_v10 = vsub.f32 %v156_v3, %v230_v4  ;;  %19618 = vmatprep.mubr.f32.mxu1 %v230_v4 }
 0x185   :  { %v159_v12 = vsel %vm93_vm0, %v146_v9, 0 }
 0x186   :  { %v240_v13 = vand.u32 4294901760, %v159_v12  ;;  %v232_v14 = vand.u32 4294901760, %v231_v10 }
 0x188   :  { %v241_v11 = vsub.f32 %v159_v12, %v240_v13  ;;  %19619 = vmatmul.mubr.f32.vlgmr.msra.gmra.mxu1 %v240_v13  ;;  %v233_v16 = vsub.f32 %v231_v10, %v232_v14 }
 0x189   :  { %19633 = vmatpush3.msra.mxu1 %v21194_v20  ;;  %19640 = vmatprep.mubr.f32.mxu1 %v232_v14 }
 0x18a   :  { %19634 = vmatprep.subr.mxu1 %v21199_v23  ;;  %v234_v15 = vand.u32 4294901760, %v233_v16  ;;  %v242_v17 = vand.u32 4294901760, %v241_v11 }
 0x18b   :  { %19635 = vmatpush3.msra.mxu1 %v21199_v23 }
 0x18c   :  { %19636 = vmatprep.subr.mxu1 %v21209_v27  ;;  %19607 = vmatprep.mubr.f32.mxu0 %v234_v15  ;;  %v243_v18 = vsub.f32 %v241_v11, %v242_v17 }
 0x18d   :  { %19637 = vmatpush3.msra.mxu1 %v21209_v27 }
 0x18e   :  { %19638 = vmatprep.subr.mxu1 %v21221_v32  ;;  %v244_v19 = vand.u32 4294901760, %v243_v18 }
 0x18f   :  { %19639 = vmatpush3.msra.mxu1 %v21221_v32 }
 0x190   :  { %19641 = vmatmul.mubr.f32.vlgmr.msra.gmra.mxu1 %v242_v17  ;;  %19654 = vmatprep.subr.mxu1 %v21194_v20 }
 0x191   :  { %19608 = vmatmul.mubr.f32.vlgmr.msra.gmra.mxu0 %v244_v19  ;;  %19655 = vmatpush3.msra.mxu1 %v21194_v20  ;;  %v23517_v20 = vsub.s32 0, %v21172_v5 }
 0x192   :  { %19622 = vmatpush3.msra.mxu0 %v21197_v22  ;;  %19662 = vmatprep.mubr.f32.mxu1 %v230_v4 }
 0x193   :  { %19623 = vmatprep.subr.mxu0 %v21207_v26  ;;  %19629 = vmatprep.mubr.f32.mxu0 %v231_v10  ;;  %v154_v21 = vrot.slane %v21175_v7, %v23517_v20 }
 0x194   :  { %19656 = vmatprep.subr.mxu1 %v21199_v23  ;;  %19624 = vmatpush3.msra.mxu0 %v21207_v26 }
 0x195   :  { %19657 = vmatpush3.msra.mxu1 %v21199_v23  ;;  %19625 = vmatprep.subr.mxu0 %v21219_v31 }
 0x196   :  { %19658 = vmatprep.subr.mxu1 %v21209_v27  ;;  %19626 = vmatpush3.msra.mxu0 %v21219_v31 }
 0x197   :  { %19659 = vmatpush3.msra.mxu1 %v21209_v27  ;;  %19627 = vmatprep.subr.mxu0 %v21231_v36 }
 0x198   :  { %19660 = vmatprep.subr.mxu1 %v21221_v32  ;;  %19628 = vmatpush3.msra.mxu0 %v21231_v36 }
 0x199   :  { %19661 = vmatpush3.msra.mxu1 %v21221_v32  ;;  %19630 = vmatmul.mubr.f32.vlgmr.msra.gmra.mxu0 %v241_v11 }
 0x19a   :  { %19643 = vmatprep.subr.mxu0 %v21204_v25  ;;  %19663 = vmatmul.mubr.f32.vlgmr.msra.gmra.mxu1 %v240_v13 }
 0x19b   :  { %19644 = vmatpush3.msra.mxu0 %v21204_v25  ;;  %19651 = vmatprep.mubr.f32.mxu0 %v230_v4 }
 0x19c   :  { %19645 = vmatprep.subr.mxu0 %v21216_v30 }
 0x19d   :  { %19646 = vmatpush3.msra.mxu0 %v21216_v30 }
 0x19e   :  { %19647 = vmatprep.subr.mxu0 %v21228_v35 }
 0x19f   :  { %19648 = vmatpush3.msra.mxu0 %v21228_v35  ;;  %v23539_v35 = vmov 0.0  }
 0x1a0   :  { %19649 = vmatprep.subr.mxu0 %v21238_v39  ;;  %19670 = vmatprep.subr.mxu1 %v23539_v35 }
 0x1a1   :  { %19650 = vmatpush3.msra.mxu0 %v21238_v39  ;;  %19672 = vmatprep.mubr.msk.f32.mxu1 %vm21095_vm5, %v23539_v35 }
 0x1a2   :  { %19652 = vmatmul.mubr.f32.vlgmr.msra.gmra.mxu0 %v240_v13  ;;  %19665 = vmatprep.subr.mxu0 %v23539_v35 }
 0x1a3   :  { %19667 = vmatprep.mubr.msk.f32.mxu0 %vm21095_vm5, %v23539_v35 }
 0x248   :  { %v19620_v24 = vpop.f32.mrf.mxu1 }
 0x24a   :  { %v337_v27 = vpop.f32.mrf.mxu1 }
 0x250   :  { %v19642_v31 = vpop.f32.mrf.mxu1 }
 0x251   :  { %v19609_v22 = vpop.f32.mrf.mxu0 }
 0x252   :  { %v247_v23 = vadd.f32 %v19609_v22, %v154_v21  ;;  %v507_v7 = vpop.f32.mrf.mxu1 }
 0x253   :  { %v236_v26 = vpop.f32.mrf.mxu0 }
 0x254   :  { %v344_v25 = vadd.f32 %v19620_v24, %v247_v23  ;;  %v237_v28 = vadd.f32 %v236_v26, %v154_v21 }
 0x256   :  { %v338_v34 = vadd.f32 %v337_v27, %v237_v28 }
 0x259   :  { %v19631_v29 = vpop.f32.mrf.mxu0 }
 0x25a   :  { %v431_v30 = vadd.f32 %v19631_v29, %v344_v25  ;;  %v19664_v37 = vpop.f32.mrf.mxu1 }
 0x25b   :  { %v423_v32 = vpop.f32.mrf.mxu0 }
 0x25c   :  { %v516_v33 = vadd.f32 %v19642_v31, %v431_v30  ;;  %v424_v36 = vadd.f32 %v423_v32, %v338_v34  ;;  %v679_v44 = vpop.f32.mrf.mxu1 }
 0x25e   :  { %v508_v40 = vadd.f32 %v507_v7, %v424_v36 }
 0x262   :  { %v19653_v38 = vpop.f32.mrf.mxu0 }
 0x263   :  { %v605_v39 = vadd.f32 %v19653_v38, %v516_v33 }
 0x264   :  { %v598_v41 = vpop.f32.mrf.mxu0 }
 0x265   :  { %v21290_v42 = vadd.f32 %v19664_v37, %v605_v39  ;;  %v599_v43 = vadd.f32 %v598_v41, %v508_v40 }
 0x267   :  { %v21292_v45 = vadd.f32 %v679_v44, %v599_v43 }
 0x269   :  { %690 = vrot.lane.b32.xlu1 %v21292_v45, %s21093_s2  ;;  %v693_v46 = vsel %vm692_vm6, %v21292_v45, 0 }
 0x26a   :  { %v763_v47 = vand.u32 4294901760, %v693_v46 }
 0x26c   :  { %v764_v48 = vsub.f32 %v693_v46, %v763_v47 }
 0x26e   :  { %v765_v49 = vand.u32 4294901760, %v764_v48 }
 0x270   :  { %v766_v52 = vsub.f32 %v764_v48, %v765_v49 }
 0x272   :  { %v767_v55 = vand.u32 4294901760, %v766_v52 }
 0x2db   :  { %v691_v50 = vpop.permute.xlu1 %690 }
 0x2dc   :  { %v695_v51 = vsel %vm692_vm6, %v691_v50, 0 }
 0x2dd   :  { %v728_v53 = vand.u32 4294901760, %v695_v51 }
 0x2df   :  { %v805_v54 = vsub.f32 %v695_v51, %v728_v53  ;;  %19666 = vmatpush3.xpose.msra.mxu0 %v728_v53 }
 0x2e0   :  { %19675 = vmatprep.subr.mxu0 %v23539_v35 }
 0x2e1   :  { %v806_v56 = vand.u32 4294901760, %v805_v54 }
 0x2e2   :  { %19668 = vmatmul.mubr.f32.vlgmr.msra.gmra.mxu0 %v767_v55 }
 0x2e3   :  { %v807_v57 = vsub.f32 %v805_v54, %v806_v56  ;;  %19676 = vmatpush3.xpose.msra.mxu0 %v805_v54  ;;  %19677 = vmatprep.mubr.msk.f32.mxu0 %vm21095_vm5, %v23539_v35 }
 0x2e4   :  { %19685 = vmatprep.subr.mxu0 %v23539_v35 }
 0x2e5   :  { %v808_v58 = vand.u32 4294901760, %v807_v57 }
 0x2e6   :  { %19678 = vmatmul.mubr.f32.vlgmr.msra.gmra.mxu0 %v764_v48 }
 0x2e7   :  { %19671 = vmatpush3.xpose.msra.mxu1 %v808_v58  ;;  %19686 = vmatpush3.xpose.msra.mxu0 %v806_v56 }
 0x2e8   :  { %19687 = vmatprep.mubr.msk.f32.mxu0 %vm21095_vm5, %v23539_v35  ;;  %19680 = vmatprep.subr.mxu1 %v23539_v35 }
 0x2e9   :  { %19695 = vmatprep.subr.mxu0 %v23539_v35 }
 0x2ea   :  { %19673 = vmatmul.mubr.f32.vlgmr.msra.gmra.mxu1 %v763_v47  ;;  %19688 = vmatmul.mubr.f32.vlgmr.msra.gmra.mxu0 %v763_v47 }
 0x2eb   :  { %19681 = vmatpush3.xpose.msra.mxu1 %v728_v53  ;;  %19682 = vmatprep.mubr.msk.f32.mxu1 %vm21095_vm5, %v23539_v35 }
 0x2ec   :  { %19690 = vmatprep.subr.mxu1 %v23539_v35  ;;  %19697 = vmatprep.mubr.msk.f32.mxu0 %vm21095_vm5, %v23539_v35 }
 0x2ee   :  { %19683 = vmatmul.mubr.f32.vlgmr.msra.gmra.mxu1 %v765_v49 }
 0x2ef   :  { %19691 = vmatpush3.xpose.msra.mxu1 %v728_v53  ;;  %19692 = vmatprep.mubr.msk.f32.mxu1 %vm21095_vm5, %v23539_v35 }
 0x2f0   :  { %19700 = vmatprep.subr.mxu1 %v23539_v35 }
 0x2f2   :  { %19693 = vmatmul.mubr.f32.vlgmr.msra.gmra.mxu1 %v763_v47 }
 0x2f3   :  { %19702 = vmatprep.mubr.msk.f32.mxu1 %vm21095_vm5, %v23539_v35 }
 0x3a2   :  { %v769_v59 = vpop.f32.mrf.mxu0 }
 0x3a4   :  { %v19669_v60 = vpop.f32.mrf.mxu0 }
 0x3a6   :  { %v919_v61 = vpop.f32.mrf.mxu0 }
 0x3a8   :  { %v19679_v62 = vpop.f32.mrf.mxu0 }
 0x3aa   :  { %v845_v63 = vpop.f32.mrf.mxu1  ;;  %v1067_v0 = vpop.f32.mrf.mxu0 }
 0x3ab   :  { %v846_v1 = vadd.f32 %v845_v63, %v769_v59 }
 0x3ac   :  { %v19674_v2 = vpop.f32.mrf.mxu1  ;;  %v19689_v3 = vpop.f32.mrf.mxu0 }
 0x3ad   :  { %v920_v4 = vadd.f32 %v919_v61, %v846_v1 }
 0x3ae   :  { %v993_v9 = vpop.f32.mrf.mxu1 }
 0x3af   :  { %v994_v10 = vadd.f32 %v993_v9, %v920_v4 }
 0x3b0   :  { %v19684_v12 = vpop.f32.mrf.mxu1 }
 0x3b1   :  { %v1068_v13 = vadd.f32 %v1067_v0, %v994_v10 }
 0x3b2   :  { %v1139_v14 = vpop.f32.mrf.mxu1 }
 0x3b3   :  { %v1140_v11 = vadd.f32 %v1139_v14, %v1068_v13 }
 0x3b4   :  { %v19694_v16 = vpop.f32.mrf.mxu1 }
 0x3b5   :  { %v1143_v15 = vmul.f32 0.35355338, %v1140_v11 }
 0x3b7   :  { %v1144_v17 = vsel %vm692_vm6, %v1143_v15, -inf }
 0x3b8   :  { %1145 = vmax.xlane.f32.xlu1 %v1144_v17 }
 0x3c9   :  { %1609 = vrot.lane.b32.xlu1 %v21292_v45, %s21096_s4 }
 0x3cd   :  { %1607 = vrot.lane.b32.xlu1 %v21292_v45, %s21097_s17 }
 0x441   :  { %v1146_v18 = vpop.xlane.xlu1 %1145 }
 0x442   :  { %v1147_v19 = vsub.f32 %v1143_v15, %v1146_v18 }
 0x444   :  { %v1148_v21 = vmul.f32 1.442695, %v1147_v19 }
 0x445   :  { %v1610_v26 = vpop.permute.xlu1 %1609 }
 0x446   :  { %20855 = vpow2.f32 %v1148_v21  ;;  %v1613_v29 = vsel %vm692_vm6, %v1610_v26, 0 }
 0x447   :  { %v1646_v31 = vand.u32 4294901760, %v1613_v29 }
 0x449   :  { %v1723_v36 = vsub.f32 %v1613_v29, %v1646_v31  ;;  %v1608_v37 = vpop.permute.xlu1 %1607 }
 0x44a   :  { %v1611_v41 = vsel %vm692_vm6, %v1608_v37, 0 }
 0x44b   :  { %v1724_v40 = vand.u32 4294901760, %v1723_v36  ;;  %v1681_v44 = vand.u32 4294901760, %v1611_v41 }
 0x44d   :  { %v1725_v47 = vsub.f32 %v1723_v36, %v1724_v40  ;;  %v1682_v49 = vsub.f32 %v1611_v41, %v1681_v44 }
 0x44f   :  { %v1726_v51 = vand.u32 4294901760, %v1725_v47  ;;  %v1683_v52 = vand.u32 4294901760, %v1682_v49 }
 0x451   :  { %v1684_v53 = vsub.f32 %v1682_v49, %v1683_v52 }
 0x453   :  { %v20856_v22 = vpop.eup %20855  ;;  %v1685_v54 = vand.u32 4294901760, %v1684_v53 }
 0x454   :  { %v1150_v23 = vsel %vm692_vm6, %v20856_v22, 0.0 }
 0x455   :  { %1151 = vadd.xlane.f32.xlu0 %v1150_v23 }
 0x46b   :  { %1155 = vrot.lane.b32.xlu0 %v21292_v45, %s21098_s18 }
 0x4de   :  { %v1152_v24 = vpop.xlane.xlu0 %1151 }
 0x4df   :  { %20857 = vrcp.f32 %v1152_v24 }
 0x4e2   :  { %v1156_v25 = vpop.permute.xlu0 %1155 }
 0x4e3   :  { %v1192_v27 = vand.u32 4294901760, %v1156_v25 }
 0x4e5   :  { %v1269_v28 = vsub.f32 %v1156_v25, %v1192_v27  ;;  %19696 = vmatpush3.msra.mxu0 %v1192_v27 }
 0x4e6   :  { %19705 = vmatprep.subr.mxu0 %v23539_v35 }
 0x4e7   :  { %v1270_v30 = vand.u32 4294901760, %v1269_v28 }
 0x4e9   :  { %v1271_v32 = vsub.f32 %v1269_v28, %v1270_v30 }
 0x4eb   :  { %v1272_v33 = vand.u32 4294901760, %v1271_v32 }
 0x4ec   :  { %v20858_v34 = vpop.eup %20857 }
 0x4ed   :  { %19701 = vmatpush3.msra.mxu1 %v1272_v33  ;;  %v1154_v7 = vmul.f32 %v20858_v34, %v20856_v22 }
 0x4ee   :  { %19710 = vmatprep.subr.mxu1 %v23539_v35 }
 0x4ef   :  { %v1159_v38 = vsel %vm692_vm6, %v1154_v7, 0 }
 0x4f0   :  { %v1227_v39 = vand.u32 4294901760, %v1159_v38 }
 0x4f2   :  { %v1228_v43 = vsub.f32 %v1159_v38, %v1227_v39  ;;  %19703 = vmatmul.mubr.f32.vlgmr.msra.gmra.mxu1 %v1227_v39 }
 0x4f3   :  { %19711 = vmatpush3.msra.mxu1 %v1192_v27  ;;  %19712 = vmatprep.mubr.msk.f32.mxu1 %vm21095_vm5, %v23539_v35 }
 0x4f4   :  { %19720 = vmatprep.subr.mxu1 %v23539_v35  ;;  %v1229_v46 = vand.u32 4294901760, %v1228_v43 }
 0x4f6   :  { %19713 = vmatmul.mubr.f32.vlgmr.msra.gmra.mxu1 %v1229_v46  ;;  %v1230_v48 = vsub.f32 %v1228_v43, %v1229_v46 }
 0x4f7   :  { %19721 = vmatpush3.msra.mxu1 %v1192_v27  ;;  %19722 = vmatprep.mubr.msk.f32.mxu1 %vm21095_vm5, %v23539_v35 }
 0x4f8   :  { %19730 = vmatprep.subr.mxu1 %v23539_v35  ;;  %v1231_v50 = vand.u32 4294901760, %v1230_v48 }
 0x4fa   :  { %19698 = vmatmul.mubr.f32.vlgmr.msra.gmra.mxu0 %v1231_v50  ;;  %19723 = vmatmul.mubr.f32.vlgmr.msra.gmra.mxu1 %v1227_v39 }
 0x4fb   :  { %19706 = vmatpush3.msra.mxu0 %v1269_v28  ;;  %19731 = vmatpush3.xpose.msra.mxu1 %v1726_v51 }
 0x4fc   :  { %19707 = vmatprep.mubr.msk.f32.mxu0 %vm21095_vm5, %v23539_v35  ;;  %19715 = vmatprep.subr.mxu0 %v23539_v35 }
 0x4fd   :  { %19732 = vmatprep.mubr.msk.f32.mxu1 %vm21095_vm5, %v23539_v35  ;;  %19740 = vmatprep.subr.mxu1 %v23539_v35 }
 0x4fe   :  { %19708 = vmatmul.mubr.f32.vlgmr.msra.gmra.mxu0 %v1228_v43  ;;  %19733 = vmatmul.mubr.f32.vlgmr.msra.gmra.mxu1 %v1681_v44 }
 0x4ff   :  { %19716 = vmatpush3.msra.mxu0 %v1270_v30  ;;  %19741 = vmatpush3.xpose.msra.mxu1 %v1646_v31 }
 0x500   :  { %19717 = vmatprep.mubr.msk.f32.mxu0 %vm21095_vm5, %v23539_v35  ;;  %19725 = vmatprep.subr.mxu0 %v23539_v35 }
 0x501   :  { %19742 = vmatprep.mubr.msk.f32.mxu1 %vm21095_vm5, %v23539_v35  ;;  %19750 = vmatprep.subr.mxu1 %v23539_v35 }
 0x502   :  { %19718 = vmatmul.mubr.f32.vlgmr.msra.gmra.mxu0 %v1227_v39  ;;  %19743 = vmatmul.mubr.f32.vlgmr.msra.gmra.mxu1 %v1683_v52 }
 0x503   :  { %19726 = vmatpush3.xpose.msra.mxu0 %v1646_v31  ;;  %19751 = vmatpush3.xpose.msra.mxu1 %v1646_v31 }
 0x504   :  { %19727 = vmatprep.mubr.msk.f32.mxu0 %vm21095_vm5, %v23539_v35  ;;  %19735 = vmatprep.subr.mxu0 %v23539_v35 }
 0x505   :  { %19752 = vmatprep.mubr.msk.f32.mxu1 %vm21095_vm5, %v23539_v35  ;;  %19760 = vmatprep.subr.mxu1 %v23539_v35 }
 0x506   :  { %19728 = vmatmul.mubr.f32.vlgmr.msra.gmra.mxu0 %v1685_v54  ;;  %19753 = vmatmul.mubr.f32.vlgmr.msra.gmra.mxu1 %v1681_v44 }
 0x507   :  { %19736 = vmatpush3.xpose.msra.mxu0 %v1723_v36  ;;  %19737 = vmatprep.mubr.msk.f32.mxu0 %vm21095_vm5, %v23539_v35 }
 0x508   :  { %19745 = vmatprep.subr.mxu0 %v23539_v35  ;;  %19762 = vmatprep.mubr.msk.f32.mxu1 %vm21095_vm5, %v23539_v35 }
 0x50a   :  { %19738 = vmatmul.mubr.f32.vlgmr.msra.gmra.mxu0 %v1682_v49 }
 0x50b   :  { %19746 = vmatpush3.xpose.msra.mxu0 %v1724_v40  ;;  %19747 = vmatprep.mubr.msk.f32.mxu0 %vm21095_vm5, %v23539_v35 }
 0x50c   :  { %19755 = vmatprep.subr.mxu0 %v23539_v35 }
 0x50e   :  { %19748 = vmatmul.mubr.f32.vlgmr.msra.gmra.mxu0 %v1681_v44 }
 0x50f   :  { %19757 = vmatprep.mubr.msk.f32.mxu0 %vm21095_vm5, %v23539_v35 }
 0x5b2   :  { %v1309_v55 = vpop.f32.mrf.mxu1 }
 0x5b4   :  { %v19704_v56 = vpop.f32.mrf.mxu1 }
 0x5b6   :  { %v1457_v57 = vpop.f32.mrf.mxu1 }
 0x5b8   :  { %v19714_v58 = vpop.f32.mrf.mxu1 }
 0x5ba   :  { %v1233_v59 = vpop.f32.mrf.mxu0  ;;  %v1603_v60 = vpop.f32.mrf.mxu1 }
 0x5bb   :  { %v1310_v61 = vadd.f32 %v1309_v55, %v1233_v59 }
 0x5bc   :  { %v19699_v62 = vpop.f32.mrf.mxu0  ;;  %v19724_v63 = vpop.f32.mrf.mxu1 }
 0x5be   :  { %v1383_v0 = vpop.f32.mrf.mxu0  ;;  %v1763_v1 = vpop.f32.mrf.mxu1 }
 0x5bf   :  { %v1384_v2 = vadd.f32 %v1383_v0, %v1310_v61 }
 0x5c0   :  { %v19709_v3 = vpop.f32.mrf.mxu0  ;;  %v19734_v4 = vpop.f32.mrf.mxu1 }
 0x5c1   :  { %v1458_v9 = vadd.f32 %v1457_v57, %v1384_v2 }
 0x5c2   :  { %v1531_v10 = vpop.f32.mrf.mxu0  ;;  %v1911_v12 = vpop.f32.mrf.mxu1 }
 0x5c3   :  { %v1532_v13 = vadd.f32 %v1531_v10, %v1458_v9 }
 0x5c4   :  { %v19719_v14 = vpop.f32.mrf.mxu0  ;;  %v19744_v11 = vpop.f32.mrf.mxu1 }
 0x5c5   :  { %v21364_v16 = vadd.f32 %v1603_v60, %v1532_v13 }
 0x5c6   :  { %v1687_v15 = vpop.f32.mrf.mxu0  ;;  %v2057_v17 = vpop.f32.mrf.mxu1 }
 0x5c7   :  { %v1764_v21 = vadd.f32 %v1763_v1, %v1687_v15 }
 0x5c8   :  { %v19729_v18 = vpop.f32.mrf.mxu0  ;;  %v19754_v19 = vpop.f32.mrf.mxu1 }
 0x5ca   :  { %v1837_v22 = vpop.f32.mrf.mxu0 }
 0x5cb   :  { %v1838_v23 = vadd.f32 %v1837_v22, %v1764_v21 }
 0x5cc   :  { %v19739_v24 = vpop.f32.mrf.mxu0 }
 0x5cd   :  { %v1912_v25 = vadd.f32 %v1911_v12, %v1838_v23 }
 0x5ce   :  { %v1985_v26 = vpop.f32.mrf.mxu0 }
 0x5cf   :  { %v1986_v27 = vadd.f32 %v1985_v26, %v1912_v25 }
 0x5d0   :  { %v19749_v28 = vpop.f32.mrf.mxu0 }
 0x5d1   :  { %v2058_v29 = vadd.f32 %v2057_v17, %v1986_v27 }
 0x5d3   :  { %v2061_v30 = vmul.f32 0.35355338, %v2058_v29 }
 0x5d5   :  { %v2062_v31 = vsel %vm692_vm6, %v2061_v30, -inf }
 0x5d6   :  { %2063 = vmax.xlane.f32.xlu1 %v2062_v31 }
 0x5e7   :  { %2527 = vrot.lane.b32.xlu1 %v21292_v45, %s21099_s19 }
 0x5eb   :  { %2525 = vrot.lane.b32.xlu1 %v21292_v45, %s21100_s20 }
 0x65f   :  { %v2064_v32 = vpop.xlane.xlu1 %2063 }
 0x660   :  { %v2065_v33 = vsub.f32 %v2061_v30, %v2064_v32 }
 0x662   :  { %v2066_v34 = vmul.f32 1.442695, %v2065_v33 }
 0x663   :  { %v2528_v39 = vpop.permute.xlu1 %2527 }
 0x664   :  { %20859 = vpow2.f32 %v2066_v34  ;;  %v2531_v43 = vsel %vm692_vm6, %v2528_v39, 0 }
 0x665   :  { %v2564_v46 = vand.u32 4294901760, %v2531_v43 }
 0x667   :  { %v2641_v50 = vsub.f32 %v2531_v43, %v2564_v46  ;;  %v2526_v52 = vpop.permute.xlu1 %2525 }
 0x668   :  { %v2529_v56 = vsel %vm692_vm6, %v2526_v52, 0 }
 0x669   :  { %v2642_v55 = vand.u32 4294901760, %v2641_v50  ;;  %v2599_v58 = vand.u32 4294901760, %v2529_v56 }
 0x66b   :  { %v2643_v60 = vsub.f32 %v2641_v50, %v2642_v55  ;;  %v2600_v62 = vsub.f32 %v2529_v56, %v2599_v58 }
 0x66d   :  { %v2644_v0 = vand.u32 4294901760, %v2643_v60  ;;  %v2601_v1 = vand.u32 4294901760, %v2600_v62 }
 0x66f   :  { %v2602_v2 = vsub.f32 %v2600_v62, %v2601_v1 }
 0x671   :  { %v20860_v36 = vpop.eup %20859  ;;  %v2603_v3 = vand.u32 4294901760, %v2602_v2 }
 0x672   :  { %v2068_v7 = vsel %vm692_vm6, %v20860_v36, 0.0 }
 0x673   :  { %2069 = vadd.xlane.f32.xlu0 %v2068_v7 }
 0x689   :  { %2073 = vrot.lane.b32.xlu0 %v21292_v45, %s21101_s21 }
 0x6fc   :  { %v2070_v37 = vpop.xlane.xlu0 %2069 }
 0x6fd   :  { %20861 = vrcp.f32 %v2070_v37 }
 0x700   :  { %v2074_v38 = vpop.permute.xlu0 %2073 }
 0x701   :  { %v2110_v40 = vand.u32 4294901760, %v2074_v38 }
 0x703   :  { %v2187_v41 = vsub.f32 %v2074_v38, %v2110_v40  ;;  %19756 = vmatpush3.msra.mxu0 %v2110_v40 }
 0x704   :  { %19765 = vmatprep.subr.mxu0 %v23539_v35 }
 0x705   :  { %v2188_v44 = vand.u32 4294901760, %v2187_v41 }
 0x707   :  { %v2189_v47 = vsub.f32 %v2187_v41, %v2188_v44 }
 0x709   :  { %v2190_v48 = vand.u32 4294901760, %v2189_v47 }
 0x70a   :  { %v20862_v49 = vpop.eup %20861 }
 0x70b   :  { %19761 = vmatpush3.msra.mxu1 %v2190_v48  ;;  %v2072_v51 = vmul.f32 %v20862_v49, %v20860_v36 }
 0x70c   :  { %19770 = vmatprep.subr.mxu1 %v23539_v35 }
 0x70d   :  { %v2077_v53 = vsel %vm692_vm6, %v2072_v51, 0 }
 0x70e   :  { %v2145_v54 = vand.u32 4294901760, %v2077_v53 }
 0x710   :  { %v2146_v57 = vsub.f32 %v2077_v53, %v2145_v54  ;;  %19763 = vmatmul.mubr.f32.vlgmr.msra.gmra.mxu1 %v2145_v54 }
 0x711   :  { %19771 = vmatpush3.msra.mxu1 %v2110_v40  ;;  %19772 = vmatprep.mubr.msk.f32.mxu1 %vm21095_vm5, %v23539_v35 }
 0x712   :  { %19780 = vmatprep.subr.mxu1 %v23539_v35  ;;  %v2147_v59 = vand.u32 4294901760, %v2146_v57 }
 0x714   :  { %19773 = vmatmul.mubr.f32.vlgmr.msra.gmra.mxu1 %v2147_v59  ;;  %v2148_v61 = vsub.f32 %v2146_v57, %v2147_v59 }
 0x715   :  { %19781 = vmatpush3.msra.mxu1 %v2110_v40  ;;  %19782 = vmatprep.mubr.msk.f32.mxu1 %vm21095_vm5, %v23539_v35 }
 0x716   :  { %19790 = vmatprep.subr.mxu1 %v23539_v35  ;;  %v2149_v63 = vand.u32 4294901760, %v2148_v61 }
 0x718   :  { %19758 = vmatmul.mubr.f32.vlgmr.msra.gmra.mxu0 %v2149_v63  ;;  %19783 = vmatmul.mubr.f32.vlgmr.msra.gmra.mxu1 %v2145_v54 }
 0x719   :  { %19766 = vmatpush3.msra.mxu0 %v2187_v41  ;;  %19791 = vmatpush3.xpose.msra.mxu1 %v2644_v0 }
 0x71a   :  { %19767 = vmatprep.mubr.msk.f32.mxu0 %vm21095_vm5, %v23539_v35  ;;  %19775 = vmatprep.subr.mxu0 %v23539_v35 }
 0x71b   :  { %19792 = vmatprep.mubr.msk.f32.mxu1 %vm21095_vm5, %v23539_v35  ;;  %19800 = vmatprep.subr.mxu1 %v23539_v35 }
 0x71c   :  { %19768 = vmatmul.mubr.f32.vlgmr.msra.gmra.mxu0 %v2146_v57  ;;  %19793 = vmatmul.mubr.f32.vlgmr.msra.gmra.mxu1 %v2599_v58 }
 0x71d   :  { %19776 = vmatpush3.msra.mxu0 %v2188_v44  ;;  %19801 = vmatpush3.xpose.msra.mxu1 %v2564_v46 }
 0x71e   :  { %19777 = vmatprep.mubr.msk.f32.mxu0 %vm21095_vm5, %v23539_v35  ;;  %19785 = vmatprep.subr.mxu0 %v23539_v35 }
 0x71f   :  { %19802 = vmatprep.mubr.msk.f32.mxu1 %vm21095_vm5, %v23539_v35  ;;  %19810 = vmatprep.subr.mxu1 %v23539_v35 }
 0x720   :  { %19778 = vmatmul.mubr.f32.vlgmr.msra.gmra.mxu0 %v2145_v54  ;;  %19803 = vmatmul.mubr.f32.vlgmr.msra.gmra.mxu1 %v2601_v1 }
 0x721   :  { %19786 = vmatpush3.xpose.msra.mxu0 %v2564_v46  ;;  %19811 = vmatpush3.xpose.msra.mxu1 %v2564_v46 }
 0x722   :  { %19787 = vmatprep.mubr.msk.f32.mxu0 %vm21095_vm5, %v23539_v35  ;;  %19795 = vmatprep.subr.mxu0 %v23539_v35 }
 0x723   :  { %19812 = vmatprep.mubr.msk.f32.mxu1 %vm21095_vm5, %v23539_v35  ;;  %19820 = vmatprep.subr.mxu1 %v23539_v35 }
 0x724   :  { %19788 = vmatmul.mubr.f32.vlgmr.msra.gmra.mxu0 %v2603_v3  ;;  %19813 = vmatmul.mubr.f32.vlgmr.msra.gmra.mxu1 %v2599_v58 }
 0x725   :  { %19796 = vmatpush3.xpose.msra.mxu0 %v2641_v50  ;;  %19797 = vmatprep.mubr.msk.f32.mxu0 %vm21095_vm5, %v23539_v35 }
 0x726   :  { %19805 = vmatprep.subr.mxu0 %v23539_v35  ;;  %19822 = vmatprep.mubr.msk.f32.mxu1 %vm21095_vm5, %v23539_v35 }
 0x728   :  { %19798 = vmatmul.mubr.f32.vlgmr.msra.gmra.mxu0 %v2600_v62 }
 0x729   :  { %19806 = vmatpush3.xpose.msra.mxu0 %v2642_v55  ;;  %19807 = vmatprep.mubr.msk.f32.mxu0 %vm21095_vm5, %v23539_v35 }
 0x72a   :  { %19815 = vmatprep.subr.mxu0 %v23539_v35 }
 0x72c   :  { %19808 = vmatmul.mubr.f32.vlgmr.msra.gmra.mxu0 %v2599_v58 }
 0x72d   :  { %19817 = vmatprep.mubr.msk.f32.mxu0 %vm21095_vm5, %v23539_v35 }
 0x7d0   :  { %v2227_v4 = vpop.f32.mrf.mxu1 }
 0x7d2   :  { %v19764_v9 = vpop.f32.mrf.mxu1 }
 0x7d4   :  { %v2375_v10 = vpop.f32.mrf.mxu1 }
 0x7d6   :  { %v19774_v12 = vpop.f32.mrf.mxu1 }
 0x7d8   :  { %v2151_v13 = vpop.f32.mrf.mxu0  ;;  %v2521_v14 = vpop.f32.mrf.mxu1 }
 0x7d9   :  { %v2228_v11 = vadd.f32 %v2227_v4, %v2151_v13 }
 0x7da   :  { %v19759_v15 = vpop.f32.mrf.mxu0  ;;  %v19784_v17 = vpop.f32.mrf.mxu1 }
 0x7dc   :  { %v2301_v18 = vpop.f32.mrf.mxu0  ;;  %v2681_v19 = vpop.f32.mrf.mxu1 }
 0x7dd   :  { %v2302_v21 = vadd.f32 %v2301_v18, %v2228_v11 }
 0x7de   :  { %v19769_v22 = vpop.f32.mrf.mxu0  ;;  %v19794_v23 = vpop.f32.mrf.mxu1 }
 0x7df   :  { %v2376_v24 = vadd.f32 %v2375_v10, %v2302_v21 }
 0x7e0   :  { %v2449_v25 = vpop.f32.mrf.mxu0  ;;  %v2829_v26 = vpop.f32.mrf.mxu1 }
 0x7e1   :  { %v2450_v27 = vadd.f32 %v2449_v25, %v2376_v24 }
 0x7e2   :  { %v19779_v28 = vpop.f32.mrf.mxu0  ;;  %v19804_v29 = vpop.f32.mrf.mxu1 }
 0x7e3   :  { %v21413_v30 = vadd.f32 %v2521_v14, %v2450_v27 }
 0x7e4   :  { %v2605_v31 = vpop.f32.mrf.mxu0  ;;  %v2975_v32 = vpop.f32.mrf.mxu1 }
 0x7e5   :  { %v2682_v36 = vadd.f32 %v2681_v19, %v2605_v31 }
 0x7e6   :  { %v19789_v33 = vpop.f32.mrf.mxu0  ;;  %v19814_v34 = vpop.f32.mrf.mxu1 }
 0x7e8   :  { %v2755_v7 = vpop.f32.mrf.mxu0 }
 0x7e9   :  { %v2756_v37 = vadd.f32 %v2755_v7, %v2682_v36 }
 0x7ea   :  { %v19799_v38 = vpop.f32.mrf.mxu0 }
 0x7eb   :  { %v2830_v39 = vadd.f32 %v2829_v26, %v2756_v37 }
 0x7ec   :  { %v2903_v40 = vpop.f32.mrf.mxu0 }
 0x7ed   :  { %v2904_v41 = vadd.f32 %v2903_v40, %v2830_v39 }
 0x7ee   :  { %v19809_v43 = vpop.f32.mrf.mxu0 }
 0x7ef   :  { %v2976_v44 = vadd.f32 %v2975_v32, %v2904_v41 }
 0x7f1   :  { %v2979_v46 = vmul.f32 0.35355338, %v2976_v44 }
 0x7f3   :  { %v2980_v47 = vsel %vm692_vm6, %v2979_v46, -inf }
 0x7f4   :  { %2981 = vmax.xlane.f32.xlu0 %v2980_v47 }
 0x80a   :  { %2991 = vrot.lane.b32.xlu0 %v21292_v45, %s21102_s22 }
 0x80e   :  { %3443 = vrot.lane.b32.xlu0 %v21292_v45, %s21103_s25 }
 0x87d   :  { %v2982_v48 = vpop.xlane.xlu0 %2981 }
 0x87e   :  { %v2983_v49 = vsub.f32 %v2979_v46, %v2982_v48 }
 0x880   :  { %v2984_v50 = vmul.f32 1.442695, %v2983_v49 }
 0x881   :  { %v2992_v51 = vpop.permute.xlu0 %2991 }
 0x882   :  { %20863 = vpow2.f32 %v2984_v50  ;;  %v3028_v52 = vand.u32 4294901760, %v2992_v51 }
 0x884   :  { %v3105_v53 = vsub.f32 %v2992_v51, %v3028_v52  ;;  %19816 = vmatpush3.msra.mxu0 %v3028_v52 }
 0x885   :  { %19825 = vmatprep.subr.mxu0 %v23539_v35  ;;  %v3444_v2 = vpop.permute.xlu0 %3443 }
 0x886   :  { %v3106_v54 = vand.u32 4294901760, %v3105_v53  ;;  %v3447_v9 = vsel %vm692_vm6, %v3444_v2, 0 }
 0x887   :  { %v3517_v13 = vand.u32 4294901760, %v3447_v9 }
 0x888   :  { %v3107_v55 = vsub.f32 %v3105_v53, %v3106_v54 }
 0x889   :  { %v3518_v17 = vsub.f32 %v3447_v9, %v3517_v13 }
 0x88a   :  { %v3108_v56 = vand.u32 4294901760, %v3107_v55 }
 0x88b   :  { %v3519_v21 = vand.u32 4294901760, %v3518_v17 }
 0x88c   :  { %19821 = vmatpush3.msra.mxu1 %v3108_v56 }
 0x88d   :  { %19830 = vmatprep.subr.mxu1 %v23539_v35  ;;  %v3520_v22 = vsub.f32 %v3518_v17, %v3519_v21 }
 0x88f   :  { %v20864_v57 = vpop.eup %20863  ;;  %v3521_v23 = vand.u32 4294901760, %v3520_v22 }
 0x890   :  { %v2986_v58 = vsel %vm692_vm6, %v20864_v57, 0.0 }
 0x891   :  { %2987 = vadd.xlane.f32.xlu1 %v2986_v58 }
 0x8a2   :  { %3445 = vrot.lane.b32.xlu1 %v21292_v45, %s21104_s26 }
 0x91a   :  { %v2988_v59 = vpop.xlane.xlu1 %2987 }
 0x91b   :  { %20865 = vrcp.f32 %v2988_v59 }
 0x91e   :  { %v3446_v60 = vpop.permute.xlu1 %3445 }
 0x91f   :  { %v3449_v61 = vsel %vm692_vm6, %v3446_v60, 0 }
 0x920   :  { %v3482_v62 = vand.u32 4294901760, %v3449_v61 }
 0x922   :  { %v3559_v0 = vsub.f32 %v3449_v61, %v3482_v62 }
 0x924   :  { %v3560_v10 = vand.u32 4294901760, %v3559_v0 }
 0x926   :  { %v3561_v11 = vsub.f32 %v3559_v0, %v3560_v10 }
 0x928   :  { %v20866_v63 = vpop.eup %20865  ;;  %v3562_v19 = vand.u32 4294901760, %v3561_v11 }
 0x929   :  { %v2990_v1 = vmul.f32 %v20866_v63, %v20864_v57 }
 0x92b   :  { %v2995_v3 = vsel %vm692_vm6, %v2990_v1, 0 }
 0x92c   :  { %v3063_v4 = vand.u32 4294901760, %v2995_v3 }
 0x92e   :  { %v3064_v12 = vsub.f32 %v2995_v3, %v3063_v4  ;;  %19823 = vmatmul.mubr.f32.vlgmr.msra.gmra.mxu1 %v3063_v4 }
 0x92f   :  { %19831 = vmatpush3.msra.mxu1 %v3028_v52  ;;  %19832 = vmatprep.mubr.msk.f32.mxu1 %vm21095_vm5, %v23539_v35 }
 0x930   :  { %19840 = vmatprep.subr.mxu1 %v23539_v35  ;;  %v3065_v14 = vand.u32 4294901760, %v3064_v12 }
 0x932   :  { %19833 = vmatmul.mubr.f32.vlgmr.msra.gmra.mxu1 %v3065_v14  ;;  %v3066_v15 = vsub.f32 %v3064_v12, %v3065_v14 }
 0x933   :  { %19841 = vmatpush3.msra.mxu1 %v3028_v52  ;;  %19842 = vmatprep.mubr.msk.f32.mxu1 %vm21095_vm5, %v23539_v35 }
 0x934   :  { %19850 = vmatprep.subr.mxu1 %v23539_v35  ;;  %v3067_v18 = vand.u32 4294901760, %v3066_v15 }
 0x936   :  { %19818 = vmatmul.mubr.f32.vlgmr.msra.gmra.mxu0 %v3067_v18  ;;  %19843 = vmatmul.mubr.f32.vlgmr.msra.gmra.mxu1 %v3063_v4 }
 0x937   :  { %19826 = vmatpush3.msra.mxu0 %v3105_v53  ;;  %19851 = vmatpush3.xpose.msra.mxu1 %v3562_v19 }
 0x938   :  { %19827 = vmatprep.mubr.msk.f32.mxu0 %vm21095_vm5, %v23539_v35  ;;  %19835 = vmatprep.subr.mxu0 %v23539_v35 }
 0x939   :  { %19852 = vmatprep.mubr.msk.f32.mxu1 %vm21095_vm5, %v23539_v35  ;;  %19860 = vmatprep.subr.mxu1 %v23539_v35 }
 0x93a   :  { %19828 = vmatmul.mubr.f32.vlgmr.msra.gmra.mxu0 %v3064_v12  ;;  %19853 = vmatmul.mubr.f32.vlgmr.msra.gmra.mxu1 %v3517_v13 }
 0x93b   :  { %19836 = vmatpush3.msra.mxu0 %v3106_v54  ;;  %19861 = vmatpush3.xpose.msra.mxu1 %v3482_v62 }
 0x93c   :  { %19837 = vmatprep.mubr.msk.f32.mxu0 %vm21095_vm5, %v23539_v35  ;;  %19845 = vmatprep.subr.mxu0 %v23539_v35 }
 0x93d   :  { %19862 = vmatprep.mubr.msk.f32.mxu1 %vm21095_vm5, %v23539_v35  ;;  %19870 = vmatprep.subr.mxu1 %v23539_v35 }
 0x93e   :  { %19838 = vmatmul.mubr.f32.vlgmr.msra.gmra.mxu0 %v3063_v4  ;;  %19863 = vmatmul.mubr.f32.vlgmr.msra.gmra.mxu1 %v3519_v21 }
 0x93f   :  { %19846 = vmatpush3.xpose.msra.mxu0 %v3482_v62  ;;  %19871 = vmatpush3.xpose.msra.mxu1 %v3482_v62 }
 0x940   :  { %19847 = vmatprep.mubr.msk.f32.mxu0 %vm21095_vm5, %v23539_v35  ;;  %19855 = vmatprep.subr.mxu0 %v23539_v35 }
 0x941   :  { %19872 = vmatprep.mubr.msk.f32.mxu1 %vm21095_vm5, %v23539_v35  ;;  %19880 = vmatprep.subr.mxu1 %v23539_v35 }
 0x942   :  { %19848 = vmatmul.mubr.f32.vlgmr.msra.gmra.mxu0 %v3521_v23  ;;  %19873 = vmatmul.mubr.f32.vlgmr.msra.gmra.mxu1 %v3517_v13 }
 0x943   :  { %19856 = vmatpush3.xpose.msra.mxu0 %v3559_v0  ;;  %19857 = vmatprep.mubr.msk.f32.mxu0 %vm21095_vm5, %v23539_v35 }
 0x944   :  { %19865 = vmatprep.subr.mxu0 %v23539_v35  ;;  %19882 = vmatprep.mubr.msk.f32.mxu1 %vm21095_vm5, %v23539_v35 }
 0x946   :  { %19858 = vmatmul.mubr.f32.vlgmr.msra.gmra.mxu0 %v3518_v17 }
 0x947   :  { %19866 = vmatpush3.xpose.msra.mxu0 %v3560_v10  ;;  %19867 = vmatprep.mubr.msk.f32.mxu0 %vm21095_vm5, %v23539_v35 }
 0x948   :  { %19875 = vmatprep.subr.mxu0 %v23539_v35 }
 0x94a   :  { %19868 = vmatmul.mubr.f32.vlgmr.msra.gmra.mxu0 %v3517_v13 }
 0x94b   :  { %19877 = vmatprep.mubr.msk.f32.mxu0 %vm21095_vm5, %v23539_v35 }
 0x9ee   :  { %v3145_v24 = vpop.f32.mrf.mxu1 }
 0x9f0   :  { %v19824_v25 = vpop.f32.mrf.mxu1 }
 0x9f1   :  { %v4381_v25 = vsel %vm692_vm6, %v21290_v42, 0 }
 0x9f2   :  { %v3293_v26 = vpop.f32.mrf.mxu1 }
 0x9f4   :  { %v19834_v27 = vpop.f32.mrf.mxu1 }
 0x9f6   :  { %v3069_v28 = vpop.f32.mrf.mxu0  ;;  %v3439_v29 = vpop.f32.mrf.mxu1 }
 0x9f7   :  { %v3146_v31 = vadd.f32 %v3145_v24, %v3069_v28  ;;  %v4451_v28 = vand.u32 4294901760, %v4381_v25 }
 0x9f8   :  { %v19819_v32 = vpop.f32.mrf.mxu0  ;;  %v19844_v33 = vpop.f32.mrf.mxu1 }
 0x9f9   :  { %v4452_v33 = vsub.f32 %v4381_v25, %v4451_v28 }
 0x9fa   :  { %v3219_v34 = vpop.f32.mrf.mxu0  ;;  %v3599_v36 = vpop.f32.mrf.mxu1 }
 0x9fb   :  { %v3220_v7 = vadd.f32 %v3219_v34, %v3146_v31 }
 0x9fc   :  { %v19829_v37 = vpop.f32.mrf.mxu0  ;;  %v19854_v38 = vpop.f32.mrf.mxu1 }
 0x9fd   :  { %v3294_v39 = vadd.f32 %v3293_v26, %v3220_v7 }
 0x9fe   :  { %v3367_v40 = vpop.f32.mrf.mxu0  ;;  %v3747_v41 = vpop.f32.mrf.mxu1 }
 0x9ff   :  { %v3368_v43 = vadd.f32 %v3367_v40, %v3294_v39 }
 0xa00   :  { %v19839_v44 = vpop.f32.mrf.mxu0  ;;  %v19864_v46 = vpop.f32.mrf.mxu1 }
 0xa01   :  { %v21462_v47 = vadd.f32 %v3439_v29, %v3368_v43 }
 0xa02   :  { %v3523_v48 = vpop.f32.mrf.mxu0  ;;  %v3893_v49 = vpop.f32.mrf.mxu1 }
 0xa03   :  { %v3600_v52 = vadd.f32 %v3599_v36, %v3523_v48  ;;  %v4453_v36 = vand.u32 4294901760, %v4452_v33 }
 0xa04   :  { %v19849_v50 = vpop.f32.mrf.mxu0  ;;  %v19874_v51 = vpop.f32.mrf.mxu1 }
 0xa05   :  { %v4454_v7 = vsub.f32 %v4452_v33, %v4453_v36 }
 0xa06   :  { %v3673_v53 = vpop.f32.mrf.mxu0 }
 0xa07   :  { %v3674_v54 = vadd.f32 %v3673_v53, %v3600_v52  ;;  %v4455_v37 = vand.u32 4294901760, %v4454_v7 }
 0xa08   :  { %v19859_v55 = vpop.f32.mrf.mxu0 }
 0xa09   :  { %v3748_v56 = vadd.f32 %v3747_v41, %v3674_v54 }
 0xa0a   :  { %v3821_v57 = vpop.f32.mrf.mxu0 }
 0xa0b   :  { %v3822_v58 = vadd.f32 %v3821_v57, %v3748_v56 }
 0xa0c   :  { %v19869_v59 = vpop.f32.mrf.mxu0 }
 0xa0d   :  { %v3894_v60 = vadd.f32 %v3893_v49, %v3822_v58 }
 0xa0f   :  { %v3897_v61 = vmul.f32 0.35355338, %v3894_v60 }
 0xa11   :  { %v3898_v62 = vsel %vm692_vm6, %v3897_v61, -inf }
 0xa12   :  { %3899 = vmax.xlane.f32.xlu1 %v3898_v62 }
 0xa23   :  { %4379 = vrot.lane.b32.xlu1 %v21290_v42, %s21093_s2 }
 0xa9b   :  { %v3900_v63 = vpop.xlane.xlu1 %3899 }
 0xa9c   :  { %v3901_v0 = vsub.f32 %v3897_v61, %v3900_v63 }
 0xa9e   :  { %v3902_v1 = vmul.f32 1.442695, %v3901_v0 }
 0xa9f   :  { %v4380_v10 = vpop.permute.xlu1 %4379 }
 0xaa0   :  { %20867 = vpow2.f32 %v3902_v1  ;;  %v4383_v14 = vsel %vm692_vm6, %v4380_v10, 0 }
 0xaa1   :  { %v4416_v15 = vand.u32 4294901760, %v4383_v14 }
 0xaa3   :  { %v4493_v21 = vsub.f32 %v4383_v14, %v4416_v15 }
 0xaa5   :  { %v4494_v24 = vand.u32 4294901760, %v4493_v21 }
 0xaa7   :  { %v4495_v29 = vsub.f32 %v4493_v21, %v4494_v24 }
 0xaa9   :  { %v4496_v34 = vand.u32 4294901760, %v4495_v29 }
 0xaad   :  { %v20868_v2 = vpop.eup %20867 }
 0xaae   :  { %v3904_v3 = vsel %vm692_vm6, %v20868_v2, 0.0 }
 0xaaf   :  { %3905 = vadd.xlane.f32.xlu0 %v3904_v3 }
 0xac5   :  { %3909 = vrot.lane.b32.xlu0 %v21292_v45, %s21105_s27 }
 0xb38   :  { %v3906_v4 = vpop.xlane.xlu0 %3905 }
 0xb39   :  { %20869 = vrcp.f32 %v3906_v4 }
 0xb3c   :  { %v3910_v9 = vpop.permute.xlu0 %3909 }
 0xb3d   :  { %v3946_v12 = vand.u32 4294901760, %v3910_v9 }
 0xb3f   :  { %v4023_v13 = vsub.f32 %v3910_v9, %v3946_v12  ;;  %19876 = vmatpush3.msra.mxu0 %v3946_v12 }
 0xb40   :  { %19885 = vmatprep.subr.mxu0 %v23539_v35 }
 0xb41   :  { %v4024_v11 = vand.u32 4294901760, %v4023_v13 }
 0xb43   :  { %v4025_v17 = vsub.f32 %v4023_v13, %v4024_v11 }
 0xb45   :  { %v4026_v18 = vand.u32 4294901760, %v4025_v17 }
 0xb46   :  { %v20870_v19 = vpop.eup %20869 }
 0xb47   :  { %19881 = vmatpush3.msra.mxu1 %v4026_v18  ;;  %v3908_v22 = vmul.f32 %v20870_v19, %v20868_v2 }
 0xb48   :  { %19890 = vmatprep.subr.mxu1 %v23539_v35 }
 0xb49   :  { %v3913_v45 = vsel %vm692_vm6, %v3908_v22, 0 }
 0xb4a   :  { %v3981_v23 = vand.u32 4294901760, %v3913_v45 }
 0xb4c   :  { %v3982_v26 = vsub.f32 %v3913_v45, %v3981_v23  ;;  %19883 = vmatmul.mubr.f32.vlgmr.msra.gmra.mxu1 %v3981_v23 }
 0xb4d   :  { %19891 = vmatpush3.msra.mxu1 %v3946_v12  ;;  %19892 = vmatprep.mubr.msk.f32.mxu1 %vm21095_vm5, %v23539_v35 }
 0xb4e   :  { %19900 = vmatprep.subr.mxu1 %v23539_v35  ;;  %v3983_v27 = vand.u32 4294901760, %v3982_v26 }
 0xb50   :  { %19893 = vmatmul.mubr.f32.vlgmr.msra.gmra.mxu1 %v3983_v27  ;;  %v3984_v31 = vsub.f32 %v3982_v26, %v3983_v27 }
 0xb51   :  { %19901 = vmatpush3.msra.mxu1 %v3946_v12  ;;  %19902 = vmatprep.mubr.msk.f32.mxu1 %vm21095_vm5, %v23539_v35 }
 0xb52   :  { %19910 = vmatprep.subr.mxu1 %v23539_v35  ;;  %v3985_v32 = vand.u32 4294901760, %v3984_v31 }
 0xb54   :  { %19878 = vmatmul.mubr.f32.vlgmr.msra.gmra.mxu0 %v3985_v32  ;;  %19903 = vmatmul.mubr.f32.vlgmr.msra.gmra.mxu1 %v3981_v23 }
 0xb55   :  { %19886 = vmatpush3.msra.mxu0 %v4023_v13  ;;  %19911 = vmatpush3.xpose.msra.mxu1 %v4496_v34 }
 0xb56   :  { %19887 = vmatprep.mubr.msk.f32.mxu0 %vm21095_vm5, %v23539_v35  ;;  %19895 = vmatprep.subr.mxu0 %v23539_v35 }
 0xb57   :  { %19912 = vmatprep.mubr.msk.f32.mxu1 %vm21095_vm5, %v23539_v35  ;;  %19920 = vmatprep.subr.mxu1 %v23539_v35 }
 0xb58   :  { %19888 = vmatmul.mubr.f32.vlgmr.msra.gmra.mxu0 %v3982_v26  ;;  %19913 = vmatmul.mubr.f32.vlgmr.msra.gmra.mxu1 %v4451_v28 }
 0xb59   :  { %19896 = vmatpush3.msra.mxu0 %v4024_v11  ;;  %19921 = vmatpush3.xpose.msra.mxu1 %v4416_v15 }
 0xb5a   :  { %19897 = vmatprep.mubr.msk.f32.mxu0 %vm21095_vm5, %v23539_v35  ;;  %19905 = vmatprep.subr.mxu0 %v23539_v35 }
 0xb5b   :  { %19922 = vmatprep.mubr.msk.f32.mxu1 %vm21095_vm5, %v23539_v35  ;;  %19930 = vmatprep.subr.mxu1 %v23539_v35 }
 0xb5c   :  { %19898 = vmatmul.mubr.f32.vlgmr.msra.gmra.mxu0 %v3981_v23  ;;  %19923 = vmatmul.mubr.f32.vlgmr.msra.gmra.mxu1 %v4453_v36 }
 0xb5d   :  { %19906 = vmatpush3.xpose.msra.mxu0 %v4416_v15  ;;  %19931 = vmatpush3.xpose.msra.mxu1 %v4416_v15 }
 0xb5e   :  { %19907 = vmatprep.mubr.msk.f32.mxu0 %vm21095_vm5, %v23539_v35  ;;  %19915 = vmatprep.subr.mxu0 %v23539_v35 }
 0xb5f   :  { %19932 = vmatprep.mubr.msk.f32.mxu1 %vm21095_vm5, %v23539_v35  ;;  %19940 = vmatprep.subr.mxu1 %v23539_v35 }
 0xb60   :  { %19908 = vmatmul.mubr.f32.vlgmr.msra.gmra.mxu0 %v4455_v37  ;;  %19933 = vmatmul.mubr.f32.vlgmr.msra.gmra.mxu1 %v4451_v28 }
 0xb61   :  { %19916 = vmatpush3.xpose.msra.mxu0 %v4493_v21  ;;  %19917 = vmatprep.mubr.msk.f32.mxu0 %vm21095_vm5, %v23539_v35 }
 0xb62   :  { %19925 = vmatprep.subr.mxu0 %v23539_v35  ;;  %19942 = vmatprep.mubr.msk.f32.mxu1 %vm21095_vm5, %v23539_v35 }
 0xb64   :  { %19918 = vmatmul.mubr.f32.vlgmr.msra.gmra.mxu0 %v4452_v33 }
 0xb65   :  { %19926 = vmatpush3.xpose.msra.mxu0 %v4494_v24  ;;  %19927 = vmatprep.mubr.msk.f32.mxu0 %vm21095_vm5, %v23539_v35 }
 0xb66   :  { %19935 = vmatprep.subr.mxu0 %v23539_v35 }
 0xb68   :  { %19928 = vmatmul.mubr.f32.vlgmr.msra.gmra.mxu0 %v4451_v28 }
 0xb69   :  { %19937 = vmatprep.mubr.msk.f32.mxu0 %vm21095_vm5, %v23539_v35 }
 0xc0c   :  { %v4063_v38 = vpop.f32.mrf.mxu1 }
 0xc0e   :  { %v19884_v39 = vpop.f32.mrf.mxu1 }
 0xc10   :  { %v4211_v40 = vpop.f32.mrf.mxu1 }
 0xc12   :  { %v19894_v41 = vpop.f32.mrf.mxu1 }
 0xc14   :  { %v3987_v43 = vpop.f32.mrf.mxu0  ;;  %v4357_v44 = vpop.f32.mrf.mxu1 }
 0xc15   :  { %v4064_v46 = vadd.f32 %v4063_v38, %v3987_v43 }
 0xc16   :  { %v19879_v48 = vpop.f32.mrf.mxu0  ;;  %v19904_v49 = vpop.f32.mrf.mxu1 }
 0xc18   :  { %v4137_v50 = vpop.f32.mrf.mxu0  ;;  %v4533_v51 = vpop.f32.mrf.mxu1 }
 0xc19   :  { %v4138_v52 = vadd.f32 %v4137_v50, %v4064_v46 }
 0xc1a   :  { %v19889_v53 = vpop.f32.mrf.mxu0  ;;  %v19914_v54 = vpop.f32.mrf.mxu1 }
 0xc1b   :  { %v4212_v55 = vadd.f32 %v4211_v40, %v4138_v52 }
 0xc1c   :  { %v4285_v56 = vpop.f32.mrf.mxu0  ;;  %v4681_v57 = vpop.f32.mrf.mxu1 }
 0xc1d   :  { %v4286_v58 = vadd.f32 %v4285_v56, %v4212_v55 }
 0xc1e   :  { %v19899_v59 = vpop.f32.mrf.mxu0  ;;  %v19924_v60 = vpop.f32.mrf.mxu1 }
 0xc1f   :  { %v21510_v61 = vadd.f32 %v4357_v44, %v4286_v58 }
 0xc20   :  { %v4457_v62 = vpop.f32.mrf.mxu0  ;;  %v4827_v63 = vpop.f32.mrf.mxu1 }
 0xc21   :  { %v4534_v2 = vadd.f32 %v4533_v51, %v4457_v62 }
 0xc22   :  { %v19909_v0 = vpop.f32.mrf.mxu0  ;;  %v19934_v1 = vpop.f32.mrf.mxu1 }
 0xc24   :  { %v4607_v3 = vpop.f32.mrf.mxu0 }
 0xc25   :  { %v4608_v4 = vadd.f32 %v4607_v3, %v4534_v2 }
 0xc26   :  { %v19919_v9 = vpop.f32.mrf.mxu0 }
 0xc27   :  { %v4682_v10 = vadd.f32 %v4681_v57, %v4608_v4 }
 0xc28   :  { %v4755_v12 = vpop.f32.mrf.mxu0 }
 0xc29   :  { %v4756_v13 = vadd.f32 %v4755_v12, %v4682_v10 }
 0xc2a   :  { %v19929_v14 = vpop.f32.mrf.mxu0 }
 0xc2b   :  { %v4828_v11 = vadd.f32 %v4827_v63, %v4756_v13 }
 0xc2d   :  { %v4831_v15 = vmul.f32 0.35355338, %v4828_v11 }
 0xc2f   :  { %v4832_v17 = vsel %vm692_vm6, %v4831_v15, -inf }
 0xc30   :  { %4833 = vmax.xlane.f32.xlu1 %v4832_v17 }
 0xc41   :  { %5297 = vrot.lane.b32.xlu1 %v21290_v42, %s21096_s4 }
 0xc45   :  { %5295 = vrot.lane.b32.xlu1 %v21290_v42, %s21097_s17 }
 0xcb9   :  { %v4834_v18 = vpop.xlane.xlu1 %4833 }
 0xcba   :  { %v4835_v19 = vsub.f32 %v4831_v15, %v4834_v18 }
 0xcbc   :  { %v4836_v21 = vmul.f32 1.442695, %v4835_v19 }
 0xcbd   :  { %v5298_v25 = vpop.permute.xlu1 %5297 }
 0xcbe   :  { %20871 = vpow2.f32 %v4836_v21  ;;  %v5301_v28 = vsel %vm692_vm6, %v5298_v25, 0 }
 0xcbf   :  { %v5334_v31 = vand.u32 4294901760, %v5301_v28 }
 0xcc1   :  { %v5411_v36 = vsub.f32 %v5301_v28, %v5334_v31  ;;  %v5296_v37 = vpop.permute.xlu1 %5295 }
 0xcc2   :  { %v5299_v41 = vsel %vm692_vm6, %v5296_v37, 0 }
 0xcc3   :  { %v5412_v40 = vand.u32 4294901760, %v5411_v36  ;;  %v5369_v44 = vand.u32 4294901760, %v5299_v41 }
 0xcc5   :  { %v5413_v48 = vsub.f32 %v5411_v36, %v5412_v40  ;;  %v5370_v50 = vsub.f32 %v5299_v41, %v5369_v44 }
 0xcc7   :  { %v5414_v52 = vand.u32 4294901760, %v5413_v48  ;;  %v5371_v53 = vand.u32 4294901760, %v5370_v50 }
 0xcc9   :  { %v5372_v54 = vsub.f32 %v5370_v50, %v5371_v53 }
 0xccb   :  { %v20872_v22 = vpop.eup %20871  ;;  %v5373_v55 = vand.u32 4294901760, %v5372_v54 }
 0xccc   :  { %v4838_v45 = vsel %vm692_vm6, %v20872_v22, 0.0 }
 0xccd   :  { %4839 = vadd.xlane.f32.xlu0 %v4838_v45 }
 0xce3   :  { %4843 = vrot.lane.b32.xlu0 %v21290_v42, %s21098_s18 }
 0xd56   :  { %v4840_v23 = vpop.xlane.xlu0 %4839 }
 0xd57   :  { %20873 = vrcp.f32 %v4840_v23 }
 0xd5a   :  { %v4844_v24 = vpop.permute.xlu0 %4843 }
 0xd5b   :  { %v4880_v26 = vand.u32 4294901760, %v4844_v24 }
 0xd5d   :  { %v4957_v27 = vsub.f32 %v4844_v24, %v4880_v26  ;;  %19936 = vmatpush3.msra.mxu0 %v4880_v26 }
 0xd5e   :  { %19945 = vmatprep.subr.mxu0 %v23539_v35 }
 0xd5f   :  { %v4958_v29 = vand.u32 4294901760, %v4957_v27 }
 0xd61   :  { %v4959_v32 = vsub.f32 %v4957_v27, %v4958_v29 }
 0xd63   :  { %v4960_v33 = vand.u32 4294901760, %v4959_v32 }
 0xd64   :  { %v20874_v34 = vpop.eup %20873 }
 0xd65   :  { %19941 = vmatpush3.msra.mxu1 %v4960_v33  ;;  %v4842_v7 = vmul.f32 %v20874_v34, %v20872_v22 }
 0xd66   :  { %19950 = vmatprep.subr.mxu1 %v23539_v35 }
 0xd67   :  { %v4847_v38 = vsel %vm692_vm6, %v4842_v7, 0 }
 0xd68   :  { %v4915_v39 = vand.u32 4294901760, %v4847_v38 }
 0xd6a   :  { %v4916_v43 = vsub.f32 %v4847_v38, %v4915_v39  ;;  %19943 = vmatmul.mubr.f32.vlgmr.msra.gmra.mxu1 %v4915_v39 }
 0xd6b   :  { %19951 = vmatpush3.msra.mxu1 %v4880_v26  ;;  %19952 = vmatprep.mubr.msk.f32.mxu1 %vm21095_vm5, %v23539_v35 }
 0xd6c   :  { %19960 = vmatprep.subr.mxu1 %v23539_v35  ;;  %v4917_v46 = vand.u32 4294901760, %v4916_v43 }
 0xd6e   :  { %19953 = vmatmul.mubr.f32.vlgmr.msra.gmra.mxu1 %v4917_v46  ;;  %v4918_v49 = vsub.f32 %v4916_v43, %v4917_v46 }
 0xd6f   :  { %19961 = vmatpush3.msra.mxu1 %v4880_v26  ;;  %19962 = vmatprep.mubr.msk.f32.mxu1 %vm21095_vm5, %v23539_v35 }
 0xd70   :  { %19970 = vmatprep.subr.mxu1 %v23539_v35  ;;  %v4919_v51 = vand.u32 4294901760, %v4918_v49 }
 0xd72   :  { %19938 = vmatmul.mubr.f32.vlgmr.msra.gmra.mxu0 %v4919_v51  ;;  %19963 = vmatmul.mubr.f32.vlgmr.msra.gmra.mxu1 %v4915_v39 }
 0xd73   :  { %19946 = vmatpush3.msra.mxu0 %v4957_v27  ;;  %19971 = vmatpush3.xpose.msra.mxu1 %v5414_v52 }
 0xd74   :  { %19947 = vmatprep.mubr.msk.f32.mxu0 %vm21095_vm5, %v23539_v35  ;;  %19955 = vmatprep.subr.mxu0 %v23539_v35 }
 0xd75   :  { %19972 = vmatprep.mubr.msk.f32.mxu1 %vm21095_vm5, %v23539_v35  ;;  %19980 = vmatprep.subr.mxu1 %v23539_v35 }
 0xd76   :  { %19948 = vmatmul.mubr.f32.vlgmr.msra.gmra.mxu0 %v4916_v43  ;;  %19973 = vmatmul.mubr.f32.vlgmr.msra.gmra.mxu1 %v5369_v44 }
 0xd77   :  { %19956 = vmatpush3.msra.mxu0 %v4958_v29  ;;  %19981 = vmatpush3.xpose.msra.mxu1 %v5334_v31 }
 0xd78   :  { %19957 = vmatprep.mubr.msk.f32.mxu0 %vm21095_vm5, %v23539_v35  ;;  %19965 = vmatprep.subr.mxu0 %v23539_v35 }
 0xd79   :  { %19982 = vmatprep.mubr.msk.f32.mxu1 %vm21095_vm5, %v23539_v35  ;;  %19990 = vmatprep.subr.mxu1 %v23539_v35 }
 0xd7a   :  { %19958 = vmatmul.mubr.f32.vlgmr.msra.gmra.mxu0 %v4915_v39  ;;  %19983 = vmatmul.mubr.f32.vlgmr.msra.gmra.mxu1 %v5371_v53 }
 0xd7b   :  { %19966 = vmatpush3.xpose.msra.mxu0 %v5334_v31  ;;  %19991 = vmatpush3.xpose.msra.mxu1 %v5334_v31 }
 0xd7c   :  { %19967 = vmatprep.mubr.msk.f32.mxu0 %vm21095_vm5, %v23539_v35  ;;  %19975 = vmatprep.subr.mxu0 %v23539_v35 }
 0xd7d   :  { %19992 = vmatprep.mubr.msk.f32.mxu1 %vm21095_vm5, %v23539_v35  ;;  %20000 = vmatprep.subr.mxu1 %v23539_v35 }
 0xd7e   :  { %19968 = vmatmul.mubr.f32.vlgmr.msra.gmra.mxu0 %v5373_v55  ;;  %19993 = vmatmul.mubr.f32.vlgmr.msra.gmra.mxu1 %v5369_v44 }
 0xd7f   :  { %19976 = vmatpush3.xpose.msra.mxu0 %v5411_v36  ;;  %19977 = vmatprep.mubr.msk.f32.mxu0 %vm21095_vm5, %v23539_v35 }
 0xd80   :  { %19985 = vmatprep.subr.mxu0 %v23539_v35  ;;  %20002 = vmatprep.mubr.msk.f32.mxu1 %vm21095_vm5, %v23539_v35 }
 0xd82   :  { %19978 = vmatmul.mubr.f32.vlgmr.msra.gmra.mxu0 %v5370_v50 }
 0xd83   :  { %19986 = vmatpush3.xpose.msra.mxu0 %v5412_v40  ;;  %19987 = vmatprep.mubr.msk.f32.mxu0 %vm21095_vm5, %v23539_v35 }
 0xd84   :  { %19995 = vmatprep.subr.mxu0 %v23539_v35 }
 0xd86   :  { %19988 = vmatmul.mubr.f32.vlgmr.msra.gmra.mxu0 %v5369_v44 }
 0xd87   :  { %19997 = vmatprep.mubr.msk.f32.mxu0 %vm21095_vm5, %v23539_v35 }
 0xe2a   :  { %v4997_v56 = vpop.f32.mrf.mxu1 }
 0xe2c   :  { %v19944_v57 = vpop.f32.mrf.mxu1 }
 0xe2e   :  { %v5145_v58 = vpop.f32.mrf.mxu1 }
 0xe30   :  { %v19954_v59 = vpop.f32.mrf.mxu1 }
 0xe32   :  { %v4921_v60 = vpop.f32.mrf.mxu0  ;;  %v5291_v62 = vpop.f32.mrf.mxu1 }
 0xe33   :  { %v4998_v63 = vadd.f32 %v4997_v56, %v4921_v60 }
 0xe34   :  { %v19939_v0 = vpop.f32.mrf.mxu0  ;;  %v19964_v1 = vpop.f32.mrf.mxu1 }
 0xe36   :  { %v5071_v2 = vpop.f32.mrf.mxu0  ;;  %v5451_v3 = vpop.f32.mrf.mxu1 }
 0xe37   :  { %v5072_v4 = vadd.f32 %v5071_v2, %v4998_v63 }
 0xe38   :  { %v19949_v9 = vpop.f32.mrf.mxu0  ;;  %v19974_v10 = vpop.f32.mrf.mxu1 }
 0xe39   :  { %v5146_v12 = vadd.f32 %v5145_v58, %v5072_v4 }
 0xe3a   :  { %v5219_v13 = vpop.f32.mrf.mxu0  ;;  %v5599_v14 = vpop.f32.mrf.mxu1 }
 0xe3b   :  { %v5220_v11 = vadd.f32 %v5219_v13, %v5146_v12 }
 0xe3c   :  { %v19959_v15 = vpop.f32.mrf.mxu0  ;;  %v19984_v17 = vpop.f32.mrf.mxu1 }
 0xe3d   :  { %v21559_v18 = vadd.f32 %v5291_v62, %v5220_v11 }
 0xe3e   :  { %v5375_v19 = vpop.f32.mrf.mxu0  ;;  %v5745_v21 = vpop.f32.mrf.mxu1 }
 0xe3f   :  { %v5452_v23 = vadd.f32 %v5451_v3, %v5375_v19 }
 0xe40   :  { %v19969_v22 = vpop.f32.mrf.mxu0  ;;  %v19994_v45 = vpop.f32.mrf.mxu1 }
 0xe42   :  { %v5525_v24 = vpop.f32.mrf.mxu0 }
 0xe43   :  { %v5526_v25 = vadd.f32 %v5525_v24, %v5452_v23 }
 0xe44   :  { %v19979_v26 = vpop.f32.mrf.mxu0 }
 0xe45   :  { %v5600_v27 = vadd.f32 %v5599_v14, %v5526_v25 }
 0xe46   :  { %v5673_v28 = vpop.f32.mrf.mxu0 }
 0xe47   :  { %v5674_v29 = vadd.f32 %v5673_v28, %v5600_v27 }
 0xe48   :  { %v19989_v31 = vpop.f32.mrf.mxu0 }
 0xe49   :  { %v5746_v32 = vadd.f32 %v5745_v21, %v5674_v29 }
 0xe4b   :  { %v5749_v33 = vmul.f32 0.35355338, %v5746_v32 }
 0xe4d   :  { %v5750_v34 = vsel %vm692_vm6, %v5749_v33, -inf }
 0xe4e   :  { %5751 = vmax.xlane.f32.xlu0 %v5750_v34 }
 0xe64   :  { %5761 = vrot.lane.b32.xlu0 %v21290_v42, %s21101_s21 }
 0xe68   :  { %6213 = vrot.lane.b32.xlu0 %v21290_v42, %s21100_s20 }
 0xed7   :  { %v5752_v36 = vpop.xlane.xlu0 %5751 }
 0xed8   :  { %v5753_v7 = vsub.f32 %v5749_v33, %v5752_v36 }
 0xeda   :  { %v5754_v37 = vmul.f32 1.442695, %v5753_v7 }
 0xedb   :  { %v5762_v38 = vpop.permute.xlu0 %5761 }
 0xedc   :  { %20875 = vpow2.f32 %v5754_v37  ;;  %v5798_v39 = vand.u32 4294901760, %v5762_v38 }
 0xede   :  { %v5875_v40 = vsub.f32 %v5762_v38, %v5798_v39  ;;  %19996 = vmatpush3.msra.mxu0 %v5798_v39 }
 0xedf   :  { %20005 = vmatprep.subr.mxu0 %v23539_v35  ;;  %v6214_v56 = vpop.permute.xlu0 %6213 }
 0xee0   :  { %v5876_v41 = vand.u32 4294901760, %v5875_v40  ;;  %v6217_v59 = vsel %vm692_vm6, %v6214_v56, 0 }
 0xee1   :  { %v6287_v63 = vand.u32 4294901760, %v6217_v59 }
 0xee2   :  { %v5877_v43 = vsub.f32 %v5875_v40, %v5876_v41 }
 0xee3   :  { %v6288_v3 = vsub.f32 %v6217_v59, %v6287_v63 }
 0xee4   :  { %v5878_v44 = vand.u32 4294901760, %v5877_v43 }
 0xee5   :  { %v6289_v10 = vand.u32 4294901760, %v6288_v3 }
 0xee6   :  { %20001 = vmatpush3.msra.mxu1 %v5878_v44 }
 0xee7   :  { %20010 = vmatprep.subr.mxu1 %v23539_v35  ;;  %v6290_v12 = vsub.f32 %v6288_v3, %v6289_v10 }
 0xee9   :  { %v20876_v46 = vpop.eup %20875  ;;  %v6291_v13 = vand.u32 4294901760, %v6290_v12 }
 0xeea   :  { %v5756_v48 = vsel %vm692_vm6, %v20876_v46, 0.0 }
 0xeeb   :  { %5757 = vadd.xlane.f32.xlu1 %v5756_v48 }
 0xefc   :  { %6215 = vrot.lane.b32.xlu1 %v21290_v42, %s21099_s19 }
 0xf74   :  { %v5758_v49 = vpop.xlane.xlu1 %5757 }
 0xf75   :  { %20877 = vrcp.f32 %v5758_v49 }
 0xf78   :  { %v6216_v50 = vpop.permute.xlu1 %6215 }
 0xf79   :  { %v6219_v51 = vsel %vm692_vm6, %v6216_v50, 0 }
 0xf7a   :  { %v6252_v52 = vand.u32 4294901760, %v6219_v51 }
 0xf7c   :  { %v6329_v54 = vsub.f32 %v6219_v51, %v6252_v52 }
 0xf7e   :  { %v6330_v60 = vand.u32 4294901760, %v6329_v54 }
 0xf80   :  { %v6331_v1 = vsub.f32 %v6329_v54, %v6330_v60 }
 0xf82   :  { %v20878_v53 = vpop.eup %20877  ;;  %v6332_v9 = vand.u32 4294901760, %v6331_v1 }
 0xf83   :  { %v5760_v55 = vmul.f32 %v20878_v53, %v20876_v46 }
 0xf85   :  { %v5765_v57 = vsel %vm692_vm6, %v5760_v55, 0 }
 0xf86   :  { %v5833_v58 = vand.u32 4294901760, %v5765_v57 }
 0xf88   :  { %v5834_v62 = vsub.f32 %v5765_v57, %v5833_v58  ;;  %20003 = vmatmul.mubr.f32.vlgmr.msra.gmra.mxu1 %v5833_v58 }
 0xf89   :  { %20011 = vmatpush3.msra.mxu1 %v5798_v39  ;;  %20012 = vmatprep.mubr.msk.f32.mxu1 %vm21095_vm5, %v23539_v35 }
 0xf8a   :  { %20020 = vmatprep.subr.mxu1 %v23539_v35  ;;  %v5835_v0 = vand.u32 4294901760, %v5834_v62 }
 0xf8c   :  { %20013 = vmatmul.mubr.f32.vlgmr.msra.gmra.mxu1 %v5835_v0  ;;  %v5836_v2 = vsub.f32 %v5834_v62, %v5835_v0 }
 0xf8d   :  { %20021 = vmatpush3.msra.mxu1 %v5798_v39  ;;  %20022 = vmatprep.mubr.msk.f32.mxu1 %vm21095_vm5, %v23539_v35 }
 0xf8e   :  { %20030 = vmatprep.subr.mxu1 %v23539_v35  ;;  %v5837_v4 = vand.u32 4294901760, %v5836_v2 }
 0xf90   :  { %19998 = vmatmul.mubr.f32.vlgmr.msra.gmra.mxu0 %v5837_v4  ;;  %20023 = vmatmul.mubr.f32.vlgmr.msra.gmra.mxu1 %v5833_v58 }
 0xf91   :  { %20006 = vmatpush3.msra.mxu0 %v5875_v40  ;;  %20031 = vmatpush3.xpose.msra.mxu1 %v6332_v9 }
 0xf92   :  { %20007 = vmatprep.mubr.msk.f32.mxu0 %vm21095_vm5, %v23539_v35  ;;  %20015 = vmatprep.subr.mxu0 %v23539_v35 }
 0xf93   :  { %20032 = vmatprep.mubr.msk.f32.mxu1 %vm21095_vm5, %v23539_v35  ;;  %20040 = vmatprep.subr.mxu1 %v23539_v35 }
 0xf94   :  { %20008 = vmatmul.mubr.f32.vlgmr.msra.gmra.mxu0 %v5834_v62  ;;  %20033 = vmatmul.mubr.f32.vlgmr.msra.gmra.mxu1 %v6287_v63 }
 0xf95   :  { %20016 = vmatpush3.msra.mxu0 %v5876_v41  ;;  %20041 = vmatpush3.xpose.msra.mxu1 %v6252_v52 }
 0xf96   :  { %20017 = vmatprep.mubr.msk.f32.mxu0 %vm21095_vm5, %v23539_v35  ;;  %20025 = vmatprep.subr.mxu0 %v23539_v35 }
 0xf97   :  { %20042 = vmatprep.mubr.msk.f32.mxu1 %vm21095_vm5, %v23539_v35  ;;  %20050 = vmatprep.subr.mxu1 %v23539_v35 }
 0xf98   :  { %20018 = vmatmul.mubr.f32.vlgmr.msra.gmra.mxu0 %v5833_v58  ;;  %20043 = vmatmul.mubr.f32.vlgmr.msra.gmra.mxu1 %v6289_v10 }
 0xf99   :  { %20026 = vmatpush3.xpose.msra.mxu0 %v6252_v52  ;;  %20051 = vmatpush3.xpose.msra.mxu1 %v6252_v52 }
 0xf9a   :  { %20027 = vmatprep.mubr.msk.f32.mxu0 %vm21095_vm5, %v23539_v35  ;;  %20035 = vmatprep.subr.mxu0 %v23539_v35 }
 0xf9b   :  { %20052 = vmatprep.mubr.msk.f32.mxu1 %vm21095_vm5, %v23539_v35  ;;  %20060 = vmatprep.subr.mxu1 %v23539_v35 }
 0xf9c   :  { %20028 = vmatmul.mubr.f32.vlgmr.msra.gmra.mxu0 %v6291_v13  ;;  %20053 = vmatmul.mubr.f32.vlgmr.msra.gmra.mxu1 %v6287_v63 }
 0xf9d   :  { %20036 = vmatpush3.xpose.msra.mxu0 %v6329_v54  ;;  %20037 = vmatprep.mubr.msk.f32.mxu0 %vm21095_vm5, %v23539_v35 }
 0xf9e   :  { %20045 = vmatprep.subr.mxu0 %v23539_v35  ;;  %20062 = vmatprep.mubr.msk.f32.mxu1 %vm21095_vm5, %v23539_v35 }
 0xfa0   :  { %20038 = vmatmul.mubr.f32.vlgmr.msra.gmra.mxu0 %v6288_v3 }
 0xfa1   :  { %20046 = vmatpush3.xpose.msra.mxu0 %v6330_v60  ;;  %20047 = vmatprep.mubr.msk.f32.mxu0 %vm21095_vm5, %v23539_v35 }
 0xfa2   :  { %20055 = vmatprep.subr.mxu0 %v23539_v35 }
 0xfa4   :  { %20048 = vmatmul.mubr.f32.vlgmr.msra.gmra.mxu0 %v6287_v63 }
 0xfa5   :  { %20057 = vmatprep.mubr.msk.f32.mxu0 %vm21095_vm5, %v23539_v35 }
0x1048   :  { %v5915_v14 = vpop.f32.mrf.mxu1 }
0x104a   :  { %v20004_v11 = vpop.f32.mrf.mxu1 }
0x104c   :  { %v6063_v15 = vpop.f32.mrf.mxu1 }
0x104e   :  { %v20014_v17 = vpop.f32.mrf.mxu1 }
0x1050   :  { %v5839_v19 = vpop.f32.mrf.mxu0  ;;  %v6209_v21 = vpop.f32.mrf.mxu1 }
0x1051   :  { %v5916_v22 = vadd.f32 %v5915_v14, %v5839_v19 }
0x1052   :  { %v19999_v45 = vpop.f32.mrf.mxu0  ;;  %v20024_v23 = vpop.f32.mrf.mxu1 }
0x1054   :  { %v5989_v24 = vpop.f32.mrf.mxu0  ;;  %v6369_v25 = vpop.f32.mrf.mxu1 }
0x1055   :  { %v5990_v26 = vadd.f32 %v5989_v24, %v5916_v22 }
0x1056   :  { %v20009_v27 = vpop.f32.mrf.mxu0  ;;  %v20034_v28 = vpop.f32.mrf.mxu1 }
0x1057   :  { %v6064_v29 = vadd.f32 %v6063_v15, %v5990_v26 }
0x1058   :  { %v6137_v31 = vpop.f32.mrf.mxu0  ;;  %v6517_v32 = vpop.f32.mrf.mxu1 }
0x1059   :  { %v6138_v33 = vadd.f32 %v6137_v31, %v6064_v29 }
0x105a   :  { %v20019_v34 = vpop.f32.mrf.mxu0  ;;  %v20044_v36 = vpop.f32.mrf.mxu1 }
0x105b   :  { %v21608_v7 = vadd.f32 %v6209_v21, %v6138_v33 }
0x105c   :  { %v6293_v37 = vpop.f32.mrf.mxu0  ;;  %v6663_v38 = vpop.f32.mrf.mxu1 }
0x105d   :  { %v6370_v41 = vadd.f32 %v6369_v25, %v6293_v37 }
0x105e   :  { %v20029_v39 = vpop.f32.mrf.mxu0  ;;  %v20054_v40 = vpop.f32.mrf.mxu1 }
0x1060   :  { %v6443_v43 = vpop.f32.mrf.mxu0 }
0x1061   :  { %v6444_v44 = vadd.f32 %v6443_v43, %v6370_v41 }
0x1062   :  { %v20039_v46 = vpop.f32.mrf.mxu0 }
0x1063   :  { %v6518_v48 = vadd.f32 %v6517_v32, %v6444_v44 }
0x1064   :  { %v6591_v49 = vpop.f32.mrf.mxu0 }
0x1065   :  { %v6592_v50 = vadd.f32 %v6591_v49, %v6518_v48 }
0x1066   :  { %v20049_v51 = vpop.f32.mrf.mxu0 }
0x1067   :  { %v6664_v52 = vadd.f32 %v6663_v38, %v6592_v50 }
0x1069   :  { %v6667_v53 = vmul.f32 0.35355338, %v6664_v52 }
0x106b   :  { %v6668_v54 = vsel %vm692_vm6, %v6667_v53, -inf }
0x106c   :  { %6669 = vmax.xlane.f32.xlu1 %v6668_v54 }
0x107d   :  { %7133 = vrot.lane.b32.xlu1 %v21290_v42, %s21104_s26 }
0x1081   :  { %7131 = vrot.lane.b32.xlu1 %v21290_v42, %s21103_s25 }
0x10f5   :  { %v6670_v55 = vpop.xlane.xlu1 %6669 }
0x10f6   :  { %v6671_v56 = vsub.f32 %v6667_v53, %v6670_v55 }
0x10f8   :  { %v6672_v57 = vmul.f32 1.442695, %v6671_v56 }
0x10f9   :  { %v7134_v63 = vpop.permute.xlu1 %7133 }
0x10fa   :  { %20879 = vpow2.f32 %v6672_v57  ;;  %v7137_v2 = vsel %vm692_vm6, %v7134_v63, 0 }
0x10fb   :  { %v7170_v4 = vand.u32 4294901760, %v7137_v2 }
0x10fd   :  { %v7247_v13 = vsub.f32 %v7137_v2, %v7170_v4  ;;  %v7132_v11 = vpop.permute.xlu1 %7131 }
0x10fe   :  { %v7135_v21 = vsel %vm692_vm6, %v7132_v11, 0 }
0x10ff   :  { %v7248_v19 = vand.u32 4294901760, %v7247_v13  ;;  %v7205_v45 = vand.u32 4294901760, %v7135_v21 }
0x1101   :  { %v7249_v24 = vsub.f32 %v7247_v13, %v7248_v19  ;;  %v7206_v26 = vsub.f32 %v7135_v21, %v7205_v45 }
0x1103   :  { %v7250_v28 = vand.u32 4294901760, %v7249_v24  ;;  %v7207_v29 = vand.u32 4294901760, %v7206_v26 }
0x1105   :  { %v7208_v31 = vsub.f32 %v7206_v26, %v7207_v29 }
0x1107   :  { %v20880_v58 = vpop.eup %20879  ;;  %v7209_v32 = vand.u32 4294901760, %v7208_v31 }
0x1108   :  { %v6674_v59 = vsel %vm692_vm6, %v20880_v58, 0.0 }
0x1109   :  { %6675 = vadd.xlane.f32.xlu0 %v6674_v59 }
0x111f   :  { %6679 = vrot.lane.b32.xlu0 %v21290_v42, %s21102_s22 }
0x1192   :  { %v6676_v60 = vpop.xlane.xlu0 %6675 }
0x1193   :  { %20881 = vrcp.f32 %v6676_v60 }
0x1196   :  { %v6680_v62 = vpop.permute.xlu0 %6679 }
0x1197   :  { %v6716_v0 = vand.u32 4294901760, %v6680_v62 }
0x1199   :  { %v6793_v1 = vsub.f32 %v6680_v62, %v6716_v0  ;;  %20056 = vmatpush3.msra.mxu0 %v6716_v0 }
0x119a   :  { %20065 = vmatprep.subr.mxu0 %v23539_v35 }
0x119b   :  { %v6794_v3 = vand.u32 4294901760, %v6793_v1 }
0x119d   :  { %v6795_v9 = vsub.f32 %v6793_v1, %v6794_v3 }
0x119f   :  { %v6796_v10 = vand.u32 4294901760, %v6795_v9 }
0x11a0   :  { %v20882_v12 = vpop.eup %20881 }
0x11a1   :  { %20061 = vmatpush3.msra.mxu1 %v6796_v10  ;;  %v6678_v14 = vmul.f32 %v20882_v12, %v20880_v58 }
0x11a2   :  { %20070 = vmatprep.subr.mxu1 %v23539_v35 }
0x11a3   :  { %v6683_v15 = vsel %vm692_vm6, %v6678_v14, 0 }
0x11a4   :  { %v6751_v17 = vand.u32 4294901760, %v6683_v15 }
0x11a6   :  { %v6752_v22 = vsub.f32 %v6683_v15, %v6751_v17  ;;  %20063 = vmatmul.mubr.f32.vlgmr.msra.gmra.mxu1 %v6751_v17 }
0x11a7   :  { %20071 = vmatpush3.msra.mxu1 %v6716_v0  ;;  %20072 = vmatprep.mubr.msk.f32.mxu1 %vm21095_vm5, %v23539_v35 }
0x11a8   :  { %20080 = vmatprep.subr.mxu1 %v23539_v35  ;;  %v6753_v23 = vand.u32 4294901760, %v6752_v22 }
0x11aa   :  { %20073 = vmatmul.mubr.f32.vlgmr.msra.gmra.mxu1 %v6753_v23  ;;  %v6754_v25 = vsub.f32 %v6752_v22, %v6753_v23 }
0x11ab   :  { %20081 = vmatpush3.msra.mxu1 %v6716_v0  ;;  %20082 = vmatprep.mubr.msk.f32.mxu1 %vm21095_vm5, %v23539_v35 }
0x11ac   :  { %20090 = vmatprep.subr.mxu1 %v23539_v35  ;;  %v6755_v27 = vand.u32 4294901760, %v6754_v25 }
0x11ae   :  { %20058 = vmatmul.mubr.f32.vlgmr.msra.gmra.mxu0 %v6755_v27  ;;  %20083 = vmatmul.mubr.f32.vlgmr.msra.gmra.mxu1 %v6751_v17 }
0x11af   :  { %20066 = vmatpush3.msra.mxu0 %v6793_v1  ;;  %20091 = vmatpush3.xpose.msra.mxu1 %v7250_v28 }
0x11b0   :  { %20067 = vmatprep.mubr.msk.f32.mxu0 %vm21095_vm5, %v23539_v35  ;;  %20075 = vmatprep.subr.mxu0 %v23539_v35 }
0x11b1   :  { %20092 = vmatprep.mubr.msk.f32.mxu1 %vm21095_vm5, %v23539_v35  ;;  %20100 = vmatprep.subr.mxu1 %v23539_v35 }
0x11b2   :  { %20068 = vmatmul.mubr.f32.vlgmr.msra.gmra.mxu0 %v6752_v22  ;;  %20093 = vmatmul.mubr.f32.vlgmr.msra.gmra.mxu1 %v7205_v45 }
0x11b3   :  { %20076 = vmatpush3.msra.mxu0 %v6794_v3  ;;  %20101 = vmatpush3.xpose.msra.mxu1 %v7170_v4 }
0x11b4   :  { %20077 = vmatprep.mubr.msk.f32.mxu0 %vm21095_vm5, %v23539_v35  ;;  %20085 = vmatprep.subr.mxu0 %v23539_v35 }
0x11b5   :  { %20102 = vmatprep.mubr.msk.f32.mxu1 %vm21095_vm5, %v23539_v35  ;;  %20110 = vmatprep.subr.mxu1 %v23539_v35 }
0x11b6   :  { %20078 = vmatmul.mubr.f32.vlgmr.msra.gmra.mxu0 %v6751_v17  ;;  %20103 = vmatmul.mubr.f32.vlgmr.msra.gmra.mxu1 %v7207_v29 }
0x11b7   :  { %20086 = vmatpush3.xpose.msra.mxu0 %v7170_v4  ;;  %20111 = vmatpush3.xpose.msra.mxu1 %v7170_v4 }
0x11b8   :  { %20087 = vmatprep.mubr.msk.f32.mxu0 %vm21095_vm5, %v23539_v35  ;;  %20095 = vmatprep.subr.mxu0 %v23539_v35 }
0x11b9   :  { %20112 = vmatprep.mubr.msk.f32.mxu1 %vm21095_vm5, %v23539_v35  ;;  %20120 = vmatprep.subr.mxu1 %v23539_v35 }
0x11ba   :  { %20088 = vmatmul.mubr.f32.vlgmr.msra.gmra.mxu0 %v7209_v32  ;;  %20113 = vmatmul.mubr.f32.vlgmr.msra.gmra.mxu1 %v7205_v45 }
0x11bb   :  { %20096 = vmatpush3.xpose.msra.mxu0 %v7247_v13  ;;  %20097 = vmatprep.mubr.msk.f32.mxu0 %vm21095_vm5, %v23539_v35 }
0x11bc   :  { %20105 = vmatprep.subr.mxu0 %v23539_v35  ;;  %20122 = vmatprep.mubr.msk.f32.mxu1 %vm21095_vm5, %v23539_v35 }
0x11be   :  { %20098 = vmatmul.mubr.f32.vlgmr.msra.gmra.mxu0 %v7206_v26 }
0x11bf   :  { %20106 = vmatpush3.xpose.msra.mxu0 %v7248_v19  ;;  %20107 = vmatprep.mubr.msk.f32.mxu0 %vm21095_vm5, %v23539_v35 }
0x11c0   :  { %20115 = vmatprep.subr.mxu0 %v23539_v35 }
0x11c2   :  { %20108 = vmatmul.mubr.f32.vlgmr.msra.gmra.mxu0 %v7205_v45 }
0x11c3   :  { %20117 = vmatprep.mubr.msk.f32.mxu0 %vm21095_vm5, %v23539_v35 }
0x1266   :  { %v6833_v33 = vpop.f32.mrf.mxu1 }
0x1268   :  { %v20064_v34 = vpop.f32.mrf.mxu1 }
0x126a   :  { %v6981_v36 = vpop.f32.mrf.mxu1 }
0x126c   :  { %v20074_v37 = vpop.f32.mrf.mxu1 }
0x126e   :  { %v6757_v38 = vpop.f32.mrf.mxu0  ;;  %v7127_v39 = vpop.f32.mrf.mxu1 }
0x126f   :  { %v6834_v40 = vadd.f32 %v6833_v33, %v6757_v38 }
0x1270   :  { %v20059_v41 = vpop.f32.mrf.mxu0  ;;  %v20084_v43 = vpop.f32.mrf.mxu1 }
0x1272   :  { %v6907_v44 = vpop.f32.mrf.mxu0  ;;  %v7287_v46 = vpop.f32.mrf.mxu1 }
0x1273   :  { %v6908_v48 = vadd.f32 %v6907_v44, %v6834_v40  ;;  %v8067_v44 = vld [vmem:[#allocation7 + $0x18] sm:$0xff] }
0x1274   :  { %v20069_v49 = vpop.f32.mrf.mxu0  ;;  %v20094_v50 = vpop.f32.mrf.mxu1 }
0x1275   :  { %v6982_v51 = vadd.f32 %v6981_v36, %v6908_v48  ;;  %v8065_v48 = vld [vmem:[#allocation7 + $0x8] sm:$0xff]  ;;  %v21700_v49 = vand.u32 4294901760, %v8067_v44 }
0x1276   :  { %v7055_v52 = vpop.f32.mrf.mxu0  ;;  %v7435_v53 = vpop.f32.mrf.mxu1 }
0x1277   :  { %v7056_v54 = vadd.f32 %v7055_v52, %v6982_v51  ;;  %v21704_v51 = vand.u32 4294901760, %v8065_v48  ;;  %v21707_v52 = vsub.f32 %v8067_v44, %v21700_v49 }
0x1278   :  { %v20079_v55 = vpop.f32.mrf.mxu0  ;;  %v20104_v56 = vpop.f32.mrf.mxu1 }
0x1279   :  { %v7128_v57 = vadd.f32 %v7127_v39, %v7056_v54  ;;  %v21713_v54 = vsub.f32 %v8065_v48, %v21704_v51  ;;  %v21718_v55 = vand.u32 4294901760, %v21707_v52 }
0x127a   :  { %v7211_v58 = vpop.f32.mrf.mxu0  ;;  %v7581_v59 = vpop.f32.mrf.mxu1 }
0x127b   :  { %v7288_v63 = vadd.f32 %v7287_v46, %v7211_v58  ;;  %v8066_v46 = vld [vmem:[#allocation7 + $0x10] sm:$0xff]  ;;  %v8194_v58 = vsub.f32 %v21707_v52, %v21718_v55 }
0x127c   :  { %v20089_v60 = vpop.f32.mrf.mxu0  ;;  %v20114_v62 = vpop.f32.mrf.mxu1  ;;  %v21702_v50 = vand.u32 4294901760, %v8066_v46 }
0x127d   :  { %v8195_v62 = vand.u32 4294901760, %v8194_v58 }
0x127e   :  { %v7361_v0 = vpop.f32.mrf.mxu0 }
0x127f   :  { %v7362_v1 = vadd.f32 %v7361_v0, %v7288_v63 }
0x1280   :  { %v20099_v2 = vpop.f32.mrf.mxu0 }
0x1281   :  { %v7436_v3 = vadd.f32 %v7435_v53, %v7362_v1  ;;  %v21710_v53 = vsub.f32 %v8066_v46, %v21702_v50  ;;  %v8064_v1 = vld [vmem:[#allocation7] sm:$0xff] }
0x1282   :  { %v7509_v4 = vpop.f32.mrf.mxu0 }
0x1283   :  { %v7510_v9 = vadd.f32 %v7509_v4, %v7436_v3  ;;  %v21721_v56 = vand.u32 4294901760, %v21710_v53  ;;  %v21736_v3 = vand.u32 4294901760, %v8064_v1 }
0x1284   :  { %v20109_v10 = vpop.f32.mrf.mxu0 }
0x1285   :  { %v7582_v12 = vadd.f32 %v7581_v59, %v7510_v9  ;;  %v8201_v59 = vsub.f32 %v21710_v53, %v21721_v56  ;;  %v21739_v9 = vsub.f32 %v8064_v1, %v21736_v3 }
0x1287   :  { %v7585_v13 = vmul.f32 0.35355338, %v7582_v12  ;;  %v8202_v63 = vand.u32 4294901760, %v8201_v59  ;;  %v21744_v12 = vand.u32 4294901760, %v21739_v9 }
0x1289   :  { %v7586_v14 = vsel %vm692_vm6, %v7585_v13, -inf }
0x128a   :  { %7587 = vmax.xlane.f32.xlu0 %v7586_v14  ;;  %v8215_v14 = vsub.f32 %v21739_v9, %v21744_v12 }
0x12a0   :  { %7597 = vrot.lane.b32.xlu0 %v21290_v42, %s21105_s27 }
0x12a4   :  { %4366 = vrot.lane.b32.xlu0 %v21462_v47, %s21106_s28 }
0x12a8   :  { %4370 = vrot.lane.b32.xlu0 %v21510_v61, %s21107_s29 }
0x1313   :  { %v7588_v11 = vpop.xlane.xlu0 %7587 }
0x1314   :  { %v7589_v15 = vsub.f32 %v7585_v13, %v7588_v11 }
0x1316   :  { %v7590_v17 = vmul.f32 1.442695, %v7589_v15 }
0x1317   :  { %v7598_v19 = vpop.permute.xlu0 %7597 }
0x1318   :  { %20883 = vpow2.f32 %v7590_v17  ;;  %v7634_v21 = vand.u32 4294901760, %v7598_v19  ;;  %v8216_v17 = vand.u32 4294901760, %v8215_v14 }
0x131a   :  { %v7711_v22 = vsub.f32 %v7598_v19, %v7634_v21  ;;  %20116 = vmatpush3.msra.mxu0 %v7634_v21 }
0x131b   :  { %20125 = vmatprep.subr.mxu0 %v23539_v35  ;;  %v4367_v26 = vpop.permute.xlu0 %4366 }
0x131c   :  { %v7712_v45 = vand.u32 4294901760, %v7711_v22 }
0x131e   :  { %v7713_v42 = vsub.f32 %v7711_v22, %v7712_v45 }
0x1320   :  { %v7714_v23 = vand.u32 4294901760, %v7713_v42 }
0x1322   :  { %20121 = vmatpush3.msra.mxu1 %v7714_v23 }
0x1323   :  { %20130 = vmatprep.subr.mxu1 %v23539_v35 }
0x1325   :  { %v20884_v47 = vpop.eup %20883 }
0x1326   :  { %v7592_v24 = vsel %vm692_vm6, %v20884_v47, 0.0 }
0x1327   :  { %7593 = vadd.xlane.f32.xlu1 %v7592_v24 }
0x1338   :  { %4362 = vrot.lane.b32.xlu1 %v21413_v30, %s21089_s24  ;;  %v4371_v30 = vpop.permute.xlu0 %4370 }
0x133c   :  { %8050 = vrot.lane.b32.xlu1 %v21608_v7, %s21089_s24 }
0x1340   :  { %8054 = vrot.lane.b32.xlu1 %v7128_v57, %s21106_s28  ;;  %v21724_v57 = vand.u32 4294901760, %v21713_v54 }
0x1342   :  { %v8208_v60 = vsub.f32 %v21713_v54, %v21724_v57 }
0x1344   :  { %8068 = vrot.lane.b32.xlu1 %v21180_v8, %s21098_s18  ;;  %v8209_v0 = vand.u32 4294901760, %v8208_v60 }
0x13b0   :  { %v7594_v61 = vpop.xlane.xlu1 %7593 }
0x13b1   :  { %20885 = vrcp.f32 %v7594_v61 }
0x13b4   :  { %v4363_v25 = vpop.permute.xlu1 %4362 }
0x13b5   :  { %v4373_v27 = vsel %vm692_vm6, %v21364_v16, %v4363_v25 }
0x13b6   :  { %v4375_v28 = vsel %vm4374_vm7, %v4373_v27, %v4367_v26 }
0x13b7   :  { %v4377_v29 = vsel %vm4376_vm8, %v4375_v28, %v4371_v30 }
0x13b8   :  { %v8072_v32 = vsel %vm93_vm0, %v4377_v29, 0  ;;  %v8051_v27 = vpop.permute.xlu1 %8050 }
0x13b9   :  { %v21680_v34 = vand.u32 4294901760, %v8072_v32  ;;  %v8061_v30 = vsel %vm692_vm6, %v21559_v18, %v8051_v27  ;;  %v8741_v27 = vld [vmem:[#allocation8 + $0x68] sm:$0xff] }
0x13bb   :  { %v21686_v37 = vsub.f32 %v8072_v32, %v21680_v34 }
0x13bc   :  { %v8055_v28 = vpop.permute.xlu1 %8054 }
0x13bd   :  { %v8148_v40 = vand.u32 4294901760, %v21686_v37  ;;  %v8062_v29 = vsel %vm4374_vm7, %v8061_v30, %v8055_v28 }
0x13be   :  { %v20886_v7 = vpop.eup %20885 }
0x13bf   :  { %v7596_v31 = vmul.f32 %v20886_v7, %v20884_v47  ;;  %v8149_v41 = vsub.f32 %v21686_v37, %v8148_v40 }
0x13c1   :  { %v7601_v8 = vsel %vm692_vm6, %v7596_v31, 0  ;;  %v8150_v43 = vand.u32 4294901760, %v8149_v41 }
0x13c2   :  { %v7669_v33 = vand.u32 4294901760, %v7601_v8 }
0x13c4   :  { %v7670_v36 = vsub.f32 %v7601_v8, %v7669_v33  ;;  %20123 = vmatmul.mubr.f32.vlgmr.msra.gmra.mxu1 %v7669_v33 }
0x13c5   :  { %20131 = vmatpush3.msra.mxu1 %v7634_v21  ;;  %20132 = vmatprep.mubr.msk.f32.mxu1 %vm21095_vm5, %v23539_v35 }
0x13c6   :  { %20140 = vmatprep.subr.mxu1 %v23539_v35  ;;  %v7671_v16 = vand.u32 4294901760, %v7670_v36 }
0x13c8   :  { %20133 = vmatmul.mubr.f32.vlgmr.msra.gmra.mxu1 %v7671_v16  ;;  %v7672_v38 = vsub.f32 %v7670_v36, %v7671_v16 }
0x13c9   :  { %20141 = vmatpush3.msra.mxu1 %v7634_v21  ;;  %20142 = vmatprep.mubr.msk.f32.mxu1 %vm21095_vm5, %v23539_v35 }
0x13ca   :  { %v7673_v39 = vand.u32 4294901760, %v7672_v38  ;;  %20156 = vmatprep.subr.mxu1 %v8195_v62  ;;  %v8069_v38 = vpop.permute.xlu1 %8068 }
0x13cc   :  { %20118 = vmatmul.mubr.f32.vlgmr.msra.gmra.mxu0 %v7673_v39  ;;  %20143 = vmatmul.mubr.f32.vlgmr.msra.gmra.mxu1 %v7669_v33 }
0x13cd   :  { %20126 = vmatpush3.msra.mxu0 %v7711_v22  ;;  %20164 = vmatprep.mubr.f32.mxu1 %v21680_v34 }
0x13ce   :  { %20127 = vmatprep.mubr.msk.f32.mxu0 %vm21095_vm5, %v23539_v35  ;;  %20135 = vmatprep.subr.mxu0 %v23539_v35 }
0x13cf   :  { %20157 = vmatpush3.msra.mxu1 %v8195_v62 }
0x13d0   :  { %20128 = vmatmul.mubr.f32.vlgmr.msra.gmra.mxu0 %v7670_v36  ;;  %20158 = vmatprep.subr.mxu1 %v8202_v63 }
0x13d1   :  { %20136 = vmatpush3.msra.mxu0 %v7712_v45  ;;  %20137 = vmatprep.mubr.msk.f32.mxu0 %vm21095_vm5, %v23539_v35 }
0x13d2   :  { %20145 = vmatprep.subr.mxu0 %v21700_v49  ;;  %20159 = vmatpush3.msra.mxu1 %v8202_v63 }
0x13d3   :  { %20160 = vmatprep.subr.mxu1 %v8209_v0 }
0x13d4   :  { %20138 = vmatmul.mubr.f32.vlgmr.msra.gmra.mxu0 %v7669_v33  ;;  %20161 = vmatpush3.msra.mxu1 %v8209_v0  ;;  %v20951_v0 = vld [vmem:[#allocation2 + $0x8] sm:$0xff] }
0x13d5   :  { %20153 = vmatprep.mubr.f32.mxu0 %v8150_v43  ;;  %20146 = vmatpush3.msra.mxu0 %v21700_v49 }
0x13d6   :  { %20147 = vmatprep.subr.mxu0 %v21702_v50  ;;  %20162 = vmatprep.subr.mxu1 %v8216_v17 }
0x13d7   :  { %20148 = vmatpush3.msra.mxu0 %v21702_v50  ;;  %20163 = vmatpush3.msra.mxu1 %v8216_v17 }
0x13d8   :  { %20149 = vmatprep.subr.mxu0 %v21704_v51  ;;  %20178 = vmatprep.subr.mxu1 %v21700_v49 }
0x13d9   :  { %20150 = vmatpush3.msra.mxu0 %v21704_v51 }
0x13da   :  { %20151 = vmatprep.subr.mxu0 %v21736_v3 }
0x13db   :  { %20152 = vmatpush3.msra.mxu0 %v21736_v3 }
0x13dc   :  { %20167 = vmatprep.subr.mxu0 %v21707_v52 }
0x1484   :  { %v7751_v2 = vpop.f32.mrf.mxu1 }
0x1486   :  { %v20124_v4 = vpop.f32.mrf.mxu1 }
0x1487   :  { %v20952_v4 = vld [vmem:[#allocation2] sm:$0xff] }
0x1488   :  { %v7899_v10 = vpop.f32.mrf.mxu1 }
0x148a   :  { %v20134_v13 = vpop.f32.mrf.mxu1 }
0x148c   :  { %v7675_v11 = vpop.f32.mrf.mxu0  ;;  %v8045_v15 = vpop.f32.mrf.mxu1 }
0x148d   :  { %v7752_v22 = vadd.f32 %v7751_v2, %v7675_v11  ;;  %v20953_v11 = vld [vmem:[#allocation10] sm:$0xff] }
0x148e   :  { %v20119_v19 = vpop.f32.mrf.mxu0  ;;  %v20144_v21 = vpop.f32.mrf.mxu1 }
0x1490   :  { %v7825_v45 = vpop.f32.mrf.mxu0 }
0x1491   :  { %v7826_v42 = vadd.f32 %v7825_v45, %v7752_v22 }
0x1492   :  { %v20129_v23 = vpop.f32.mrf.mxu0 }
0x1493   :  { %v7900_v47 = vadd.f32 %v7899_v10, %v7826_v42 }
0x1494   :  { %v7973_v24 = vpop.f32.mrf.mxu0 }
0x1495   :  { %v7974_v61 = vadd.f32 %v7973_v24, %v7900_v47 }
0x1496   :  { %v20139_v25 = vpop.f32.mrf.mxu0 }
0x1497   :  { %v8046_v26 = vadd.f32 %v8045_v15, %v7974_v61  ;;  %v8743_v25 = vld [vmem:[#allocation8 + $0x78] sm:$0xff] }
0x1498   :  { %v21813_v28 = vand.u32 4294901760, %v8743_v25 }
0x1499   :  { %8058 = vrot.lane.b32.xlu0 %v8046_v26, %s21107_s29  ;;  %v8742_v26 = vld [vmem:[#allocation8 + $0x70] sm:$0xff] }
0x149a   :  { %v21815_v30 = vand.u32 4294901760, %v8742_v26 }
0x150b   :  { %v8059_v7 = vpop.permute.xlu0 %8058 }
0x150c   :  { %v8063_v31 = vsel %vm4376_vm8, %v8062_v29, %v8059_v7  ;;  %v21817_v29 = vand.u32 4294901760, %v8741_v27  ;;  %v8740_v7 = vld [vmem:[#allocation8 + $0x60] sm:$0xff] }
0x150d   :  { %v8075_v32 = vsel %vm93_vm0, %v8063_v31, 0  ;;  %v8739_v31 = vld [vmem:[#allocation8 + $0x58] sm:$0xff] }
0x150e   :  { %v8156_v8 = vand.u32 4294901760, %v8075_v32 }
0x1510   :  { %v8157_v33 = vsub.f32 %v8075_v32, %v8156_v8  ;;  %20165 = vmatmul.mubr.f32.vlgmr.msra.gmra.mxu1 %v8156_v8  ;;  %v8738_v32 = vld [vmem:[#allocation8 + $0x50] sm:$0xff] }
0x1511   :  { %20179 = vmatpush3.msra.mxu1 %v21700_v49  ;;  %20186 = vmatprep.mubr.f32.mxu1 %v8148_v40 }
0x1512   :  { %20180 = vmatprep.subr.mxu1 %v21702_v50  ;;  %v8158_v36 = vand.u32 4294901760, %v8157_v33 }
0x1513   :  { %20181 = vmatpush3.msra.mxu1 %v21702_v50 }
0x1514   :  { %20182 = vmatprep.subr.mxu1 %v21704_v51  ;;  %v8159_v18 = vsub.f32 %v8157_v33, %v8158_v36 }
0x1515   :  { %20183 = vmatpush3.msra.mxu1 %v21704_v51 }
0x1516   :  { %20184 = vmatprep.subr.mxu1 %v21736_v3  ;;  %v8160_v16 = vand.u32 4294901760, %v8159_v18  ;;  %v8737_v18 = vld [vmem:[#allocation8 + $0x48] sm:$0xff] }
0x1517   :  { %20185 = vmatpush3.msra.mxu1 %v21736_v3 }
0x1518   :  { %20187 = vmatmul.mubr.f32.vlgmr.msra.gmra.mxu1 %v8158_v36  ;;  %20200 = vmatprep.subr.mxu1 %v21700_v49  ;;  %v21823_v36 = vand.u32 4294901760, %v8738_v32 }
0x1519   :  { %20154 = vmatmul.mubr.f32.vlgmr.msra.gmra.mxu0 %v8160_v16  ;;  %20201 = vmatpush3.msra.mxu1 %v21700_v49  ;;  %v8736_v16 = vld [vmem:[#allocation8 + $0x40] sm:$0xff] }
0x151a   :  { %20168 = vmatpush3.msra.mxu0 %v21707_v52  ;;  %20208 = vmatprep.mubr.f32.mxu1 %v21680_v34 }
0x151b   :  { %20169 = vmatprep.subr.mxu0 %v21710_v53  ;;  %20175 = vmatprep.mubr.f32.mxu0 %v21686_v37 }
0x151c   :  { %20202 = vmatprep.subr.mxu1 %v21702_v50  ;;  %20170 = vmatpush3.msra.mxu0 %v21710_v53 }
0x151d   :  { %20203 = vmatpush3.msra.mxu1 %v21702_v50  ;;  %20171 = vmatprep.subr.mxu0 %v21713_v54 }
0x151e   :  { %20204 = vmatprep.subr.mxu1 %v21704_v51  ;;  %20172 = vmatpush3.msra.mxu0 %v21713_v54 }
0x151f   :  { %20205 = vmatpush3.msra.mxu1 %v21704_v51  ;;  %20173 = vmatprep.subr.mxu0 %v21739_v9 }
0x1520   :  { %20206 = vmatprep.subr.mxu1 %v21736_v3  ;;  %20174 = vmatpush3.msra.mxu0 %v21739_v9 }
0x1521   :  { %20207 = vmatpush3.msra.mxu1 %v21736_v3  ;;  %20176 = vmatmul.mubr.f32.vlgmr.msra.gmra.mxu0 %v8157_v33  ;;  %v21821_v33 = vand.u32 4294901760, %v8739_v31 }
0x1522   :  { %20189 = vmatprep.subr.mxu0 %v21718_v55  ;;  %20209 = vmatmul.mubr.f32.vlgmr.msra.gmra.mxu1 %v8156_v8 }
0x1523   :  { %20190 = vmatpush3.msra.mxu0 %v21718_v55  ;;  %20197 = vmatprep.mubr.f32.mxu0 %v21680_v34 }
0x1524   :  { %20191 = vmatprep.subr.mxu0 %v21721_v56  ;;  %8867 = vmatprep.subr.mxu1 %v23539_v35 }
0x1525   :  { %20192 = vmatpush3.msra.mxu0 %v21721_v56 }
0x1526   :  { %20193 = vmatprep.subr.mxu0 %v21724_v57 }
0x1527   :  { %20194 = vmatpush3.msra.mxu0 %v21724_v57 }
0x1528   :  { %20195 = vmatprep.subr.mxu0 %v21744_v12 }
0x1529   :  { %20196 = vmatpush3.msra.mxu0 %v21744_v12  ;;  %v23516_v12 = vsub.s32 4, %v21172_v5 }
0x152a   :  { %20198 = vmatmul.mubr.f32.vlgmr.msra.gmra.mxu0 %v8156_v8  ;;  %8752 = vmatprep.subr.mxu0 %v23539_v35  ;;  %v21819_v8 = vand.u32 4294901760, %v8740_v7 }
0x152b   :  { %v8630_v15 = vrot.slane %v20953_v11, %v23516_v12  ;;  %8754 = vmatpush1.msra.mxu0 %v21813_v28 }
0x152c   :  { %8755 = vmatprep.subr.mxu0 %v23539_v35 }
0x152d   :  { %8757 = vmatpush1.msra.mxu0 %v21815_v30 }
0x152e   :  { %8758 = vmatprep.subr.mxu0 %v23539_v35 }
0x152f   :  { %8760 = vmatpush1.msra.mxu0 %v21817_v29 }
0x1530   :  { %8761 = vmatprep.subr.mxu0 %v23539_v35 }
0x1531   :  { %8763 = vmatpush1.msra.mxu0 %v21819_v8 }
0x1532   :  { %8764 = vmatprep.subr.mxu0 %v23539_v35 }
0x1533   :  { %8766 = vmatpush1.msra.mxu0 %v21821_v33 }
0x1534   :  { %8767 = vmatprep.subr.mxu0 %v23539_v35 }
0x1535   :  { %8769 = vmatpush1.msra.mxu0 %v21823_v36 }
0x1536   :  { %8770 = vmatprep.subr.mxu0 %v23539_v35 }
0x15d0   :  { %v20166_v34 = vpop.f32.mrf.mxu1 }
0x15d2   :  { %v8253_v44 = vpop.f32.mrf.mxu1 }
0x15d8   :  { %v20188_v48 = vpop.f32.mrf.mxu1 }
0x15d9   :  { %v20155_v37 = vpop.f32.mrf.mxu0 }
0x15da   :  { %v8163_v40 = vadd.f32 %v20155_v37, %v8069_v38  ;;  %v8423_v53 = vpop.f32.mrf.mxu1  ;;  %v21826_v37 = vsub.f32 %v8743_v25, %v21813_v28 }
0x15db   :  { %v8152_v39 = vpop.f32.mrf.mxu0 }
0x15dc   :  { %v8153_v41 = vadd.f32 %v8152_v39, %v8069_v38  ;;  %v8260_v46 = vadd.f32 %v20166_v34, %v8163_v40  ;;  %v21829_v38 = vsub.f32 %v8742_v26, %v21815_v30  ;;  %v21832_v34 = vsub.f32 %v8741_v27, %v21817_v29 }
0x15dd   :  { %v21835_v39 = vand.u32 4294901760, %v8737_v18  ;;  %v21838_v40 = vsub.f32 %v8740_v7, %v21819_v8 }
0x15de   :  { %v8254_v51 = vadd.f32 %v8253_v44, %v8153_v41  ;;  %v21841_v41 = vsub.f32 %v8739_v31, %v21821_v33  ;;  %v21847_v44 = vand.u32 4294901760, %v8736_v16 }
0x15df   :  { %8772 = vmatpush1.msra.mxu0 %v21835_v39 }
0x15e0   :  { %8773 = vmatprep.subr.mxu0 %v23539_v35 }
0x15e1   :  { %v20177_v43 = vpop.f32.mrf.mxu0  ;;  %8775 = vmatpush1.msra.mxu0 %v21847_v44 }
0x15e2   :  { %v8347_v50 = vadd.f32 %v20177_v43, %v8260_v46  ;;  %v20210_v55 = vpop.f32.mrf.mxu1  ;;  %v21845_v43 = vsub.f32 %v8738_v32, %v21823_v36  ;;  %v23538_v46 = vand.u32 4294901760, %v21826_v37  ;;  %v8729_v32 = vld [vmem:[#allocation8 + $0x8] sm:$0xff]  ;;  %8776 = vmatprep.subr.mxu0 %v23539_v35 }
0x15e3   :  { %v8339_v49 = vpop.f32.mrf.mxu0 }
0x15e4   :  { %v8340_v52 = vadd.f32 %v8339_v49, %v8254_v51  ;;  %v8432_v54 = vadd.f32 %v20188_v48, %v8347_v50  ;;  %v8595_v63 = vpop.f32.mrf.mxu1  ;;  %v23537_v48 = vand.u32 4294901760, %v21829_v38  ;;  %v23535_v49 = vand.u32 4294901760, %v21832_v34 }
0x15e5   :  { %v23534_v50 = vand.u32 4294901760, %v21838_v40  ;;  %v23533_v51 = vand.u32 4294901760, %v21841_v41 }
0x15e6   :  { %v8424_v58 = vadd.f32 %v8423_v53, %v8340_v52  ;;  %v21857_v52 = vsub.f32 %v8737_v18, %v21835_v39  ;;  %v8871_v53 = vsub.f32 %v21826_v37, %v23538_v46 }
0x15ea   :  { %v20199_v56 = vpop.f32.mrf.mxu0 }
0x15eb   :  { %v8521_v57 = vadd.f32 %v20199_v56, %v8432_v54  ;;  %v8878_v54 = vsub.f32 %v21829_v38, %v23537_v48  ;;  %v23532_v56 = vand.u32 4294901760, %v21845_v43 }
0x15ec   :  { %v8514_v59 = vpop.f32.mrf.mxu0 }
0x15ed   :  { %v8602_v60 = vadd.f32 %v20210_v55, %v8521_v57  ;;  %v8515_v62 = vadd.f32 %v8514_v59, %v8424_v58  ;;  %v8885_v55 = vsub.f32 %v21832_v34, %v23535_v49  ;;  %v21872_v57 = vsub.f32 %v8736_v16, %v21847_v44  ;;  %v8735_v58 = vld [vmem:[#allocation8 + $0x38] sm:$0xff]  ;;  %v8734_v59 = vld [vmem:[#allocation8 + $0x30] sm:$0xff] }
0x15ef   :  { %v21793_v1 = vadd.f32 %v20951_v0, %v8602_v60  ;;  %v8596_v2 = vadd.f32 %v8595_v63, %v8515_v62  ;;  %v8733_v60 = vld [vmem:[#allocation8 + $0x28] sm:$0xff]  ;;  %v8872_v62 = vand.u32 4294901760, %v8871_v53  ;;  %v8879_v63 = vand.u32 4294901760, %v8878_v54 }
0x15f0   :  { %v8892_v0 = vsub.f32 %v21838_v40, %v23534_v50  ;;  %v21888_v11 = vand.u32 4294901760, %v8733_v60 }
0x15f1   :  { %23565 = vst [vmem:[#allocation16_spill] sm:$0xff] %v21793_v1  ;;  %v8610_v3 = vsel %vm93_vm0, %v21793_v1, 0.0  ;;  %v21797_v9 = vadd.f32 %v20952_v4, %v8596_v2  ;;  %v8899_v2 = vsub.f32 %v21841_v41, %v23533_v51  ;;  %v8732_v4 = vld [vmem:[#allocation8 + $0x20] sm:$0xff]  ;;  %8873 = vmatpush1.msra.mxu1 %v8872_v62  ;;  %v21939_v62 = vand.u32 4294901760, %v8729_v32 }
0x15f2   :  { %8611 = vadd.xlane.f32.xlu1 %v8610_v3  ;;  %v23530_v3 = vand.u32 4294901760, %v21857_v52  ;;  %8874 = vmatprep.subr.mxu1 %v23539_v35  ;;  %v21913_v27 = vsub.f32 %v8733_v60, %v21888_v11 }
0x15f3   :  { %v8607_v10 = vsel %vm93_vm0, %v21797_v9, 0.0  ;;  %8880 = vmatpush1.msra.mxu1 %v8879_v63  ;;  %v8900_v25 = vand.u32 4294901760, %v8899_v2 }
0x15f4   :  { %8608 = vadd.xlane.f32.xlu0 %v8607_v10  ;;  %v8886_v10 = vand.u32 4294901760, %v8885_v55  ;;  %8881 = vmatprep.subr.mxu1 %v23539_v35 }
0x15f6   :  { %8887 = vmatpush1.msra.mxu1 %v8886_v10 }
0x15f7   :  { %8888 = vmatprep.subr.mxu1 %v23539_v35 }
0x167b   :  { %v8612_v13 = vpop.xlane.xlu1 %8611 }
0x167c   :  { %v8614_v14 = vmul.f32 0.03125, %v8612_v13  ;;  %v21884_v13 = vand.u32 4294901760, %v8735_v58 }
0x167d   :  { %v8609_v17 = vpop.xlane.xlu0 %8608 }
0x167e   :  { %v8616_v19 = vsub.f32 %v21793_v1, %v8614_v14  ;;  %v8613_v21 = vmul.f32 0.03125, %v8609_v17  ;;  %v21886_v14 = vand.u32 4294901760, %v8734_v59  ;;  %v23528_v17 = vand.u32 4294901760, %v21872_v57  ;;  %8778 = vmatpush1.msra.mxu0 %v21884_v13 }
0x167f   :  { %8779 = vmatprep.subr.mxu0 %v23539_v35 }
0x1680   :  { %v8615_v22 = vsub.f32 %v21797_v9, %v8613_v21  ;;  %v21806_v45 = vmul.f32 %v8630_v15, %v8616_v19  ;;  %v8618_v24 = vmul.f32 %v8616_v19, %v8616_v19  ;;  %v8731_v19 = vld [vmem:[#allocation8 + $0x18] sm:$0xff]  ;;  %v8893_v21 = vand.u32 4294901760, %v8892_v0  ;;  %8781 = vmatpush1.msra.mxu0 %v21886_v14 }
0x1681   :  { %v21915_v7 = vand.u32 4294901760, %v8731_v19  ;;  %v8920_v18 = vsub.f32 %v21872_v57, %v23528_v17  ;;  %8782 = vmatprep.subr.mxu0 %v23539_v35 }
0x1682   :  { %v8617_v42 = vmul.f32 %v8615_v22, %v8615_v22  ;;  %v21808_v23 = vmul.f32 %v8630_v15, %v8615_v22  ;;  %v8622_v61 = vsel %vm93_vm0, %v8618_v24, 0.0  ;;  %v21897_v22 = vsub.f32 %v8735_v58, %v21884_v13  ;;  %8894 = vmatpush1.msra.mxu1 %v8893_v21  ;;  %8784 = vmatpush1.msra.mxu0 %v21888_v11 }
0x1683   :  { %v8913_v24 = vsub.f32 %v21857_v52, %v23530_v3  ;;  %8895 = vmatprep.subr.mxu1 %v23539_v35  ;;  %v21937_v60 = vsub.f32 %v8731_v19, %v21915_v7  ;;  %v8921_v63 = vand.u32 4294901760, %v8920_v18  ;;  %v21959_v21 = vsub.f32 %v8729_v32, %v21939_v62  ;;  %8785 = vmatprep.subr.mxu0 %v23539_v35 }
0x1684   :  { %v8619_v47 = vsel %vm93_vm0, %v8617_v42, 0.0  ;;  %v21901_v42 = vsub.f32 %v8734_v59, %v21886_v14  ;;  %v23526_v26 = vand.u32 4294901760, %v21897_v22  ;;  %8901 = vmatpush1.msra.mxu1 %v8900_v25  ;;  %v23524_v59 = vand.u32 4294901760, %v21913_v27 }
0x1685   :  { %8620 = vadd.xlane.f32.xlu0 %v8619_v47  ;;  %v21903_v47 = vand.u32 4294901760, %v8732_v4  ;;  %v8914_v55 = vand.u32 4294901760, %v8913_v24  ;;  %8902 = vmatprep.subr.mxu1 %v23539_v35  ;;  %v23521_v19 = vand.u32 4294901760, %v21937_v60  ;;  %v23519_v18 = vand.u32 4294901760, %v21959_v21 }
0x1686   :  { %v23525_v16 = vand.u32 4294901760, %v21901_v42  ;;  %v8927_v58 = vsub.f32 %v21897_v22, %v23526_v26 }
0x1687   :  { %v21925_v53 = vsub.f32 %v8732_v4, %v21903_v47  ;;  %8787 = vmatpush1.msra.mxu0 %v21903_v47  ;;  %v8955_v32 = vsub.f32 %v21937_v60, %v23521_v19 }
0x1688   :  { %v8934_v0 = vsub.f32 %v21901_v42, %v23525_v16  ;;  %v8928_v10 = vand.u32 4294901760, %v8927_v58  ;;  %8788 = vmatprep.subr.mxu0 %v23539_v35 }
0x1689   :  { %8623 = vadd.xlane.f32.xlu0 %v8622_v61  ;;  %v8730_v61 = vld [vmem:[#allocation8 + $0x10] sm:$0xff]  ;;  %v23522_v2 = vand.u32 4294901760, %v21925_v53  ;;  %8790 = vmatpush1.msra.mxu0 %v21915_v7 }
0x168a   :  { %v21927_v54 = vand.u32 4294901760, %v8730_v61  ;;  %v8935_v24 = vand.u32 4294901760, %v8934_v0  ;;  %8791 = vmatprep.subr.mxu0 %v23539_v35  ;;  %v8969_v0 = vsub.f32 %v21959_v21, %v23519_v18 }
0x168c   :  { %v21949_v4 = vsub.f32 %v8730_v61, %v21927_v54  ;;  %v8948_v61 = vsub.f32 %v21925_v53, %v23522_v2  ;;  %8793 = vmatpush1.msra.mxu0 %v21927_v54 }
0x168d   :  { %8794 = vmatprep.subr.mxu0 %v23539_v35 }
0x168e   :  { %v23520_v25 = vand.u32 4294901760, %v21949_v4  ;;  %8796 = vmatpush1.msra.mxu0 %v21939_v62 }
0x168f   :  { %8797 = vmatprep.subr.mxu0 %v23539_v35 }
0x1690   :  { %v8962_v58 = vsub.f32 %v21949_v4, %v23520_v25 }
0x169f   :  { %8654 = vrot.lane.b32.xlu0 %v8630_v15, %s21093_s2  ;;  %v8906_v15 = vsub.f32 %v21845_v43, %v23532_v56 }
0x16a1   :  { %v8907_v31 = vand.u32 4294901760, %v8906_v15  ;;  %v8941_v15 = vsub.f32 %v21913_v27, %v23524_v59 }
0x16a3   :  { %8908 = vmatpush1.msra.mxu1 %v8907_v31  ;;  %v8942_v31 = vand.u32 4294901760, %v8941_v15  ;;  %v8970_v15 = vand.u32 4294901760, %v8969_v0 }
0x16a4   :  { %8909 = vmatprep.subr.mxu1 %v23539_v35 }
0x16a5   :  { %8915 = vmatpush1.msra.mxu1 %v8914_v55  ;;  %v8949_v55 = vand.u32 4294901760, %v8948_v61 }
0x16a6   :  { %8916 = vmatprep.subr.mxu1 %v23539_v35 }
0x16a7   :  { %8922 = vmatpush1.msra.mxu1 %v8921_v63  ;;  %v8956_v63 = vand.u32 4294901760, %v8955_v32 }
0x16a8   :  { %8923 = vmatprep.subr.mxu1 %v23539_v35 }
0x16a9   :  { %8929 = vmatpush1.msra.mxu1 %v8928_v10  ;;  %v8963_v10 = vand.u32 4294901760, %v8962_v58 }
0x16aa   :  { %8930 = vmatprep.subr.mxu1 %v23539_v35 }
0x16ab   :  { %8936 = vmatpush1.msra.mxu1 %v8935_v24 }
0x16ac   :  { %8937 = vmatprep.subr.mxu1 %v23539_v35 }
0x16ad   :  { %8943 = vmatpush1.msra.mxu1 %v8942_v31 }
0x16ae   :  { %8944 = vmatprep.subr.mxu1 %v23539_v35 }
0x16af   :  { %8950 = vmatpush1.msra.mxu1 %v8949_v55 }
0x16b0   :  { %8951 = vmatprep.subr.mxu1 %v23539_v35 }
0x16b1   :  { %8957 = vmatpush1.msra.mxu1 %v8956_v63 }
0x16b2   :  { %8958 = vmatprep.subr.mxu1 %v23539_v35 }
0x16b3   :  { %8964 = vmatpush1.msra.mxu1 %v8963_v10 }
0x16b4   :  { %8965 = vmatprep.subr.mxu1 %v23539_v35 }
0x16b5   :  { %8971 = vmatpush1.msra.mxu1 %v8970_v15 }
0x16b6   :  { %8972 = vmatprep.subr.mxu1 %v23539_v35 }
0x170e   :  { %v8621_v24 = vpop.xlane.xlu0 %8620 }
0x170f   :  { %v8625_v61 = vmul.f32 0.032258064, %v8621_v24 }
0x1711   :  { %20887 = vrsqrt.f32 %v8625_v61  ;;  %vm8635_vm9 = vcmp.eq.f32.partialorder %v8625_v61, inf  ;;  %v8638_v12 = vand.u32 2147483648, %v8625_v61  ;;  %vm8637_vm10 = vcmp.eq.f32.partialorder %v8625_v61, 0.0 }
0x1712   :  { %v8624_v31 = vpop.xlane.xlu0 %8623 }
0x1713   :  { %v8626_v32 = vmul.f32 0.032258064, %v8624_v31  ;;  %v8728_v31 = vld [vmem:[#allocation8] sm:$0xff] }
0x1714   :  { %v21993_v19 = vand.u32 4294901760, %v8728_v31 }
0x1715   :  { %20889 = vrsqrt.f32 %v8626_v32  ;;  %vm8642_vm11 = vcmp.eq.f32.partialorder %v8626_v32, inf  ;;  %v8645_v15 = vand.u32 2147483648, %v8626_v32  ;;  %vm8644_vm12 = vcmp.eq.f32.partialorder %v8626_v32, 0.0 }
0x1716   :  { %v21996_v2 = vsub.f32 %v8728_v31, %v21993_v19  ;;  %8799 = vmatpush1.msra.mxu0 %v21993_v19 }
0x1717   :  { %8824 = vmatprep.subr.mxu0 %v23539_v35 }
0x171e   :  { %v20888_v55 = vpop.eup %20887 }
0x171f   :  { %v8634_v58 = vmul.f32 %v20888_v55, %v8625_v61  ;;  %v8747_v55 = vld [vmem:[#allocation8 + $0x98] sm:$0xff] }
0x1721   :  { %v8636_v63 = vsel %vm8635_vm9, %v8625_v61, %v8634_v58  ;;  %v21998_v61 = vand.u32 4294901760, %v8747_v55 }
0x1722   :  { %v20890_v0 = vpop.eup %20889  ;;  %v8639_v20 = vsel %vm8637_vm10, %v8638_v12, %v8636_v63  ;;  %v23523_v12 = vand.u32 4294901760, %v21996_v2 }
0x1723   :  { %v8641_v10 = vmul.f32 %v20890_v0, %v8626_v32  ;;  %v8647_v6 = vadd.f32 1e-06, %v8639_v20  ;;  %v8746_v20 = vld [vmem:[#allocation8 + $0x90] sm:$0xff]  ;;  %8826 = vmatpush2.msra.mxu0 %v21998_v61 }
0x1724   :  { %8827 = vmatprep.subr.mxu0 %v23539_v35 }
0x1725   :  { %v8643_v18 = vsel %vm8642_vm11, %v8626_v32, %v8641_v10  ;;  %20891 = vrcp.f32 %v8647_v6  ;;  %v22004_v6 = vsub.f32 %v8747_v55, %v21998_v61  ;;  %v8976_v32 = vsub.f32 %v21996_v2, %v23523_v12  ;;  %v8744_v10 = vld [vmem:[#allocation8 + $0x80] sm:$0xff] }
0x1726   :  { %v8646_v24 = vsel %vm8644_vm12, %v8645_v15, %v8643_v18  ;;  %v8745_v18 = vld [vmem:[#allocation8 + $0x88] sm:$0xff]  ;;  %v22030_v16 = vand.u32 4294901760, %v8744_v10 }
0x1727   :  { %v8648_v25 = vadd.f32 1e-06, %v8646_v24  ;;  %v23527_v58 = vand.u32 4294901760, %v22004_v6  ;;  %v22017_v0 = vand.u32 4294901760, %v8745_v18  ;;  %v8655_v24 = vpop.permute.xlu0 %8654  ;;  %v8977_v31 = vand.u32 4294901760, %v8976_v32 }
0x1729   :  { %20893 = vrcp.f32 %v8648_v25  ;;  %v22006_v25 = vand.u32 4294901760, %v8746_v20  ;;  %v9007_v55 = vsub.f32 %v22004_v6, %v23527_v58  ;;  %v22026_v59 = vsub.f32 %v8745_v18, %v22017_v0  ;;  %8978 = vmatpush1.msra.mxu1 %v8977_v31 }
0x172a   :  { %9003 = vmatprep.subr.mxu1 %v23539_v35  ;;  %v22039_v18 = vsub.f32 %v8744_v10, %v22030_v16 }
0x172b   :  { %v22015_v63 = vsub.f32 %v8746_v20, %v22006_v25  ;;  %8829 = vmatpush2.msra.mxu0 %v22006_v25  ;;  %v9008_v26 = vand.u32 4294901760, %v9007_v55  ;;  %v23531_v58 = vand.u32 4294901760, %v22026_v59 }
0x172c   :  { %8830 = vmatprep.subr.mxu0 %v23539_v35  ;;  %v23536_v10 = vand.u32 4294901760, %v22039_v18 }
0x172d   :  { %v23529_v12 = vand.u32 4294901760, %v22015_v63  ;;  %8832 = vmatpush2.msra.mxu0 %v22017_v0  ;;  %9009 = vmatpush2.msra.mxu1 %v9008_v26  ;;  %v9021_v31 = vsub.f32 %v22026_v59, %v23531_v58 }
0x172e   :  { %8833 = vmatprep.subr.mxu0 %v23539_v35  ;;  %9010 = vmatprep.subr.mxu1 %v23539_v35 }
0x172f   :  { %v9014_v32 = vsub.f32 %v22015_v63, %v23529_v12  ;;  %8835 = vmatpush2.msra.mxu0 %v22030_v16  ;;  %v9022_v12 = vand.u32 4294901760, %v9021_v31 }
0x1730   :  { %9046 = vmatprep.subr.mxu0 %v23539_v35 }
0x1732   :  { %v20892_v15 = vpop.eup %20891 }
0x1733   :  { %v8650_v20 = vmul.f32 %v20892_v15, %v21808_v23  ;;  %v9015_v15 = vand.u32 4294901760, %v9014_v32 }
0x1735   :  { %v8657_v17 = vadd.f32 %v8655_v24, %v8650_v20  ;;  %9016 = vmatpush2.msra.mxu1 %v9015_v15 }
0x1736   :  { %v20894_v23 = vpop.eup %20893  ;;  %9017 = vmatprep.subr.mxu1 %v23539_v35 }
0x1737   :  { %v8652_v55 = vmul.f32 %v20894_v23, %v21806_v45  ;;  %v8660_v20 = vrot.slane %v8657_v17, 6  ;;  %v9028_v45 = vsub.f32 %v22039_v18, %v23536_v10  ;;  %9023 = vmatpush2.msra.mxu1 %v9022_v12 }
0x1738   :  { %9024 = vmatprep.subr.mxu1 %v23539_v35 }
0x1739   :  { %v8658_v3 = vadd.f32 %v8655_v24, %v8652_v55  ;;  %v8663_v26 = vsel %vm8662_vm13, 0.0, %v8660_v20  ;;  %v8664_v32 = vsel %vm8662_vm13, %v8660_v20, 0.0  ;;  %v9029_v55 = vand.u32 4294901760, %v9028_v45 }
0x173a   :  { %v8689_v17 = vrot.slane %v8663_v26, 4  ;;  %v8690_v23 = vrot.slane %v8664_v32, 4  ;;  %v8668_v58 = vrot.slane %v8663_v26, 1  ;;  %v8669_v56 = vrot.slane %v8664_v32, 1 }
0x173b   :  { %v8698_v51 = vrot.slane %v8658_v3, 6  ;;  %v8675_v50 = vrot.slane %v8663_v26, 2  ;;  %v8676_v31 = vrot.slane %v8664_v32, 2  ;;  %9030 = vmatpush2.msra.mxu1 %v9029_v55  ;;  %v8683_v45 = vrot.slane %v8664_v32, 3 }
0x173c   :  { %v8670_v24 = vsel %vm8667_vm14, %v8668_v58, %v8669_v56  ;;  %v8691_v15 = vsel %vm8688_vm15, %v8689_v17, %v8690_v23  ;;  %9169 = vmatprep.subr.mxu1 %v23539_v35  ;;  %v8682_v58 = vrot.slane %v8663_v26, 3 }
0x173d   :  { %v8700_v20 = vsel %vm8662_vm13, 0.0, %v8698_v51  ;;  %v8701_v49 = vsel %vm8662_vm13, %v8698_v51, 0.0  ;;  %8671 = vrot.lane.b32.xlu1 %v8670_v24, %s21108_s30  ;;  %v8748_v10 = vsel %vm93_vm0, %v8691_v15, 0  ;;  %v8677_v56 = vsel %vm8674_vm1, %v8675_v50, %v8676_v31 }
0x173e   :  { %v22062_v3 = vand.u32 4294901760, %v8748_v10  ;;  %v8704_v12 = vrot.slane %v8700_v20, 1  ;;  %v8705_v48 = vrot.slane %v8701_v49, 1  ;;  %v8716_v23 = vrot.slane %v8700_v20, 3 }
0x173f   :  { %v8717_v24 = vrot.slane %v8701_v49, 3  ;;  %v8684_v55 = vsel %vm8681_vm2, %v8682_v58, %v8683_v45  ;;  %v8710_v31 = vrot.slane %v8700_v20, 2  ;;  %v8711_v32 = vrot.slane %v8701_v49, 2 }
0x1740   :  { %9032 = vmatprep.mubr.f32.mxu1 %v22062_v3  ;;  %v22068_v51 = vsub.f32 %v8748_v10, %v22062_v3  ;;  %v8706_v17 = vsel %vm8667_vm14, %v8704_v12, %v8705_v48 }
0x1741   :  { %8678 = vrot.lane.b32.xlu1 %v8677_v56, %s21098_s18  ;;  %8707 = vrot.lane.b32.xlu0 %v8706_v17, %s21108_s30  ;;  %v8718_v10 = vsel %vm8681_vm2, %v8716_v23, %v8717_v24  ;;  %v8712_v12 = vsel %vm8674_vm1, %v8710_v31, %v8711_v32  ;;  %v8722_v56 = vrot.slane %v8700_v20, 4  ;;  %v8723_v17 = vrot.slane %v8701_v49, 4 }
0x1742   :  { %v8838_v15 = vand.u32 4294901760, %v22068_v51 }
0x1743   :  { %v8724_v58 = vsel %vm8688_vm15, %v8722_v56, %v8723_v17 }
0x1744   :  { %v8839_v50 = vsub.f32 %v22068_v51, %v8838_v15  ;;  %v8750_v46 = vsel %vm93_vm0, %v8724_v58, 0 }
0x1745   :  { %8685 = vrot.lane.b32.xlu1 %v8684_v55, %s21093_s2  ;;  %8719 = vrot.lane.b32.xlu0 %v8718_v10, %s21093_s2  ;;  %v22083_v1 = vand.u32 4294901760, %v8750_v46 }
0x1746   :  { %v8840_v48 = vand.u32 4294901760, %v8839_v50 }
0x1747   :  { %v22088_v31 = vsub.f32 %v8750_v46, %v22083_v1 }
0x1748   :  { %8841 = vmatprep.mubr.f32.mxu0 %v8840_v48 }
0x1749   :  { %8713 = vrot.lane.b32.xlu1 %v8712_v12, %s21098_s18 }
0x17af   :  { %v8672_v45 = vpop.permute.xlu1 %8671 }
0x17b0   :  { %v8692_v23 = vsel %vm93_vm0, %v8663_v26, %v8672_v45  ;;  %v8853_v26 = vand.u32 4294901760, %v22088_v31 }
0x17b3   :  { %v8679_v35 = vpop.permute.xlu1 %8678  ;;  %v8708_v24 = vpop.permute.xlu0 %8707 }
0x17b4   :  { %v8694_v55 = vsel %vm8693_vm3, %v8692_v23, %v8679_v35  ;;  %v8725_v10 = vsel %vm93_vm0, %v8700_v20, %v8708_v24  ;;  %v23566_v20 = vmov 0.0   ;;  %v8854_v23 = vsub.f32 %v22088_v31, %v8853_v26 }
0x17b7   :  { %v8686_v50 = vpop.permute.xlu1 %8685  ;;  %v8720_v56 = vpop.permute.xlu0 %8719 }
0x17b8   :  { %v8696_v49 = vsel %vm8695_vm4, %v8694_v55, %v8686_v50 }
0x17b9   :  { %v22091_v32 = vand.u32 4294901760, %v8696_v49 }
0x17bb   :  { %v22095_v48 = vsub.f32 %v8696_v49, %v22091_v32  ;;  %9034 = vmatmul.mubr.f32.vlgmr.msra.gmra.mxu1 %v22091_v32  ;;  %v8714_v12 = vpop.permute.xlu1 %8713  ;;  %v8855_v49 = vand.u32 4294901760, %v8854_v23 }
0x17bc   :  { %9171 = vmatpush1.msra.mxu1 %v21813_v28  ;;  %v8726_v35 = vsel %vm8693_vm3, %v8725_v10, %v8714_v12  ;;  %9039 = vmatprep.mubr.f32.mxu1 %v22083_v1  ;;  %v23542_v12 = vsub.s32 2, %v21172_v5 }
0x17bd   :  { %v8844_v46 = vand.u32 4294901760, %v22095_v48  ;;  %v8727_v17 = vsel %vm8695_vm4, %v8726_v35, %v8720_v56  ;;  %9172 = vmatprep.subr.mxu1 %v23566_v20  ;;  %v20954_v35 = vld [vmem:[#allocation10] sm:$0xff] }
0x17be   :  { %v22105_v58 = vand.u32 4294901760, %v8727_v17  ;;  %9174 = vmatpush1.msra.mxu1 %v21815_v30  ;;  %v9523_v23 = vrot.slane %v20954_v35, %v23542_v12 }
0x17bf   :  { %v8845_v45 = vsub.f32 %v22095_v48, %v8844_v46  ;;  %9175 = vmatprep.subr.mxu1 %v23566_v20 }
0x17c0   :  { %v22116_v24 = vsub.f32 %v8727_v17, %v22105_v58  ;;  %9177 = vmatpush1.msra.mxu1 %v21817_v29 }
0x17c1   :  { %9041 = vmatmul.mubr.f32.gmra.mxu1 %v22105_v58  ;;  %9178 = vmatprep.subr.mxu1 %v23566_v20  ;;  %v8846_v55 = vand.u32 4294901760, %v8845_v45 }
0x17c2   :  { %9180 = vmatpush1.msra.mxu1 %v21819_v8  ;;  %9256 = vmatprep.mubr.f32.mxu1 %v8838_v15  ;;  %v8859_v50 = vand.u32 4294901760, %v22116_v24 }
0x17c3   :  { %9181 = vmatprep.subr.mxu1 %v23566_v20  ;;  %8847 = vmatmul.mubr.f32.vlgmr.msra.gmra.mxu0 %v8846_v55 }
0x17c4   :  { %9049 = vmatpush1.msra.mxu0 %v21826_v37  ;;  %9183 = vmatpush1.msra.mxu1 %v21821_v33  ;;  %v8860_v10 = vsub.f32 %v22116_v24, %v8859_v50 }
0x17c5   :  { %8856 = vmatprep.mubr.f32.mxu0 %v8855_v49  ;;  %9050 = vmatprep.subr.mxu0 %v23566_v20 }
0x17c6   :  { %9184 = vmatprep.subr.mxu1 %v23566_v20  ;;  %9053 = vmatpush1.msra.mxu0 %v21829_v38  ;;  %v8861_v15 = vand.u32 4294901760, %v8860_v10 }
0x17c7   :  { %9186 = vmatpush1.msra.mxu1 %v21823_v36  ;;  %9054 = vmatprep.subr.mxu0 %v23566_v20 }
0x17c8   :  { %9187 = vmatprep.subr.mxu1 %v23566_v20  ;;  %9057 = vmatpush1.msra.mxu0 %v21832_v34 }
0x17c9   :  { %9189 = vmatpush1.msra.mxu1 %v21835_v39  ;;  %8862 = vmatmul.mubr.f32.gmra.mxu0 %v8861_v15 }
0x17ca   :  { %9058 = vmatprep.subr.mxu0 %v23566_v20  ;;  %9190 = vmatprep.subr.mxu1 %v23566_v20 }
0x17cb   :  { %9061 = vmatpush1.msra.mxu0 %v21838_v40  ;;  %9152 = vmatprep.mubr.f32.mxu0 %v22068_v51  ;;  %v23543_v51 = vsub.s32 1, %v21172_v5 }
0x17cc   :  { %9192 = vmatpush1.msra.mxu1 %v21847_v44  ;;  %9062 = vmatprep.subr.mxu0 %v23566_v20 }
0x17cd   :  { %9193 = vmatprep.subr.mxu1 %v23566_v20  ;;  %9065 = vmatpush1.msra.mxu0 %v21841_v41 }
0x17ce   :  { %9195 = vmatpush1.msra.mxu1 %v21884_v13  ;;  %9066 = vmatprep.subr.mxu0 %v23566_v20 }
0x17cf   :  { %9196 = vmatprep.subr.mxu1 %v23566_v20  ;;  %9069 = vmatpush1.msra.mxu0 %v21845_v43 }
0x17d0   :  { %9198 = vmatpush1.msra.mxu1 %v21886_v14  ;;  %9070 = vmatprep.subr.mxu0 %v23566_v20 }
0x17d1   :  { %9199 = vmatprep.subr.mxu1 %v23566_v20  ;;  %9073 = vmatpush1.msra.mxu0 %v21857_v52 }
0x17d2   :  { %9201 = vmatpush1.msra.mxu1 %v21888_v11  ;;  %9074 = vmatprep.subr.mxu0 %v23566_v20 }
0x17d3   :  { %9202 = vmatprep.subr.mxu1 %v23566_v20  ;;  %9077 = vmatpush1.msra.mxu0 %v21872_v57 }
0x17d4   :  { %9204 = vmatpush1.msra.mxu1 %v21903_v47  ;;  %9078 = vmatprep.subr.mxu0 %v23566_v20 }
0x17d5   :  { %9205 = vmatprep.subr.mxu1 %v23566_v20  ;;  %9081 = vmatpush1.msra.mxu0 %v21897_v22 }
0x17d6   :  { %9207 = vmatpush1.msra.mxu1 %v21915_v7  ;;  %9082 = vmatprep.subr.mxu0 %v23566_v20 }
0x17d7   :  { %9208 = vmatprep.subr.mxu1 %v23566_v20  ;;  %9085 = vmatpush1.msra.mxu0 %v21901_v42 }
0x17d8   :  { %9210 = vmatpush1.msra.mxu1 %v21927_v54  ;;  %9086 = vmatprep.subr.mxu0 %v23566_v20 }
0x17d9   :  { %9211 = vmatprep.subr.mxu1 %v23566_v20  ;;  %9089 = vmatpush1.msra.mxu0 %v21913_v27 }
0x17da   :  { %9213 = vmatpush1.msra.mxu1 %v21939_v62  ;;  %9090 = vmatprep.subr.mxu0 %v23566_v20 }
0x17db   :  { %9214 = vmatprep.subr.mxu1 %v23566_v20  ;;  %9093 = vmatpush1.msra.mxu0 %v21925_v53 }
0x17dc   :  { %9216 = vmatpush1.msra.mxu1 %v21993_v19  ;;  %9094 = vmatprep.subr.mxu0 %v23566_v20 }
0x17dd   :  { %9241 = vmatprep.subr.mxu1 %v23566_v20  ;;  %9097 = vmatpush1.msra.mxu0 %v21937_v60 }
0x17de   :  { %9243 = vmatpush2.msra.mxu1 %v21998_v61  ;;  %9098 = vmatprep.subr.mxu0 %v23566_v20 }
0x17df   :  { %9244 = vmatprep.subr.mxu1 %v23566_v20  ;;  %9101 = vmatpush1.msra.mxu0 %v21949_v4 }
0x17e0   :  { %9246 = vmatpush2.msra.mxu1 %v22006_v25  ;;  %9102 = vmatprep.subr.mxu0 %v23566_v20 }
0x17e1   :  { %9247 = vmatprep.subr.mxu1 %v23566_v20  ;;  %9105 = vmatpush1.msra.mxu0 %v21959_v21 }
0x17e2   :  { %9249 = vmatpush2.msra.mxu1 %v22017_v0  ;;  %9106 = vmatprep.subr.mxu0 %v23566_v20 }
0x17e3   :  { %9250 = vmatprep.subr.mxu1 %v23566_v20  ;;  %9109 = vmatpush1.msra.mxu0 %v21996_v2 }
0x17e4   :  { %9252 = vmatpush2.msra.mxu1 %v22030_v16  ;;  %9134 = vmatprep.subr.mxu0 %v23566_v20 }
0x17e5   :  { %9260 = vmatmul.mubr.f32.vlgmr.msra.gmra.mxu1 %v8844_v46  ;;  %9415 = vmatprep.subr.mxu1 %v23566_v20  ;;  %v9517_v46 = vrot.slane %v20954_v35, %v23543_v51 }
0x17e6   :  { %9137 = vmatpush2.msra.mxu0 %v22004_v6  ;;  %9267 = vmatprep.mubr.f32.mxu1 %v8853_v26 }
0x17e7   :  { %9417 = vmatpush1.msra.mxu1 %v21813_v28  ;;  %9138 = vmatprep.subr.mxu0 %v23566_v20  ;;  %v23567_v28 = vand.u32 4294901760, %v21826_v37  ;;  %v23573_v37 = vand.u32 4294901760, %v21857_v52  ;;  %v23581_v52 = vand.u32 4294901760, %v21959_v21 }
0x17e8   :  { %9418 = vmatprep.subr.mxu1 %v23566_v20  ;;  %9141 = vmatpush2.msra.mxu0 %v22015_v63 }
0x17e9   :  { %9420 = vmatpush1.msra.mxu1 %v21815_v30  ;;  %9142 = vmatprep.subr.mxu0 %v23566_v20  ;;  %v23568_v30 = vand.u32 4294901760, %v21829_v38  ;;  %v23574_v38 = vand.u32 4294901760, %v21872_v57  ;;  %v23582_v57 = vand.u32 4294901760, %v21996_v2 }
0x17ea   :  { %9271 = vmatmul.mubr.f32.gmra.mxu1 %v8859_v50  ;;  %9421 = vmatprep.subr.mxu1 %v23566_v20 }
0x17eb   :  { %9145 = vmatpush2.msra.mxu0 %v22026_v59  ;;  %9423 = vmatpush1.msra.mxu1 %v21817_v29  ;;  %v23569_v29 = vand.u32 4294901760, %v21832_v34  ;;  %v23575_v34 = vand.u32 4294901760, %v21897_v22  ;;  %v23586_v22 = vand.u32 4294901760, %v22039_v18 }
0x17ec   :  { %9500 = vmatprep.mubr.f32.mxu1 %v22062_v3  ;;  %9146 = vmatprep.subr.mxu0 %v23566_v20 }
0x17ed   :  { %9424 = vmatprep.subr.mxu1 %v23566_v20  ;;  %9149 = vmatpush2.msra.mxu0 %v22039_v18 }
0x17ee   :  { %9426 = vmatpush1.msra.mxu1 %v21819_v8  ;;  %9155 = vmatmul.mubr.f32.vlgmr.msra.gmra.mxu0 %v22095_v48  ;;  %v23570_v8 = vand.u32 4294901760, %v21838_v40  ;;  %v23577_v40 = vand.u32 4294901760, %v21913_v27 }
0x17ef   :  { %9276 = vmatprep.subr.mxu0 %v23566_v20  ;;  %9427 = vmatprep.subr.mxu1 %v23566_v20 }
0x17f0   :  { %9161 = vmatprep.mubr.f32.mxu0 %v22088_v31  ;;  %9280 = vmatpush1.msra.mxu0 %v23567_v28 }
0x17f1   :  { %9429 = vmatpush1.msra.mxu1 %v21821_v33  ;;  %9281 = vmatprep.subr.mxu0 %v23566_v20  ;;  %v23571_v33 = vand.u32 4294901760, %v21841_v41  ;;  %v23578_v41 = vand.u32 4294901760, %v21925_v53 }
0x17f2   :  { %9430 = vmatprep.subr.mxu1 %v23566_v20  ;;  %9285 = vmatpush1.msra.mxu0 %v23568_v30 }
0x17f3   :  { %9432 = vmatpush1.msra.mxu1 %v21823_v36  ;;  %9164 = vmatmul.mubr.f32.gmra.mxu0 %v22116_v24  ;;  %v23572_v36 = vand.u32 4294901760, %v21845_v43  ;;  %v23579_v43 = vand.u32 4294901760, %v21937_v60 }
0x17f4   :  { %9286 = vmatprep.subr.mxu0 %v23566_v20  ;;  %9433 = vmatprep.subr.mxu1 %v23566_v20 }
0x17f5   :  { %9290 = vmatpush1.msra.mxu0 %v23569_v29  ;;  %9401 = vmatprep.mubr.f32.mxu0 %v22062_v3 }
0x17f6   :  { %9435 = vmatpush1.msra.mxu1 %v21835_v39  ;;  %9291 = vmatprep.subr.mxu0 %v23566_v20  ;;  %v23576_v39 = vand.u32 4294901760, %v21901_v42 }
0x17f7   :  { %9436 = vmatprep.subr.mxu1 %v23566_v20  ;;  %9295 = vmatpush1.msra.mxu0 %v23570_v8 }
0x17f8   :  { %9438 = vmatpush1.msra.mxu1 %v21847_v44  ;;  %9296 = vmatprep.subr.mxu0 %v23566_v20  ;;  %v23580_v44 = vand.u32 4294901760, %v21949_v4 }
0x17f9   :  { %9439 = vmatprep.subr.mxu1 %v23566_v20  ;;  %9300 = vmatpush1.msra.mxu0 %v23571_v33 }
0x17fa   :  { %9441 = vmatpush1.msra.mxu1 %v21884_v13  ;;  %9301 = vmatprep.subr.mxu0 %v23566_v20  ;;  %v23583_v13 = vand.u32 4294901760, %v22004_v6 }
0x17fb   :  { %9442 = vmatprep.subr.mxu1 %v23566_v20  ;;  %9305 = vmatpush1.msra.mxu0 %v23572_v36 }
0x17fc   :  { %9444 = vmatpush1.msra.mxu1 %v21886_v14  ;;  %9306 = vmatprep.subr.mxu0 %v23566_v20  ;;  %v23584_v14 = vand.u32 4294901760, %v22015_v63 }
0x17fd   :  { %9445 = vmatprep.subr.mxu1 %v23566_v20  ;;  %9310 = vmatpush1.msra.mxu0 %v23573_v37 }
0x17fe   :  { %9447 = vmatpush1.msra.mxu1 %v21888_v11  ;;  %9311 = vmatprep.subr.mxu0 %v23566_v20  ;;  %v23585_v11 = vand.u32 4294901760, %v22026_v59 }
0x17ff   :  { %9448 = vmatprep.subr.mxu1 %v23566_v20  ;;  %9315 = vmatpush1.msra.mxu0 %v23574_v38 }
0x1800   :  { %9450 = vmatpush1.msra.mxu1 %v21903_v47  ;;  %9316 = vmatprep.subr.mxu0 %v23566_v20 }
0x1801   :  { %9451 = vmatprep.subr.mxu1 %v23566_v20  ;;  %9320 = vmatpush1.msra.mxu0 %v23575_v34 }
0x1802   :  { %9453 = vmatpush1.msra.mxu1 %v21915_v7  ;;  %9321 = vmatprep.subr.mxu0 %v23566_v20 }
0x1803   :  { %9454 = vmatprep.subr.mxu1 %v23566_v20  ;;  %9325 = vmatpush1.msra.mxu0 %v23576_v39 }
0x1804   :  { %9456 = vmatpush1.msra.mxu1 %v21927_v54  ;;  %9326 = vmatprep.subr.mxu0 %v23566_v20 }
0x1805   :  { %9457 = vmatprep.subr.mxu1 %v23566_v20  ;;  %9330 = vmatpush1.msra.mxu0 %v23577_v40 }
0x1806   :  { %9459 = vmatpush1.msra.mxu1 %v21939_v62  ;;  %9331 = vmatprep.subr.mxu0 %v23566_v20 }
0x1807   :  { %9460 = vmatprep.subr.mxu1 %v23566_v20  ;;  %9335 = vmatpush1.msra.mxu0 %v23578_v41 }
0x1808   :  { %9462 = vmatpush1.msra.mxu1 %v21993_v19  ;;  %9336 = vmatprep.subr.mxu0 %v23566_v20 }
0x1809   :  { %9487 = vmatprep.subr.mxu1 %v23566_v20  ;;  %9340 = vmatpush1.msra.mxu0 %v23579_v43 }
0x180a   :  { %9489 = vmatpush2.msra.mxu1 %v21998_v61  ;;  %9341 = vmatprep.subr.mxu0 %v23566_v20 }
0x180b   :  { %9490 = vmatprep.subr.mxu1 %v23566_v20  ;;  %9345 = vmatpush1.msra.mxu0 %v23580_v44 }
0x180c   :  { %9492 = vmatpush2.msra.mxu1 %v22006_v25  ;;  %9346 = vmatprep.subr.mxu0 %v23566_v20 }
0x180d   :  { %9493 = vmatprep.subr.mxu1 %v23566_v20  ;;  %9350 = vmatpush1.msra.mxu0 %v23581_v52 }
0x180e   :  { %9495 = vmatpush2.msra.mxu1 %v22017_v0  ;;  %9351 = vmatprep.subr.mxu0 %v23566_v20 }
0x180f   :  { %9496 = vmatprep.subr.mxu1 %v23566_v20  ;;  %9355 = vmatpush1.msra.mxu0 %v23582_v57 }
0x1810   :  { %9498 = vmatpush2.msra.mxu1 %v22030_v16  ;;  %9380 = vmatprep.subr.mxu0 %v23566_v20 }
0x1811   :  { %9502 = vmatmul.mubr.f32.vlgmr.msra.gmra.mxu1 %v22091_v32  ;;  %9384 = vmatpush2.msra.mxu0 %v23583_v13  ;;  %v23587_v13 = vld [vmem:[#allocation16_spill] sm:$0xff] }
0x1812   :  { %9507 = vmatprep.mubr.f32.mxu1 %v22083_v1  ;;  %9385 = vmatprep.subr.mxu0 %v23566_v20 }
0x1813   :  { %9389 = vmatpush2.msra.mxu0 %v23584_v14 }
0x1814   :  { %9390 = vmatprep.subr.mxu0 %v23566_v20 }
0x1815   :  { %9509 = vmatmul.mubr.f32.gmra.mxu1 %v22105_v58  ;;  %9394 = vmatpush2.msra.mxu0 %v23585_v11 }
0x1816   :  { %9395 = vmatprep.subr.mxu0 %v23566_v20 }
0x1817   :  { %9399 = vmatpush2.msra.mxu0 %v23586_v22  ;;  %v22335_v22 = vld [vmem:[#allocation10 + $0x8] sm:$0xff] }
0x1818   :  { %9403 = vmatmul.mubr.f32.vlgmr.msra.gmra.mxu0 %v22091_v32 }
0x1819   :  { %9408 = vmatprep.mubr.f32.mxu0 %v22083_v1 }
0x181c   :  { %9410 = vmatmul.mubr.f32.gmra.mxu0 %v22105_v58 }
0x187b   :  { %v9035_v42 = vpop.f32.mrf.mxu1 }
0x187d   :  { %v9037_v47 = vpop.f32.mrf.mxu1 }
0x1881   :  { %v9042_v27 = vpop.f32.mrf.mxu1 }
0x1883   :  { %v9044_v7 = vpop.f32.mrf.mxu1  ;;  %v8848_v16 = vpop.f32.mrf.mxu0 }
0x1884   :  { %v9036_v53 = vadd.f32 %v9035_v42, %v8848_v16  ;;  %v23588_v42 = vsub.s32 3, %v21172_v5 }
0x1885   :  { %v8850_v54 = vpop.f32.mrf.mxu0 }
0x1889   :  { %v8863_v59 = vpop.f32.mrf.mxu0 }
0x188a   :  { %v9043_v60 = vadd.f32 %v9042_v27, %v8863_v59 }
0x188b   :  { %v8865_v62 = vpop.f32.mrf.mxu0 }
0x18a5   :  { %v9261_v2 = vpop.f32.mrf.mxu1 }
0x18a7   :  { %v9263_v4 = vpop.f32.mrf.mxu1 }
0x18a8   :  { %v9606_v4 = vld [vmem:[#allocation5 + $0x38] sm:$0xff] }
0x18aa   :  { %v9272_v19 = vpop.f32.mrf.mxu1 }
0x18ac   :  { %v9274_v21 = vpop.f32.mrf.mxu1 }
0x18ad   :  { %v9605_v21 = vld [vmem:[#allocation5 + $0x30] sm:$0xff] }
0x18ae   :  { %v9156_v61 = vpop.f32.mrf.mxu0 }
0x18af   :  { %v9157_v0 = vadd.f32 %v9156_v61, %v9036_v53 }
0x18b0   :  { %v9158_v6 = vpop.f32.mrf.mxu0 }
0x18b1   :  { %v9262_v48 = vadd.f32 %v9261_v2, %v9157_v0  ;;  %v22361_v6 = vand.u32 4294901760, %v9605_v21 }
0x18b3   :  { %v9165_v25 = vpop.f32.mrf.mxu0 }
0x18b4   :  { %v9166_v31 = vadd.f32 %v9165_v25, %v9043_v60  ;;  %v9604_v25 = vld [vmem:[#allocation5 + $0x28] sm:$0xff] }
0x18b5   :  { %v9167_v1 = vpop.f32.mrf.mxu0  ;;  %v22371_v0 = vand.u32 4294901760, %v9604_v25 }
0x18b6   :  { %v9273_v45 = vadd.f32 %v9272_v19, %v9166_v31  ;;  %v22356_v19 = vand.u32 4294901760, %v9606_v4 }
0x18b8   :  { %v22359_v61 = vsub.f32 %v9606_v4, %v22356_v19  ;;  %20211 = vmatprep.subr.mxu0 %v22356_v19 }
0x18b9   :  { %20212 = vmatpush3.msra.mxu0 %v22356_v19 }
0x18ba   :  { %v22366_v1 = vand.u32 4294901760, %v22359_v61  ;;  %20213 = vmatprep.subr.mxu0 %v22361_v6 }
0x18bb   :  { %20214 = vmatpush3.msra.mxu0 %v22361_v6 }
0x18bc   :  { %20215 = vmatprep.subr.mxu0 %v22371_v0 }
0x18bd   :  { %20216 = vmatpush3.msra.mxu0 %v22371_v0 }
0x18d1   :  { %v9503_v63 = vpop.f32.mrf.mxu1 }
0x18d3   :  { %v9505_v18 = vpop.f32.mrf.mxu1 }
0x18d4   :  { %v9603_v18 = vld [vmem:[#allocation5 + $0x20] sm:$0xff] }
0x18d5   :  { %v9510_v3 = vpop.f32.mrf.mxu1 }
0x18d7   :  { %v9512_v32 = vpop.f32.mrf.mxu1 }
0x18d8   :  { %v9404_v26 = vpop.f32.mrf.mxu0  ;;  %v22381_v32 = vsub.f32 %v9604_v25, %v22371_v0 }
0x18d9   :  { %v9405_v56 = vadd.f32 %v9404_v26, %v9262_v48  ;;  %v22383_v48 = vand.u32 4294901760, %v9603_v18 }
0x18da   :  { %v9406_v17 = vpop.f32.mrf.mxu0  ;;  %v22390_v35 = vand.u32 4294901760, %v22381_v32 }
0x18db   :  { %v9504_v58 = vadd.f32 %v9503_v63, %v9405_v56  ;;  %v22369_v63 = vsub.f32 %v9605_v21, %v22361_v6  ;;  %20217 = vmatprep.subr.mxu0 %v22383_v48 }
0x18dc   :  { %v9411_v24 = vpop.f32.mrf.mxu0  ;;  %20218 = vmatpush3.msra.mxu0 %v22383_v48 }
0x18dd   :  { %v9518_v55 = vmul.f32 %v9517_v46, %v9504_v58  ;;  %v9412_v50 = vadd.f32 %v9411_v24, %v9273_v45  ;;  %v22378_v31 = vand.u32 4294901760, %v22369_v63  ;;  %v9748_v58 = vsub.f32 %v22381_v32, %v22390_v35  ;;  %20233 = vmatprep.subr.mxu0 %v22359_v61 }
0x18de   :  { %v9413_v49 = vpop.f32.mrf.mxu0 }
0x18df   :  { %v9511_v10 = vadd.f32 %v9510_v3, %v9412_v50  ;;  %v9524_v15 = vadd.f32 %v9523_v23, %v9518_v55  ;;  %v9734_v3 = vsub.f32 %v22359_v61, %v22366_v1  ;;  %v9741_v56 = vsub.f32 %v22369_v63, %v22378_v31 }
0x18e1   :  { %v9519_v28 = vmul.f32 %v9517_v46, %v9511_v10  ;;  %v9526_v30 = vmax.f32 %v9524_v15, 0.0  ;;  %v9735_v26 = vand.u32 4294901760, %v9734_v3  ;;  %v22393_v46 = vsub.f32 %v9603_v18, %v22383_v48 }
0x18e2   :  { %v9742_v17 = vand.u32 4294901760, %v9741_v56 }
0x18e3   :  { %9530 = vrot.lane.b32.xlu1 %v9526_v30, %s21093_s2  ;;  %v9525_v29 = vadd.f32 %v9523_v23, %v9519_v28  ;;  %20222 = vmatprep.subr.mxu1 %v9735_v26  ;;  %v22400_v45 = vand.u32 4294901760, %v22393_v46  ;;  %v9749_v23 = vand.u32 4294901760, %v9748_v58 }
0x18e4   :  { %20223 = vmatpush3.msra.mxu1 %v9735_v26 }
0x18e5   :  { %v9527_v8 = vmax.f32 %v9525_v29, 0.0  ;;  %20224 = vmatprep.subr.mxu1 %v9742_v17  ;;  %v9755_v24 = vsub.f32 %v22393_v46, %v22400_v45 }
0x18e6   :  { %20225 = vmatpush3.msra.mxu1 %v9742_v17 }
0x18e7   :  { %9532 = vrot.lane.b32.xlu0 %v9527_v8, %s21093_s2  ;;  %9538 = vrot.lane.b32.xlu1 %v9526_v30, %s21098_s18  ;;  %v9756_v55 = vand.u32 4294901760, %v9755_v24 }
0x18e8   :  { %20226 = vmatprep.subr.mxu1 %v9749_v23 }
0x18e9   :  { %20227 = vmatpush3.msra.mxu1 %v9749_v23 }
0x18ea   :  { %20228 = vmatprep.subr.mxu1 %v9756_v55 }
0x18eb   :  { %9540 = vrot.lane.b32.xlu0 %v9527_v8, %s21098_s18  ;;  %20229 = vmatpush3.msra.mxu1 %v9756_v55 }
0x18ec   :  { %20244 = vmatprep.subr.mxu1 %v22356_v19 }
0x1955   :  { %v9531_v33 = vpop.permute.xlu1 %9530 }
0x1956   :  { %v9536_v36 = vadd.f32 %v9531_v33, %v9526_v30 }
0x1959   :  { %v9533_v37 = vpop.permute.xlu0 %9532  ;;  %v9539_v38 = vpop.permute.xlu1 %9538 }
0x195a   :  { %v9544_v34 = vadd.f32 %v9539_v38, %v9536_v36  ;;  %v9537_v39 = vadd.f32 %v9533_v37, %v9527_v8 }
0x195c   :  { %v9546_v40 = vmul.f32 0.33333334, %v9544_v34 }
0x195d   :  { %v9541_v41 = vpop.permute.xlu0 %9540 }
0x195e   :  { %v22326_v43 = vadd.f32 %v9546_v40, %v21797_v9  ;;  %v9545_v44 = vadd.f32 %v9541_v41, %v9537_v39  ;;  %v22340_v9 = vrot.slane %v22335_v22, %v23588_v42 }
0x1960   :  { %v9547_v52 = vmul.f32 0.33333334, %v9545_v44  ;;  %v9550_v57 = vsel %vm93_vm0, %v22326_v43, 0.0 }
0x1961   :  { %9551 = vadd.xlane.f32.xlu1 %v9550_v57 }
0x1962   :  { %v22331_v14 = vadd.f32 %v9547_v52, %v23587_v13 }
0x1964   :  { %v9553_v11 = vsel %vm93_vm0, %v22331_v14, 0.0 }
0x1965   :  { %9554 = vadd.xlane.f32.xlu0 %v9553_v11 }
0x1972   :  { %9597 = vrot.lane.b32.xlu1 %v22340_v9, %s21093_s2 }
0x19ea   :  { %v9552_v47 = vpop.xlane.xlu1 %9551 }
0x19eb   :  { %v9556_v27 = vmul.f32 0.03125, %v9552_v47 }
0x19ed   :  { %v22345_v7 = vsub.f32 %v22326_v43, %v9556_v27 }
0x19ee   :  { %v9555_v16 = vpop.xlane.xlu0 %9554  ;;  %v9598_v57 = vpop.permute.xlu1 %9597 }
0x19ef   :  { %v9557_v53 = vmul.f32 0.03125, %v9555_v16  ;;  %v9560_v54 = vmul.f32 %v22345_v7, %v22345_v7  ;;  %v9574_v44 = vmul.f32 %v22340_v9, %v22345_v7 }
0x19f1   :  { %v22350_v59 = vsub.f32 %v22331_v14, %v9557_v53  ;;  %v9562_v60 = vsel %vm93_vm0, %v9560_v54, 0.0 }
0x19f2   :  { %9563 = vadd.xlane.f32.xlu0 %v9562_v60 }
0x19f3   :  { %v9561_v62 = vmul.f32 %v22350_v59, %v22350_v59  ;;  %v9575_v11 = vmul.f32 %v22340_v9, %v22350_v59 }
0x19f5   :  { %v9565_v2 = vsel %vm93_vm0, %v9561_v62, 0.0 }
0x19f6   :  { %9566 = vadd.xlane.f32.xlu0 %v9565_v2 }
0x1a7b   :  { %v9564_v50 = vpop.xlane.xlu0 %9563 }
0x1a7c   :  { %v9568_v49 = vmul.f32 0.032258064, %v9564_v50 }
0x1a7e   :  { %20895 = vrsqrt.f32 %v9568_v49  ;;  %vm9578_vm9 = vcmp.eq.f32.partialorder %v9568_v49, inf  ;;  %v9581_v29 = vand.u32 2147483648, %v9568_v49  ;;  %vm9580_vm10 = vcmp.eq.f32.partialorder %v9568_v49, 0.0 }
0x1a7f   :  { %v9567_v10 = vpop.xlane.xlu0 %9566 }
0x1a80   :  { %v9569_v15 = vmul.f32 0.032258064, %v9567_v10 }
0x1a82   :  { %20897 = vrsqrt.f32 %v9569_v15  ;;  %vm9585_vm11 = vcmp.eq.f32.partialorder %v9569_v15, inf  ;;  %v9588_v34 = vand.u32 2147483648, %v9569_v15  ;;  %vm9587_vm12 = vcmp.eq.f32.partialorder %v9569_v15, 0.0 }
0x1a8b   :  { %v20896_v28 = vpop.eup %20895 }
0x1a8c   :  { %v9577_v30 = vmul.f32 %v20896_v28, %v9568_v49 }
0x1a8e   :  { %v9579_v8 = vsel %vm9578_vm9, %v9568_v49, %v9577_v30 }
0x1a8f   :  { %v20898_v33 = vpop.eup %20897  ;;  %v9582_v36 = vsel %vm9580_vm10, %v9581_v29, %v9579_v8 }
0x1a90   :  { %v9584_v37 = vmul.f32 %v20898_v33, %v9569_v15  ;;  %v9590_v38 = vadd.f32 1e-06, %v9582_v36 }
0x1a92   :  { %v9586_v39 = vsel %vm9585_vm11, %v9569_v15, %v9584_v37  ;;  %20899 = vrcp.f32 %v9590_v38 }
0x1a93   :  { %v9589_v40 = vsel %vm9587_vm12, %v9588_v34, %v9586_v39 }
0x1a94   :  { %v9591_v41 = vadd.f32 1e-06, %v9589_v40 }
0x1a96   :  { %20901 = vrcp.f32 %v9591_v41 }
0x1a9f   :  { %v20900_v52 = vpop.eup %20899 }
0x1aa0   :  { %v9593_v13 = vmul.f32 %v20900_v52, %v9574_v44 }
0x1aa2   :  { %v9600_v42 = vadd.f32 %v9598_v57, %v9593_v13 }
0x1aa3   :  { %v20902_v47 = vpop.eup %20901 }
0x1aa4   :  { %v9595_v27 = vmul.f32 %v20902_v47, %v9575_v11  ;;  %v9612_v16 = vsel %vm93_vm0, %v9600_v42, 0 }
0x1aa5   :  { %v9686_v53 = vand.u32 4294901760, %v9612_v16 }
0x1aa6   :  { %v9601_v54 = vadd.f32 %v9598_v57, %v9595_v27 }
0x1aa7   :  { %v9687_v60 = vsub.f32 %v9612_v16, %v9686_v53  ;;  %20230 = vmatprep.mubr.f32.mxu1 %v9686_v53 }
0x1aa8   :  { %v9615_v62 = vsel %vm93_vm0, %v9601_v54, 0 }
0x1aa9   :  { %v9696_v2 = vand.u32 4294901760, %v9615_v62  ;;  %v9688_v4 = vand.u32 4294901760, %v9687_v60 }
0x1aab   :  { %v9697_v7 = vsub.f32 %v9615_v62, %v9696_v2  ;;  %20231 = vmatmul.mubr.f32.vlgmr.msra.gmra.mxu1 %v9696_v2  ;;  %v9689_v21 = vsub.f32 %v9687_v60, %v9688_v4 }
0x1aac   :  { %20245 = vmatpush3.msra.mxu1 %v22356_v19  ;;  %20252 = vmatprep.mubr.f32.mxu1 %v9688_v4 }
0x1aad   :  { %v9698_v59 = vand.u32 4294901760, %v9697_v7  ;;  %20246 = vmatprep.subr.mxu1 %v22361_v6  ;;  %v9690_v25 = vand.u32 4294901760, %v9689_v21 }
0x1aae   :  { %20247 = vmatpush3.msra.mxu1 %v22361_v6 }
0x1aaf   :  { %v9699_v18 = vsub.f32 %v9697_v7, %v9698_v59  ;;  %20248 = vmatprep.subr.mxu1 %v22371_v0  ;;  %20219 = vmatprep.mubr.f32.mxu0 %v9690_v25 }
0x1ab0   :  { %20249 = vmatpush3.msra.mxu1 %v22371_v0 }
0x1ab1   :  { %v9700_v3 = vand.u32 4294901760, %v9699_v18  ;;  %20250 = vmatprep.subr.mxu1 %v22383_v48 }
0x1ab2   :  { %20251 = vmatpush3.msra.mxu1 %v22383_v48 }
0x1ab3   :  { %20253 = vmatmul.mubr.f32.vlgmr.msra.gmra.mxu1 %v9698_v59  ;;  %20266 = vmatprep.subr.mxu1 %v22356_v19 }
0x1ab4   :  { %20220 = vmatmul.mubr.f32.vlgmr.msra.gmra.mxu0 %v9700_v3  ;;  %20267 = vmatpush3.msra.mxu1 %v22356_v19  ;;  %v23589_v19 = vsub.s32 0, %v21172_v5 }
0x1ab5   :  { %20234 = vmatpush3.msra.mxu0 %v22359_v61  ;;  %20274 = vmatprep.mubr.f32.mxu1 %v9686_v53 }
0x1ab6   :  { %20235 = vmatprep.subr.mxu0 %v22369_v63  ;;  %20241 = vmatprep.mubr.f32.mxu0 %v9687_v60  ;;  %v9610_v61 = vrot.slane %v22335_v22, %v23589_v19 }
0x1ab7   :  { %20268 = vmatprep.subr.mxu1 %v22361_v6  ;;  %20236 = vmatpush3.msra.mxu0 %v22369_v63 }
0x1ab8   :  { %20269 = vmatpush3.msra.mxu1 %v22361_v6  ;;  %20237 = vmatprep.subr.mxu0 %v22381_v32 }
0x1ab9   :  { %20270 = vmatprep.subr.mxu1 %v22371_v0  ;;  %20238 = vmatpush3.msra.mxu0 %v22381_v32 }
0x1aba   :  { %20271 = vmatpush3.msra.mxu1 %v22371_v0  ;;  %20239 = vmatprep.subr.mxu0 %v22393_v46 }
0x1abb   :  { %20272 = vmatprep.subr.mxu1 %v22383_v48  ;;  %20240 = vmatpush3.msra.mxu0 %v22393_v46 }
0x1abc   :  { %20273 = vmatpush3.msra.mxu1 %v22383_v48  ;;  %20242 = vmatmul.mubr.f32.vlgmr.msra.gmra.mxu0 %v9697_v7 }
0x1abd   :  { %20255 = vmatprep.subr.mxu0 %v22366_v1  ;;  %20275 = vmatmul.mubr.f32.vlgmr.msra.gmra.mxu1 %v9696_v2 }
0x1abe   :  { %20256 = vmatpush3.msra.mxu0 %v22366_v1  ;;  %20263 = vmatprep.mubr.f32.mxu0 %v9686_v53 }
0x1abf   :  { %20257 = vmatprep.subr.mxu0 %v22378_v31  ;;  %20282 = vmatprep.subr.mxu1 %v23566_v20 }
0x1ac0   :  { %20258 = vmatpush3.msra.mxu0 %v22378_v31  ;;  %20284 = vmatprep.mubr.msk.f32.mxu1 %vm21095_vm5, %v23566_v20 }
0x1ac1   :  { %20259 = vmatprep.subr.mxu0 %v22390_v35 }
0x1ac2   :  { %20260 = vmatpush3.msra.mxu0 %v22390_v35 }
0x1ac3   :  { %20261 = vmatprep.subr.mxu0 %v22400_v45 }
0x1ac4   :  { %20262 = vmatpush3.msra.mxu0 %v22400_v45 }
0x1ac5   :  { %20264 = vmatmul.mubr.f32.vlgmr.msra.gmra.mxu0 %v9696_v2  ;;  %20277 = vmatprep.subr.mxu0 %v23566_v20 }
0x1ac6   :  { %20279 = vmatprep.mubr.msk.f32.mxu0 %vm21095_vm5, %v23566_v20 }
0x1b6b   :  { %v20232_v63 = vpop.f32.mrf.mxu1 }
0x1b6d   :  { %v9793_v32 = vpop.f32.mrf.mxu1 }
0x1b73   :  { %v20254_v35 = vpop.f32.mrf.mxu1 }
0x1b74   :  { %v20221_v6 = vpop.f32.mrf.mxu0 }
0x1b75   :  { %v9703_v1 = vadd.f32 %v20221_v6, %v9610_v61  ;;  %v9963_v23 = vpop.f32.mrf.mxu1 }
0x1b76   :  { %v9692_v31 = vpop.f32.mrf.mxu0 }
0x1b77   :  { %v9800_v0 = vadd.f32 %v20232_v63, %v9703_v1  ;;  %v9693_v48 = vadd.f32 %v9692_v31, %v9610_v61 }
0x1b79   :  { %v9794_v58 = vadd.f32 %v9793_v32, %v9693_v48 }
0x1b7c   :  { %v20243_v26 = vpop.f32.mrf.mxu0 }
0x1b7d   :  { %v9887_v56 = vadd.f32 %v20243_v26, %v9800_v0  ;;  %v20276_v24 = vpop.f32.mrf.mxu1 }
0x1b7e   :  { %v9879_v46 = vpop.f32.mrf.mxu0 }
0x1b7f   :  { %v9972_v17 = vadd.f32 %v20254_v35, %v9887_v56  ;;  %v9880_v45 = vadd.f32 %v9879_v46, %v9794_v58  ;;  %v10135_v28 = vpop.f32.mrf.mxu1 }
0x1b81   :  { %v9964_v49 = vadd.f32 %v9963_v23, %v9880_v45 }
0x1b85   :  { %v20265_v55 = vpop.f32.mrf.mxu0 }
0x1b86   :  { %v10061_v50 = vadd.f32 %v20265_v55, %v9972_v17 }
0x1b87   :  { %v10054_v22 = vpop.f32.mrf.mxu0 }
0x1b88   :  { %v22451_v10 = vadd.f32 %v20276_v24, %v10061_v50  ;;  %v10055_v15 = vadd.f32 %v10054_v22, %v9964_v49 }
0x1b8a   :  { %v22453_v30 = vadd.f32 %v10135_v28, %v10055_v15 }
0x1b8c   :  { %10146 = vrot.lane.b32.xlu0 %v22453_v30, %s21093_s2  ;;  %v10148_v29 = vsel %vm692_vm6, %v22453_v30, 0 }
0x1b8d   :  { %v10218_v8 = vand.u32 4294901760, %v10148_v29 }
0x1b8f   :  { %v10219_v33 = vsub.f32 %v10148_v29, %v10218_v8 }
0x1b91   :  { %v10220_v36 = vand.u32 4294901760, %v10219_v33 }
0x1b93   :  { %v10221_v34 = vsub.f32 %v10219_v33, %v10220_v36 }
0x1b95   :  { %v10222_v41 = vand.u32 4294901760, %v10221_v34 }
0x1bfe   :  { %v10147_v37 = vpop.permute.xlu0 %10146 }
0x1bff   :  { %v10150_v38 = vsel %vm692_vm6, %v10147_v37, 0 }
0x1c00   :  { %v10183_v39 = vand.u32 4294901760, %v10150_v38 }
0x1c02   :  { %v10260_v40 = vsub.f32 %v10150_v38, %v10183_v39  ;;  %20278 = vmatpush3.xpose.msra.mxu0 %v10183_v39 }
0x1c03   :  { %20287 = vmatprep.subr.mxu0 %v23566_v20 }
0x1c04   :  { %v10261_v44 = vand.u32 4294901760, %v10260_v40 }
0x1c05   :  { %20280 = vmatmul.mubr.f32.vlgmr.msra.gmra.mxu0 %v10222_v41 }
0x1c06   :  { %v10262_v52 = vsub.f32 %v10260_v40, %v10261_v44  ;;  %20288 = vmatpush3.xpose.msra.mxu0 %v10260_v40  ;;  %20289 = vmatprep.mubr.msk.f32.mxu0 %vm21095_vm5, %v23566_v20 }
0x1c07   :  { %20297 = vmatprep.subr.mxu0 %v23566_v20 }
0x1c08   :  { %v10263_v57 = vand.u32 4294901760, %v10262_v52 }
0x1c09   :  { %20290 = vmatmul.mubr.f32.vlgmr.msra.gmra.mxu0 %v10219_v33 }
0x1c0a   :  { %20283 = vmatpush3.xpose.msra.mxu1 %v10263_v57  ;;  %20298 = vmatpush3.xpose.msra.mxu0 %v10261_v44 }
0x1c0b   :  { %20299 = vmatprep.mubr.msk.f32.mxu0 %vm21095_vm5, %v23566_v20  ;;  %20292 = vmatprep.subr.mxu1 %v23566_v20 }
0x1c0c   :  { %20307 = vmatprep.subr.mxu0 %v23566_v20 }
0x1c0d   :  { %20285 = vmatmul.mubr.f32.vlgmr.msra.gmra.mxu1 %v10218_v8  ;;  %20300 = vmatmul.mubr.f32.vlgmr.msra.gmra.mxu0 %v10218_v8 }
0x1c0e   :  { %20293 = vmatpush3.xpose.msra.mxu1 %v10183_v39  ;;  %20294 = vmatprep.mubr.msk.f32.mxu1 %vm21095_vm5, %v23566_v20 }
0x1c0f   :  { %20302 = vmatprep.subr.mxu1 %v23566_v20  ;;  %20309 = vmatprep.mubr.msk.f32.mxu0 %vm21095_vm5, %v23566_v20 }
0x1c11   :  { %20295 = vmatmul.mubr.f32.vlgmr.msra.gmra.mxu1 %v10220_v36 }
0x1c12   :  { %20303 = vmatpush3.xpose.msra.mxu1 %v10183_v39  ;;  %20304 = vmatprep.mubr.msk.f32.mxu1 %vm21095_vm5, %v23566_v20 }
0x1c13   :  { %20312 = vmatprep.subr.mxu1 %v23566_v20 }
0x1c15   :  { %20305 = vmatmul.mubr.f32.vlgmr.msra.gmra.mxu1 %v10218_v8 }
0x1c16   :  { %20314 = vmatprep.mubr.msk.f32.mxu1 %vm21095_vm5, %v23566_v20 }
0x1cc5   :  { %v10224_v13 = vpop.f32.mrf.mxu0 }
0x1cc7   :  { %v20281_v11 = vpop.f32.mrf.mxu0 }
0x1cc9   :  { %v10374_v42 = vpop.f32.mrf.mxu0 }
0x1ccb   :  { %v20291_v47 = vpop.f32.mrf.mxu0 }
0x1ccd   :  { %v10300_v27 = vpop.f32.mrf.mxu1  ;;  %v10522_v16 = vpop.f32.mrf.mxu0 }
0x1cce   :  { %v10301_v53 = vadd.f32 %v10300_v27, %v10224_v13 }
0x1ccf   :  { %v20286_v54 = vpop.f32.mrf.mxu1  ;;  %v20301_v60 = vpop.f32.mrf.mxu0 }
0x1cd0   :  { %v10375_v62 = vadd.f32 %v10374_v42, %v10301_v53 }
0x1cd1   :  { %v10448_v2 = vpop.f32.mrf.mxu1 }
0x1cd2   :  { %v10449_v4 = vadd.f32 %v10448_v2, %v10375_v62 }
0x1cd3   :  { %v20296_v7 = vpop.f32.mrf.mxu1 }
0x1cd4   :  { %v10523_v21 = vadd.f32 %v10522_v16, %v10449_v4 }
0x1cd5   :  { %v10594_v59 = vpop.f32.mrf.mxu1 }
0x1cd6   :  { %v10595_v25 = vadd.f32 %v10594_v59, %v10523_v21 }
0x1cd7   :  { %v20306_v18 = vpop.f32.mrf.mxu1 }
0x1cd8   :  { %v10598_v3 = vmul.f32 0.35355338, %v10595_v25 }
0x1cda   :  { %v10599_v19 = vsel %vm692_vm6, %v10598_v3, -inf }
0x1cdb   :  { %10600 = vmax.xlane.f32.xlu1 %v10599_v19 }
0x1cec   :  { %10610 = vrot.lane.b32.xlu1 %v22453_v30, %s21098_s18 }
0x1cf0   :  { %11062 = vrot.lane.b32.xlu1 %v22453_v30, %s21097_s17 }
0x1d64   :  { %v10601_v61 = vpop.xlane.xlu1 %10600 }
0x1d65   :  { %v10602_v6 = vsub.f32 %v10598_v3, %v10601_v61 }
0x1d67   :  { %v10603_v1 = vmul.f32 1.442695, %v10602_v6 }
0x1d68   :  { %v10611_v63 = vpop.permute.xlu1 %10610 }
0x1d69   :  { %20903 = vpow2.f32 %v10603_v1  ;;  %v10647_v0 = vand.u32 4294901760, %v10611_v63 }
0x1d6b   :  { %v10724_v31 = vsub.f32 %v10611_v63, %v10647_v0  ;;  %20308 = vmatpush3.msra.mxu0 %v10647_v0 }
0x1d6c   :  { %20317 = vmatprep.subr.mxu0 %v23566_v20  ;;  %v11063_v50 = vpop.permute.xlu1 %11062 }
0x1d6d   :  { %v10725_v32 = vand.u32 4294901760, %v10724_v31  ;;  %v11066_v15 = vsel %vm692_vm6, %v11063_v50, 0 }
0x1d6e   :  { %v11136_v8 = vand.u32 4294901760, %v11066_v15 }
0x1d6f   :  { %v10726_v48 = vsub.f32 %v10724_v31, %v10725_v32 }
0x1d70   :  { %v11137_v38 = vsub.f32 %v11066_v15, %v11136_v8 }
0x1d71   :  { %v10727_v26 = vand.u32 4294901760, %v10726_v48 }
0x1d72   :  { %v11138_v40 = vand.u32 4294901760, %v11137_v38 }
0x1d73   :  { %20313 = vmatpush3.msra.mxu1 %v10727_v26 }
0x1d74   :  { %20322 = vmatprep.subr.mxu1 %v23566_v20  ;;  %v11139_v41 = vsub.f32 %v11137_v38, %v11138_v40 }
0x1d76   :  { %v20904_v56 = vpop.eup %20903  ;;  %v11140_v44 = vand.u32 4294901760, %v11139_v41 }
0x1d77   :  { %v10605_v35 = vsel %vm692_vm6, %v20904_v56, 0.0 }
0x1d78   :  { %10606 = vadd.xlane.f32.xlu0 %v10605_v35 }
0x1d8e   :  { %11064 = vrot.lane.b32.xlu0 %v22453_v30, %s21096_s4 }
0x1e01   :  { %v10607_v46 = vpop.xlane.xlu0 %10606 }
0x1e02   :  { %20905 = vrcp.f32 %v10607_v46 }
0x1e05   :  { %v11065_v17 = vpop.permute.xlu0 %11064 }
0x1e06   :  { %v11068_v58 = vsel %vm692_vm6, %v11065_v17, 0 }
0x1e07   :  { %v11101_v45 = vand.u32 4294901760, %v11068_v58 }
0x1e09   :  { %v11178_v55 = vsub.f32 %v11068_v58, %v11101_v45 }
0x1e0b   :  { %v11179_v28 = vand.u32 4294901760, %v11178_v55 }
0x1e0d   :  { %v11180_v36 = vsub.f32 %v11178_v55, %v11179_v28 }
0x1e0f   :  { %v20906_v23 = vpop.eup %20905  ;;  %v11181_v39 = vand.u32 4294901760, %v11180_v36 }
0x1e10   :  { %v10609_v24 = vmul.f32 %v20906_v23, %v20904_v56 }
0x1e12   :  { %v10614_v49 = vsel %vm692_vm6, %v10609_v24, 0 }
0x1e13   :  { %v10682_v22 = vand.u32 4294901760, %v10614_v49 }
0x1e15   :  { %v10683_v29 = vsub.f32 %v10614_v49, %v10682_v22  ;;  %20315 = vmatmul.mubr.f32.vlgmr.msra.gmra.mxu1 %v10682_v22 }
0x1e16   :  { %20323 = vmatpush3.msra.mxu1 %v10647_v0  ;;  %20324 = vmatprep.mubr.msk.f32.mxu1 %vm21095_vm5, %v23566_v20 }
0x1e17   :  { %20332 = vmatprep.subr.mxu1 %v23566_v20  ;;  %v10684_v33 = vand.u32 4294901760, %v10683_v29 }
0x1e19   :  { %20325 = vmatmul.mubr.f32.vlgmr.msra.gmra.mxu1 %v10684_v33  ;;  %v10685_v37 = vsub.f32 %v10683_v29, %v10684_v33 }
0x1e1a   :  { %20333 = vmatpush3.msra.mxu1 %v10647_v0  ;;  %20334 = vmatprep.mubr.msk.f32.mxu1 %vm21095_vm5, %v23566_v20 }
0x1e1b   :  { %20342 = vmatprep.subr.mxu1 %v23566_v20  ;;  %v10686_v34 = vand.u32 4294901760, %v10685_v37 }
0x1e1d   :  { %20310 = vmatmul.mubr.f32.vlgmr.msra.gmra.mxu0 %v10686_v34  ;;  %20335 = vmatmul.mubr.f32.vlgmr.msra.gmra.mxu1 %v10682_v22 }
0x1e1e   :  { %20318 = vmatpush3.msra.mxu0 %v10724_v31  ;;  %20343 = vmatpush3.xpose.msra.mxu1 %v11181_v39 }
0x1e1f   :  { %20319 = vmatprep.mubr.msk.f32.mxu0 %vm21095_vm5, %v23566_v20  ;;  %20327 = vmatprep.subr.mxu0 %v23566_v20 }
0x1e20   :  { %20344 = vmatprep.mubr.msk.f32.mxu1 %vm21095_vm5, %v23566_v20  ;;  %20352 = vmatprep.subr.mxu1 %v23566_v20 }
0x1e21   :  { %20320 = vmatmul.mubr.f32.vlgmr.msra.gmra.mxu0 %v10683_v29  ;;  %20345 = vmatmul.mubr.f32.vlgmr.msra.gmra.mxu1 %v11136_v8 }
0x1e22   :  { %20328 = vmatpush3.msra.mxu0 %v10725_v32  ;;  %20353 = vmatpush3.xpose.msra.mxu1 %v11101_v45 }
0x1e23   :  { %20329 = vmatprep.mubr.msk.f32.mxu0 %vm21095_vm5, %v23566_v20  ;;  %20337 = vmatprep.subr.mxu0 %v23566_v20 }
0x1e24   :  { %20354 = vmatprep.mubr.msk.f32.mxu1 %vm21095_vm5, %v23566_v20  ;;  %20362 = vmatprep.subr.mxu1 %v23566_v20 }
0x1e25   :  { %20330 = vmatmul.mubr.f32.vlgmr.msra.gmra.mxu0 %v10682_v22  ;;  %20355 = vmatmul.mubr.f32.vlgmr.msra.gmra.mxu1 %v11138_v40 }
0x1e26   :  { %20338 = vmatpush3.xpose.msra.mxu0 %v11101_v45  ;;  %20363 = vmatpush3.xpose.msra.mxu1 %v11101_v45 }
0x1e27   :  { %20339 = vmatprep.mubr.msk.f32.mxu0 %vm21095_vm5, %v23566_v20  ;;  %20347 = vmatprep.subr.mxu0 %v23566_v20 }
0x1e28   :  { %20364 = vmatprep.mubr.msk.f32.mxu1 %vm21095_vm5, %v23566_v20  ;;  %20372 = vmatprep.subr.mxu1 %v23566_v20 }
0x1e29   :  { %20340 = vmatmul.mubr.f32.vlgmr.msra.gmra.mxu0 %v11140_v44  ;;  %20365 = vmatmul.mubr.f32.vlgmr.msra.gmra.mxu1 %v11136_v8 }
0x1e2a   :  { %20348 = vmatpush3.xpose.msra.mxu0 %v11178_v55  ;;  %20349 = vmatprep.mubr.msk.f32.mxu0 %vm21095_vm5, %v23566_v20 }
0x1e2b   :  { %20357 = vmatprep.subr.mxu0 %v23566_v20  ;;  %20374 = vmatprep.mubr.msk.f32.mxu1 %vm21095_vm5, %v23566_v20 }
0x1e2d   :  { %20350 = vmatmul.mubr.f32.vlgmr.msra.gmra.mxu0 %v11137_v38 }
0x1e2e   :  { %20358 = vmatpush3.xpose.msra.mxu0 %v11179_v28  ;;  %20359 = vmatprep.mubr.msk.f32.mxu0 %vm21095_vm5, %v23566_v20 }
0x1e2f   :  { %20367 = vmatprep.subr.mxu0 %v23566_v20 }
0x1e31   :  { %20360 = vmatmul.mubr.f32.vlgmr.msra.gmra.mxu0 %v11136_v8 }
0x1e32   :  { %20369 = vmatprep.mubr.msk.f32.mxu0 %vm21095_vm5, %v23566_v20 }
0x1ed5   :  { %v10764_v52 = vpop.f32.mrf.mxu1 }
0x1ed7   :  { %v20316_v57 = vpop.f32.mrf.mxu1 }
0x1ed9   :  { %v10912_v13 = vpop.f32.mrf.mxu1 }
0x1edb   :  { %v20326_v11 = vpop.f32.mrf.mxu1 }
0x1edd   :  { %v10688_v42 = vpop.f32.mrf.mxu0  ;;  %v11058_v47 = vpop.f32.mrf.mxu1 }
0x1ede   :  { %v10765_v27 = vadd.f32 %v10764_v52, %v10688_v42 }
0x1edf   :  { %v20311_v16 = vpop.f32.mrf.mxu0  ;;  %v20336_v53 = vpop.f32.mrf.mxu1 }
0x1ee1   :  { %v10838_v54 = vpop.f32.mrf.mxu0  ;;  %v11218_v60 = vpop.f32.mrf.mxu1 }
0x1ee2   :  { %v10839_v62 = vadd.f32 %v10838_v54, %v10765_v27 }
0x1ee3   :  { %v20321_v2 = vpop.f32.mrf.mxu0  ;;  %v20346_v4 = vpop.f32.mrf.mxu1 }
0x1ee4   :  { %v10913_v7 = vadd.f32 %v10912_v13, %v10839_v62 }
0x1ee5   :  { %v10986_v21 = vpop.f32.mrf.mxu0  ;;  %v11366_v59 = vpop.f32.mrf.mxu1 }
0x1ee6   :  { %v10987_v25 = vadd.f32 %v10986_v21, %v10913_v7 }
0x1ee7   :  { %v20331_v18 = vpop.f32.mrf.mxu0  ;;  %v20356_v3 = vpop.f32.mrf.mxu1 }
0x1ee8   :  { %v22525_v19 = vadd.f32 %v11058_v47, %v10987_v25 }
0x1ee9   :  { %v11142_v61 = vpop.f32.mrf.mxu0  ;;  %v11512_v6 = vpop.f32.mrf.mxu1 }
0x1eea   :  { %v11219_v0 = vadd.f32 %v11218_v60, %v11142_v61 }
0x1eeb   :  { %v20341_v1 = vpop.f32.mrf.mxu0  ;;  %v20366_v63 = vpop.f32.mrf.mxu1 }
0x1eed   :  { %v11292_v31 = vpop.f32.mrf.mxu0 }
0x1eee   :  { %v11293_v32 = vadd.f32 %v11292_v31, %v11219_v0 }
0x1eef   :  { %v20351_v48 = vpop.f32.mrf.mxu0 }
0x1ef0   :  { %v11367_v26 = vadd.f32 %v11366_v59, %v11293_v32 }
0x1ef1   :  { %v11440_v56 = vpop.f32.mrf.mxu0 }
0x1ef2   :  { %v11441_v35 = vadd.f32 %v11440_v56, %v11367_v26 }
0x1ef3   :  { %v20361_v46 = vpop.f32.mrf.mxu0 }
0x1ef4   :  { %v11513_v17 = vadd.f32 %v11512_v6, %v11441_v35 }
0x1ef6   :  { %v11516_v58 = vmul.f32 0.35355338, %v11513_v17 }
0x1ef8   :  { %v11517_v45 = vsel %vm692_vm6, %v11516_v58, -inf }
0x1ef9   :  { %11518 = vmax.xlane.f32.xlu1 %v11517_v45 }
0x1f0a   :  { %11982 = vrot.lane.b32.xlu1 %v22453_v30, %s21099_s19 }
0x1f0e   :  { %11980 = vrot.lane.b32.xlu1 %v22453_v30, %s21100_s20 }
0x1f82   :  { %v11519_v23 = vpop.xlane.xlu1 %11518 }
0x1f83   :  { %v11520_v24 = vsub.f32 %v11516_v58, %v11519_v23 }
0x1f85   :  { %v11521_v55 = vmul.f32 1.442695, %v11520_v24 }
0x1f86   :  { %v11983_v28 = vpop.permute.xlu1 %11982 }
0x1f87   :  { %20907 = vpow2.f32 %v11521_v55  ;;  %v11986_v33 = vsel %vm692_vm6, %v11983_v28, 0 }
0x1f88   :  { %v12019_v37 = vand.u32 4294901760, %v11986_v33 }
0x1f8a   :  { %v12096_v40 = vsub.f32 %v11986_v33, %v12019_v37  ;;  %v11981_v44 = vpop.permute.xlu1 %11980 }
0x1f8b   :  { %v11984_v11 = vsel %vm692_vm6, %v11981_v44, 0 }
0x1f8c   :  { %v12097_v13 = vand.u32 4294901760, %v12096_v40  ;;  %v12054_v47 = vand.u32 4294901760, %v11984_v11 }
0x1f8e   :  { %v12098_v16 = vsub.f32 %v12096_v40, %v12097_v13  ;;  %v12055_v54 = vsub.f32 %v11984_v11, %v12054_v47 }
0x1f90   :  { %v12099_v62 = vand.u32 4294901760, %v12098_v16  ;;  %v12056_v2 = vand.u32 4294901760, %v12055_v54 }
0x1f92   :  { %v12057_v4 = vsub.f32 %v12055_v54, %v12056_v2 }
0x1f94   :  { %v20908_v50 = vpop.eup %20907  ;;  %v12058_v7 = vand.u32 4294901760, %v12057_v4 }
0x1f95   :  { %v11523_v49 = vsel %vm692_vm6, %v20908_v50, 0.0 }
0x1f96   :  { %11524 = vadd.xlane.f32.xlu0 %v11523_v49 }
0x1fac   :  { %11528 = vrot.lane.b32.xlu0 %v22453_v30, %s21101_s21 }
0x201f   :  { %v11525_v22 = vpop.xlane.xlu0 %11524 }
0x2020   :  { %20909 = vrcp.f32 %v11525_v22 }
0x2023   :  { %v11529_v15 = vpop.permute.xlu0 %11528 }
0x2024   :  { %v11565_v29 = vand.u32 4294901760, %v11529_v15 }
0x2026   :  { %v11642_v8 = vsub.f32 %v11529_v15, %v11565_v29  ;;  %20368 = vmatpush3.msra.mxu0 %v11565_v29 }
0x2027   :  { %20377 = vmatprep.subr.mxu0 %v23566_v20 }
0x2028   :  { %v11643_v36 = vand.u32 4294901760, %v11642_v8 }
0x202a   :  { %v11644_v38 = vsub.f32 %v11642_v8, %v11643_v36 }
0x202c   :  { %v11645_v34 = vand.u32 4294901760, %v11644_v38 }
0x202d   :  { %v20910_v39 = vpop.eup %20909 }
0x202e   :  { %v11527_v41 = vmul.f32 %v20910_v39, %v20908_v50  ;;  %20373 = vmatpush3.msra.mxu1 %v11645_v34 }
0x202f   :  { %20382 = vmatprep.subr.mxu1 %v23566_v20 }
0x2030   :  { %v11532_v52 = vsel %vm692_vm6, %v11527_v41, 0 }
0x2031   :  { %v11600_v57 = vand.u32 4294901760, %v11532_v52 }
0x2033   :  { %v11601_v42 = vsub.f32 %v11532_v52, %v11600_v57  ;;  %20375 = vmatmul.mubr.f32.vlgmr.msra.gmra.mxu1 %v11600_v57 }
0x2034   :  { %20383 = vmatpush3.msra.mxu1 %v11565_v29  ;;  %20384 = vmatprep.mubr.msk.f32.mxu1 %vm21095_vm5, %v23566_v20 }
0x2035   :  { %20392 = vmatprep.subr.mxu1 %v23566_v20  ;;  %v11602_v27 = vand.u32 4294901760, %v11601_v42 }
0x2037   :  { %20385 = vmatmul.mubr.f32.vlgmr.msra.gmra.mxu1 %v11602_v27  ;;  %v11603_v53 = vsub.f32 %v11601_v42, %v11602_v27 }
0x2038   :  { %20393 = vmatpush3.msra.mxu1 %v11565_v29  ;;  %20394 = vmatprep.mubr.msk.f32.mxu1 %vm21095_vm5, %v23566_v20 }
0x2039   :  { %20402 = vmatprep.subr.mxu1 %v23566_v20  ;;  %v11604_v60 = vand.u32 4294901760, %v11603_v53 }
0x203b   :  { %20370 = vmatmul.mubr.f32.vlgmr.msra.gmra.mxu0 %v11604_v60  ;;  %20395 = vmatmul.mubr.f32.vlgmr.msra.gmra.mxu1 %v11600_v57 }
0x203c   :  { %20378 = vmatpush3.msra.mxu0 %v11642_v8  ;;  %20403 = vmatpush3.xpose.msra.mxu1 %v12099_v62 }
0x203d   :  { %20379 = vmatprep.mubr.msk.f32.mxu0 %vm21095_vm5, %v23566_v20  ;;  %20387 = vmatprep.subr.mxu0 %v23566_v20 }
0x203e   :  { %20404 = vmatprep.mubr.msk.f32.mxu1 %vm21095_vm5, %v23566_v20  ;;  %20412 = vmatprep.subr.mxu1 %v23566_v20 }
0x203f   :  { %20380 = vmatmul.mubr.f32.vlgmr.msra.gmra.mxu0 %v11601_v42  ;;  %20405 = vmatmul.mubr.f32.vlgmr.msra.gmra.mxu1 %v12054_v47 }
0x2040   :  { %20388 = vmatpush3.msra.mxu0 %v11643_v36  ;;  %20413 = vmatpush3.xpose.msra.mxu1 %v12019_v37 }
0x2041   :  { %20389 = vmatprep.mubr.msk.f32.mxu0 %vm21095_vm5, %v23566_v20  ;;  %20397 = vmatprep.subr.mxu0 %v23566_v20 }
0x2042   :  { %20414 = vmatprep.mubr.msk.f32.mxu1 %vm21095_vm5, %v23566_v20  ;;  %20422 = vmatprep.subr.mxu1 %v23566_v20 }
0x2043   :  { %20390 = vmatmul.mubr.f32.vlgmr.msra.gmra.mxu0 %v11600_v57  ;;  %20415 = vmatmul.mubr.f32.vlgmr.msra.gmra.mxu1 %v12056_v2 }
0x2044   :  { %20398 = vmatpush3.xpose.msra.mxu0 %v12019_v37  ;;  %20423 = vmatpush3.xpose.msra.mxu1 %v12019_v37 }
0x2045   :  { %20399 = vmatprep.mubr.msk.f32.mxu0 %vm21095_vm5, %v23566_v20  ;;  %20407 = vmatprep.subr.mxu0 %v23566_v20 }
0x2046   :  { %20424 = vmatprep.mubr.msk.f32.mxu1 %vm21095_vm5, %v23566_v20  ;;  %20432 = vmatprep.subr.mxu1 %v23566_v20 }
0x2047   :  { %20400 = vmatmul.mubr.f32.vlgmr.msra.gmra.mxu0 %v12058_v7  ;;  %20425 = vmatmul.mubr.f32.vlgmr.msra.gmra.mxu1 %v12054_v47 }
0x2048   :  { %20408 = vmatpush3.xpose.msra.mxu0 %v12096_v40  ;;  %20409 = vmatprep.mubr.msk.f32.mxu0 %vm21095_vm5, %v23566_v20 }
0x2049   :  { %20417 = vmatprep.subr.mxu0 %v23566_v20  ;;  %20434 = vmatprep.mubr.msk.f32.mxu1 %vm21095_vm5, %v23566_v20 }
0x204b   :  { %20410 = vmatmul.mubr.f32.vlgmr.msra.gmra.mxu0 %v12055_v54 }
0x204c   :  { %20418 = vmatpush3.xpose.msra.mxu0 %v12097_v13  ;;  %20419 = vmatprep.mubr.msk.f32.mxu0 %vm21095_vm5, %v23566_v20 }
0x204d   :  { %20427 = vmatprep.subr.mxu0 %v23566_v20 }
0x204f   :  { %20420 = vmatmul.mubr.f32.vlgmr.msra.gmra.mxu0 %v12054_v47 }
0x2050   :  { %20429 = vmatprep.mubr.msk.f32.mxu0 %vm21095_vm5, %v23566_v20 }
0x20f3   :  { %v11682_v21 = vpop.f32.mrf.mxu1 }
0x20f5   :  { %v20376_v59 = vpop.f32.mrf.mxu1 }
0x20f7   :  { %v11830_v25 = vpop.f32.mrf.mxu1 }
0x20f9   :  { %v20386_v18 = vpop.f32.mrf.mxu1 }
0x20fb   :  { %v11606_v3 = vpop.f32.mrf.mxu0  ;;  %v11976_v61 = vpop.f32.mrf.mxu1 }
0x20fc   :  { %v11683_v6 = vadd.f32 %v11682_v21, %v11606_v3 }
0x20fd   :  { %v20371_v1 = vpop.f32.mrf.mxu0  ;;  %v20396_v63 = vpop.f32.mrf.mxu1 }
0x20ff   :  { %v11756_v0 = vpop.f32.mrf.mxu0  ;;  %v12136_v31 = vpop.f32.mrf.mxu1 }
0x2100   :  { %v11757_v32 = vadd.f32 %v11756_v0, %v11683_v6 }
0x2101   :  { %v20381_v48 = vpop.f32.mrf.mxu0  ;;  %v20406_v26 = vpop.f32.mrf.mxu1 }
0x2102   :  { %v11831_v56 = vadd.f32 %v11830_v25, %v11757_v32 }
0x2103   :  { %v11904_v35 = vpop.f32.mrf.mxu0  ;;  %v12284_v46 = vpop.f32.mrf.mxu1 }
0x2104   :  { %v11905_v17 = vadd.f32 %v11904_v35, %v11831_v56 }
0x2105   :  { %v20391_v58 = vpop.f32.mrf.mxu0  ;;  %v20416_v45 = vpop.f32.mrf.mxu1 }
0x2106   :  { %v22574_v23 = vadd.f32 %v11976_v61, %v11905_v17 }
0x2107   :  { %v12060_v24 = vpop.f32.mrf.mxu0  ;;  %v12430_v55 = vpop.f32.mrf.mxu1 }
0x2108   :  { %v12137_v22 = vadd.f32 %v12136_v31, %v12060_v24 }
0x2109   :  { %v20401_v50 = vpop.f32.mrf.mxu0  ;;  %v20426_v49 = vpop.f32.mrf.mxu1 }
0x210b   :  { %v12210_v15 = vpop.f32.mrf.mxu0 }
0x210c   :  { %v12211_v28 = vadd.f32 %v12210_v15, %v12137_v22 }
0x210d   :  { %v20411_v29 = vpop.f32.mrf.mxu0 }
0x210e   :  { %v12285_v8 = vadd.f32 %v12284_v46, %v12211_v28 }
0x210f   :  { %v12358_v33 = vpop.f32.mrf.mxu0 }
0x2110   :  { %v12359_v36 = vadd.f32 %v12358_v33, %v12285_v8 }
0x2111   :  { %v20421_v37 = vpop.f32.mrf.mxu0 }
0x2112   :  { %v12431_v38 = vadd.f32 %v12430_v55, %v12359_v36 }
0x2114   :  { %v12434_v34 = vmul.f32 0.35355338, %v12431_v38 }
0x2116   :  { %v12435_v39 = vsel %vm692_vm6, %v12434_v34, -inf }
0x2117   :  { %12436 = vmax.xlane.f32.xlu1 %v12435_v39 }
0x2128   :  { %12900 = vrot.lane.b32.xlu1 %v22453_v30, %s21104_s26 }
0x212c   :  { %12898 = vrot.lane.b32.xlu1 %v22453_v30, %s21103_s25 }
0x21a0   :  { %v12437_v40 = vpop.xlane.xlu1 %12436 }
0x21a1   :  { %v12438_v41 = vsub.f32 %v12434_v34, %v12437_v40 }
0x21a3   :  { %v12439_v44 = vmul.f32 1.442695, %v12438_v41 }
0x21a4   :  { %v12901_v42 = vpop.permute.xlu1 %12900 }
0x21a5   :  { %20911 = vpow2.f32 %v12439_v44  ;;  %v12904_v16 = vsel %vm692_vm6, %v12901_v42, 0 }
0x21a6   :  { %v12937_v54 = vand.u32 4294901760, %v12904_v16 }
0x21a8   :  { %v13014_v4 = vsub.f32 %v12904_v16, %v12937_v54  ;;  %v12899_v21 = vpop.permute.xlu1 %12898 }
0x21a9   :  { %v12902_v3 = vsel %vm692_vm6, %v12899_v21, 0 }
0x21aa   :  { %v13015_v18 = vand.u32 4294901760, %v13014_v4  ;;  %v12972_v6 = vand.u32 4294901760, %v12902_v3 }
0x21ac   :  { %v13016_v63 = vsub.f32 %v13014_v4, %v13015_v18  ;;  %v12973_v31 = vsub.f32 %v12902_v3, %v12972_v6 }
0x21ae   :  { %v13017_v48 = vand.u32 4294901760, %v13016_v63  ;;  %v12974_v26 = vand.u32 4294901760, %v12973_v31 }
0x21b0   :  { %v12975_v56 = vsub.f32 %v12973_v31, %v12974_v26 }
0x21b2   :  { %v20912_v52 = vpop.eup %20911  ;;  %v12976_v35 = vand.u32 4294901760, %v12975_v56 }
0x21b3   :  { %v12441_v57 = vsel %vm692_vm6, %v20912_v52, 0.0 }
0x21b4   :  { %12442 = vadd.xlane.f32.xlu0 %v12441_v57 }
0x21ca   :  { %12446 = vrot.lane.b32.xlu0 %v22453_v30, %s21102_s22 }
0x223d   :  { %v12443_v13 = vpop.xlane.xlu0 %12442 }
0x223e   :  { %20913 = vrcp.f32 %v12443_v13 }
0x2241   :  { %v12447_v11 = vpop.permute.xlu0 %12446 }
0x2242   :  { %v12483_v47 = vand.u32 4294901760, %v12447_v11 }
0x2244   :  { %v12560_v27 = vsub.f32 %v12447_v11, %v12483_v47  ;;  %20428 = vmatpush3.msra.mxu0 %v12483_v47 }
0x2245   :  { %20437 = vmatprep.subr.mxu0 %v23566_v20 }
0x2246   :  { %v12561_v53 = vand.u32 4294901760, %v12560_v27 }
0x2248   :  { %v12562_v60 = vsub.f32 %v12560_v27, %v12561_v53 }
0x224a   :  { %v12563_v62 = vand.u32 4294901760, %v12562_v60 }
0x224b   :  { %v20914_v2 = vpop.eup %20913 }
0x224c   :  { %v12445_v7 = vmul.f32 %v20914_v2, %v20912_v52  ;;  %20433 = vmatpush3.msra.mxu1 %v12563_v62 }
0x224d   :  { %20442 = vmatprep.subr.mxu1 %v23566_v20 }
0x224e   :  { %v12450_v59 = vsel %vm692_vm6, %v12445_v7, 0 }
0x224f   :  { %v12518_v25 = vand.u32 4294901760, %v12450_v59 }
0x2251   :  { %v12519_v61 = vsub.f32 %v12450_v59, %v12518_v25  ;;  %20435 = vmatmul.mubr.f32.vlgmr.msra.gmra.mxu1 %v12518_v25 }
0x2252   :  { %20443 = vmatpush3.msra.mxu1 %v12483_v47  ;;  %20444 = vmatprep.mubr.msk.f32.mxu1 %vm21095_vm5, %v23566_v20 }
0x2253   :  { %20452 = vmatprep.subr.mxu1 %v23566_v20  ;;  %v12520_v1 = vand.u32 4294901760, %v12519_v61 }
0x2255   :  { %20445 = vmatmul.mubr.f32.vlgmr.msra.gmra.mxu1 %v12520_v1  ;;  %v12521_v0 = vsub.f32 %v12519_v61, %v12520_v1 }
0x2256   :  { %20453 = vmatpush3.msra.mxu1 %v12483_v47  ;;  %20454 = vmatprep.mubr.msk.f32.mxu1 %vm21095_vm5, %v23566_v20 }
0x2257   :  { %20462 = vmatprep.subr.mxu1 %v23566_v20  ;;  %v12522_v32 = vand.u32 4294901760, %v12521_v0 }
0x2259   :  { %20430 = vmatmul.mubr.f32.vlgmr.msra.gmra.mxu0 %v12522_v32  ;;  %20455 = vmatmul.mubr.f32.vlgmr.msra.gmra.mxu1 %v12518_v25 }
0x225a   :  { %20438 = vmatpush3.msra.mxu0 %v12560_v27  ;;  %20463 = vmatpush3.xpose.msra.mxu1 %v13017_v48 }
0x225b   :  { %20439 = vmatprep.mubr.msk.f32.mxu0 %vm21095_vm5, %v23566_v20  ;;  %20447 = vmatprep.subr.mxu0 %v23566_v20 }
0x225c   :  { %20464 = vmatprep.mubr.msk.f32.mxu1 %vm21095_vm5, %v23566_v20  ;;  %20472 = vmatprep.subr.mxu1 %v23566_v20 }
0x225d   :  { %20440 = vmatmul.mubr.f32.vlgmr.msra.gmra.mxu0 %v12519_v61  ;;  %20465 = vmatmul.mubr.f32.vlgmr.msra.gmra.mxu1 %v12972_v6 }
0x225e   :  { %20448 = vmatpush3.msra.mxu0 %v12561_v53  ;;  %20473 = vmatpush3.xpose.msra.mxu1 %v12937_v54 }
0x225f   :  { %20449 = vmatprep.mubr.msk.f32.mxu0 %vm21095_vm5, %v23566_v20  ;;  %20457 = vmatprep.subr.mxu0 %v23566_v20 }
0x2260   :  { %20474 = vmatprep.mubr.msk.f32.mxu1 %vm21095_vm5, %v23566_v20  ;;  %20482 = vmatprep.subr.mxu1 %v23566_v20 }
0x2261   :  { %20450 = vmatmul.mubr.f32.vlgmr.msra.gmra.mxu0 %v12518_v25  ;;  %20475 = vmatmul.mubr.f32.vlgmr.msra.gmra.mxu1 %v12974_v26 }
0x2262   :  { %20458 = vmatpush3.xpose.msra.mxu0 %v12937_v54  ;;  %20483 = vmatpush3.xpose.msra.mxu1 %v12937_v54 }
0x2263   :  { %20459 = vmatprep.mubr.msk.f32.mxu0 %vm21095_vm5, %v23566_v20  ;;  %20467 = vmatprep.subr.mxu0 %v23566_v20 }
0x2264   :  { %20484 = vmatprep.mubr.msk.f32.mxu1 %vm21095_vm5, %v23566_v20  ;;  %20492 = vmatprep.subr.mxu1 %v23566_v20 }
0x2265   :  { %20460 = vmatmul.mubr.f32.vlgmr.msra.gmra.mxu0 %v12976_v35  ;;  %20485 = vmatmul.mubr.f32.vlgmr.msra.gmra.mxu1 %v12972_v6 }
0x2266   :  { %20468 = vmatpush3.xpose.msra.mxu0 %v13014_v4  ;;  %20469 = vmatprep.mubr.msk.f32.mxu0 %vm21095_vm5, %v23566_v20 }
0x2267   :  { %20477 = vmatprep.subr.mxu0 %v23566_v20  ;;  %20494 = vmatprep.mubr.msk.f32.mxu1 %vm21095_vm5, %v23566_v20 }
0x2269   :  { %20470 = vmatmul.mubr.f32.vlgmr.msra.gmra.mxu0 %v12973_v31 }
0x226a   :  { %20478 = vmatpush3.xpose.msra.mxu0 %v13015_v18  ;;  %20479 = vmatprep.mubr.msk.f32.mxu0 %vm21095_vm5, %v23566_v20 }
0x226b   :  { %20487 = vmatprep.subr.mxu0 %v23566_v20 }
0x226d   :  { %20480 = vmatmul.mubr.f32.vlgmr.msra.gmra.mxu0 %v12972_v6 }
0x226e   :  { %20489 = vmatprep.mubr.msk.f32.mxu0 %vm21095_vm5, %v23566_v20 }
0x2311   :  { %v12600_v46 = vpop.f32.mrf.mxu1 }
0x2313   :  { %v20436_v17 = vpop.f32.mrf.mxu1 }
0x2315   :  { %v12748_v58 = vpop.f32.mrf.mxu1 }
0x2317   :  { %v20446_v45 = vpop.f32.mrf.mxu1 }
0x2318   :  { %v13834_v45 = vsel %vm692_vm6, %v22451_v10, 0 }
0x2319   :  { %v12524_v24 = vpop.f32.mrf.mxu0  ;;  %v12894_v55 = vpop.f32.mrf.mxu1 }
0x231a   :  { %v12601_v50 = vadd.f32 %v12600_v46, %v12524_v24 }
0x231b   :  { %v20431_v49 = vpop.f32.mrf.mxu0  ;;  %v20456_v22 = vpop.f32.mrf.mxu1 }
0x231d   :  { %v12674_v15 = vpop.f32.mrf.mxu0  ;;  %v13054_v28 = vpop.f32.mrf.mxu1 }
0x231e   :  { %v12675_v29 = vadd.f32 %v12674_v15, %v12601_v50  ;;  %v13904_v50 = vand.u32 4294901760, %v13834_v45 }
0x231f   :  { %v20441_v8 = vpop.f32.mrf.mxu0  ;;  %v20466_v33 = vpop.f32.mrf.mxu1 }
0x2320   :  { %v12749_v36 = vadd.f32 %v12748_v58, %v12675_v29 }
0x2321   :  { %v12822_v37 = vpop.f32.mrf.mxu0  ;;  %v13202_v38 = vpop.f32.mrf.mxu1 }
0x2322   :  { %v12823_v34 = vadd.f32 %v12822_v37, %v12749_v36 }
0x2323   :  { %v20451_v39 = vpop.f32.mrf.mxu0  ;;  %v20476_v40 = vpop.f32.mrf.mxu1 }
0x2324   :  { %v22623_v41 = vadd.f32 %v12894_v55, %v12823_v34 }
0x2325   :  { %v12978_v44 = vpop.f32.mrf.mxu0  ;;  %v13348_v52 = vpop.f32.mrf.mxu1 }
0x2326   :  { %v13055_v11 = vadd.f32 %v13054_v28, %v12978_v44  ;;  %v13905_v28 = vsub.f32 %v13834_v45, %v13904_v50 }
0x2327   :  { %v20461_v57 = vpop.f32.mrf.mxu0  ;;  %v20486_v13 = vpop.f32.mrf.mxu1 }
0x2328   :  { %v13906_v8 = vand.u32 4294901760, %v13905_v28 }
0x2329   :  { %v13128_v42 = vpop.f32.mrf.mxu0 }
0x232a   :  { %v13129_v47 = vadd.f32 %v13128_v42, %v13055_v11  ;;  %v13907_v33 = vsub.f32 %v13905_v28, %v13906_v8 }
0x232b   :  { %v20471_v27 = vpop.f32.mrf.mxu0 }
0x232c   :  { %v13203_v16 = vadd.f32 %v13202_v38, %v13129_v47  ;;  %v13908_v36 = vand.u32 4294901760, %v13907_v33 }
0x232d   :  { %v13276_v53 = vpop.f32.mrf.mxu0 }
0x232e   :  { %v13277_v54 = vadd.f32 %v13276_v53, %v13203_v16 }
0x232f   :  { %v20481_v60 = vpop.f32.mrf.mxu0 }
0x2330   :  { %v13349_v62 = vadd.f32 %v13348_v52, %v13277_v54 }
0x2332   :  { %v13352_v2 = vmul.f32 0.35355338, %v13349_v62 }
0x2334   :  { %v13353_v4 = vsel %vm692_vm6, %v13352_v2, -inf }
0x2335   :  { %13354 = vmax.xlane.f32.xlu0 %v13353_v4 }
0x234b   :  { %13364 = vrot.lane.b32.xlu0 %v22453_v30, %s21105_s27 }
0x23be   :  { %v13355_v7 = vpop.xlane.xlu0 %13354 }
0x23bf   :  { %v13356_v21 = vsub.f32 %v13352_v2, %v13355_v7 }
0x23c1   :  { %v13357_v59 = vmul.f32 1.442695, %v13356_v21 }
0x23c2   :  { %v13365_v25 = vpop.permute.xlu0 %13364 }
0x23c3   :  { %20915 = vpow2.f32 %v13357_v59  ;;  %v13401_v18 = vand.u32 4294901760, %v13365_v25 }
0x23c5   :  { %v13478_v3 = vsub.f32 %v13365_v25, %v13401_v18  ;;  %20488 = vmatpush3.msra.mxu0 %v13401_v18 }
0x23c6   :  { %20497 = vmatprep.subr.mxu0 %v23566_v20 }
0x23c7   :  { %v13479_v61 = vand.u32 4294901760, %v13478_v3 }
0x23c9   :  { %v13480_v6 = vsub.f32 %v13478_v3, %v13479_v61 }
0x23cb   :  { %v13481_v1 = vand.u32 4294901760, %v13480_v6 }
0x23cd   :  { %20493 = vmatpush3.msra.mxu1 %v13481_v1 }
0x23ce   :  { %20502 = vmatprep.subr.mxu1 %v23566_v20 }
0x23d0   :  { %v20916_v63 = vpop.eup %20915 }
0x23d1   :  { %v13359_v0 = vsel %vm692_vm6, %v20916_v63, 0.0 }
0x23d2   :  { %13360 = vadd.xlane.f32.xlu1 %v13359_v0 }
0x23e3   :  { %13832 = vrot.lane.b32.xlu1 %v22451_v10, %s21093_s2 }
0x245b   :  { %v13361_v30 = vpop.xlane.xlu1 %13360 }
0x245c   :  { %20917 = vrcp.f32 %v13361_v30 }
0x245f   :  { %v13833_v31 = vpop.permute.xlu1 %13832 }
0x2460   :  { %v13836_v32 = vsel %vm692_vm6, %v13833_v31, 0 }
0x2461   :  { %v13869_v48 = vand.u32 4294901760, %v13836_v32 }
0x2463   :  { %v13946_v35 = vsub.f32 %v13836_v32, %v13869_v48 }
0x2465   :  { %v13947_v58 = vand.u32 4294901760, %v13946_v35 }
0x2467   :  { %v13948_v49 = vsub.f32 %v13946_v35, %v13947_v58 }
0x2469   :  { %v20918_v26 = vpop.eup %20917  ;;  %v13949_v29 = vand.u32 4294901760, %v13948_v49 }
0x246a   :  { %v13363_v56 = vmul.f32 %v20918_v26, %v20916_v63 }
0x246c   :  { %v13368_v46 = vsel %vm692_vm6, %v13363_v56, 0 }
0x246d   :  { %v13436_v17 = vand.u32 4294901760, %v13368_v46 }
0x246f   :  { %v13437_v24 = vsub.f32 %v13368_v46, %v13436_v17  ;;  %20495 = vmatmul.mubr.f32.vlgmr.msra.gmra.mxu1 %v13436_v17 }
0x2470   :  { %20503 = vmatpush3.msra.mxu1 %v13401_v18  ;;  %20504 = vmatprep.mubr.msk.f32.mxu1 %vm21095_vm5, %v23566_v20 }
0x2471   :  { %20512 = vmatprep.subr.mxu1 %v23566_v20  ;;  %v13438_v55 = vand.u32 4294901760, %v13437_v24 }
0x2473   :  { %20505 = vmatmul.mubr.f32.vlgmr.msra.gmra.mxu1 %v13438_v55  ;;  %v13439_v22 = vsub.f32 %v13437_v24, %v13438_v55 }
0x2474   :  { %20513 = vmatpush3.msra.mxu1 %v13401_v18  ;;  %20514 = vmatprep.mubr.msk.f32.mxu1 %vm21095_vm5, %v23566_v20 }
0x2475   :  { %20522 = vmatprep.subr.mxu1 %v23566_v20  ;;  %v13440_v15 = vand.u32 4294901760, %v13439_v22 }
0x2477   :  { %20490 = vmatmul.mubr.f32.vlgmr.msra.gmra.mxu0 %v13440_v15  ;;  %20515 = vmatmul.mubr.f32.vlgmr.msra.gmra.mxu1 %v13436_v17 }
0x2478   :  { %20498 = vmatpush3.msra.mxu0 %v13478_v3  ;;  %20523 = vmatpush3.xpose.msra.mxu1 %v13949_v29 }
0x2479   :  { %20499 = vmatprep.mubr.msk.f32.mxu0 %vm21095_vm5, %v23566_v20  ;;  %20507 = vmatprep.subr.mxu0 %v23566_v20 }
0x247a   :  { %20524 = vmatprep.mubr.msk.f32.mxu1 %vm21095_vm5, %v23566_v20  ;;  %20532 = vmatprep.subr.mxu1 %v23566_v20 }
0x247b   :  { %20500 = vmatmul.mubr.f32.vlgmr.msra.gmra.mxu0 %v13437_v24  ;;  %20525 = vmatmul.mubr.f32.vlgmr.msra.gmra.mxu1 %v13904_v50 }
0x247c   :  { %20508 = vmatpush3.msra.mxu0 %v13479_v61  ;;  %20533 = vmatpush3.xpose.msra.mxu1 %v13869_v48 }
0x247d   :  { %20509 = vmatprep.mubr.msk.f32.mxu0 %vm21095_vm5, %v23566_v20  ;;  %20517 = vmatprep.subr.mxu0 %v23566_v20 }
0x247e   :  { %20534 = vmatprep.mubr.msk.f32.mxu1 %vm21095_vm5, %v23566_v20  ;;  %20542 = vmatprep.subr.mxu1 %v23566_v20 }
0x247f   :  { %20510 = vmatmul.mubr.f32.vlgmr.msra.gmra.mxu0 %v13436_v17  ;;  %20535 = vmatmul.mubr.f32.vlgmr.msra.gmra.mxu1 %v13906_v8 }
0x2480   :  { %20518 = vmatpush3.xpose.msra.mxu0 %v13869_v48  ;;  %20543 = vmatpush3.xpose.msra.mxu1 %v13869_v48 }
0x2481   :  { %20519 = vmatprep.mubr.msk.f32.mxu0 %vm21095_vm5, %v23566_v20  ;;  %20527 = vmatprep.subr.mxu0 %v23566_v20 }
0x2482   :  { %20544 = vmatprep.mubr.msk.f32.mxu1 %vm21095_vm5, %v23566_v20  ;;  %20552 = vmatprep.subr.mxu1 %v23566_v20 }
0x2483   :  { %20520 = vmatmul.mubr.f32.vlgmr.msra.gmra.mxu0 %v13908_v36  ;;  %20545 = vmatmul.mubr.f32.vlgmr.msra.gmra.mxu1 %v13904_v50 }
0x2484   :  { %20528 = vmatpush3.xpose.msra.mxu0 %v13946_v35  ;;  %20529 = vmatprep.mubr.msk.f32.mxu0 %vm21095_vm5, %v23566_v20 }
0x2485   :  { %20537 = vmatprep.subr.mxu0 %v23566_v20  ;;  %20554 = vmatprep.mubr.msk.f32.mxu1 %vm21095_vm5, %v23566_v20 }
0x2487   :  { %20530 = vmatmul.mubr.f32.vlgmr.msra.gmra.mxu0 %v13905_v28 }
0x2488   :  { %20538 = vmatpush3.xpose.msra.mxu0 %v13947_v58  ;;  %20539 = vmatprep.mubr.msk.f32.mxu0 %vm21095_vm5, %v23566_v20 }
0x2489   :  { %20547 = vmatprep.subr.mxu0 %v23566_v20 }
0x248b   :  { %20540 = vmatmul.mubr.f32.vlgmr.msra.gmra.mxu0 %v13904_v50 }
0x248c   :  { %20549 = vmatprep.mubr.msk.f32.mxu0 %vm21095_vm5, %v23566_v20 }
0x252f   :  { %v13518_v37 = vpop.f32.mrf.mxu1 }
0x2531   :  { %v20496_v38 = vpop.f32.mrf.mxu1 }
0x2533   :  { %v13666_v34 = vpop.f32.mrf.mxu1 }
0x2535   :  { %v20506_v39 = vpop.f32.mrf.mxu1 }
0x2537   :  { %v13442_v40 = vpop.f32.mrf.mxu0  ;;  %v13812_v44 = vpop.f32.mrf.mxu1 }
0x2538   :  { %v13519_v52 = vadd.f32 %v13518_v37, %v13442_v40 }
0x2539   :  { %v20491_v57 = vpop.f32.mrf.mxu0  ;;  %v20516_v13 = vpop.f32.mrf.mxu1 }
0x253b   :  { %v13592_v11 = vpop.f32.mrf.mxu0  ;;  %v13986_v42 = vpop.f32.mrf.mxu1 }
0x253c   :  { %v13593_v47 = vadd.f32 %v13592_v11, %v13519_v52 }
0x253d   :  { %v20501_v27 = vpop.f32.mrf.mxu0  ;;  %v20526_v16 = vpop.f32.mrf.mxu1 }
0x253e   :  { %v13667_v53 = vadd.f32 %v13666_v34, %v13593_v47 }
0x253f   :  { %v13740_v54 = vpop.f32.mrf.mxu0  ;;  %v14134_v60 = vpop.f32.mrf.mxu1 }
0x2540   :  { %v13741_v62 = vadd.f32 %v13740_v54, %v13667_v53 }
0x2541   :  { %v20511_v2 = vpop.f32.mrf.mxu0  ;;  %v20536_v4 = vpop.f32.mrf.mxu1 }
0x2542   :  { %v22671_v7 = vadd.f32 %v13812_v44, %v13741_v62 }
0x2543   :  { %v13910_v21 = vpop.f32.mrf.mxu0  ;;  %v14280_v59 = vpop.f32.mrf.mxu1 }
0x2544   :  { %v13987_v3 = vadd.f32 %v13986_v42, %v13910_v21 }
0x2545   :  { %v20521_v25 = vpop.f32.mrf.mxu0  ;;  %v20546_v18 = vpop.f32.mrf.mxu1 }
0x2547   :  { %v14060_v61 = vpop.f32.mrf.mxu0 }
0x2548   :  { %v14061_v6 = vadd.f32 %v14060_v61, %v13987_v3 }
0x2549   :  { %v20531_v1 = vpop.f32.mrf.mxu0 }
0x254a   :  { %v14135_v63 = vadd.f32 %v14134_v60, %v14061_v6 }
0x254b   :  { %v14208_v0 = vpop.f32.mrf.mxu0 }
0x254c   :  { %v14209_v30 = vadd.f32 %v14208_v0, %v14135_v63 }
0x254d   :  { %v20541_v31 = vpop.f32.mrf.mxu0 }
0x254e   :  { %v14281_v32 = vadd.f32 %v14280_v59, %v14209_v30 }
0x2550   :  { %v14284_v48 = vmul.f32 0.35355338, %v14281_v32 }
0x2552   :  { %v14285_v26 = vsel %vm692_vm6, %v14284_v48, -inf }
0x2553   :  { %14286 = vmax.xlane.f32.xlu0 %v14285_v26 }
0x2569   :  { %14296 = vrot.lane.b32.xlu0 %v22451_v10, %s21098_s18 }
0x256d   :  { %14748 = vrot.lane.b32.xlu0 %v22451_v10, %s21097_s17 }
0x25dc   :  { %v14287_v56 = vpop.xlane.xlu0 %14286 }
0x25dd   :  { %v14288_v35 = vsub.f32 %v14284_v48, %v14287_v56 }
0x25df   :  { %v14289_v46 = vmul.f32 1.442695, %v14288_v35 }
0x25e0   :  { %v14297_v17 = vpop.permute.xlu0 %14296 }
0x25e1   :  { %20919 = vpow2.f32 %v14289_v46  ;;  %v14333_v58 = vand.u32 4294901760, %v14297_v17 }
0x25e3   :  { %v14410_v45 = vsub.f32 %v14297_v17, %v14333_v58  ;;  %20548 = vmatpush3.msra.mxu0 %v14333_v58 }
0x25e4   :  { %20557 = vmatprep.subr.mxu0 %v23566_v20  ;;  %v14749_v38 = vpop.permute.xlu0 %14748 }
0x25e5   :  { %v14411_v24 = vand.u32 4294901760, %v14410_v45  ;;  %v14752_v40 = vsel %vm692_vm6, %v14749_v38, 0 }
0x25e6   :  { %v14822_v57 = vand.u32 4294901760, %v14752_v40 }
0x25e7   :  { %v14412_v55 = vsub.f32 %v14410_v45, %v14411_v24 }
0x25e8   :  { %v14823_v47 = vsub.f32 %v14752_v40, %v14822_v57 }
0x25e9   :  { %v14413_v50 = vand.u32 4294901760, %v14412_v55 }
0x25ea   :  { %v14824_v53 = vand.u32 4294901760, %v14823_v47 }
0x25eb   :  { %20553 = vmatpush3.msra.mxu1 %v14413_v50 }
0x25ec   :  { %20562 = vmatprep.subr.mxu1 %v23566_v20  ;;  %v14825_v54 = vsub.f32 %v14823_v47, %v14824_v53 }
0x25ee   :  { %v20920_v49 = vpop.eup %20919  ;;  %v14826_v60 = vand.u32 4294901760, %v14825_v54 }
0x25ef   :  { %v14291_v22 = vsel %vm692_vm6, %v20920_v49, 0.0 }
0x25f0   :  { %14292 = vadd.xlane.f32.xlu1 %v14291_v22 }
0x2601   :  { %14750 = vrot.lane.b32.xlu1 %v22451_v10, %s21096_s4 }
0x2679   :  { %v14293_v15 = vpop.xlane.xlu1 %14292 }
0x267a   :  { %20921 = vrcp.f32 %v14293_v15 }
0x267d   :  { %v14751_v28 = vpop.permute.xlu1 %14750 }
0x267e   :  { %v14754_v29 = vsel %vm692_vm6, %v14751_v28, 0 }
0x267f   :  { %v14787_v8 = vand.u32 4294901760, %v14754_v29 }
0x2681   :  { %v14864_v37 = vsub.f32 %v14754_v29, %v14787_v8 }
0x2683   :  { %v14865_v44 = vand.u32 4294901760, %v14864_v37 }
0x2685   :  { %v14866_v11 = vsub.f32 %v14864_v37, %v14865_v44 }
0x2687   :  { %v20922_v33 = vpop.eup %20921  ;;  %v14867_v16 = vand.u32 4294901760, %v14866_v11 }
0x2688   :  { %v14295_v36 = vmul.f32 %v20922_v33, %v20920_v49 }
0x268a   :  { %v14300_v34 = vsel %vm692_vm6, %v14295_v36, 0 }
0x268b   :  { %v14368_v39 = vand.u32 4294901760, %v14300_v34 }
0x268d   :  { %v14369_v52 = vsub.f32 %v14300_v34, %v14368_v39  ;;  %20555 = vmatmul.mubr.f32.vlgmr.msra.gmra.mxu1 %v14368_v39 }
0x268e   :  { %20563 = vmatpush3.msra.mxu1 %v14333_v58  ;;  %20564 = vmatprep.mubr.msk.f32.mxu1 %vm21095_vm5, %v23566_v20 }
0x268f   :  { %20572 = vmatprep.subr.mxu1 %v23566_v20  ;;  %v14370_v13 = vand.u32 4294901760, %v14369_v52 }
0x2691   :  { %20565 = vmatmul.mubr.f32.vlgmr.msra.gmra.mxu1 %v14370_v13  ;;  %v14371_v42 = vsub.f32 %v14369_v52, %v14370_v13 }
0x2692   :  { %20573 = vmatpush3.msra.mxu1 %v14333_v58  ;;  %20574 = vmatprep.mubr.msk.f32.mxu1 %vm21095_vm5, %v23566_v20 }
0x2693   :  { %20582 = vmatprep.subr.mxu1 %v23566_v20  ;;  %v14372_v27 = vand.u32 4294901760, %v14371_v42 }
0x2695   :  { %20550 = vmatmul.mubr.f32.vlgmr.msra.gmra.mxu0 %v14372_v27  ;;  %20575 = vmatmul.mubr.f32.vlgmr.msra.gmra.mxu1 %v14368_v39 }
0x2696   :  { %20558 = vmatpush3.msra.mxu0 %v14410_v45  ;;  %20583 = vmatpush3.xpose.msra.mxu1 %v14867_v16 }
0x2697   :  { %20559 = vmatprep.mubr.msk.f32.mxu0 %vm21095_vm5, %v23566_v20  ;;  %20567 = vmatprep.subr.mxu0 %v23566_v20 }
0x2698   :  { %20584 = vmatprep.mubr.msk.f32.mxu1 %vm21095_vm5, %v23566_v20  ;;  %20592 = vmatprep.subr.mxu1 %v23566_v20 }
0x2699   :  { %20560 = vmatmul.mubr.f32.vlgmr.msra.gmra.mxu0 %v14369_v52  ;;  %20585 = vmatmul.mubr.f32.vlgmr.msra.gmra.mxu1 %v14822_v57 }
0x269a   :  { %20568 = vmatpush3.msra.mxu0 %v14411_v24  ;;  %20593 = vmatpush3.xpose.msra.mxu1 %v14787_v8 }
0x269b   :  { %20569 = vmatprep.mubr.msk.f32.mxu0 %vm21095_vm5, %v23566_v20  ;;  %20577 = vmatprep.subr.mxu0 %v23566_v20 }
0x269c   :  { %20594 = vmatprep.mubr.msk.f32.mxu1 %vm21095_vm5, %v23566_v20  ;;  %20602 = vmatprep.subr.mxu1 %v23566_v20 }
0x269d   :  { %20570 = vmatmul.mubr.f32.vlgmr.msra.gmra.mxu0 %v14368_v39  ;;  %20595 = vmatmul.mubr.f32.vlgmr.msra.gmra.mxu1 %v14824_v53 }
0x269e   :  { %20578 = vmatpush3.xpose.msra.mxu0 %v14787_v8  ;;  %20603 = vmatpush3.xpose.msra.mxu1 %v14787_v8 }
0x269f   :  { %20579 = vmatprep.mubr.msk.f32.mxu0 %vm21095_vm5, %v23566_v20  ;;  %20587 = vmatprep.subr.mxu0 %v23566_v20 }
0x26a0   :  { %20604 = vmatprep.mubr.msk.f32.mxu1 %vm21095_vm5, %v23566_v20  ;;  %20612 = vmatprep.subr.mxu1 %v23566_v20 }
0x26a1   :  { %20580 = vmatmul.mubr.f32.vlgmr.msra.gmra.mxu0 %v14826_v60  ;;  %20605 = vmatmul.mubr.f32.vlgmr.msra.gmra.mxu1 %v14822_v57 }
0x26a2   :  { %20588 = vmatpush3.xpose.msra.mxu0 %v14864_v37  ;;  %20589 = vmatprep.mubr.msk.f32.mxu0 %vm21095_vm5, %v23566_v20 }
0x26a3   :  { %20597 = vmatprep.subr.mxu0 %v23566_v20  ;;  %20614 = vmatprep.mubr.msk.f32.mxu1 %vm21095_vm5, %v23566_v20 }
0x26a5   :  { %20590 = vmatmul.mubr.f32.vlgmr.msra.gmra.mxu0 %v14823_v47 }
0x26a6   :  { %20598 = vmatpush3.xpose.msra.mxu0 %v14865_v44  ;;  %20599 = vmatprep.mubr.msk.f32.mxu0 %vm21095_vm5, %v23566_v20 }
0x26a7   :  { %20607 = vmatprep.subr.mxu0 %v23566_v20 }
0x26a9   :  { %20600 = vmatmul.mubr.f32.vlgmr.msra.gmra.mxu0 %v14822_v57 }
0x26aa   :  { %20609 = vmatprep.mubr.msk.f32.mxu0 %vm21095_vm5, %v23566_v20 }
0x274d   :  { %v14450_v62 = vpop.f32.mrf.mxu1 }
0x274f   :  { %v20556_v2 = vpop.f32.mrf.mxu1 }
0x2751   :  { %v14598_v4 = vpop.f32.mrf.mxu1 }
0x2753   :  { %v20566_v21 = vpop.f32.mrf.mxu1 }
0x2755   :  { %v14374_v59 = vpop.f32.mrf.mxu0  ;;  %v14744_v25 = vpop.f32.mrf.mxu1 }
0x2756   :  { %v14451_v18 = vadd.f32 %v14450_v62, %v14374_v59 }
0x2757   :  { %v20551_v3 = vpop.f32.mrf.mxu0  ;;  %v20576_v61 = vpop.f32.mrf.mxu1 }
0x2759   :  { %v14524_v6 = vpop.f32.mrf.mxu0  ;;  %v14904_v1 = vpop.f32.mrf.mxu1 }
0x275a   :  { %v14525_v63 = vadd.f32 %v14524_v6, %v14451_v18 }
0x275b   :  { %v20561_v0 = vpop.f32.mrf.mxu0  ;;  %v20586_v30 = vpop.f32.mrf.mxu1 }
0x275c   :  { %v14599_v31 = vadd.f32 %v14598_v4, %v14525_v63 }
0x275d   :  { %v14672_v32 = vpop.f32.mrf.mxu0  ;;  %v15052_v48 = vpop.f32.mrf.mxu1 }
0x275e   :  { %v14673_v26 = vadd.f32 %v14672_v32, %v14599_v31 }
0x275f   :  { %v20571_v56 = vpop.f32.mrf.mxu0  ;;  %v20596_v35 = vpop.f32.mrf.mxu1 }
0x2760   :  { %v22720_v46 = vadd.f32 %v14744_v25, %v14673_v26 }
0x2761   :  { %v14828_v17 = vpop.f32.mrf.mxu0  ;;  %v15198_v58 = vpop.f32.mrf.mxu1 }
0x2762   :  { %v14905_v55 = vadd.f32 %v14904_v1, %v14828_v17 }
0x2763   :  { %v20581_v45 = vpop.f32.mrf.mxu0  ;;  %v20606_v24 = vpop.f32.mrf.mxu1 }
0x2765   :  { %v14978_v50 = vpop.f32.mrf.mxu0 }
0x2766   :  { %v14979_v49 = vadd.f32 %v14978_v50, %v14905_v55 }
0x2767   :  { %v20591_v22 = vpop.f32.mrf.mxu0 }
0x2768   :  { %v15053_v15 = vadd.f32 %v15052_v48, %v14979_v49 }
0x2769   :  { %v15126_v28 = vpop.f32.mrf.mxu0 }
0x276a   :  { %v15127_v29 = vadd.f32 %v15126_v28, %v15053_v15 }
0x276b   :  { %v20601_v8 = vpop.f32.mrf.mxu0 }
0x276c   :  { %v15199_v33 = vadd.f32 %v15198_v58, %v15127_v29 }
0x276e   :  { %v15202_v36 = vmul.f32 0.35355338, %v15199_v33 }
0x2770   :  { %v15203_v37 = vsel %vm692_vm6, %v15202_v36, -inf }
0x2771   :  { %15204 = vmax.xlane.f32.xlu1 %v15203_v37 }
0x2782   :  { %15668 = vrot.lane.b32.xlu1 %v22451_v10, %s21099_s19 }
0x2786   :  { %15666 = vrot.lane.b32.xlu1 %v22451_v10, %s21100_s20 }
0x27fa   :  { %v15205_v38 = vpop.xlane.xlu1 %15204 }
0x27fb   :  { %v15206_v34 = vsub.f32 %v15202_v36, %v15205_v38 }
0x27fd   :  { %v15207_v39 = vmul.f32 1.442695, %v15206_v34 }
0x27fe   :  { %v15669_v13 = vpop.permute.xlu1 %15668 }
0x27ff   :  { %20923 = vpow2.f32 %v15207_v39  ;;  %v15672_v47 = vsel %vm692_vm6, %v15669_v13, 0 }
0x2800   :  { %v15705_v16 = vand.u32 4294901760, %v15672_v47 }
0x2802   :  { %v15782_v62 = vsub.f32 %v15672_v47, %v15705_v16  ;;  %v15667_v4 = vpop.permute.xlu1 %15666 }
0x2803   :  { %v15670_v18 = vsel %vm692_vm6, %v15667_v4, 0 }
0x2804   :  { %v15783_v25 = vand.u32 4294901760, %v15782_v62  ;;  %v15740_v61 = vand.u32 4294901760, %v15670_v18 }
0x2806   :  { %v15784_v1 = vsub.f32 %v15782_v62, %v15783_v25  ;;  %v15741_v0 = vsub.f32 %v15670_v18, %v15740_v61 }
0x2808   :  { %v15785_v31 = vand.u32 4294901760, %v15784_v1  ;;  %v15742_v32 = vand.u32 4294901760, %v15741_v0 }
0x280a   :  { %v15743_v48 = vsub.f32 %v15741_v0, %v15742_v32 }
0x280c   :  { %v20924_v40 = vpop.eup %20923  ;;  %v15744_v26 = vand.u32 4294901760, %v15743_v48 }
0x280d   :  { %v15209_v44 = vsel %vm692_vm6, %v20924_v40, 0.0 }
0x280e   :  { %15210 = vadd.xlane.f32.xlu0 %v15209_v44 }
0x2824   :  { %15214 = vrot.lane.b32.xlu0 %v22451_v10, %s21101_s21 }
0x2897   :  { %v15211_v52 = vpop.xlane.xlu0 %15210 }
0x2898   :  { %20925 = vrcp.f32 %v15211_v52 }
0x289b   :  { %v15215_v57 = vpop.permute.xlu0 %15214 }
0x289c   :  { %v15251_v11 = vand.u32 4294901760, %v15215_v57 }
0x289e   :  { %v15328_v42 = vsub.f32 %v15215_v57, %v15251_v11  ;;  %20608 = vmatpush3.msra.mxu0 %v15251_v11 }
0x289f   :  { %20617 = vmatprep.subr.mxu0 %v23566_v20 }
0x28a0   :  { %v15329_v27 = vand.u32 4294901760, %v15328_v42 }
0x28a2   :  { %v15330_v53 = vsub.f32 %v15328_v42, %v15329_v27 }
0x28a4   :  { %v15331_v54 = vand.u32 4294901760, %v15330_v53 }
0x28a5   :  { %v20926_v60 = vpop.eup %20925 }
0x28a6   :  { %v15213_v2 = vmul.f32 %v20926_v60, %v20924_v40  ;;  %20613 = vmatpush3.msra.mxu1 %v15331_v54 }
0x28a7   :  { %20622 = vmatprep.subr.mxu1 %v23566_v20 }
0x28a8   :  { %v15218_v21 = vsel %vm692_vm6, %v15213_v2, 0 }
0x28a9   :  { %v15286_v59 = vand.u32 4294901760, %v15218_v21 }
0x28ab   :  { %v15287_v3 = vsub.f32 %v15218_v21, %v15286_v59  ;;  %20615 = vmatmul.mubr.f32.vlgmr.msra.gmra.mxu1 %v15286_v59 }
0x28ac   :  { %20623 = vmatpush3.msra.mxu1 %v15251_v11  ;;  %20624 = vmatprep.mubr.msk.f32.mxu1 %vm21095_vm5, %v23566_v20 }
0x28ad   :  { %20632 = vmatprep.subr.mxu1 %v23566_v20  ;;  %v15288_v6 = vand.u32 4294901760, %v15287_v3 }
0x28af   :  { %20625 = vmatmul.mubr.f32.vlgmr.msra.gmra.mxu1 %v15288_v6  ;;  %v15289_v63 = vsub.f32 %v15287_v3, %v15288_v6 }
0x28b0   :  { %20633 = vmatpush3.msra.mxu1 %v15251_v11  ;;  %20634 = vmatprep.mubr.msk.f32.mxu1 %vm21095_vm5, %v23566_v20 }
0x28b1   :  { %20642 = vmatprep.subr.mxu1 %v23566_v20  ;;  %v15290_v30 = vand.u32 4294901760, %v15289_v63 }
0x28b3   :  { %20610 = vmatmul.mubr.f32.vlgmr.msra.gmra.mxu0 %v15290_v30  ;;  %20635 = vmatmul.mubr.f32.vlgmr.msra.gmra.mxu1 %v15286_v59 }
0x28b4   :  { %20618 = vmatpush3.msra.mxu0 %v15328_v42  ;;  %20643 = vmatpush3.xpose.msra.mxu1 %v15785_v31 }
0x28b5   :  { %20619 = vmatprep.mubr.msk.f32.mxu0 %vm21095_vm5, %v23566_v20  ;;  %20627 = vmatprep.subr.mxu0 %v23566_v20 }
0x28b6   :  { %20644 = vmatprep.mubr.msk.f32.mxu1 %vm21095_vm5, %v23566_v20  ;;  %20652 = vmatprep.subr.mxu1 %v23566_v20 }
0x28b7   :  { %20620 = vmatmul.mubr.f32.vlgmr.msra.gmra.mxu0 %v15287_v3  ;;  %20645 = vmatmul.mubr.f32.vlgmr.msra.gmra.mxu1 %v15740_v61 }
0x28b8   :  { %20628 = vmatpush3.msra.mxu0 %v15329_v27  ;;  %20653 = vmatpush3.xpose.msra.mxu1 %v15705_v16 }
0x28b9   :  { %20629 = vmatprep.mubr.msk.f32.mxu0 %vm21095_vm5, %v23566_v20  ;;  %20637 = vmatprep.subr.mxu0 %v23566_v20 }
0x28ba   :  { %20654 = vmatprep.mubr.msk.f32.mxu1 %vm21095_vm5, %v23566_v20  ;;  %20662 = vmatprep.subr.mxu1 %v23566_v20 }
0x28bb   :  { %20630 = vmatmul.mubr.f32.vlgmr.msra.gmra.mxu0 %v15286_v59  ;;  %20655 = vmatmul.mubr.f32.vlgmr.msra.gmra.mxu1 %v15742_v32 }
0x28bc   :  { %20638 = vmatpush3.xpose.msra.mxu0 %v15705_v16  ;;  %20663 = vmatpush3.xpose.msra.mxu1 %v15705_v16 }
0x28bd   :  { %20639 = vmatprep.mubr.msk.f32.mxu0 %vm21095_vm5, %v23566_v20  ;;  %20647 = vmatprep.subr.mxu0 %v23566_v20 }
0x28be   :  { %20664 = vmatprep.mubr.msk.f32.mxu1 %vm21095_vm5, %v23566_v20  ;;  %20672 = vmatprep.subr.mxu1 %v23566_v20 }
0x28bf   :  { %20640 = vmatmul.mubr.f32.vlgmr.msra.gmra.mxu0 %v15744_v26  ;;  %20665 = vmatmul.mubr.f32.vlgmr.msra.gmra.mxu1 %v15740_v61 }
0x28c0   :  { %20648 = vmatpush3.xpose.msra.mxu0 %v15782_v62  ;;  %20649 = vmatprep.mubr.msk.f32.mxu0 %vm21095_vm5, %v23566_v20 }
0x28c1   :  { %20657 = vmatprep.subr.mxu0 %v23566_v20  ;;  %20674 = vmatprep.mubr.msk.f32.mxu1 %vm21095_vm5, %v23566_v20 }
0x28c3   :  { %20650 = vmatmul.mubr.f32.vlgmr.msra.gmra.mxu0 %v15741_v0 }
0x28c4   :  { %20658 = vmatpush3.xpose.msra.mxu0 %v15783_v25  ;;  %20659 = vmatprep.mubr.msk.f32.mxu0 %vm21095_vm5, %v23566_v20 }
0x28c5   :  { %20667 = vmatprep.subr.mxu0 %v23566_v20 }
0x28c7   :  { %20660 = vmatmul.mubr.f32.vlgmr.msra.gmra.mxu0 %v15740_v61 }
0x28c8   :  { %20669 = vmatprep.mubr.msk.f32.mxu0 %vm21095_vm5, %v23566_v20 }
0x296b   :  { %v15368_v56 = vpop.f32.mrf.mxu1 }
0x296d   :  { %v20616_v35 = vpop.f32.mrf.mxu1 }
0x296f   :  { %v15516_v17 = vpop.f32.mrf.mxu1 }
0x2971   :  { %v20626_v58 = vpop.f32.mrf.mxu1 }
0x2973   :  { %v15292_v45 = vpop.f32.mrf.mxu0  ;;  %v15662_v24 = vpop.f32.mrf.mxu1 }
0x2974   :  { %v15369_v55 = vadd.f32 %v15368_v56, %v15292_v45 }
0x2975   :  { %v20611_v50 = vpop.f32.mrf.mxu0  ;;  %v20636_v49 = vpop.f32.mrf.mxu1 }
0x2977   :  { %v15442_v22 = vpop.f32.mrf.mxu0  ;;  %v15822_v15 = vpop.f32.mrf.mxu1 }
0x2978   :  { %v15443_v28 = vadd.f32 %v15442_v22, %v15369_v55 }
0x2979   :  { %v20621_v29 = vpop.f32.mrf.mxu0  ;;  %v20646_v8 = vpop.f32.mrf.mxu1 }
0x297a   :  { %v15517_v33 = vadd.f32 %v15516_v17, %v15443_v28 }
0x297b   :  { %v15590_v36 = vpop.f32.mrf.mxu0  ;;  %v15970_v37 = vpop.f32.mrf.mxu1 }
0x297c   :  { %v15591_v38 = vadd.f32 %v15590_v36, %v15517_v33 }
0x297d   :  { %v20631_v34 = vpop.f32.mrf.mxu0  ;;  %v20656_v39 = vpop.f32.mrf.mxu1 }
0x297e   :  { %v22769_v40 = vadd.f32 %v15662_v24, %v15591_v38 }
0x297f   :  { %v15746_v44 = vpop.f32.mrf.mxu0  ;;  %v16116_v52 = vpop.f32.mrf.mxu1 }
0x2980   :  { %v15823_v11 = vadd.f32 %v15822_v15, %v15746_v44 }
0x2981   :  { %v20641_v57 = vpop.f32.mrf.mxu0  ;;  %v20666_v13 = vpop.f32.mrf.mxu1 }
0x2983   :  { %v15896_v42 = vpop.f32.mrf.mxu0 }
0x2984   :  { %v15897_v47 = vadd.f32 %v15896_v42, %v15823_v11 }
0x2985   :  { %v20651_v27 = vpop.f32.mrf.mxu0 }
0x2986   :  { %v15971_v16 = vadd.f32 %v15970_v37, %v15897_v47 }
0x2987   :  { %v16044_v53 = vpop.f32.mrf.mxu0 }
0x2988   :  { %v16045_v54 = vadd.f32 %v16044_v53, %v15971_v16 }
0x2989   :  { %v20661_v60 = vpop.f32.mrf.mxu0 }
0x298a   :  { %v16117_v62 = vadd.f32 %v16116_v52, %v16045_v54 }
0x298c   :  { %v16120_v2 = vmul.f32 0.35355338, %v16117_v62 }
0x298e   :  { %v16121_v4 = vsel %vm692_vm6, %v16120_v2, -inf }
0x298f   :  { %16122 = vmax.xlane.f32.xlu0 %v16121_v4 }
0x29a5   :  { %16132 = vrot.lane.b32.xlu0 %v22451_v10, %s21102_s22 }
0x29a9   :  { %16584 = vrot.lane.b32.xlu0 %v22451_v10, %s21103_s25 }
0x2a18   :  { %v16123_v21 = vpop.xlane.xlu0 %16122 }
0x2a19   :  { %v16124_v59 = vsub.f32 %v16120_v2, %v16123_v21 }
0x2a1b   :  { %v16125_v25 = vmul.f32 1.442695, %v16124_v59 }
0x2a1c   :  { %v16133_v18 = vpop.permute.xlu0 %16132 }
0x2a1d   :  { %20927 = vpow2.f32 %v16125_v25  ;;  %v16169_v3 = vand.u32 4294901760, %v16133_v18 }
0x2a1f   :  { %v16246_v61 = vsub.f32 %v16133_v18, %v16169_v3  ;;  %20668 = vmatpush3.msra.mxu0 %v16169_v3 }
0x2a20   :  { %20677 = vmatprep.subr.mxu0 %v23566_v20  ;;  %v16585_v58 = vpop.permute.xlu0 %16584 }
0x2a21   :  { %v16247_v6 = vand.u32 4294901760, %v16246_v61  ;;  %v16588_v55 = vsel %vm692_vm6, %v16585_v58, 0 }
0x2a22   :  { %v16658_v22 = vand.u32 4294901760, %v16588_v55 }
0x2a23   :  { %v16248_v1 = vsub.f32 %v16246_v61, %v16247_v6 }
0x2a24   :  { %v16659_v8 = vsub.f32 %v16588_v55, %v16658_v22 }
0x2a25   :  { %v16249_v63 = vand.u32 4294901760, %v16248_v1 }
0x2a26   :  { %v16660_v37 = vand.u32 4294901760, %v16659_v8 }
0x2a27   :  { %20673 = vmatpush3.msra.mxu1 %v16249_v63 }
0x2a28   :  { %20682 = vmatprep.subr.mxu1 %v23566_v20  ;;  %v16661_v38 = vsub.f32 %v16659_v8, %v16660_v37 }
0x2a2a   :  { %v20928_v0 = vpop.eup %20927  ;;  %v16662_v34 = vand.u32 4294901760, %v16661_v38 }
0x2a2b   :  { %v16127_v30 = vsel %vm692_vm6, %v20928_v0, 0.0 }
0x2a2c   :  { %16128 = vadd.xlane.f32.xlu1 %v16127_v30 }
0x2a3d   :  { %16586 = vrot.lane.b32.xlu1 %v22451_v10, %s21104_s26 }
0x2ab5   :  { %v16129_v31 = vpop.xlane.xlu1 %16128 }
0x2ab6   :  { %20929 = vrcp.f32 %v16129_v31 }
0x2ab9   :  { %v16587_v32 = vpop.permute.xlu1 %16586 }
0x2aba   :  { %v16590_v48 = vsel %vm692_vm6, %v16587_v32, 0 }
0x2abb   :  { %v16623_v26 = vand.u32 4294901760, %v16590_v48 }
0x2abd   :  { %v16700_v17 = vsub.f32 %v16590_v48, %v16623_v26 }
0x2abf   :  { %v16701_v50 = vand.u32 4294901760, %v16700_v17 }
0x2ac1   :  { %v16702_v28 = vsub.f32 %v16700_v17, %v16701_v50 }
0x2ac3   :  { %v20930_v56 = vpop.eup %20929  ;;  %v16703_v36 = vand.u32 4294901760, %v16702_v28 }
0x2ac4   :  { %v16131_v35 = vmul.f32 %v20930_v56, %v20928_v0 }
0x2ac6   :  { %v16136_v45 = vsel %vm692_vm6, %v16131_v35, 0 }
0x2ac7   :  { %v16204_v24 = vand.u32 4294901760, %v16136_v45 }
0x2ac9   :  { %v16205_v49 = vsub.f32 %v16136_v45, %v16204_v24  ;;  %20675 = vmatmul.mubr.f32.vlgmr.msra.gmra.mxu1 %v16204_v24 }
0x2aca   :  { %20683 = vmatpush3.msra.mxu1 %v16169_v3  ;;  %20684 = vmatprep.mubr.msk.f32.mxu1 %vm21095_vm5, %v23566_v20 }
0x2acb   :  { %20692 = vmatprep.subr.mxu1 %v23566_v20  ;;  %v16206_v15 = vand.u32 4294901760, %v16205_v49 }
0x2acd   :  { %20685 = vmatmul.mubr.f32.vlgmr.msra.gmra.mxu1 %v16206_v15  ;;  %v16207_v29 = vsub.f32 %v16205_v49, %v16206_v15 }
0x2ace   :  { %20693 = vmatpush3.msra.mxu1 %v16169_v3  ;;  %20694 = vmatprep.mubr.msk.f32.mxu1 %vm21095_vm5, %v23566_v20 }
0x2acf   :  { %20702 = vmatprep.subr.mxu1 %v23566_v20  ;;  %v16208_v33 = vand.u32 4294901760, %v16207_v29 }
0x2ad1   :  { %20670 = vmatmul.mubr.f32.vlgmr.msra.gmra.mxu0 %v16208_v33  ;;  %20695 = vmatmul.mubr.f32.vlgmr.msra.gmra.mxu1 %v16204_v24 }
0x2ad2   :  { %20678 = vmatpush3.msra.mxu0 %v16246_v61  ;;  %20703 = vmatpush3.xpose.msra.mxu1 %v16703_v36 }
0x2ad3   :  { %20679 = vmatprep.mubr.msk.f32.mxu0 %vm21095_vm5, %v23566_v20  ;;  %20687 = vmatprep.subr.mxu0 %v23566_v20 }
0x2ad4   :  { %20704 = vmatprep.mubr.msk.f32.mxu1 %vm21095_vm5, %v23566_v20  ;;  %20712 = vmatprep.subr.mxu1 %v23566_v20 }
0x2ad5   :  { %20680 = vmatmul.mubr.f32.vlgmr.msra.gmra.mxu0 %v16205_v49  ;;  %20705 = vmatmul.mubr.f32.vlgmr.msra.gmra.mxu1 %v16658_v22 }
0x2ad6   :  { %20688 = vmatpush3.msra.mxu0 %v16247_v6  ;;  %20713 = vmatpush3.xpose.msra.mxu1 %v16623_v26 }
0x2ad7   :  { %20689 = vmatprep.mubr.msk.f32.mxu0 %vm21095_vm5, %v23566_v20  ;;  %20697 = vmatprep.subr.mxu0 %v23566_v20 }
0x2ad8   :  { %20714 = vmatprep.mubr.msk.f32.mxu1 %vm21095_vm5, %v23566_v20  ;;  %20722 = vmatprep.subr.mxu1 %v23566_v20 }
0x2ad9   :  { %20690 = vmatmul.mubr.f32.vlgmr.msra.gmra.mxu0 %v16204_v24  ;;  %20715 = vmatmul.mubr.f32.vlgmr.msra.gmra.mxu1 %v16660_v37 }
0x2ada   :  { %20698 = vmatpush3.xpose.msra.mxu0 %v16623_v26  ;;  %20723 = vmatpush3.xpose.msra.mxu1 %v16623_v26 }
0x2adb   :  { %20699 = vmatprep.mubr.msk.f32.mxu0 %vm21095_vm5, %v23566_v20  ;;  %20707 = vmatprep.subr.mxu0 %v23566_v20 }
0x2adc   :  { %20724 = vmatprep.mubr.msk.f32.mxu1 %vm21095_vm5, %v23566_v20  ;;  %20732 = vmatprep.subr.mxu1 %v23566_v20 }
0x2add   :  { %20700 = vmatmul.mubr.f32.vlgmr.msra.gmra.mxu0 %v16662_v34  ;;  %20725 = vmatmul.mubr.f32.vlgmr.msra.gmra.mxu1 %v16658_v22 }
0x2ade   :  { %20708 = vmatpush3.xpose.msra.mxu0 %v16700_v17  ;;  %20709 = vmatprep.mubr.msk.f32.mxu0 %vm21095_vm5, %v23566_v20 }
0x2adf   :  { %20717 = vmatprep.subr.mxu0 %v23566_v20  ;;  %20734 = vmatprep.mubr.msk.f32.mxu1 %vm21095_vm5, %v23566_v20 }
0x2ae1   :  { %20710 = vmatmul.mubr.f32.vlgmr.msra.gmra.mxu0 %v16659_v8 }
0x2ae2   :  { %20718 = vmatpush3.xpose.msra.mxu0 %v16701_v50  ;;  %20719 = vmatprep.mubr.msk.f32.mxu0 %vm21095_vm5, %v23566_v20 }
0x2ae3   :  { %20727 = vmatprep.subr.mxu0 %v23566_v20 }
0x2ae5   :  { %20720 = vmatmul.mubr.f32.vlgmr.msra.gmra.mxu0 %v16658_v22 }
0x2ae6   :  { %20729 = vmatprep.mubr.msk.f32.mxu0 %vm21095_vm5, %v23566_v20 }
0x2b89   :  { %v16286_v39 = vpop.f32.mrf.mxu1 }
0x2b8b   :  { %v20676_v44 = vpop.f32.mrf.mxu1 }
0x2b8d   :  { %v16434_v52 = vpop.f32.mrf.mxu1 }
0x2b8f   :  { %v20686_v57 = vpop.f32.mrf.mxu1 }
0x2b91   :  { %v16210_v13 = vpop.f32.mrf.mxu0  ;;  %v16580_v11 = vpop.f32.mrf.mxu1 }
0x2b92   :  { %v16287_v42 = vadd.f32 %v16286_v39, %v16210_v13 }
0x2b93   :  { %v20671_v47 = vpop.f32.mrf.mxu0  ;;  %v20696_v27 = vpop.f32.mrf.mxu1 }
0x2b95   :  { %v16360_v16 = vpop.f32.mrf.mxu0  ;;  %v16740_v53 = vpop.f32.mrf.mxu1 }
0x2b96   :  { %v16361_v54 = vadd.f32 %v16360_v16, %v16287_v42 }
0x2b97   :  { %v20681_v60 = vpop.f32.mrf.mxu0  ;;  %v20706_v62 = vpop.f32.mrf.mxu1 }
0x2b98   :  { %v16435_v2 = vadd.f32 %v16434_v52, %v16361_v54  ;;  %v17521_v54 = vld [vmem:[#allocation7 + $0x38] sm:$0xff]  ;;  %v17520_v60 = vld [vmem:[#allocation7 + $0x30] sm:$0xff]  ;;  %v17519_v62 = vld [vmem:[#allocation7 + $0x28] sm:$0xff] }
0x2b99   :  { %v16508_v4 = vpop.f32.mrf.mxu0  ;;  %v16888_v21 = vpop.f32.mrf.mxu1 }
0x2b9a   :  { %v16509_v59 = vadd.f32 %v16508_v4, %v16435_v2  ;;  %v22861_v2 = vand.u32 4294901760, %v17521_v54  ;;  %v22863_v4 = vand.u32 4294901760, %v17520_v60 }
0x2b9b   :  { %v20691_v25 = vpop.f32.mrf.mxu0  ;;  %v20716_v18 = vpop.f32.mrf.mxu1 }
0x2b9c   :  { %v16581_v3 = vadd.f32 %v16580_v11, %v16509_v59  ;;  %v22868_v59 = vsub.f32 %v17521_v54, %v22861_v2  ;;  %v22871_v25 = vsub.f32 %v17520_v60, %v22863_v4 }
0x2b9d   :  { %v16664_v61 = vpop.f32.mrf.mxu0  ;;  %v17034_v6 = vpop.f32.mrf.mxu1 }
0x2b9e   :  { %v16741_v0 = vadd.f32 %v16740_v53, %v16664_v61  ;;  %v22882_v61 = vand.u32 4294901760, %v22871_v25 }
0x2b9f   :  { %v20701_v1 = vpop.f32.mrf.mxu0  ;;  %v20726_v63 = vpop.f32.mrf.mxu1 }
0x2ba0   :  { %v17655_v63 = vsub.f32 %v22871_v25, %v22882_v61 }
0x2ba1   :  { %v16814_v30 = vpop.f32.mrf.mxu0 }
0x2ba2   :  { %v16815_v31 = vadd.f32 %v16814_v30, %v16741_v0 }
0x2ba3   :  { %v20711_v32 = vpop.f32.mrf.mxu0 }
0x2ba4   :  { %v16889_v48 = vadd.f32 %v16888_v21, %v16815_v31  ;;  %v22865_v21 = vand.u32 4294901760, %v17519_v62  ;;  %v17656_v31 = vand.u32 4294901760, %v17655_v63 }
0x2ba5   :  { %v16962_v26 = vpop.f32.mrf.mxu0 }
0x2ba6   :  { %v16963_v56 = vadd.f32 %v16962_v26, %v16889_v48  ;;  %v22874_v18 = vsub.f32 %v17519_v62, %v22865_v21  ;;  %v17518_v48 = vld [vmem:[#allocation7 + $0x20] sm:$0xff] }
0x2ba7   :  { %v20721_v35 = vpop.f32.mrf.mxu0 }
0x2ba8   :  { %v17035_v17 = vadd.f32 %v17034_v6, %v16963_v56  ;;  %v22885_v6 = vand.u32 4294901760, %v22874_v18  ;;  %v22897_v56 = vand.u32 4294901760, %v17518_v48 }
0x2baa   :  { %v17038_v58 = vmul.f32 0.35355338, %v17035_v17  ;;  %v17662_v0 = vsub.f32 %v22874_v18, %v22885_v6  ;;  %v22900_v17 = vsub.f32 %v17518_v48, %v22897_v56 }
0x2bac   :  { %v17039_v45 = vsel %vm692_vm6, %v17038_v58, -inf  ;;  %v17663_v32 = vand.u32 4294901760, %v17662_v0 }
0x2bad   :  { %17040 = vmax.xlane.f32.xlu1 %v17039_v45  ;;  %v22905_v45 = vand.u32 4294901760, %v22900_v17 }
0x2bbe   :  { %13817 = vrot.lane.b32.xlu1 %v22574_v23, %s21089_s24 }
0x2bc2   :  { %13821 = vrot.lane.b32.xlu1 %v22623_v41, %s21106_s28 }
0x2bc6   :  { %13825 = vrot.lane.b32.xlu1 %v22671_v7, %s21107_s29 }
0x2c36   :  { %v17041_v24 = vpop.xlane.xlu1 %17040 }
0x2c37   :  { %v17042_v55 = vsub.f32 %v17038_v58, %v17041_v24 }
0x2c39   :  { %v17043_v50 = vmul.f32 1.442695, %v17042_v55  ;;  %v17669_v55 = vsub.f32 %v22900_v17, %v22905_v45 }
0x2c3a   :  { %v13818_v23 = vpop.permute.xlu1 %13817 }
0x2c3b   :  { %20931 = vpow2.f32 %v17043_v50 }
0x2c3e   :  { %v13822_v7 = vpop.permute.xlu1 %13821 }
0x2c48   :  { %v20932_v49 = vpop.eup %20931 }
0x2c49   :  { %v17045_v22 = vsel %vm692_vm6, %v20932_v49, 0.0 }
0x2c4a   :  { %17046 = vadd.xlane.f32.xlu0 %v17045_v22  ;;  %v17670_v22 = vand.u32 4294901760, %v17669_v55 }
0x2c60   :  { %17050 = vrot.lane.b32.xlu0 %v22451_v10, %s21105_s27  ;;  %v13826_v10 = vpop.permute.xlu1 %13825 }
0x2c64   :  { %17503 = vrot.lane.b32.xlu0 %v22769_v40, %s21089_s24  ;;  %v13828_v40 = vsel %vm692_vm6, %v22525_v19, %v13818_v23 }
0x2c65   :  { %v13829_v36 = vsel %vm4374_vm7, %v13828_v40, %v13822_v7 }
0x2c68   :  { %17507 = vrot.lane.b32.xlu0 %v16581_v3, %s21106_s28  ;;  %v22879_v3 = vand.u32 4294901760, %v22868_v59 }
0x2c6a   :  { %v17648_v1 = vsub.f32 %v22868_v59, %v22879_v3 }
0x2c6c   :  { %17522 = vrot.lane.b32.xlu0 %v22340_v9, %s21098_s18  ;;  %v13830_v9 = vsel %vm4376_vm8, %v13829_v36, %v13826_v10  ;;  %v17649_v30 = vand.u32 4294901760, %v17648_v1 }
0x2c6d   :  { %v17526_v39 = vsel %vm93_vm0, %v13830_v9, 0 }
0x2c6e   :  { %v22841_v57 = vand.u32 4294901760, %v17526_v39 }
0x2c70   :  { %v22847_v11 = vsub.f32 %v17526_v39, %v22841_v57 }
0x2c72   :  { %v17602_v27 = vand.u32 4294901760, %v22847_v11 }
0x2c74   :  { %v17603_v16 = vsub.f32 %v22847_v11, %v17602_v27 }
0x2c76   :  { %v17604_v53 = vand.u32 4294901760, %v17603_v16 }
0x2cd3   :  { %v17047_v41 = vpop.xlane.xlu0 %17046 }
0x2cd4   :  { %20933 = vrcp.f32 %v17047_v41 }
0x2cd7   :  { %v17051_v15 = vpop.permute.xlu0 %17050 }
0x2cd8   :  { %v17087_v28 = vand.u32 4294901760, %v17051_v15 }
0x2cda   :  { %v17164_v29 = vsub.f32 %v17051_v15, %v17087_v28  ;;  %20728 = vmatpush3.msra.mxu0 %v17087_v28 }
0x2cdb   :  { %20737 = vmatprep.subr.mxu0 %v23566_v20  ;;  %v17504_v9 = vpop.permute.xlu0 %17503 }
0x2cdc   :  { %v17165_v8 = vand.u32 4294901760, %v17164_v29 }
0x2cde   :  { %v17166_v33 = vsub.f32 %v17164_v29, %v17165_v8 }
0x2ce0   :  { %v17167_v37 = vand.u32 4294901760, %v17166_v33 }
0x2ce1   :  { %v20934_v38 = vpop.eup %20933 }
0x2ce2   :  { %v17049_v34 = vmul.f32 %v20934_v38, %v20932_v49  ;;  %20733 = vmatpush3.msra.mxu1 %v17167_v37  ;;  %v17508_v37 = vpop.permute.xlu0 %17507  ;;  %v17514_v38 = vsel %vm692_vm6, %v22720_v46, %v17504_v9  ;;  %v18188_v9 = vld [vmem:[#allocation8 + $0x100] sm:$0xff] }
0x2ce3   :  { %20742 = vmatprep.subr.mxu1 %v23566_v20 }
0x2ce4   :  { %v17054_v44 = vsel %vm692_vm6, %v17049_v34, 0  ;;  %v17515_v34 = vsel %vm4374_vm7, %v17514_v38, %v17508_v37  ;;  %v18187_v37 = vld [vmem:[#allocation8 + $0xf8] sm:$0xff]  ;;  %v18186_v38 = vld [vmem:[#allocation8 + $0xf0] sm:$0xff] }
0x2ce5   :  { %v17122_v52 = vand.u32 4294901760, %v17054_v44 }
0x2ce7   :  { %v17123_v13 = vsub.f32 %v17054_v44, %v17122_v52  ;;  %20735 = vmatmul.mubr.f32.vlgmr.msra.gmra.mxu1 %v17122_v52 }
0x2ce8   :  { %20743 = vmatpush3.msra.mxu1 %v17087_v28  ;;  %20744 = vmatprep.mubr.msk.f32.mxu1 %vm21095_vm5, %v23566_v20 }
0x2ce9   :  { %20752 = vmatprep.subr.mxu1 %v23566_v20  ;;  %v17124_v19 = vand.u32 4294901760, %v17123_v13 }
0x2ceb   :  { %20745 = vmatmul.mubr.f32.vlgmr.msra.gmra.mxu1 %v17124_v19  ;;  %v17125_v42 = vsub.f32 %v17123_v13, %v17124_v19 }
0x2cec   :  { %20753 = vmatpush3.msra.mxu1 %v17087_v28  ;;  %20754 = vmatprep.mubr.msk.f32.mxu1 %vm21095_vm5, %v23566_v20 }
0x2ced   :  { %v17126_v47 = vand.u32 4294901760, %v17125_v42  ;;  %20768 = vmatprep.subr.mxu1 %v17649_v30 }
0x2cef   :  { %20730 = vmatmul.mubr.f32.vlgmr.msra.gmra.mxu0 %v17126_v47  ;;  %20755 = vmatmul.mubr.f32.vlgmr.msra.gmra.mxu1 %v17122_v52 }
0x2cf0   :  { %20738 = vmatpush3.msra.mxu0 %v17164_v29  ;;  %20776 = vmatprep.mubr.f32.mxu1 %v22841_v57 }
0x2cf1   :  { %20739 = vmatprep.mubr.msk.f32.mxu0 %vm21095_vm5, %v23566_v20  ;;  %20747 = vmatprep.subr.mxu0 %v23566_v20 }
0x2cf2   :  { %20769 = vmatpush3.msra.mxu1 %v17649_v30 }
0x2cf3   :  { %20740 = vmatmul.mubr.f32.vlgmr.msra.gmra.mxu0 %v17123_v13  ;;  %20770 = vmatprep.subr.mxu1 %v17656_v31 }
0x2cf4   :  { %20748 = vmatpush3.msra.mxu0 %v17165_v8  ;;  %20749 = vmatprep.mubr.msk.f32.mxu0 %vm21095_vm5, %v23566_v20 }
0x2cf5   :  { %20757 = vmatprep.subr.mxu0 %v22861_v2  ;;  %20771 = vmatpush3.msra.mxu1 %v17656_v31 }
0x2cf6   :  { %20772 = vmatprep.subr.mxu1 %v17663_v32 }
0x2cf7   :  { %20750 = vmatmul.mubr.f32.vlgmr.msra.gmra.mxu0 %v17122_v52  ;;  %20773 = vmatpush3.msra.mxu1 %v17663_v32 }
0x2cf8   :  { %20765 = vmatprep.mubr.f32.mxu0 %v17604_v53  ;;  %20758 = vmatpush3.msra.mxu0 %v22861_v2 }
0x2cf9   :  { %20759 = vmatprep.subr.mxu0 %v22863_v4  ;;  %20774 = vmatprep.subr.mxu1 %v17670_v22 }
0x2cfa   :  { %20760 = vmatpush3.msra.mxu0 %v22863_v4  ;;  %20775 = vmatpush3.msra.mxu1 %v17670_v22 }
0x2cfb   :  { %20761 = vmatprep.subr.mxu0 %v22865_v21  ;;  %20790 = vmatprep.subr.mxu1 %v22861_v2 }
0x2cfc   :  { %20762 = vmatpush3.msra.mxu0 %v22865_v21 }
0x2cfd   :  { %20763 = vmatprep.subr.mxu0 %v22897_v56 }
0x2cfe   :  { %20764 = vmatpush3.msra.mxu0 %v22897_v56 }
0x2cff   :  { %20779 = vmatprep.subr.mxu0 %v22868_v59 }
0x2da7   :  { %v17204_v26 = vpop.f32.mrf.mxu1 }
0x2da9   :  { %v20736_v35 = vpop.f32.mrf.mxu1 }
0x2dab   :  { %v17352_v58 = vpop.f32.mrf.mxu1 }
0x2dad   :  { %v20746_v24 = vpop.f32.mrf.mxu1 }
0x2dae   :  { %v23591_v24 = vsub.s32 4, %v21172_v5 }
0x2daf   :  { %v17128_v50 = vpop.f32.mrf.mxu0  ;;  %v17498_v49 = vpop.f32.mrf.mxu1 }
0x2db0   :  { %v17205_v7 = vadd.f32 %v17204_v26, %v17128_v50 }
0x2db1   :  { %v20731_v23 = vpop.f32.mrf.mxu0  ;;  %v20756_v41 = vpop.f32.mrf.mxu1 }
0x2db3   :  { %v17278_v15 = vpop.f32.mrf.mxu0 }
0x2db4   :  { %v17279_v28 = vadd.f32 %v17278_v15, %v17205_v7 }
0x2db5   :  { %v20741_v29 = vpop.f32.mrf.mxu0 }
0x2db6   :  { %v17353_v8 = vadd.f32 %v17352_v58, %v17279_v28  ;;  %v18191_v29 = vld [vmem:[#allocation8 + $0x118] sm:$0xff] }
0x2db7   :  { %v17426_v10 = vpop.f32.mrf.mxu0 }
0x2db8   :  { %v17427_v40 = vadd.f32 %v17426_v10, %v17353_v8  ;;  %v18190_v8 = vld [vmem:[#allocation8 + $0x110] sm:$0xff]  ;;  %v18189_v10 = vld [vmem:[#allocation8 + $0x108] sm:$0xff] }
0x2db9   :  { %v20751_v33 = vpop.f32.mrf.mxu0 }
0x2dba   :  { %v17499_v36 = vadd.f32 %v17498_v49, %v17427_v40  ;;  %v22982_v40 = vand.u32 4294901760, %v18191_v29  ;;  %v22984_v33 = vand.u32 4294901760, %v18190_v8 }
0x2dbc   :  { %17511 = vrot.lane.b32.xlu1 %v17499_v36, %s21107_s29  ;;  %v22986_v36 = vand.u32 4294901760, %v18189_v10 }
0x2e2e   :  { %v17512_v39 = vpop.permute.xlu1 %17511 }
0x2e2f   :  { %v17516_v44 = vsel %vm4376_vm8, %v17515_v34, %v17512_v39  ;;  %v22988_v34 = vand.u32 4294901760, %v18188_v9  ;;  %v22990_v39 = vand.u32 4294901760, %v18187_v37 }
0x2e30   :  { %v17529_v52 = vsel %vm93_vm0, %v17516_v44, 0  ;;  %v22992_v44 = vand.u32 4294901760, %v18186_v38 }
0x2e31   :  { %v17610_v13 = vand.u32 4294901760, %v17529_v52 }
0x2e33   :  { %v17611_v19 = vsub.f32 %v17529_v52, %v17610_v13  ;;  %20777 = vmatmul.mubr.f32.vlgmr.msra.gmra.mxu1 %v17610_v13  ;;  %v18185_v52 = vld [vmem:[#allocation8 + $0xe8] sm:$0xff] }
0x2e34   :  { %20791 = vmatpush3.msra.mxu1 %v22861_v2  ;;  %20798 = vmatprep.mubr.f32.mxu1 %v17602_v27  ;;  %v17523_v27 = vpop.permute.xlu0 %17522 }
0x2e35   :  { %v17612_v42 = vand.u32 4294901760, %v17611_v19  ;;  %20792 = vmatprep.subr.mxu1 %v22863_v4 }
0x2e36   :  { %20793 = vmatpush3.msra.mxu1 %v22863_v4 }
0x2e37   :  { %v17613_v46 = vsub.f32 %v17611_v19, %v17612_v42  ;;  %20794 = vmatprep.subr.mxu1 %v22865_v21 }
0x2e38   :  { %20795 = vmatpush3.msra.mxu1 %v22865_v21 }
0x2e39   :  { %v17614_v47 = vand.u32 4294901760, %v17613_v46  ;;  %20796 = vmatprep.subr.mxu1 %v22897_v56  ;;  %v23001_v46 = vsub.f32 %v18189_v10, %v22986_v36 }
0x2e3a   :  { %20797 = vmatpush3.msra.mxu1 %v22897_v56 }
0x2e3b   :  { %20799 = vmatmul.mubr.f32.vlgmr.msra.gmra.mxu1 %v17612_v42  ;;  %20812 = vmatprep.subr.mxu1 %v22861_v2  ;;  %v22998_v42 = vsub.f32 %v18190_v8, %v22984_v33 }
0x2e3c   :  { %20766 = vmatmul.mubr.f32.vlgmr.msra.gmra.mxu0 %v17614_v47  ;;  %20813 = vmatpush3.msra.mxu1 %v22861_v2  ;;  %v23004_v47 = vand.u32 4294901760, %v18185_v52 }
0x2e3d   :  { %20780 = vmatpush3.msra.mxu0 %v22868_v59  ;;  %20820 = vmatprep.mubr.f32.mxu1 %v22841_v57 }
0x2e3e   :  { %20781 = vmatprep.subr.mxu0 %v22871_v25  ;;  %20787 = vmatprep.mubr.f32.mxu0 %v22847_v11 }
0x2e3f   :  { %20814 = vmatprep.subr.mxu1 %v22863_v4  ;;  %20782 = vmatpush3.msra.mxu0 %v22871_v25 }
0x2e40   :  { %20815 = vmatpush3.msra.mxu1 %v22863_v4  ;;  %20783 = vmatprep.subr.mxu0 %v22874_v18 }
0x2e41   :  { %20816 = vmatprep.subr.mxu1 %v22865_v21  ;;  %20784 = vmatpush3.msra.mxu0 %v22874_v18 }
0x2e42   :  { %20817 = vmatpush3.msra.mxu1 %v22865_v21  ;;  %20785 = vmatprep.subr.mxu0 %v22900_v17 }
0x2e43   :  { %20818 = vmatprep.subr.mxu1 %v22897_v56  ;;  %20786 = vmatpush3.msra.mxu0 %v22900_v17 }
0x2e44   :  { %20819 = vmatpush3.msra.mxu1 %v22897_v56  ;;  %20788 = vmatmul.mubr.f32.vlgmr.msra.gmra.mxu0 %v17611_v19  ;;  %v22995_v19 = vsub.f32 %v18191_v29, %v22982_v40 }
0x2e45   :  { %20801 = vmatprep.subr.mxu0 %v22879_v3  ;;  %20821 = vmatmul.mubr.f32.vlgmr.msra.gmra.mxu1 %v17610_v13 }
0x2e46   :  { %20802 = vmatpush3.msra.mxu0 %v22879_v3  ;;  %20809 = vmatprep.mubr.f32.mxu0 %v22841_v57 }
0x2e47   :  { %20803 = vmatprep.subr.mxu0 %v22882_v61  ;;  %18315 = vmatprep.subr.mxu1 %v23566_v20 }
0x2e48   :  { %20804 = vmatpush3.msra.mxu0 %v22882_v61 }
0x2e49   :  { %20805 = vmatprep.subr.mxu0 %v22885_v6 }
0x2e4a   :  { %20806 = vmatpush3.msra.mxu0 %v22885_v6 }
0x2e4b   :  { %20807 = vmatprep.subr.mxu0 %v22905_v45 }
0x2e4c   :  { %20808 = vmatpush3.msra.mxu0 %v22905_v45  ;;  %v20955_v45 = vld [vmem:[#allocation10 + $0x8] sm:$0xff] }
0x2e4d   :  { %20810 = vmatmul.mubr.f32.vlgmr.msra.gmra.mxu0 %v17610_v13  ;;  %18200 = vmatprep.subr.mxu0 %v23566_v20  ;;  %v22966_v55 = vrot.slane %v20955_v45, %v23591_v24  ;;  %v18184_v13 = vld [vmem:[#allocation8 + $0xe0] sm:$0xff] }
0x2e4e   :  { %18202 = vmatpush1.msra.mxu0 %v22982_v40 }
0x2e4f   :  { %18203 = vmatprep.subr.mxu0 %v23566_v20 }
0x2e50   :  { %18205 = vmatpush1.msra.mxu0 %v22984_v33 }
0x2e51   :  { %18206 = vmatprep.subr.mxu0 %v23566_v20 }
0x2e52   :  { %18208 = vmatpush1.msra.mxu0 %v22986_v36 }
0x2e53   :  { %18209 = vmatprep.subr.mxu0 %v23566_v20 }
0x2e54   :  { %18211 = vmatpush1.msra.mxu0 %v22988_v34 }
0x2e55   :  { %18212 = vmatprep.subr.mxu0 %v23566_v20 }
0x2e56   :  { %18214 = vmatpush1.msra.mxu0 %v22990_v39 }
0x2e57   :  { %18215 = vmatprep.subr.mxu0 %v23566_v20 }
0x2e58   :  { %18217 = vmatpush1.msra.mxu0 %v22992_v44 }
0x2e59   :  { %18218 = vmatprep.subr.mxu0 %v23566_v20 }
0x2e5a   :  { %18220 = vmatpush1.msra.mxu0 %v23004_v47 }
0x2e5b   :  { %18221 = vmatprep.subr.mxu0 %v23566_v20 }
0x2ef3   :  { %v20778_v57 = vpop.f32.mrf.mxu1 }
0x2ef5   :  { %v17707_v62 = vpop.f32.mrf.mxu1 }
0x2efb   :  { %v20800_v4 = vpop.f32.mrf.mxu1 }
0x2efc   :  { %v20767_v11 = vpop.f32.mrf.mxu0 }
0x2efd   :  { %v17617_v53 = vadd.f32 %v20767_v11, %v17523_v27  ;;  %v17877_v3 = vpop.f32.mrf.mxu1  ;;  %v23007_v11 = vsub.f32 %v18188_v9, %v22988_v34 }
0x2efe   :  { %v17606_v16 = vpop.f32.mrf.mxu0 }
0x2eff   :  { %v17607_v54 = vadd.f32 %v17606_v16, %v17523_v27  ;;  %v17714_v2 = vadd.f32 %v20778_v57, %v17617_v53  ;;  %v23010_v27 = vsub.f32 %v18187_v37, %v22990_v39  ;;  %v23014_v57 = vsub.f32 %v18186_v38, %v22992_v44  ;;  %v18177_v37 = vld [vmem:[#allocation8 + $0xa8] sm:$0xff] }
0x2f00   :  { %v23016_v16 = vand.u32 4294901760, %v18184_v13  ;;  %v23563_v53 = vand.u32 4294901760, %v22995_v19 }
0x2f01   :  { %v17708_v25 = vadd.f32 %v17707_v62, %v17607_v54  ;;  %v23562_v54 = vand.u32 4294901760, %v22998_v42  ;;  %v23559_v62 = vand.u32 4294901760, %v23007_v11 }
0x2f02   :  { %18223 = vmatpush1.msra.mxu0 %v23016_v16 }
0x2f03   :  { %18224 = vmatprep.subr.mxu0 %v23566_v20 }
0x2f04   :  { %v20789_v60 = vpop.f32.mrf.mxu0 }
0x2f05   :  { %v17801_v59 = vadd.f32 %v20789_v60, %v17714_v2  ;;  %v20822_v6 = vpop.f32.mrf.mxu1  ;;  %v23561_v60 = vand.u32 4294901760, %v23001_v46  ;;  %v23558_v2 = vand.u32 4294901760, %v23010_v27 }
0x2f06   :  { %v17793_v21 = vpop.f32.mrf.mxu0 }
0x2f07   :  { %v17794_v18 = vadd.f32 %v17793_v21, %v17708_v25  ;;  %v17886_v61 = vadd.f32 %v20800_v4, %v17801_v59  ;;  %v18049_v48 = vpop.f32.mrf.mxu1  ;;  %v23026_v4 = vsub.f32 %v18185_v52, %v23004_v47  ;;  %v18319_v21 = vsub.f32 %v22995_v19, %v23563_v53 }
0x2f08   :  { %v18326_v59 = vsub.f32 %v22998_v42, %v23562_v54  ;;  %v18333_v25 = vsub.f32 %v23001_v46, %v23561_v60 }
0x2f09   :  { %v17878_v0 = vadd.f32 %v17877_v3, %v17794_v18  ;;  %v23556_v18 = vand.u32 4294901760, %v23014_v57  ;;  %v23041_v3 = vsub.f32 %v18184_v13, %v23016_v16 }
0x2f0b   :  { %v18354_v24 = vsub.f32 %v23014_v57, %v23556_v18 }
0x2f0d   :  { %v20811_v1 = vpop.f32.mrf.mxu0  ;;  %v18355_v52 = vand.u32 4294901760, %v18354_v24 }
0x2f0e   :  { %v17975_v63 = vadd.f32 %v20811_v1, %v17886_v61  ;;  %v18183_v61 = vld [vmem:[#allocation8 + $0xd8] sm:$0xff]  ;;  %v18181_v1 = vld [vmem:[#allocation8 + $0xc8] sm:$0xff] }
0x2f0f   :  { %v17968_v30 = vpop.f32.mrf.mxu0  ;;  %v23057_v45 = vand.u32 4294901760, %v18181_v1 }
0x2f10   :  { %v18056_v31 = vadd.f32 %v20822_v6, %v17975_v63  ;;  %v17969_v32 = vadd.f32 %v17968_v30, %v17878_v0  ;;  %v18182_v6 = vld [vmem:[#allocation8 + $0xd0] sm:$0xff]  ;;  %v18320_v63 = vand.u32 4294901760, %v18319_v21  ;;  %v18327_v0 = vand.u32 4294901760, %v18326_v59 }
0x2f11   :  { %v18340_v30 = vsub.f32 %v23007_v11, %v23559_v62  ;;  %v23082_v10 = vsub.f32 %v18181_v1, %v23057_v45 }
0x2f12   :  { %v22955_v26 = vadd.f32 %v18056_v31, %v22331_v14  ;;  %v18050_v56 = vadd.f32 %v18049_v48, %v17969_v32  ;;  %v18347_v31 = vsub.f32 %v23010_v27, %v23558_v2  ;;  %v23554_v32 = vand.u32 4294901760, %v23026_v4  ;;  %v18180_v48 = vld [vmem:[#allocation8 + $0xc0] sm:$0xff]  ;;  %18321 = vmatpush1.msra.mxu1 %v18320_v63 }
0x2f13   :  { %18322 = vmatprep.subr.mxu1 %v23566_v20  ;;  %v23550_v63 = vand.u32 4294901760, %v23082_v10 }
0x2f14   :  { %23590 = vst [vmem:[#allocation16_spill] sm:$0xff] %v22955_v26  ;;  %v22958_v35 = vadd.f32 %v18050_v56, %v22326_v43  ;;  %v18064_v17 = vsel %vm93_vm0, %v22955_v26, 0.0  ;;  %v18334_v56 = vand.u32 4294901760, %v18333_v25  ;;  %18328 = vmatpush1.msra.mxu1 %v18327_v0  ;;  %v18348_v29 = vand.u32 4294901760, %v18347_v31  ;;  %v18195_v31 = vld [vmem:[#allocation8 + $0x138] sm:$0xff] }
0x2f15   :  { %18065 = vadd.xlane.f32.xlu0 %v18064_v17  ;;  %v23053_v17 = vand.u32 4294901760, %v18183_v61  ;;  %18329 = vmatprep.subr.mxu1 %v23566_v20  ;;  %v23100_v25 = vand.u32 4294901760, %v18177_v37 }
0x2f16   :  { %v18061_v58 = vsel %vm93_vm0, %v22958_v35, 0.0  ;;  %18335 = vmatpush1.msra.mxu1 %v18334_v56 }
0x2f17   :  { %18062 = vadd.xlane.f32.xlu1 %v18061_v58  ;;  %v23055_v58 = vand.u32 4294901760, %v18182_v6  ;;  %18336 = vmatprep.subr.mxu1 %v23566_v20 }
0x2f18   :  { %18226 = vmatpush1.msra.mxu0 %v23053_v17 }
0x2f19   :  { %18227 = vmatprep.subr.mxu0 %v23566_v20 }
0x2f1a   :  { %18229 = vmatpush1.msra.mxu0 %v23055_v58 }
0x2f1b   :  { %18230 = vmatprep.subr.mxu0 %v23566_v20 }
0x2f1c   :  { %18232 = vmatpush1.msra.mxu0 %v23057_v45 }
0x2f1d   :  { %18233 = vmatprep.subr.mxu0 %v23566_v20 }
0x2f28   :  { %18108 = vrot.lane.b32.xlu1 %v22966_v55, %s21093_s2 }
0x2f9e   :  { %v18066_v14 = vpop.xlane.xlu0 %18065 }
0x2f9f   :  { %v18068_v50 = vmul.f32 0.03125, %v18066_v14  ;;  %v23553_v14 = vand.u32 4294901760, %v23041_v3 }
0x2fa0   :  { %v18063_v43 = vpop.xlane.xlu1 %18062 }
0x2fa1   :  { %v18067_v49 = vmul.f32 0.03125, %v18063_v43  ;;  %v22971_v22 = vsub.f32 %v22955_v26, %v18068_v50  ;;  %v18179_v50 = vld [vmem:[#allocation8 + $0xb8] sm:$0xff]  ;;  %v18341_v43 = vand.u32 4294901760, %v18340_v30  ;;  %v18368_v38 = vsub.f32 %v23041_v3, %v23553_v14  ;;  %v18194_v14 = vld [vmem:[#allocation8 + $0x130] sm:$0xff] }
0x2fa2   :  { %v23084_v9 = vand.u32 4294901760, %v18179_v50 }
0x2fa3   :  { %v22974_v23 = vsub.f32 %v22958_v35, %v18067_v49  ;;  %v18072_v15 = vmul.f32 %v22971_v22, %v22971_v22  ;;  %v23066_v49 = vsub.f32 %v18183_v61, %v23053_v17  ;;  %18342 = vmatpush1.msra.mxu1 %v18341_v43  ;;  %v18176_v61 = vld [vmem:[#allocation8 + $0xa0] sm:$0xff]  ;;  %v18369_v30 = vand.u32 4294901760, %v18368_v38 }
0x2fa4   :  { %18343 = vmatprep.subr.mxu1 %v23566_v20  ;;  %v23108_v0 = vsub.f32 %v18179_v50, %v23084_v9  ;;  %v23120_v50 = vand.u32 4294901760, %v18176_v61  ;;  %v23125_v43 = vsub.f32 %v18177_v37, %v23100_v25 }
0x2fa5   :  { %v18071_v41 = vmul.f32 %v22974_v23, %v22974_v23  ;;  %v18076_v28 = vsel %vm93_vm0, %v18072_v15, 0.0  ;;  %v18361_v15 = vsub.f32 %v23026_v4, %v23554_v32  ;;  %v23552_v8 = vand.u32 4294901760, %v23066_v49  ;;  %18349 = vmatpush1.msra.mxu1 %v18348_v29 }
0x2fa6   :  { %18350 = vmatprep.subr.mxu1 %v23566_v20  ;;  %v18389_v29 = vsub.f32 %v23082_v10, %v23550_v63  ;;  %v23544_v38 = vand.u32 4294901760, %v23108_v0 }
0x2fa7   :  { %v18073_v7 = vsel %vm93_vm0, %v18071_v41, 0.0  ;;  %v23070_v41 = vsub.f32 %v18182_v6, %v23055_v58  ;;  %v18362_v6 = vand.u32 4294901760, %v18361_v15  ;;  %v18375_v1 = vsub.f32 %v23066_v49, %v23552_v8  ;;  %18356 = vmatpush1.msra.mxu1 %v18355_v52 }
0x2fa8   :  { %18074 = vadd.xlane.f32.xlu0 %v18073_v7  ;;  %v23072_v7 = vand.u32 4294901760, %v18180_v48  ;;  %18357 = vmatprep.subr.mxu1 %v23566_v20  ;;  %v18390_v12 = vand.u32 4294901760, %v18389_v29 }
0x2fa9   :  { %v23551_v13 = vand.u32 4294901760, %v23070_v41  ;;  %18363 = vmatpush1.msra.mxu1 %v18362_v6  ;;  %v18376_v15 = vand.u32 4294901760, %v18375_v1  ;;  %v23142_v1 = vsub.f32 %v18176_v61, %v23120_v50 }
0x2faa   :  { %v23094_v21 = vsub.f32 %v18180_v48, %v23072_v7  ;;  %18364 = vmatprep.subr.mxu1 %v23566_v20  ;;  %18235 = vmatpush1.msra.mxu0 %v23072_v7 }
0x2fab   :  { %v18382_v48 = vsub.f32 %v23070_v41, %v23551_v13  ;;  %18370 = vmatpush1.msra.mxu1 %v18369_v30  ;;  %18236 = vmatprep.subr.mxu0 %v23566_v20  ;;  %v18403_v30 = vsub.f32 %v23108_v0, %v23544_v38  ;;  %v23547_v29 = vand.u32 4294901760, %v23142_v1 }
0x2fac   :  { %18077 = vadd.xlane.f32.xlu0 %v18076_v28  ;;  %v18178_v28 = vld [vmem:[#allocation8 + $0xb0] sm:$0xff]  ;;  %v23549_v56 = vand.u32 4294901760, %v23094_v21  ;;  %18371 = vmatprep.subr.mxu1 %v23566_v20 }
0x2fad   :  { %v23096_v59 = vand.u32 4294901760, %v18178_v28  ;;  %v18383_v52 = vand.u32 4294901760, %v18382_v48  ;;  %18377 = vmatpush1.msra.mxu1 %v18376_v15  ;;  %v23548_v48 = vand.u32 4294901760, %v23125_v43  ;;  %18238 = vmatpush1.msra.mxu0 %v23084_v9 }
0x2fae   :  { %v18396_v37 = vsub.f32 %v23094_v21, %v23549_v56  ;;  %18378 = vmatprep.subr.mxu1 %v23566_v20  ;;  %18239 = vmatprep.subr.mxu0 %v23566_v20 }
0x2faf   :  { %v23118_v24 = vsub.f32 %v18178_v28, %v23096_v59  ;;  %v23132_v28 = vand.u32 4294901760, %v18195_v31  ;;  %18384 = vmatpush1.msra.mxu1 %v18383_v52  ;;  %18241 = vmatpush1.msra.mxu0 %v23096_v59  ;;  %v18417_v38 = vsub.f32 %v23125_v43, %v23548_v48 }
0x2fb0   :  { %v18397_v61 = vand.u32 4294901760, %v18396_v37  ;;  %18385 = vmatprep.subr.mxu1 %v23566_v20  ;;  %18242 = vmatprep.subr.mxu0 %v23566_v20 }
0x2fb1   :  { %v23545_v6 = vand.u32 4294901760, %v23118_v24  ;;  %v23152_v51 = vsub.f32 %v18195_v31, %v23132_v28  ;;  %18391 = vmatpush1.msra.mxu1 %v18390_v12  ;;  %v18404_v31 = vand.u32 4294901760, %v18403_v30  ;;  %18244 = vmatpush1.msra.mxu0 %v23100_v25  ;;  %v18418_v12 = vand.u32 4294901760, %v18417_v38 }
0x2fb2   :  { %18392 = vmatprep.subr.mxu1 %v23566_v20  ;;  %18245 = vmatprep.subr.mxu0 %v23566_v20 }
0x2fb3   :  { %v18410_v15 = vsub.f32 %v23118_v24, %v23545_v6  ;;  %v23546_v52 = vand.u32 4294901760, %v23152_v51  ;;  %18398 = vmatpush1.msra.mxu1 %v18397_v61  ;;  %v18424_v6 = vsub.f32 %v23142_v1, %v23547_v29  ;;  %18247 = vmatpush1.msra.mxu0 %v23120_v50 }
0x2fb4   :  { %18399 = vmatprep.subr.mxu1 %v23566_v20  ;;  %18272 = vmatprep.subr.mxu0 %v23566_v20 }
0x2fb5   :  { %v18411_v37 = vand.u32 4294901760, %v18410_v15  ;;  %18405 = vmatpush1.msra.mxu1 %v18404_v31  ;;  %v18455_v30 = vsub.f32 %v23152_v51, %v23546_v52  ;;  %18274 = vmatpush2.msra.mxu0 %v23132_v28  ;;  %v18425_v61 = vand.u32 4294901760, %v18424_v6 }
0x2fb6   :  { %18406 = vmatprep.subr.mxu1 %v23566_v20  ;;  %18275 = vmatprep.subr.mxu0 %v23566_v20 }
0x2fb7   :  { %18412 = vmatpush1.msra.mxu1 %v18411_v37  ;;  %v18456_v15 = vand.u32 4294901760, %v18455_v30 }
0x2fb8   :  { %18413 = vmatprep.subr.mxu1 %v23566_v20 }
0x2fb9   :  { %18419 = vmatpush1.msra.mxu1 %v18418_v12 }
0x2fba   :  { %18420 = vmatprep.subr.mxu1 %v23566_v20 }
0x2fbb   :  { %18426 = vmatpush1.msra.mxu1 %v18425_v61 }
0x2fbc   :  { %18451 = vmatprep.subr.mxu1 %v23566_v20 }
0x2fbd   :  { %18457 = vmatpush2.msra.mxu1 %v18456_v15 }
0x2fbe   :  { %18458 = vmatprep.subr.mxu1 %v23566_v20 }
0x3031   :  { %v18075_v38 = vpop.xlane.xlu0 %18074 }
0x3032   :  { %v18079_v31 = vmul.f32 0.032258064, %v18075_v38 }
0x3034   :  { %20935 = vrsqrt.f32 %v18079_v31  ;;  %vm18089_vm5 = vcmp.eq.f32.partialorder %v18079_v31, inf  ;;  %v18092_v48 = vand.u32 2147483648, %v18079_v31  ;;  %vm18091_vm6 = vcmp.eq.f32.partialorder %v18079_v31, 0.0 }
0x3035   :  { %v18078_v52 = vpop.xlane.xlu0 %18077 }
0x3036   :  { %v18080_v29 = vmul.f32 0.032258064, %v18078_v52  ;;  %v23186_v52 = vand.u32 4294901760, %v18194_v14 }
0x3038   :  { %20937 = vrsqrt.f32 %v18080_v29  ;;  %vm18096_vm7 = vcmp.eq.f32.partialorder %v18080_v29, inf  ;;  %v18099_v15 = vand.u32 2147483648, %v18080_v29  ;;  %vm18098_vm8 = vcmp.eq.f32.partialorder %v18080_v29, 0.0  ;;  %18277 = vmatpush2.msra.mxu0 %v23186_v52 }
0x3039   :  { %v23189_v32 = vsub.f32 %v18194_v14, %v23186_v52  ;;  %18278 = vmatprep.subr.mxu0 %v23566_v20 }
0x3041   :  { %v20936_v37 = vpop.eup %20935 }
0x3042   :  { %v18088_v6 = vmul.f32 %v20936_v37, %v18079_v31  ;;  %v18193_v37 = vld [vmem:[#allocation8 + $0x128] sm:$0xff] }
0x3044   :  { %v18090_v12 = vsel %vm18089_vm5, %v18079_v31, %v18088_v6  ;;  %v23191_v31 = vand.u32 4294901760, %v18193_v37  ;;  %v18085_v6 = vmul.f32 %v22966_v55, %v22974_v23  ;;  %v18086_v23 = vmul.f32 %v22966_v55, %v22971_v22 }
0x3045   :  { %v20938_v30 = vpop.eup %20937  ;;  %v18093_v56 = vsel %vm18091_vm6, %v18092_v48, %v18090_v12  ;;  %v23555_v48 = vand.u32 4294901760, %v23189_v32 }
0x3046   :  { %v18095_v61 = vmul.f32 %v20938_v30, %v18080_v29  ;;  %v18101_v63 = vadd.f32 1e-06, %v18093_v56  ;;  %v18192_v56 = vld [vmem:[#allocation8 + $0x120] sm:$0xff]  ;;  %18280 = vmatpush2.msra.mxu0 %v23191_v31 }
0x3047   :  { %18281 = vmatprep.subr.mxu0 %v23566_v20  ;;  %v18462_v14 = vsub.f32 %v23189_v32, %v23555_v48 }
0x3048   :  { %v18097_v13 = vsel %vm18096_vm7, %v18080_v29, %v18095_v61  ;;  %20939 = vrcp.f32 %v18101_v63  ;;  %v23199_v63 = vand.u32 4294901760, %v18192_v56 }
0x3049   :  { %v18100_v38 = vsel %vm18098_vm8, %v18099_v15, %v18097_v13  ;;  %v23197_v13 = vsub.f32 %v18193_v37, %v23191_v31  ;;  %v18463_v12 = vand.u32 4294901760, %v18462_v14 }
0x304a   :  { %v18102_v8 = vadd.f32 1e-06, %v18100_v38  ;;  %v23208_v29 = vsub.f32 %v18192_v56, %v23199_v63  ;;  %18283 = vmatpush2.msra.mxu0 %v23199_v63  ;;  %v18109_v38 = vpop.permute.xlu1 %18108 }
0x304b   :  { %18494 = vmatprep.subr.mxu0 %v23566_v20  ;;  %18464 = vmatpush2.msra.mxu1 %v18463_v12 }
0x304c   :  { %20941 = vrcp.f32 %v18102_v8  ;;  %v23557_v8 = vand.u32 4294901760, %v23197_v13  ;;  %v23560_v61 = vand.u32 4294901760, %v23208_v29  ;;  %18465 = vmatprep.subr.mxu1 %v23566_v20 }
0x304e   :  { %v18469_v30 = vsub.f32 %v23197_v13, %v23557_v8  ;;  %v18476_v48 = vsub.f32 %v23208_v29, %v23560_v61 }
0x3050   :  { %v18470_v56 = vand.u32 4294901760, %v18469_v30  ;;  %v18477_v18 = vand.u32 4294901760, %v18476_v48 }
0x3052   :  { %18471 = vmatpush2.msra.mxu1 %v18470_v56 }
0x3053   :  { %18472 = vmatprep.subr.mxu1 %v23566_v20 }
0x3054   :  { %18478 = vmatpush2.msra.mxu1 %v18477_v18 }
0x3055   :  { %v20940_v15 = vpop.eup %20939  ;;  %18617 = vmatprep.subr.mxu1 %v23566_v20 }
0x3056   :  { %v18104_v37 = vmul.f32 %v20940_v15, %v18085_v6 }
0x3058   :  { %v18111_v14 = vadd.f32 %v18109_v38, %v18104_v37 }
0x3059   :  { %v20942_v8 = vpop.eup %20941 }
0x305a   :  { %v18106_v2 = vmul.f32 %v20942_v8, %v18086_v23  ;;  %v18114_v62 = vrot.slane %v18111_v14, 6 }
0x305c   :  { %v18112_v6 = vadd.f32 %v18109_v38, %v18106_v2  ;;  %v18116_v12 = vsel %vm8662_vm13, 0.0, %v18114_v62  ;;  %v18117_v30 = vsel %vm8662_vm13, %v18114_v62, 0.0 }
0x305d   :  { %v18138_v15 = vrot.slane %v18116_v12, 4  ;;  %v18139_v61 = vrot.slane %v18117_v30, 4  ;;  %v18126_v60 = vrot.slane %v18116_v12, 2  ;;  %v18127_v55 = vrot.slane %v18117_v30, 2 }
0x305e   :  { %v18145_v22 = vrot.slane %v18112_v6, 6  ;;  %v18120_v37 = vrot.slane %v18116_v12, 1  ;;  %v18121_v48 = vrot.slane %v18117_v30, 1  ;;  %v18132_v23 = vrot.slane %v18116_v12, 3 }
0x305f   :  { %v18128_v56 = vsel %vm8674_vm1, %v18126_v60, %v18127_v55  ;;  %v18140_v8 = vsel %vm8688_vm15, %v18138_v15, %v18139_v61  ;;  %v18133_v18 = vrot.slane %v18117_v30, 3 }
0x3060   :  { %v18147_v14 = vsel %vm8662_vm13, 0.0, %v18145_v22  ;;  %v18148_v2 = vsel %vm8662_vm13, %v18145_v22, 0.0  ;;  %18129 = vrot.lane.b32.xlu1 %v18128_v56, %s21098_s18  ;;  %v18122_v62 = vsel %vm8667_vm14, %v18120_v37, %v18121_v48  ;;  %v18196_v38 = vsel %vm93_vm0, %v18140_v8, 0 }
0x3061   :  { %18123 = vrot.lane.b32.xlu0 %v18122_v62, %s21108_s30  ;;  %v23236_v6 = vand.u32 4294901760, %v18196_v38  ;;  %v18157_v54 = vrot.slane %v18147_v14, 2  ;;  %v18158_v60 = vrot.slane %v18148_v2, 2  ;;  %v18134_v61 = vsel %vm8681_vm2, %v18132_v23, %v18133_v18 }
0x3062   :  { %v18151_v30 = vrot.slane %v18147_v14, 1  ;;  %v18152_v15 = vrot.slane %v18148_v2, 1  ;;  %v18163_v8 = vrot.slane %v18147_v14, 3  ;;  %v18164_v62 = vrot.slane %v18148_v2, 3 }
0x3063   :  { %18480 = vmatprep.mubr.f32.mxu1 %v23236_v6  ;;  %v23241_v55 = vsub.f32 %v18196_v38, %v23236_v6  ;;  %v18159_v22 = vsel %vm8674_vm1, %v18157_v54, %v18158_v60  ;;  %v18169_v38 = vrot.slane %v18147_v14, 4  ;;  %v18170_v54 = vrot.slane %v18148_v2, 4 }
0x3064   :  { %18135 = vrot.lane.b32.xlu1 %v18134_v61, %s21093_s2  ;;  %v18153_v48 = vsel %vm8667_vm14, %v18151_v30, %v18152_v15  ;;  %v18165_v18 = vsel %vm8681_vm2, %v18163_v8, %v18164_v62 }
0x3065   :  { %18160 = vrot.lane.b32.xlu0 %v18159_v22, %s21098_s18  ;;  %v18286_v37 = vand.u32 4294901760, %v23241_v55  ;;  %v18171_v60 = vsel %vm8688_vm15, %v18169_v38, %v18170_v54 }
0x3066   :  { %v18198_v61 = vsel %vm93_vm0, %v18171_v60, 0 }
0x3067   :  { %v18287_v56 = vsub.f32 %v23241_v55, %v18286_v37  ;;  %v23254_v30 = vand.u32 4294901760, %v18198_v61 }
0x3068   :  { %18154 = vrot.lane.b32.xlu1 %v18153_v48, %s21108_s30 }
0x3069   :  { %v18288_v23 = vand.u32 4294901760, %v18287_v56  ;;  %v23259_v56 = vsub.f32 %v18198_v61, %v23254_v30 }
0x306b   :  { %18289 = vmatprep.mubr.f32.mxu0 %v18288_v23 }
0x306c   :  { %18166 = vrot.lane.b32.xlu1 %v18165_v18, %s21093_s2  ;;  %v18301_v18 = vand.u32 4294901760, %v23259_v56 }
0x306e   :  { %v18302_v60 = vsub.f32 %v23259_v56, %v18301_v18 }
0x30d2   :  { %v18130_v22 = vpop.permute.xlu1 %18129 }
0x30d3   :  { %v18124_v15 = vpop.permute.xlu0 %18123 }
0x30d4   :  { %v18141_v53 = vsel %vm93_vm0, %v18116_v12, %v18124_v15 }
0x30d5   :  { %v18142_v48 = vsel %vm8693_vm3, %v18141_v53, %v18130_v22 }
0x30d6   :  { %v18136_v26 = vpop.permute.xlu1 %18135 }
0x30d7   :  { %v18143_v8 = vsel %vm8695_vm4, %v18142_v48, %v18136_v26  ;;  %v18161_v26 = vpop.permute.xlu0 %18160 }
0x30d8   :  { %v23262_v62 = vand.u32 4294901760, %v18143_v8 }
0x30da   :  { %v23265_v2 = vsub.f32 %v18143_v8, %v23262_v62  ;;  %v18155_v23 = vpop.permute.xlu1 %18154  ;;  %18482 = vmatmul.mubr.f32.vlgmr.msra.gmra.mxu1 %v23262_v62  ;;  %v18303_v8 = vand.u32 4294901760, %v18302_v60 }
0x30db   :  { %v18172_v12 = vsel %vm93_vm0, %v18147_v14, %v18155_v23  ;;  %18619 = vmatpush1.msra.mxu1 %v22982_v40  ;;  %18487 = vmatprep.mubr.f32.mxu1 %v23254_v30 }
0x30dc   :  { %v18292_v53 = vand.u32 4294901760, %v23265_v2  ;;  %18620 = vmatprep.subr.mxu1 %v23566_v20  ;;  %v18173_v14 = vsel %vm8693_vm3, %v18172_v12, %v18161_v26 }
0x30dd   :  { %18622 = vmatpush1.msra.mxu1 %v22984_v33 }
0x30de   :  { %v18293_v38 = vsub.f32 %v23265_v2, %v18292_v53  ;;  %18623 = vmatprep.subr.mxu1 %v23566_v20  ;;  %v18167_v54 = vpop.permute.xlu1 %18166 }
0x30df   :  { %v18174_v61 = vsel %vm8695_vm4, %v18173_v14, %v18167_v54  ;;  %18625 = vmatpush1.msra.mxu1 %v22986_v36  ;;  %v23613_v14 = vsub.s32 2, %v21172_v5 }
0x30e0   :  { %v18294_v22 = vand.u32 4294901760, %v18293_v38  ;;  %v23285_v15 = vand.u32 4294901760, %v18174_v61  ;;  %18626 = vmatprep.subr.mxu1 %v23566_v20 }
0x30e1   :  { %18628 = vmatpush1.msra.mxu1 %v22988_v34 }
0x30e2   :  { %v23290_v48 = vsub.f32 %v18174_v61, %v23285_v15  ;;  %18629 = vmatprep.subr.mxu1 %v23566_v20  ;;  %18295 = vmatmul.mubr.f32.vlgmr.msra.gmra.mxu0 %v18294_v22 }
0x30e3   :  { %18489 = vmatmul.mubr.f32.gmra.mxu1 %v23285_v15  ;;  %18497 = vmatpush1.msra.mxu0 %v22995_v19 }
0x30e4   :  { %v18307_v23 = vand.u32 4294901760, %v23290_v48  ;;  %18631 = vmatpush1.msra.mxu1 %v22990_v39  ;;  %18304 = vmatprep.mubr.f32.mxu0 %v18303_v8 }
0x30e5   :  { %18498 = vmatprep.subr.mxu0 %v23566_v20  ;;  %18632 = vmatprep.subr.mxu1 %v23566_v20 }
0x30e6   :  { %v18308_v12 = vsub.f32 %v23290_v48, %v18307_v23  ;;  %18704 = vmatprep.mubr.f32.mxu1 %v18286_v37  ;;  %18501 = vmatpush1.msra.mxu0 %v22998_v42 }
0x30e7   :  { %18634 = vmatpush1.msra.mxu1 %v22992_v44  ;;  %18502 = vmatprep.subr.mxu0 %v23566_v20 }
0x30e8   :  { %18635 = vmatprep.subr.mxu1 %v23566_v20  ;;  %18505 = vmatpush1.msra.mxu0 %v23001_v46  ;;  %v18309_v26 = vand.u32 4294901760, %v18308_v12 }
0x30e9   :  { %18637 = vmatpush1.msra.mxu1 %v23004_v47  ;;  %18506 = vmatprep.subr.mxu0 %v23566_v20 }
0x30ea   :  { %18638 = vmatprep.subr.mxu1 %v23566_v20  ;;  %18509 = vmatpush1.msra.mxu0 %v23007_v11 }
0x30eb   :  { %18640 = vmatpush1.msra.mxu1 %v23016_v16  ;;  %18510 = vmatprep.subr.mxu0 %v23566_v20 }
0x30ec   :  { %18641 = vmatprep.subr.mxu1 %v23566_v20  ;;  %18310 = vmatmul.mubr.f32.gmra.mxu0 %v18309_v26 }
0x30ed   :  { %18513 = vmatpush1.msra.mxu0 %v23010_v27  ;;  %18643 = vmatpush1.msra.mxu1 %v23053_v17 }
0x30ee   :  { %18514 = vmatprep.subr.mxu0 %v23566_v20  ;;  %18600 = vmatprep.mubr.f32.mxu0 %v23241_v55 }
0x30ef   :  { %18644 = vmatprep.subr.mxu1 %v23566_v20  ;;  %18517 = vmatpush1.msra.mxu0 %v23014_v57 }
0x30f0   :  { %18646 = vmatpush1.msra.mxu1 %v23055_v58  ;;  %18518 = vmatprep.subr.mxu0 %v23566_v20 }
0x30f1   :  { %18647 = vmatprep.subr.mxu1 %v23566_v20  ;;  %18521 = vmatpush1.msra.mxu0 %v23026_v4 }
0x30f2   :  { %18649 = vmatpush1.msra.mxu1 %v23057_v45  ;;  %18522 = vmatprep.subr.mxu0 %v23566_v20 }
0x30f3   :  { %18650 = vmatprep.subr.mxu1 %v23566_v20  ;;  %18525 = vmatpush1.msra.mxu0 %v23041_v3 }
0x30f4   :  { %18652 = vmatpush1.msra.mxu1 %v23072_v7  ;;  %18526 = vmatprep.subr.mxu0 %v23566_v20 }
0x30f5   :  { %18653 = vmatprep.subr.mxu1 %v23566_v20  ;;  %18529 = vmatpush1.msra.mxu0 %v23066_v49 }
0x30f6   :  { %18655 = vmatpush1.msra.mxu1 %v23084_v9  ;;  %18530 = vmatprep.subr.mxu0 %v23566_v20 }
0x30f7   :  { %18656 = vmatprep.subr.mxu1 %v23566_v20  ;;  %18533 = vmatpush1.msra.mxu0 %v23070_v41 }
0x30f8   :  { %18658 = vmatpush1.msra.mxu1 %v23096_v59  ;;  %18534 = vmatprep.subr.mxu0 %v23566_v20 }
0x30f9   :  { %18659 = vmatprep.subr.mxu1 %v23566_v20  ;;  %18537 = vmatpush1.msra.mxu0 %v23082_v10 }
0x30fa   :  { %18661 = vmatpush1.msra.mxu1 %v23100_v25  ;;  %18538 = vmatprep.subr.mxu0 %v23566_v20 }
0x30fb   :  { %18662 = vmatprep.subr.mxu1 %v23566_v20  ;;  %18541 = vmatpush1.msra.mxu0 %v23094_v21 }
0x30fc   :  { %18664 = vmatpush1.msra.mxu1 %v23120_v50  ;;  %18542 = vmatprep.subr.mxu0 %v23566_v20 }
0x30fd   :  { %18689 = vmatprep.subr.mxu1 %v23566_v20  ;;  %18545 = vmatpush1.msra.mxu0 %v23108_v0 }
0x30fe   :  { %18691 = vmatpush2.msra.mxu1 %v23132_v28  ;;  %18546 = vmatprep.subr.mxu0 %v23566_v20 }
0x30ff   :  { %18692 = vmatprep.subr.mxu1 %v23566_v20  ;;  %18549 = vmatpush1.msra.mxu0 %v23118_v24 }
0x3100   :  { %18694 = vmatpush2.msra.mxu1 %v23186_v52  ;;  %18550 = vmatprep.subr.mxu0 %v23566_v20 }
0x3101   :  { %18695 = vmatprep.subr.mxu1 %v23566_v20  ;;  %18553 = vmatpush1.msra.mxu0 %v23125_v43 }
0x3102   :  { %18697 = vmatpush2.msra.mxu1 %v23191_v31  ;;  %18554 = vmatprep.subr.mxu0 %v23566_v20 }
0x3103   :  { %18698 = vmatprep.subr.mxu1 %v23566_v20  ;;  %18557 = vmatpush1.msra.mxu0 %v23142_v1 }
0x3104   :  { %18700 = vmatpush2.msra.mxu1 %v23199_v63  ;;  %18582 = vmatprep.subr.mxu0 %v23566_v20 }
0x3105   :  { %18708 = vmatmul.mubr.f32.vlgmr.msra.gmra.mxu1 %v18292_v53  ;;  %18863 = vmatprep.subr.mxu1 %v23566_v20 }
0x3106   :  { %18585 = vmatpush2.msra.mxu0 %v23152_v51  ;;  %18715 = vmatprep.mubr.f32.mxu1 %v18301_v18  ;;  %v23612_v18 = vsub.s32 1, %v21172_v5 }
0x3107   :  { %18865 = vmatpush1.msra.mxu1 %v22982_v40  ;;  %18586 = vmatprep.subr.mxu0 %v23566_v20  ;;  %v23592_v40 = vand.u32 4294901760, %v22995_v19  ;;  %v23598_v19 = vand.u32 4294901760, %v23026_v4  ;;  %v23606_v4 = vand.u32 4294901760, %v23125_v43 }
0x3108   :  { %18866 = vmatprep.subr.mxu1 %v23566_v20  ;;  %18589 = vmatpush2.msra.mxu0 %v23189_v32 }
0x3109   :  { %18868 = vmatpush1.msra.mxu1 %v22984_v33  ;;  %18590 = vmatprep.subr.mxu0 %v23566_v20  ;;  %v23593_v33 = vand.u32 4294901760, %v22998_v42  ;;  %v23599_v42 = vand.u32 4294901760, %v23041_v3  ;;  %v23607_v3 = vand.u32 4294901760, %v23142_v1 }
0x310a   :  { %18719 = vmatmul.mubr.f32.gmra.mxu1 %v18307_v23  ;;  %18869 = vmatprep.subr.mxu1 %v23566_v20 }
0x310b   :  { %18593 = vmatpush2.msra.mxu0 %v23197_v13  ;;  %18871 = vmatpush1.msra.mxu1 %v22986_v36  ;;  %v23594_v36 = vand.u32 4294901760, %v23001_v46  ;;  %v23600_v46 = vand.u32 4294901760, %v23066_v49  ;;  %v23611_v49 = vand.u32 4294901760, %v23208_v29 }
0x310c   :  { %18948 = vmatprep.mubr.f32.mxu1 %v23236_v6  ;;  %18594 = vmatprep.subr.mxu0 %v23566_v20 }
0x310d   :  { %18872 = vmatprep.subr.mxu1 %v23566_v20  ;;  %18597 = vmatpush2.msra.mxu0 %v23208_v29 }
0x310e   :  { %18874 = vmatpush1.msra.mxu1 %v22988_v34  ;;  %18603 = vmatmul.mubr.f32.vlgmr.msra.gmra.mxu0 %v23265_v2  ;;  %v23595_v34 = vand.u32 4294901760, %v23007_v11  ;;  %v23602_v11 = vand.u32 4294901760, %v23082_v10  ;;  %v20956_v2 = vld [vmem:[#allocation10 + $0x8] sm:$0xff] }
0x310f   :  { %18724 = vmatprep.subr.mxu0 %v23566_v20  ;;  %18875 = vmatprep.subr.mxu1 %v23566_v20  ;;  %v18965_v53 = vrot.slane %v20956_v2, %v23612_v18  ;;  %v18971_v60 = vrot.slane %v20956_v2, %v23613_v14 }
0x3110   :  { %18609 = vmatprep.mubr.f32.mxu0 %v23259_v56  ;;  %18728 = vmatpush1.msra.mxu0 %v23592_v40 }
0x3111   :  { %18877 = vmatpush1.msra.mxu1 %v22990_v39  ;;  %18729 = vmatprep.subr.mxu0 %v23566_v20  ;;  %v23596_v39 = vand.u32 4294901760, %v23010_v27  ;;  %v23603_v27 = vand.u32 4294901760, %v23094_v21 }
0x3112   :  { %18878 = vmatprep.subr.mxu1 %v23566_v20  ;;  %18733 = vmatpush1.msra.mxu0 %v23593_v33 }
0x3113   :  { %18880 = vmatpush1.msra.mxu1 %v22992_v44  ;;  %18612 = vmatmul.mubr.f32.gmra.mxu0 %v23290_v48  ;;  %v23597_v44 = vand.u32 4294901760, %v23014_v57  ;;  %v23604_v57 = vand.u32 4294901760, %v23108_v0 }
0x3114   :  { %18734 = vmatprep.subr.mxu0 %v23566_v20  ;;  %18881 = vmatprep.subr.mxu1 %v23566_v20 }
0x3115   :  { %18738 = vmatpush1.msra.mxu0 %v23594_v36  ;;  %18849 = vmatprep.mubr.f32.mxu0 %v23236_v6 }
0x3116   :  { %18883 = vmatpush1.msra.mxu1 %v23004_v47  ;;  %18739 = vmatprep.subr.mxu0 %v23566_v20  ;;  %v23601_v47 = vand.u32 4294901760, %v23070_v41 }
0x3117   :  { %18884 = vmatprep.subr.mxu1 %v23566_v20  ;;  %18743 = vmatpush1.msra.mxu0 %v23595_v34 }
0x3118   :  { %18886 = vmatpush1.msra.mxu1 %v23016_v16  ;;  %18744 = vmatprep.subr.mxu0 %v23566_v20  ;;  %v23605_v16 = vand.u32 4294901760, %v23118_v24 }
0x3119   :  { %18887 = vmatprep.subr.mxu1 %v23566_v20  ;;  %18748 = vmatpush1.msra.mxu0 %v23596_v39 }
0x311a   :  { %18889 = vmatpush1.msra.mxu1 %v23053_v17  ;;  %18749 = vmatprep.subr.mxu0 %v23566_v20  ;;  %v23608_v17 = vand.u32 4294901760, %v23152_v51 }
0x311b   :  { %18890 = vmatprep.subr.mxu1 %v23566_v20  ;;  %18753 = vmatpush1.msra.mxu0 %v23597_v44 }
0x311c   :  { %18892 = vmatpush1.msra.mxu1 %v23055_v58  ;;  %18754 = vmatprep.subr.mxu0 %v23566_v20  ;;  %v23609_v58 = vand.u32 4294901760, %v23189_v32 }
0x311d   :  { %18893 = vmatprep.subr.mxu1 %v23566_v20  ;;  %18758 = vmatpush1.msra.mxu0 %v23598_v19 }
0x311e   :  { %18895 = vmatpush1.msra.mxu1 %v23057_v45  ;;  %18759 = vmatprep.subr.mxu0 %v23566_v20  ;;  %v23610_v45 = vand.u32 4294901760, %v23197_v13 }
0x311f   :  { %18896 = vmatprep.subr.mxu1 %v23566_v20  ;;  %18763 = vmatpush1.msra.mxu0 %v23599_v42 }
0x3120   :  { %18898 = vmatpush1.msra.mxu1 %v23072_v7  ;;  %18764 = vmatprep.subr.mxu0 %v23566_v20 }
0x3121   :  { %18899 = vmatprep.subr.mxu1 %v23566_v20  ;;  %18768 = vmatpush1.msra.mxu0 %v23600_v46 }
0x3122   :  { %18901 = vmatpush1.msra.mxu1 %v23084_v9  ;;  %18769 = vmatprep.subr.mxu0 %v23566_v20 }
0x3123   :  { %18902 = vmatprep.subr.mxu1 %v23566_v20  ;;  %18773 = vmatpush1.msra.mxu0 %v23601_v47 }
0x3124   :  { %18904 = vmatpush1.msra.mxu1 %v23096_v59  ;;  %18774 = vmatprep.subr.mxu0 %v23566_v20 }
0x3125   :  { %18905 = vmatprep.subr.mxu1 %v23566_v20  ;;  %18778 = vmatpush1.msra.mxu0 %v23602_v11 }
0x3126   :  { %18907 = vmatpush1.msra.mxu1 %v23100_v25  ;;  %18779 = vmatprep.subr.mxu0 %v23566_v20 }
0x3127   :  { %18908 = vmatprep.subr.mxu1 %v23566_v20  ;;  %18783 = vmatpush1.msra.mxu0 %v23603_v27 }
0x3128   :  { %18910 = vmatpush1.msra.mxu1 %v23120_v50  ;;  %18784 = vmatprep.subr.mxu0 %v23566_v20 }
0x3129   :  { %18935 = vmatprep.subr.mxu1 %v23566_v20  ;;  %18788 = vmatpush1.msra.mxu0 %v23604_v57 }
0x312a   :  { %18937 = vmatpush2.msra.mxu1 %v23132_v28  ;;  %18789 = vmatprep.subr.mxu0 %v23566_v20 }
0x312b   :  { %18938 = vmatprep.subr.mxu1 %v23566_v20  ;;  %18793 = vmatpush1.msra.mxu0 %v23605_v16 }
0x312c   :  { %18940 = vmatpush2.msra.mxu1 %v23186_v52  ;;  %18794 = vmatprep.subr.mxu0 %v23566_v20 }
0x312d   :  { %18941 = vmatprep.subr.mxu1 %v23566_v20  ;;  %18798 = vmatpush1.msra.mxu0 %v23606_v4 }
0x312e   :  { %18943 = vmatpush2.msra.mxu1 %v23191_v31  ;;  %18799 = vmatprep.subr.mxu0 %v23566_v20 }
0x312f   :  { %18944 = vmatprep.subr.mxu1 %v23566_v20  ;;  %18803 = vmatpush1.msra.mxu0 %v23607_v3  ;;  %v23614_v3 = vld [vmem:[#allocation16_spill] sm:$0xff] }
0x3130   :  { %18946 = vmatpush2.msra.mxu1 %v23199_v63  ;;  %18828 = vmatprep.subr.mxu0 %v23566_v20 }
0x3131   :  { %18950 = vmatmul.mubr.f32.vlgmr.msra.gmra.mxu1 %v23262_v62  ;;  %18832 = vmatpush2.msra.mxu0 %v23608_v17 }
0x3132   :  { %18955 = vmatprep.mubr.f32.mxu1 %v23254_v30  ;;  %18833 = vmatprep.subr.mxu0 %v23566_v20 }
0x3133   :  { %18837 = vmatpush2.msra.mxu0 %v23609_v58 }
0x3134   :  { %18838 = vmatprep.subr.mxu0 %v23566_v20 }
0x3135   :  { %18957 = vmatmul.mubr.f32.gmra.mxu1 %v23285_v15  ;;  %18842 = vmatpush2.msra.mxu0 %v23610_v45  ;;  %v19020_v45 = vsub.s32 5, %v21172_v5 }
0x3136   :  { %18843 = vmatprep.subr.mxu0 %v23566_v20 }
0x3137   :  { %18847 = vmatpush2.msra.mxu0 %v23611_v49 }
0x3138   :  { %18851 = vmatmul.mubr.f32.vlgmr.msra.gmra.mxu0 %v23262_v62 }
0x3139   :  { %18856 = vmatprep.mubr.f32.mxu0 %v23254_v30 }
0x313c   :  { %18858 = vmatmul.mubr.f32.gmra.mxu0 %v23285_v15 }
0x319a   :  { %v18483_v51 = vpop.f32.mrf.mxu1 }
0x319c   :  { %v18485_v32 = vpop.f32.mrf.mxu1 }
0x319d   :  { %v20957_v32 = vld [vmem:[#allocation10] sm:$0xff] }
0x31a2   :  { %v18296_v41 = vpop.f32.mrf.mxu0 }
0x31a3   :  { %v18484_v7 = vadd.f32 %v18483_v51, %v18296_v41  ;;  %v18490_v10 = vpop.f32.mrf.mxu1  ;;  %v19021_v41 = vrot.slane %v20957_v32, %v19020_v45 }
0x31a4   :  { %v18298_v9 = vpop.f32.mrf.mxu0 }
0x31a5   :  { %v18492_v21 = vpop.f32.mrf.mxu1 }
0x31ac   :  { %v18311_v59 = vpop.f32.mrf.mxu0 }
0x31ad   :  { %v18491_v25 = vadd.f32 %v18490_v10, %v18311_v59 }
0x31ae   :  { %v18313_v0 = vpop.f32.mrf.mxu0 }
0x31c5   :  { %v18709_v20 = vpop.f32.mrf.mxu1 }
0x31c7   :  { %v18711_v24 = vpop.f32.mrf.mxu1 }
0x31ca   :  { %v18720_v50 = vpop.f32.mrf.mxu1 }
0x31cc   :  { %v18722_v43 = vpop.f32.mrf.mxu1 }
0x31ce   :  { %v18604_v28 = vpop.f32.mrf.mxu0 }
0x31cf   :  { %v18605_v63 = vadd.f32 %v18604_v28, %v18484_v7 }
0x31d0   :  { %v18606_v1 = vpop.f32.mrf.mxu0 }
0x31d1   :  { %v18710_v30 = vadd.f32 %v18709_v20, %v18605_v63 }
0x31d3   :  { %v18613_v52 = vpop.f32.mrf.mxu0 }
0x31d4   :  { %v18614_v55 = vadd.f32 %v18613_v52, %v18491_v25 }
0x31d5   :  { %v18615_v31 = vpop.f32.mrf.mxu0 }
0x31d6   :  { %v18721_v61 = vadd.f32 %v18720_v50, %v18614_v55 }
0x31f1   :  { %v18951_v13 = vpop.f32.mrf.mxu1 }
0x31f3   :  { %v18953_v29 = vpop.f32.mrf.mxu1 }
0x31f5   :  { %v18958_v6 = vpop.f32.mrf.mxu1 }
0x31f7   :  { %v18960_v37 = vpop.f32.mrf.mxu1 }
0x31f8   :  { %v18852_v56 = vpop.f32.mrf.mxu0 }
0x31f9   :  { %v18853_v62 = vadd.f32 %v18852_v56, %v18710_v30 }
0x31fa   :  { %v18854_v38 = vpop.f32.mrf.mxu0 }
0x31fb   :  { %v18952_v54 = vadd.f32 %v18951_v13, %v18853_v62 }
0x31fc   :  { %v18859_v22 = vpop.f32.mrf.mxu0 }
0x31fd   :  { %v18966_v15 = vmul.f32 %v18965_v53, %v18952_v54  ;;  %v18860_v48 = vadd.f32 %v18859_v22, %v18721_v61 }
0x31fe   :  { %v18861_v8 = vpop.f32.mrf.mxu0 }
0x31ff   :  { %v18972_v23 = vadd.f32 %v18971_v60, %v18966_v15  ;;  %v18959_v12 = vadd.f32 %v18958_v6, %v18860_v48 }
0x3201   :  { %v18974_v26 = vmax.f32 %v18972_v23, 0.0  ;;  %v18967_v40 = vmul.f32 %v18965_v53, %v18959_v12 }
0x3203   :  { %v18973_v33 = vadd.f32 %v18971_v60, %v18967_v40  ;;  %18978 = vrot.lane.b32.xlu0 %v18974_v26, %s21093_s2 }
0x3205   :  { %v18975_v36 = vmax.f32 %v18973_v33, 0.0 }
0x3207   :  { %18980 = vrot.lane.b32.xlu1 %v18975_v36, %s21093_s2  ;;  %18986 = vrot.lane.b32.xlu0 %v18974_v26, %s21098_s18 }
0x320b   :  { %18988 = vrot.lane.b32.xlu1 %v18975_v36, %s21098_s18 }
0x3275   :  { %v18979_v34 = vpop.permute.xlu0 %18978 }
0x3276   :  { %v18984_v39 = vadd.f32 %v18979_v34, %v18974_v26 }
0x3279   :  { %v18981_v44 = vpop.permute.xlu1 %18980  ;;  %v18987_v19 = vpop.permute.xlu0 %18986 }
0x327a   :  { %v18992_v42 = vadd.f32 %v18987_v19, %v18984_v39  ;;  %v18985_v46 = vadd.f32 %v18981_v44, %v18975_v36 }
0x327c   :  { %v18994_v47 = vmul.f32 0.33333334, %v18992_v42 }
0x327d   :  { %v18989_v11 = vpop.permute.xlu1 %18988 }
0x327e   :  { %v18996_v27 = vadd.f32 %v18994_v47, %v22958_v35  ;;  %v18993_v57 = vadd.f32 %v18989_v11, %v18985_v46 }
0x3280   :  { %v18995_v16 = vmul.f32 0.33333334, %v18993_v57  ;;  %v18998_v4 = vsel %vm93_vm0, %v18996_v27, 0.0 }
0x3281   :  { %18999 = vadd.xlane.f32.xlu0 %v18998_v4 }
0x3282   :  { %v18997_v17 = vadd.f32 %v18995_v16, %v23614_v3 }
0x3284   :  { %v19001_v58 = vsel %vm93_vm0, %v18997_v17, 0.0 }
0x3285   :  { %19002 = vadd.xlane.f32.xlu1 %v19001_v58 }
0x330a   :  { %v19000_v49 = vpop.xlane.xlu0 %18999 }
0x330b   :  { %v19004_v51 = vmul.f32 0.03125, %v19000_v49 }
0x330d   :  { %v19006_v7 = vsub.f32 %v18996_v27, %v19004_v51 }
0x330e   :  { %v19003_v10 = vpop.xlane.xlu1 %19002 }
0x330f   :  { %v19005_v9 = vmul.f32 0.03125, %v19003_v10  ;;  %v19008_v35 = vmul.f32 %v19006_v7, %v19006_v7  ;;  %v19022_v21 = vmul.f32 %v19021_v41, %v19006_v7 }
0x3311   :  { %v19007_v59 = vsub.f32 %v18997_v17, %v19005_v9  ;;  %v19010_v25 = vsel %vm93_vm0, %v19008_v35, 0.0 }
0x3312   :  { %19011 = vadd.xlane.f32.xlu0 %v19010_v25 }
0x3313   :  { %v19023_v0 = vmul.f32 %v19021_v41, %v19007_v59  ;;  %v19009_v20 = vmul.f32 %v19007_v59, %v19007_v59 }
0x3315   :  { %v19013_v24 = vsel %vm93_vm0, %v19009_v20, 0.0 }
0x3316   :  { %19014 = vadd.xlane.f32.xlu0 %v19013_v24 }
0x332c   :  { %19045 = vrot.lane.b32.xlu0 %v19021_v41, %s21093_s2 }
0x339b   :  { %v19012_v5 = vpop.xlane.xlu0 %19011 }
0x339c   :  { %v19016_v50 = vmul.f32 0.032258064, %v19012_v5 }
0x339e   :  { %20943 = vrsqrt.f32 %v19016_v50  ;;  %vm19026_vm13 = vcmp.eq.f32.partialorder %v19016_v50, inf  ;;  %v19029_v31 = vand.u32 2147483648, %v19016_v50  ;;  %vm19028_vm14 = vcmp.eq.f32.partialorder %v19016_v50, 0.0 }
0x339f   :  { %v19015_v43 = vpop.xlane.xlu0 %19014 }
0x33a0   :  { %v19017_v28 = vmul.f32 0.032258064, %v19015_v43 }
0x33a2   :  { %20945 = vrsqrt.f32 %v19017_v28  ;;  %vm19033_vm15 = vcmp.eq.f32.partialorder %v19017_v28, inf  ;;  %v19036_v37 = vand.u32 2147483648, %v19017_v28  ;;  %vm19035_vm1 = vcmp.eq.f32.partialorder %v19017_v28, 0.0 }
0x33a3   :  { %v19046_v18 = vpop.permute.xlu0 %19045 }
0x33ab   :  { %v20944_v1 = vpop.eup %20943 }
0x33ac   :  { %v19025_v52 = vmul.f32 %v20944_v1, %v19016_v50 }
0x33ae   :  { %v19027_v13 = vsel %vm19026_vm13, %v19016_v50, %v19025_v52 }
0x33af   :  { %v20946_v63 = vpop.eup %20945  ;;  %v19030_v29 = vsel %vm19028_vm14, %v19029_v31, %v19027_v13 }
0x33b0   :  { %v19032_v6 = vmul.f32 %v20946_v63, %v19017_v28  ;;  %v19038_v55 = vadd.f32 1e-06, %v19030_v29 }
0x33b2   :  { %v19034_v30 = vsel %vm19033_vm15, %v19017_v28, %v19032_v6  ;;  %20947 = vrcp.f32 %v19038_v55 }
0x33b3   :  { %v19037_v56 = vsel %vm19035_vm1, %v19036_v37, %v19034_v30 }
0x33b4   :  { %v19039_v62 = vadd.f32 1e-06, %v19037_v56 }
0x33b6   :  { %20949 = vrcp.f32 %v19039_v62 }
0x33bf   :  { %v20948_v2 = vpop.eup %20947 }
0x33c0   :  { %v19041_v53 = vmul.f32 %v20948_v2, %v19022_v21 }
0x33c2   :  { %v19048_v38 = vadd.f32 %v19046_v18, %v19041_v53 }
0x33c3   :  { %v20950_v54 = vpop.eup %20949 }
0x33c4   :  { %v19043_v14 = vmul.f32 %v20950_v54, %v19023_v0  ;;  %19050 = vst.msk [vmem:[#allocation11] sm:$0xff] %vm93_vm0, %v19048_v38 }
0x33c6   :  { %v19049_v60 = vadd.f32 %v19046_v18, %v19043_v14 }
0x33c8   :  { %19051 = vst.msk [vmem:[#allocation11 + $0x8] sm:$0xff] %vm93_vm0, %v19049_v60 }
0x33c9   :  { %21069 = shalt.err (!%p21066_p1)
}
0x33ca   :  { %19063 = dma.vmem_to_hbm [thread:$0]  %s19058_s7, 256, %s23515_s5, [#allocation4], %s21088_s23, %s21088_s23, %s21089_s24  }
0x33cb   :  { %21084 = dma.done.wait [#allocation4], 256  }
0x33cc   :  { %21085 = vsyncadd [#allocation4], 4294967040 }
0x33cd   :  { %19067 = vsyncpa [#allocation3], 1 }
0x33ce   :  { %19068 = vsyncpa [#allocation6], 1 }
0x33cf   :  { %19069 = vsyncpa [#allocation9], 1 }
0x33d0   :  { %19070 = vsyncpa [#allocation4], 1 }

</bundles_post_ra>
